<compile_context>
chip_gen: v5e
topology: v5e:2x2
jax: 0.10.0
libtpu: 0.0.40
codegen_flags: <defaults>
</compile_context>

<pallas_src>
import jax
import jax.numpy as jnp
from jax.experimental import pallas as pl
from jax.experimental.pallas import tpu as pltpu

L_IN = 101                  # sequence length (fixed by BatchNorm1d(101) / conv widths)
KW = 7                      # conv kernel width
L_CONV = L_IN - KW + 1      # 95
POOL_K = 5
L_POOL = L_CONV // POOL_K   # 19
C_OUT = 102                 # logical conv out-channels (PyTorch)
C_PAD = 128                 # lane-padded conv out-channels
H13, H14 = 512, 264
FLAT = C_OUT * L_POOL       # 1938 (PyTorch fc13 fan-in, channel-major view order)


# ----------------------------------------------------------------------------
# Fused kernel: one grid step processes bb samples end-to-end.
# ----------------------------------------------------------------------------
def _fused_kernel(dpcp_ref, ncp_ref, kk_ref, pair_ref,
                  bns_ref, bnb_ref, w1_ref, b1_ref, wa_ref, ba_ref,
                  wc11_ref, bc11_ref, wc12_ref, bc12_ref, wc13_ref, bc13_ref,
                  pool_ref,
                  w13_ref, b13_ref, w14_ref, b14_ref, w15_ref, b15_ref,
                  w2_ref, b2_ref, out_ref, x0s_ref):
    rows = dpcp_ref.shape[1]            # bb * 101 (stacked samples)
    bb = out_ref.shape[1]               # samples per grid step
    lc = rows - (KW - 1)                # valid shifted-matmul rows
    bf16 = jnp.bfloat16

    # --- branch-0 mix: BN(DPCP); relu(linear1(NCP)); sigmoid attention blend ---
    dpcp_bn = dpcp_ref[0] * bns_ref[...] + bnb_ref[...]               # (rows, 11)
    h0 = jnp.maximum(
        jnp.dot(ncp_ref[0].astype(bf16), w1_ref[...],
                preferred_element_type=jnp.float32) + b1_ref[...], 0.0)
    # N=1 attention as a VPU multiply + lane reduce (no MXU push).
    aw = jax.nn.sigmoid(jnp.sum(h0 * wa_ref[...], axis=-1, keepdims=True)
                        + ba_ref[...])
    x0s_ref[...] = aw * h0 + (1.0 - aw) * dpcp_bn                     # f32 scratch

    # --- three 7-tap convolutions as shifted matmuls (bf16 MXU, f32 acc) ---
    def conv(load_tap, w_ref):
        acc = None
        for k in range(KW):
            t = jnp.dot(load_tap(k).astype(bf16), w_ref[k],
                        preferred_element_type=jnp.float32)
            acc = t if acc is None else acc + t
        return acc                                                     # (lc, 128)

    acc0 = conv(lambda k: x0s_ref[k:k + lc, :], wc11_ref)              # branch 0
    acc1 = conv(lambda k: kk_ref[0, k:k + lc, :], wc12_ref)            # branch 1 (Kmer|knf)
    acc2 = conv(lambda k: pair_ref[0, k:k + lc, :], wc13_ref)          # branch 2

    # pooling is linear, so p0 + p1 == pool(relu0 + relu1): pool once.
    y01 = (jnp.maximum(acc0 + bc11_ref[...], 0.0)
           + jnp.maximum(acc1 + bc12_ref[...], 0.0)).astype(bf16)
    y2 = jnp.maximum(acc2 + bc13_ref[...], 0.0).astype(bf16)

    # AvgPool1d(5) (and discard of cross-sample rows) as lane-dense matmuls.
    poolm = pool_ref[...]                                              # (19*bb, lc) bf16
    x01 = jnp.dot(poolm, y01, preferred_element_type=jnp.float32)      # p0 + p1
    p2 = jnp.dot(poolm, y2, preferred_element_type=jnp.float32)
    mix = 0.9 * x01 + 0.1 * (p2 * jax.nn.sigmoid(p2))                  # (19*bb, 128)

    # --- MLP head; fc13 as a sum over the 19 pooled positions (no reshape) ---
    acc = None
    for t in range(L_POOL):
        c = jnp.dot(mix[t * bb:(t + 1) * bb, :].astype(bf16), w13_ref[t],
                    preferred_element_type=jnp.float32)
        acc = c if acc is None else acc + c
    h = jnp.maximum(acc + b13_ref[...], 0.0)                           # (bb, 512)
    h = jnp.maximum(jnp.dot(h.astype(bf16), w14_ref[...],
                            preferred_element_type=jnp.float32) + b14_ref[...], 0.0)
    h = jnp.maximum(jnp.dot(h.astype(bf16), w15_ref[...],
                            preferred_element_type=jnp.float32) + b15_ref[...], 0.0)
    logits = jnp.dot(h.astype(bf16), w2_ref[...],
                     preferred_element_type=jnp.float32) + b2_ref[...]  # (bb, 2)

    # Exact softmax (previous approx reciprocal broke sum-to-1).
    z = logits - jnp.max(logits, axis=1, keepdims=True)
    e = jnp.exp(z)
    out_ref[0] = e / jnp.sum(e, axis=1, keepdims=True)


# ----------------------------------------------------------------------------
# Host-side helpers
# ----------------------------------------------------------------------------
def _block_batch(B, bb_max=16):
    # Samples per grid step: cap at 16, keep >=2 (and even) grid steps so the
    # two v7x TensorCores stay balanced; larger blocks amortize fc13/fc14
    # weight streaming on single-TC v5e/v6e.
    if B <= 1:
        return 1
    nb = max(2, -(-B // bb_max))
    if nb % 2:
        nb += 1
    return -(-B // nb)


def _pool_matrix(bb):
    # Time-major pooling matrix P: (L_POOL*bb, bb*101-6).
    # P[p*bb + b, b*101 + 5p + j] = 1/5 for j in 0..4 ; zero elsewhere
    # (also zeroes the cross-sample garbage rows t >= 95 of the stacked conv).
    lc = bb * L_IN - (KW - 1)
    r = jnp.arange(L_POOL * bb)[:, None]
    c = jnp.arange(lc)[None, :]
    b_c = c // L_IN
    t_c = c % L_IN
    hit = (b_c == (r % bb)) & ((t_c // POOL_K) == (r // bb)) & (t_c < L_CONV)
    return (hit.astype(jnp.float32) / float(POOL_K)).astype(jnp.bfloat16)


def init_params(key):
    ks = jax.random.split(key, 18)
    n = lambda k, shape, s=0.05: jax.random.normal(k, shape, jnp.float32) * s
    bf = lambda x: x.astype(jnp.bfloat16)

    def pad_cout(w):  # zero-pad last dim 102 -> 128 (lane-dense MXU output)
        return jnp.pad(w, [(0, 0)] * (w.ndim - 1) + [(0, C_PAD - C_OUT)])

    # Conv weights as (kw, cin, 102), lane-padded to 128.  conv12 is one merged
    # (kw, 105, 128) weight (Kmer 64 + knf 41) - no split-K.
    wc11 = pad_cout(n(ks[4], (KW, 11, C_OUT)))
    wc12 = pad_cout(n(ks[6], (KW, 105, C_OUT)))
    wc13 = pad_cout(n(ks[8], (KW, L_IN, C_OUT)))

    # fc13 generated in PyTorch layout (fan-in index = c*19 + t), then permuted
    # to (19, channel, 512) and channel-padded so the kernel consumes the
    # time-major pooled layout directly (no transpose / flatten in the forward).
    w13_pt = n(ks[10], (FLAT, H13))
    w13r = jnp.transpose(w13_pt.reshape(C_OUT, L_POOL, H13), (1, 0, 2))
    w13r = jnp.pad(w13r, ((0, 0), (0, C_PAD - C_OUT), (0, 0)))

    w15p = jnp.pad(n(ks[14], (H14, C_OUT)), ((0, 0), (0, C_PAD - C_OUT)))
    b15p = jnp.pad(n(ks[16], (1, C_OUT)), ((0, 0), (0, C_PAD - C_OUT)))
    w2p = jnp.pad(n(ks[15], (C_OUT, 2)), ((0, C_PAD - C_OUT), (0, 0)))

    params = {
        # mix layers: w1 feeds a bf16 dot; wa/ba stay f32 (VPU path)
        "w1": bf(n(ks[0], (3, 11))), "b1": n(ks[1], (1, 11)),
        "wa": n(ks[2], (1, 11)), "ba": n(ks[3], (1, 1)),
        # all MXU weights stored bf16 (halves VMEM residency / streaming)
        "wc11": bf(wc11), "bc11": pad_cout(n(ks[5], (1, C_OUT))),
        "wc12": bf(wc12), "bc12": pad_cout(n(ks[7], (1, C_OUT))),
        "wc13": bf(wc13), "bc13": pad_cout(n(ks[9], (1, C_OUT))),
        "w13r": bf(w13r), "b13": n(ks[11], (1, H13)),
        "w14": bf(n(ks[12], (H13, H14))), "b14": n(ks[13], (1, H14)),
        "w15p": bf(w15p), "b15p": b15p,
        "w2p": bf(w2p), "b2": n(ks[17], (1, 2)),
        # BatchNorm1d(101), eval mode with default stats (gamma=1, beta=0, mean=0, var=1).
        "bn_scale": jnp.ones((L_IN, 1), jnp.float32) / jnp.sqrt(1.0 + 1e-5),
        "bn_shift": jnp.zeros((L_IN, 1), jnp.float32),
    }
    return params


@jax.jit
def mstcrb_forward(params, dpcp, ncp, kmer, knf, pair):
    B = dpcp.shape[0]
    bb = _block_batch(B)
    nb = -(-B // bb)
    b_pad = nb * bb
    rows = bb * L_IN
    lc = rows - (KW - 1)

    # Branch-1 input as one (.., 105) operand (Encoder = identity).
    kk = jnp.concatenate([kmer, knf], axis=2)

    def prep(x):
        if b_pad != B:
            x = jnp.pad(x, ((0, b_pad - B), (0, 0), (0, 0)))
        # (b_pad, 101, cin) -> (nb, bb*101, cin): contiguous, metadata-only reshape.
        return x.reshape(nb, rows, x.shape[-1])

    dpcp2, ncp2, kk2, pair2 = map(prep, (dpcp, ncp, kk, pair))

    bns = jnp.tile(params["bn_scale"], (bb, 1))      # (bb*101, 1)
    bnb = jnp.tile(params["bn_shift"], (bb, 1))
    pool = _pool_matrix(bb)                          # (19*bb, lc) bf16

    def data_spec(cin):
        return pl.BlockSpec((1, rows, cin), lambda i: (i, 0, 0))

    def const_spec(shape):
        nd = len(shape)
        return pl.BlockSpec(shape, lambda i, _nd=nd: (0,) * _nd)

    out = pl.pallas_call(
        _fused_kernel,
        out_shape=jax.ShapeDtypeStruct((nb, bb, 2), jnp.float32),
        grid=(nb,),
        in_specs=[
            data_spec(11), data_spec(3), data_spec(105), data_spec(L_IN),
            const_spec((rows, 1)), const_spec((rows, 1)),
            const_spec((3, 11)), const_spec((1, 11)),
            const_spec((1, 11)), const_spec((1, 1)),
            const_spec((KW, 11, C_PAD)), const_spec((1, C_PAD)),
            const_spec((KW, 105, C_PAD)), const_spec((1, C_PAD)),
            const_spec((KW, L_IN, C_PAD)), const_spec((1, C_PAD)),
            const_spec((L_POOL * bb, lc)),
            const_spec((L_POOL, C_PAD, H13)), const_spec((1, H13)),
            const_spec((H13, H14)), const_spec((1, H14)),
            const_spec((H14, C_PAD)), const_spec((1, C_PAD)),
            const_spec((C_PAD, 2)), const_spec((1, 2)),
        ],
        out_specs=pl.BlockSpec((1, bb, 2), lambda i: (i, 0, 0)),
        scratch_shapes=[pltpu.VMEM((rows, 11), jnp.float32)],   # branch-0 mix
        compiler_params=pltpu.CompilerParams(
            dimension_semantics=("parallel",),
            vmem_limit_bytes=32 * 1024 * 1024),
    )(dpcp2, ncp2, kk2, pair2,
      bns, bnb,
      params["w1"], params["b1"], params["wa"], params["ba"],
      params["wc11"], params["bc11"],
      params["wc12"], params["bc12"],
      params["wc13"], params["bc13"],
      pool,
      params["w13r"], params["b13"],
      params["w14"], params["b14"],
      params["w15p"], params["b15p"],
      params["w2p"], params["b2"])

    return out.reshape(b_pad, 2)[:B]


# ----------------------------------------------------------------------------
# Pure-JAX f32 reference (same math, same bf16-rounded weights) for validation.
# ----------------------------------------------------------------------------
def _reference_forward(params, dpcp, ncp, kmer, knf, pair):
    f32 = lambda w: w.astype(jnp.float32)
    bn = dpcp * params["bn_scale"] + params["bn_shift"]
    h0 = jax.nn.relu(ncp @ f32(params["w1"]) + params["b1"])
    aw = jax.nn.sigmoid(jnp.sum(h0 * params["wa"], -1, keepdims=True) + params["ba"])
    x0 = aw * h0 + (1.0 - aw) * bn
    x1 = jnp.concatenate([kmer, knf], axis=2)

    def conv_pool(x, w, b):
        w = f32(w)
        y = sum(x[:, k:k + L_CONV, :] @ w[k] for k in range(KW)) + b
        y = jax.nn.relu(y)
        return y.reshape(x.shape[0], L_POOL, POOL_K, C_PAD).mean(axis=2)

    p0 = conv_pool(x0, params["wc11"], params["bc11"])
    p1 = conv_pool(x1, params["wc12"], params["bc12"])
    p2 = conv_pool(pair, params["wc13"], params["bc13"])
    mix = 0.9 * (p0 + p1) + 0.1 * (p2 * jax.nn.sigmoid(p2))
    h = jax.nn.relu(jnp.einsum("btc,tch->bh", mix, f32(params["w13r"])) + params["b13"])
    h = jax.nn.relu(h @ f32(params["w14"]) + params["b14"])
    h = jax.nn.relu(h @ f32(params["w15p"]) + params["b15p"])
    logits = h @ f32(params["w2p"]) + params["b2"]
    return jax.nn.softmax(logits, axis=1)


if __name__ == "__main__":
    key = jax.random.PRNGKey(0)
    k_param, k_d, k_n, k_k, k_f, k_p = jax.random.split(key, 6)

    params = init_params(k_param)

    B = 2
    dpcp = jax.random.normal(k_d, (B, L_IN, 11), jnp.float32)
    ncp = jax.random.normal(k_n, (B, L_IN, 3), jnp.float32)
    kmer = jax.random.normal(k_k, (B, L_IN, 64), jnp.float32)
    knf = jax.random.normal(k_f, (B, L_IN, 41), jnp.float32)   # 64 + 41 = 105
    pair = jax.random.normal(k_p, (B, L_IN, L_IN), jnp.float32)

    out = mstcrb_forward(params, dpcp, ncp, kmer, knf, pair)
    out = jax.block_until_ready(out)

    ref = _reference_forward(params, dpcp, ncp, kmer, knf, pair)

    assert out.shape == (B, 2)
    assert bool(jnp.all(jnp.isfinite(out)))
    assert bool(jnp.allclose(jnp.sum(out, axis=1), 1.0, atol=1e-3))
    assert bool(jnp.allclose(out, ref, atol=5e-2))   # bf16-matmul drift budget
    print("KERNEL_OK")
</pallas_src>

<mosaic_0001>
module attributes {stable_mosaic.version = 11 : i64} {
  func.func @_fused_kernel(%arg0: i32, %arg1: memref<1x101x11xf32, #tpu.memory_space<vmem>>, %arg2: memref<1x101x3xf32, #tpu.memory_space<vmem>>, %arg3: memref<1x101x105xf32, #tpu.memory_space<vmem>>, %arg4: memref<1x101x101xf32, #tpu.memory_space<vmem>>, %arg5: memref<101x1xf32, #tpu.memory_space<vmem>>, %arg6: memref<101x1xf32, #tpu.memory_space<vmem>>, %arg7: memref<3x11xbf16, #tpu.memory_space<vmem>>, %arg8: memref<1x11xf32, #tpu.memory_space<vmem>>, %arg9: memref<1x11xf32, #tpu.memory_space<vmem>>, %arg10: memref<1x1xf32, #tpu.memory_space<vmem>>, %arg11: memref<7x11x128xbf16, #tpu.memory_space<vmem>>, %arg12: memref<1x128xf32, #tpu.memory_space<vmem>>, %arg13: memref<7x105x128xbf16, #tpu.memory_space<vmem>>, %arg14: memref<1x128xf32, #tpu.memory_space<vmem>>, %arg15: memref<7x101x128xbf16, #tpu.memory_space<vmem>>, %arg16: memref<1x128xf32, #tpu.memory_space<vmem>>, %arg17: memref<19x95xbf16, #tpu.memory_space<vmem>>, %arg18: memref<19x128x512xbf16, #tpu.memory_space<vmem>>, %arg19: memref<1x512xf32, #tpu.memory_space<vmem>>, %arg20: memref<512x264xbf16, #tpu.memory_space<vmem>>, %arg21: memref<1x264xf32, #tpu.memory_space<vmem>>, %arg22: memref<264x128xbf16, #tpu.memory_space<vmem>>, %arg23: memref<1x128xf32, #tpu.memory_space<vmem>>, %arg24: memref<128x2xbf16, #tpu.memory_space<vmem>>, %arg25: memref<1x2xf32, #tpu.memory_space<vmem>>, %arg26: memref<1x1x2xf32, #tpu.memory_space<vmem>>, %arg27: memref<101x11xf32, #tpu.memory_space<vmem>>) attributes {dimension_semantics = [#tpu.dimension_semantics<parallel>], iteration_bounds = array<i64: 2>, scalar_prefetch = 0 : i64, scratch_operands = 1 : i64, tpu.core_type = #tpu.core_type<tc>, window_params = [{transform_indices = @transform_0, window_bounds = array<i64: 1, 101, 11>}, {transform_indices = @transform_1, window_bounds = array<i64: 1, 101, 3>}, {transform_indices = @transform_2, window_bounds = array<i64: 1, 101, 105>}, {transform_indices = @transform_3, window_bounds = array<i64: 1, 101, 101>}, {pipeline_mode = #tpu.pipeline_mode<synchronous>, transform_indices = @transform_4, window_bounds = array<i64: 101, 1>}, {pipeline_mode = #tpu.pipeline_mode<synchronous>, transform_indices = @transform_5, window_bounds = array<i64: 101, 1>}, {pipeline_mode = #tpu.pipeline_mode<synchronous>, transform_indices = @transform_6, window_bounds = array<i64: 3, 11>}, {pipeline_mode = #tpu.pipeline_mode<synchronous>, transform_indices = @transform_7, window_bounds = array<i64: 1, 11>}, {pipeline_mode = #tpu.pipeline_mode<synchronous>, transform_indices = @transform_8, window_bounds = array<i64: 1, 11>}, {pipeline_mode = #tpu.pipeline_mode<synchronous>, transform_indices = @transform_9, window_bounds = array<i64: 1, 1>}, {pipeline_mode = #tpu.pipeline_mode<synchronous>, transform_indices = @transform_10, window_bounds = array<i64: 7, 11, 128>}, {pipeline_mode = #tpu.pipeline_mode<synchronous>, transform_indices = @transform_11, window_bounds = array<i64: 1, 128>}, {pipeline_mode = #tpu.pipeline_mode<synchronous>, transform_indices = @transform_12, window_bounds = array<i64: 7, 105, 128>}, {pipeline_mode = #tpu.pipeline_mode<synchronous>, transform_indices = @transform_13, window_bounds = array<i64: 1, 128>}, {pipeline_mode = #tpu.pipeline_mode<synchronous>, transform_indices = @transform_14, window_bounds = array<i64: 7, 101, 128>}, {pipeline_mode = #tpu.pipeline_mode<synchronous>, transform_indices = @transform_15, window_bounds = array<i64: 1, 128>}, {pipeline_mode = #tpu.pipeline_mode<synchronous>, transform_indices = @transform_16, window_bounds = array<i64: 19, 95>}, {pipeline_mode = #tpu.pipeline_mode<synchronous>, transform_indices = @transform_17, window_bounds = array<i64: 19, 128, 512>}, {pipeline_mode = #tpu.pipeline_mode<synchronous>, transform_indices = @transform_18, window_bounds = array<i64: 1, 512>}, {pipeline_mode = #tpu.pipeline_mode<synchronous>, transform_indices = @transform_19, window_bounds = array<i64: 512, 264>}, {pipeline_mode = #tpu.pipeline_mode<synchronous>, transform_indices = @transform_20, window_bounds = array<i64: 1, 264>}, {pipeline_mode = #tpu.pipeline_mode<synchronous>, transform_indices = @transform_21, window_bounds = array<i64: 264, 128>}, {pipeline_mode = #tpu.pipeline_mode<synchronous>, transform_indices = @transform_22, window_bounds = array<i64: 1, 128>}, {pipeline_mode = #tpu.pipeline_mode<synchronous>, transform_indices = @transform_23, window_bounds = array<i64: 128, 2>}, {pipeline_mode = #tpu.pipeline_mode<synchronous>, transform_indices = @transform_24, window_bounds = array<i64: 1, 2>}, {transform_indices = @transform_25, window_bounds = array<i64: 1, 1, 2>}]} {
    %c0 = arith.constant 0 : index
    %c0_0 = arith.constant 0 : index
    %c0_1 = arith.constant 0 : index
    %0 = vector.load %arg1[%c0, %c0_0, %c0_1] : memref<1x101x11xf32, #tpu.memory_space<vmem>>, vector<1x101x11xf32>
    %1 = vector.shape_cast %0 : vector<1x101x11xf32> to vector<101x11xf32>
    %c0_2 = arith.constant 0 : index
    %c0_3 = arith.constant 0 : index
    %2 = vector.load %arg5[%c0_2, %c0_3] : memref<101x1xf32, #tpu.memory_space<vmem>>, vector<101x1xf32>
    %3 = vector.broadcast %2 : vector<101x1xf32> to vector<101x11xf32>
    %4 = arith.mulf %1, %3 : vector<101x11xf32>
    %c0_4 = arith.constant 0 : index
    %c0_5 = arith.constant 0 : index
    %5 = vector.load %arg6[%c0_4, %c0_5] : memref<101x1xf32, #tpu.memory_space<vmem>>, vector<101x1xf32>
    %6 = vector.broadcast %5 : vector<101x1xf32> to vector<101x11xf32>
    %7 = arith.addf %4, %6 : vector<101x11xf32>
    %c0_6 = arith.constant 0 : index
    %c0_7 = arith.constant 0 : index
    %c0_8 = arith.constant 0 : index
    %8 = vector.load %arg2[%c0_6, %c0_7, %c0_8] : memref<1x101x3xf32, #tpu.memory_space<vmem>>, vector<1x101x3xf32>
    %9 = vector.shape_cast %8 : vector<1x101x3xf32> to vector<101x3xf32>
    %10 = arith.truncf %9 : vector<101x3xf32> to vector<101x3xbf16>
    %c0_9 = arith.constant 0 : index
    %c0_10 = arith.constant 0 : index
    %11 = vector.load %arg7[%c0_9, %c0_10] : memref<3x11xbf16, #tpu.memory_space<vmem>>, vector<3x11xbf16>
    %cst = arith.constant dense<0.000000e+00> : vector<101x11xf32>
    %12 = tpu.matmul %10, %11, %cst {dimension_numbers = #tpu.dot_dimension_numbers<[1], [0], [0], [1], [0, 0, 1, 1], [], []>} : vector<101x3xbf16>, vector<3x11xbf16>, vector<101x11xf32> -> vector<101x11xf32>
    %c0_11 = arith.constant 0 : index
    %c0_12 = arith.constant 0 : index
    %13 = vector.load %arg8[%c0_11, %c0_12] : memref<1x11xf32, #tpu.memory_space<vmem>>, vector<1x11xf32>
    %14 = vector.broadcast %13 : vector<1x11xf32> to vector<101x11xf32>
    %15 = arith.addf %12, %14 : vector<101x11xf32>
    %cst_13 = arith.constant 0.000000e+00 : f32
    %16 = vector.broadcast %cst_13 : f32 to vector<101x11xf32>
    %17 = arith.maximumf %15, %16 : vector<101x11xf32>
    %c0_14 = arith.constant 0 : index
    %c0_15 = arith.constant 0 : index
    %18 = vector.load %arg9[%c0_14, %c0_15] : memref<1x11xf32, #tpu.memory_space<vmem>>, vector<1x11xf32>
    %19 = vector.broadcast %18 : vector<1x11xf32> to vector<101x11xf32>
    %20 = arith.mulf %17, %19 : vector<101x11xf32>
    %cst_16 = arith.constant dense<0.000000e+00> : vector<101xf32>
    %21 = vector.multi_reduction <add>, %20, %cst_16 [1] : vector<101x11xf32> to vector<101xf32>
    %22 = vector.shape_cast %21 : vector<101xf32> to vector<101x1xf32>
    %c0_17 = arith.constant 0 : index
    %c0_18 = arith.constant 0 : index
    %23 = vector.load %arg10[%c0_17, %c0_18] : memref<1x1xf32, #tpu.memory_space<vmem>>, vector<1x1xf32>
    %24 = vector.broadcast %23 : vector<1x1xf32> to vector<101x1xf32>
    %25 = arith.addf %22, %24 : vector<101x1xf32>
    %26 = arith.negf %25 : vector<101x1xf32>
    %27 = math.exp %26 : vector<101x1xf32>
    %cst_19 = arith.constant 1.000000e+00 : f32
    %28 = vector.broadcast %cst_19 : f32 to vector<101x1xf32>
    %29 = arith.addf %28, %27 : vector<101x1xf32>
    %30 = arith.divf %28, %29 : vector<101x1xf32>
    %31 = vector.broadcast %30 : vector<101x1xf32> to vector<101x11xf32>
    %32 = arith.mulf %31, %17 : vector<101x11xf32>
    %cst_20 = arith.constant 1.000000e+00 : f32
    %33 = vector.broadcast %cst_20 : f32 to vector<101x1xf32>
    %34 = arith.subf %33, %30 : vector<101x1xf32>
    %35 = vector.broadcast %34 : vector<101x1xf32> to vector<101x11xf32>
    %36 = arith.mulf %35, %7 : vector<101x11xf32>
    %37 = arith.addf %32, %36 : vector<101x11xf32>
    %c0_21 = arith.constant 0 : index
    %c0_22 = arith.constant 0 : index
    %38 = vector.load %arg27[%c0_21, %c0_22] : memref<101x11xf32, #tpu.memory_space<vmem>>, vector<101x11xf32>
    tpu.vector_store %arg27[%c0_21, %c0_22], %37 {strides = array<i32>} : memref<101x11xf32, #tpu.memory_space<vmem>>, vector<101x11xf32>,
    %c0_23 = arith.constant 0 : index
    %c0_24 = arith.constant 0 : index
    %39 = vector.load %arg27[%c0_23, %c0_24] : memref<101x11xf32, #tpu.memory_space<vmem>>, vector<95x11xf32>
    %40 = arith.truncf %39 : vector<95x11xf32> to vector<95x11xbf16>
    %c0_25 = arith.constant 0 : index
    %c0_26 = arith.constant 0 : index
    %c0_27 = arith.constant 0 : index
    %41 = vector.load %arg11[%c0_25, %c0_26, %c0_27] : memref<7x11x128xbf16, #tpu.memory_space<vmem>>, vector<1x11x128xbf16>
    %42 = vector.shape_cast %41 : vector<1x11x128xbf16> to vector<11x128xbf16>
    %cst_28 = arith.constant dense<0.000000e+00> : vector<95x128xf32>
    %43 = tpu.matmul %40, %42, %cst_28 {dimension_numbers = #tpu.dot_dimension_numbers<[1], [0], [0], [1], [0, 0, 1, 1], [], []>} : vector<95x11xbf16>, vector<11x128xbf16>, vector<95x128xf32> -> vector<95x128xf32>
    %c1 = arith.constant 1 : index
    %c0_29 = arith.constant 0 : index
    %44 = vector.load %arg27[%c1, %c0_29] : memref<101x11xf32, #tpu.memory_space<vmem>>, vector<95x11xf32>
    %45 = arith.truncf %44 : vector<95x11xf32> to vector<95x11xbf16>
    %c1_30 = arith.constant 1 : index
    %c0_31 = arith.constant 0 : index
    %c0_32 = arith.constant 0 : index
    %46 = vector.load %arg11[%c1_30, %c0_31, %c0_32] : memref<7x11x128xbf16, #tpu.memory_space<vmem>>, vector<1x11x128xbf16>
    %47 = vector.shape_cast %46 : vector<1x11x128xbf16> to vector<11x128xbf16>
    %cst_33 = arith.constant dense<0.000000e+00> : vector<95x128xf32>
    %48 = tpu.matmul %45, %47, %cst_33 {dimension_numbers = #tpu.dot_dimension_numbers<[1], [0], [0], [1], [0, 0, 1, 1], [], []>} : vector<95x11xbf16>, vector<11x128xbf16>, vector<95x128xf32> -> vector<95x128xf32>
    %49 = arith.addf %43, %48 : vector<95x128xf32>
    %c2 = arith.constant 2 : index
    %c0_34 = arith.constant 0 : index
    %50 = vector.load %arg27[%c2, %c0_34] : memref<101x11xf32, #tpu.memory_space<vmem>>, vector<95x11xf32>
    %51 = arith.truncf %50 : vector<95x11xf32> to vector<95x11xbf16>
    %c2_35 = arith.constant 2 : index
    %c0_36 = arith.constant 0 : index
    %c0_37 = arith.constant 0 : index
    %52 = vector.load %arg11[%c2_35, %c0_36, %c0_37] : memref<7x11x128xbf16, #tpu.memory_space<vmem>>, vector<1x11x128xbf16>
    %53 = vector.shape_cast %52 : vector<1x11x128xbf16> to vector<11x128xbf16>
    %cst_38 = arith.constant dense<0.000000e+00> : vector<95x128xf32>
    %54 = tpu.matmul %51, %53, %cst_38 {dimension_numbers = #tpu.dot_dimension_numbers<[1], [0], [0], [1], [0, 0, 1, 1], [], []>} : vector<95x11xbf16>, vector<11x128xbf16>, vector<95x128xf32> -> vector<95x128xf32>
    %55 = arith.addf %49, %54 : vector<95x128xf32>
    %c3 = arith.constant 3 : index
    %c0_39 = arith.constant 0 : index
    %56 = vector.load %arg27[%c3, %c0_39] : memref<101x11xf32, #tpu.memory_space<vmem>>, vector<95x11xf32>
    %57 = arith.truncf %56 : vector<95x11xf32> to vector<95x11xbf16>
    %c3_40 = arith.constant 3 : index
    %c0_41 = arith.constant 0 : index
    %c0_42 = arith.constant 0 : index
    %58 = vector.load %arg11[%c3_40, %c0_41, %c0_42] : memref<7x11x128xbf16, #tpu.memory_space<vmem>>, vector<1x11x128xbf16>
    %59 = vector.shape_cast %58 : vector<1x11x128xbf16> to vector<11x128xbf16>
    %cst_43 = arith.constant dense<0.000000e+00> : vector<95x128xf32>
    %60 = tpu.matmul %57, %59, %cst_43 {dimension_numbers = #tpu.dot_dimension_numbers<[1], [0], [0], [1], [0, 0, 1, 1], [], []>} : vector<95x11xbf16>, vector<11x128xbf16>, vector<95x128xf32> -> vector<95x128xf32>
    %61 = arith.addf %55, %60 : vector<95x128xf32>
    %c4 = arith.constant 4 : index
    %c0_44 = arith.constant 0 : index
    %62 = vector.load %arg27[%c4, %c0_44] : memref<101x11xf32, #tpu.memory_space<vmem>>, vector<95x11xf32>
    %63 = arith.truncf %62 : vector<95x11xf32> to vector<95x11xbf16>
    %c4_45 = arith.constant 4 : index
    %c0_46 = arith.constant 0 : index
    %c0_47 = arith.constant 0 : index
    %64 = vector.load %arg11[%c4_45, %c0_46, %c0_47] : memref<7x11x128xbf16, #tpu.memory_space<vmem>>, vector<1x11x128xbf16>
    %65 = vector.shape_cast %64 : vector<1x11x128xbf16> to vector<11x128xbf16>
    %cst_48 = arith.constant dense<0.000000e+00> : vector<95x128xf32>
    %66 = tpu.matmul %63, %65, %cst_48 {dimension_numbers = #tpu.dot_dimension_numbers<[1], [0], [0], [1], [0, 0, 1, 1], [], []>} : vector<95x11xbf16>, vector<11x128xbf16>, vector<95x128xf32> -> vector<95x128xf32>
    %67 = arith.addf %61, %66 : vector<95x128xf32>
    %c5 = arith.constant 5 : index
    %c0_49 = arith.constant 0 : index
    %68 = vector.load %arg27[%c5, %c0_49] : memref<101x11xf32, #tpu.memory_space<vmem>>, vector<95x11xf32>
    %69 = arith.truncf %68 : vector<95x11xf32> to vector<95x11xbf16>
    %c5_50 = arith.constant 5 : index
    %c0_51 = arith.constant 0 : index
    %c0_52 = arith.constant 0 : index
    %70 = vector.load %arg11[%c5_50, %c0_51, %c0_52] : memref<7x11x128xbf16, #tpu.memory_space<vmem>>, vector<1x11x128xbf16>
    %71 = vector.shape_cast %70 : vector<1x11x128xbf16> to vector<11x128xbf16>
    %cst_53 = arith.constant dense<0.000000e+00> : vector<95x128xf32>
    %72 = tpu.matmul %69, %71, %cst_53 {dimension_numbers = #tpu.dot_dimension_numbers<[1], [0], [0], [1], [0, 0, 1, 1], [], []>} : vector<95x11xbf16>, vector<11x128xbf16>, vector<95x128xf32> -> vector<95x128xf32>
    %73 = arith.addf %67, %72 : vector<95x128xf32>
    %c6 = arith.constant 6 : index
    %c0_54 = arith.constant 0 : index
    %74 = vector.load %arg27[%c6, %c0_54] : memref<101x11xf32, #tpu.memory_space<vmem>>, vector<95x11xf32>
    %75 = arith.truncf %74 : vector<95x11xf32> to vector<95x11xbf16>
    %c6_55 = arith.constant 6 : index
    %c0_56 = arith.constant 0 : index
    %c0_57 = arith.constant 0 : index
    %76 = vector.load %arg11[%c6_55, %c0_56, %c0_57] : memref<7x11x128xbf16, #tpu.memory_space<vmem>>, vector<1x11x128xbf16>
    %77 = vector.shape_cast %76 : vector<1x11x128xbf16> to vector<11x128xbf16>
    %cst_58 = arith.constant dense<0.000000e+00> : vector<95x128xf32>
    %78 = tpu.matmul %75, %77, %cst_58 {dimension_numbers = #tpu.dot_dimension_numbers<[1], [0], [0], [1], [0, 0, 1, 1], [], []>} : vector<95x11xbf16>, vector<11x128xbf16>, vector<95x128xf32> -> vector<95x128xf32>
    %79 = arith.addf %73, %78 : vector<95x128xf32>
    %c0_59 = arith.constant 0 : index
    %c0_60 = arith.constant 0 : index
    %c0_61 = arith.constant 0 : index
    %80 = vector.load %arg3[%c0_59, %c0_60, %c0_61] : memref<1x101x105xf32, #tpu.memory_space<vmem>>, vector<1x95x105xf32>
    %81 = vector.shape_cast %80 : vector<1x95x105xf32> to vector<95x105xf32>
    %82 = arith.truncf %81 : vector<95x105xf32> to vector<95x105xbf16>
    %c0_62 = arith.constant 0 : index
    %c0_63 = arith.constant 0 : index
    %c0_64 = arith.constant 0 : index
    %83 = vector.load %arg13[%c0_62, %c0_63, %c0_64] : memref<7x105x128xbf16, #tpu.memory_space<vmem>>, vector<1x105x128xbf16>
    %84 = vector.shape_cast %83 : vector<1x105x128xbf16> to vector<105x128xbf16>
    %cst_65 = arith.constant dense<0.000000e+00> : vector<95x128xf32>
    %85 = tpu.matmul %82, %84, %cst_65 {dimension_numbers = #tpu.dot_dimension_numbers<[1], [0], [0], [1], [0, 0, 1, 1], [], []>} : vector<95x105xbf16>, vector<105x128xbf16>, vector<95x128xf32> -> vector<95x128xf32>
    %c0_66 = arith.constant 0 : index
    %c1_67 = arith.constant 1 : index
    %c0_68 = arith.constant 0 : index
    %86 = vector.load %arg3[%c0_66, %c1_67, %c0_68] : memref<1x101x105xf32, #tpu.memory_space<vmem>>, vector<1x95x105xf32>
    %87 = vector.shape_cast %86 : vector<1x95x105xf32> to vector<95x105xf32>
    %88 = arith.truncf %87 : vector<95x105xf32> to vector<95x105xbf16>
    %c1_69 = arith.constant 1 : index
    %c0_70 = arith.constant 0 : index
    %c0_71 = arith.constant 0 : index
    %89 = vector.load %arg13[%c1_69, %c0_70, %c0_71] : memref<7x105x128xbf16, #tpu.memory_space<vmem>>, vector<1x105x128xbf16>
    %90 = vector.shape_cast %89 : vector<1x105x128xbf16> to vector<105x128xbf16>
    %cst_72 = arith.constant dense<0.000000e+00> : vector<95x128xf32>
    %91 = tpu.matmul %88, %90, %cst_72 {dimension_numbers = #tpu.dot_dimension_numbers<[1], [0], [0], [1], [0, 0, 1, 1], [], []>} : vector<95x105xbf16>, vector<105x128xbf16>, vector<95x128xf32> -> vector<95x128xf32>
    %92 = arith.addf %85, %91 : vector<95x128xf32>
    %c0_73 = arith.constant 0 : index
    %c2_74 = arith.constant 2 : index
    %c0_75 = arith.constant 0 : index
    %93 = vector.load %arg3[%c0_73, %c2_74, %c0_75] : memref<1x101x105xf32, #tpu.memory_space<vmem>>, vector<1x95x105xf32>
    %94 = vector.shape_cast %93 : vector<1x95x105xf32> to vector<95x105xf32>
    %95 = arith.truncf %94 : vector<95x105xf32> to vector<95x105xbf16>
    %c2_76 = arith.constant 2 : index
    %c0_77 = arith.constant 0 : index
    %c0_78 = arith.constant 0 : index
    %96 = vector.load %arg13[%c2_76, %c0_77, %c0_78] : memref<7x105x128xbf16, #tpu.memory_space<vmem>>, vector<1x105x128xbf16>
    %97 = vector.shape_cast %96 : vector<1x105x128xbf16> to vector<105x128xbf16>
    %cst_79 = arith.constant dense<0.000000e+00> : vector<95x128xf32>
    %98 = tpu.matmul %95, %97, %cst_79 {dimension_numbers = #tpu.dot_dimension_numbers<[1], [0], [0], [1], [0, 0, 1, 1], [], []>} : vector<95x105xbf16>, vector<105x128xbf16>, vector<95x128xf32> -> vector<95x128xf32>
    %99 = arith.addf %92, %98 : vector<95x128xf32>
    %c0_80 = arith.constant 0 : index
    %c3_81 = arith.constant 3 : index
    %c0_82 = arith.constant 0 : index
    %100 = vector.load %arg3[%c0_80, %c3_81, %c0_82] : memref<1x101x105xf32, #tpu.memory_space<vmem>>, vector<1x95x105xf32>
    %101 = vector.shape_cast %100 : vector<1x95x105xf32> to vector<95x105xf32>
    %102 = arith.truncf %101 : vector<95x105xf32> to vector<95x105xbf16>
    %c3_83 = arith.constant 3 : index
    %c0_84 = arith.constant 0 : index
    %c0_85 = arith.constant 0 : index
    %103 = vector.load %arg13[%c3_83, %c0_84, %c0_85] : memref<7x105x128xbf16, #tpu.memory_space<vmem>>, vector<1x105x128xbf16>
    %104 = vector.shape_cast %103 : vector<1x105x128xbf16> to vector<105x128xbf16>
    %cst_86 = arith.constant dense<0.000000e+00> : vector<95x128xf32>
    %105 = tpu.matmul %102, %104, %cst_86 {dimension_numbers = #tpu.dot_dimension_numbers<[1], [0], [0], [1], [0, 0, 1, 1], [], []>} : vector<95x105xbf16>, vector<105x128xbf16>, vector<95x128xf32> -> vector<95x128xf32>
    %106 = arith.addf %99, %105 : vector<95x128xf32>
    %c0_87 = arith.constant 0 : index
    %c4_88 = arith.constant 4 : index
    %c0_89 = arith.constant 0 : index
    %107 = vector.load %arg3[%c0_87, %c4_88, %c0_89] : memref<1x101x105xf32, #tpu.memory_space<vmem>>, vector<1x95x105xf32>
    %108 = vector.shape_cast %107 : vector<1x95x105xf32> to vector<95x105xf32>
    %109 = arith.truncf %108 : vector<95x105xf32> to vector<95x105xbf16>
    %c4_90 = arith.constant 4 : index
    %c0_91 = arith.constant 0 : index
    %c0_92 = arith.constant 0 : index
    %110 = vector.load %arg13[%c4_90, %c0_91, %c0_92] : memref<7x105x128xbf16, #tpu.memory_space<vmem>>, vector<1x105x128xbf16>
    %111 = vector.shape_cast %110 : vector<1x105x128xbf16> to vector<105x128xbf16>
    %cst_93 = arith.constant dense<0.000000e+00> : vector<95x128xf32>
    %112 = tpu.matmul %109, %111, %cst_93 {dimension_numbers = #tpu.dot_dimension_numbers<[1], [0], [0], [1], [0, 0, 1, 1], [], []>} : vector<95x105xbf16>, vector<105x128xbf16>, vector<95x128xf32> -> vector<95x128xf32>
    %113 = arith.addf %106, %112 : vector<95x128xf32>
    %c0_94 = arith.constant 0 : index
    %c5_95 = arith.constant 5 : index
    %c0_96 = arith.constant 0 : index
    %114 = vector.load %arg3[%c0_94, %c5_95, %c0_96] : memref<1x101x105xf32, #tpu.memory_space<vmem>>, vector<1x95x105xf32>
    %115 = vector.shape_cast %114 : vector<1x95x105xf32> to vector<95x105xf32>
    %116 = arith.truncf %115 : vector<95x105xf32> to vector<95x105xbf16>
    %c5_97 = arith.constant 5 : index
    %c0_98 = arith.constant 0 : index
    %c0_99 = arith.constant 0 : index
    %117 = vector.load %arg13[%c5_97, %c0_98, %c0_99] : memref<7x105x128xbf16, #tpu.memory_space<vmem>>, vector<1x105x128xbf16>
    %118 = vector.shape_cast %117 : vector<1x105x128xbf16> to vector<105x128xbf16>
    %cst_100 = arith.constant dense<0.000000e+00> : vector<95x128xf32>
    %119 = tpu.matmul %116, %118, %cst_100 {dimension_numbers = #tpu.dot_dimension_numbers<[1], [0], [0], [1], [0, 0, 1, 1], [], []>} : vector<95x105xbf16>, vector<105x128xbf16>, vector<95x128xf32> -> vector<95x128xf32>
    %120 = arith.addf %113, %119 : vector<95x128xf32>
    %c0_101 = arith.constant 0 : index
    %c6_102 = arith.constant 6 : index
    %c0_103 = arith.constant 0 : index
    %121 = vector.load %arg3[%c0_101, %c6_102, %c0_103] : memref<1x101x105xf32, #tpu.memory_space<vmem>>, vector<1x95x105xf32>
    %122 = vector.shape_cast %121 : vector<1x95x105xf32> to vector<95x105xf32>
    %123 = arith.truncf %122 : vector<95x105xf32> to vector<95x105xbf16>
    %c6_104 = arith.constant 6 : index
    %c0_105 = arith.constant 0 : index
    %c0_106 = arith.constant 0 : index
    %124 = vector.load %arg13[%c6_104, %c0_105, %c0_106] : memref<7x105x128xbf16, #tpu.memory_space<vmem>>, vector<1x105x128xbf16>
    %125 = vector.shape_cast %124 : vector<1x105x128xbf16> to vector<105x128xbf16>
    %cst_107 = arith.constant dense<0.000000e+00> : vector<95x128xf32>
    %126 = tpu.matmul %123, %125, %cst_107 {dimension_numbers = #tpu.dot_dimension_numbers<[1], [0], [0], [1], [0, 0, 1, 1], [], []>} : vector<95x105xbf16>, vector<105x128xbf16>, vector<95x128xf32> -> vector<95x128xf32>
    %127 = arith.addf %120, %126 : vector<95x128xf32>
    %c0_108 = arith.constant 0 : index
    %c0_109 = arith.constant 0 : index
    %c0_110 = arith.constant 0 : index
    %128 = vector.load %arg4[%c0_108, %c0_109, %c0_110] : memref<1x101x101xf32, #tpu.memory_space<vmem>>, vector<1x95x101xf32>
    %129 = vector.shape_cast %128 : vector<1x95x101xf32> to vector<95x101xf32>
    %130 = arith.truncf %129 : vector<95x101xf32> to vector<95x101xbf16>
    %c0_111 = arith.constant 0 : index
    %c0_112 = arith.constant 0 : index
    %c0_113 = arith.constant 0 : index
    %131 = vector.load %arg15[%c0_111, %c0_112, %c0_113] : memref<7x101x128xbf16, #tpu.memory_space<vmem>>, vector<1x101x128xbf16>
    %132 = vector.shape_cast %131 : vector<1x101x128xbf16> to vector<101x128xbf16>
    %cst_114 = arith.constant dense<0.000000e+00> : vector<95x128xf32>
    %133 = tpu.matmul %130, %132, %cst_114 {dimension_numbers = #tpu.dot_dimension_numbers<[1], [0], [0], [1], [0, 0, 1, 1], [], []>} : vector<95x101xbf16>, vector<101x128xbf16>, vector<95x128xf32> -> vector<95x128xf32>
    %c0_115 = arith.constant 0 : index
    %c1_116 = arith.constant 1 : index
    %c0_117 = arith.constant 0 : index
    %134 = vector.load %arg4[%c0_115, %c1_116, %c0_117] : memref<1x101x101xf32, #tpu.memory_space<vmem>>, vector<1x95x101xf32>
    %135 = vector.shape_cast %134 : vector<1x95x101xf32> to vector<95x101xf32>
    %136 = arith.truncf %135 : vector<95x101xf32> to vector<95x101xbf16>
    %c1_118 = arith.constant 1 : index
    %c0_119 = arith.constant 0 : index
    %c0_120 = arith.constant 0 : index
    %137 = vector.load %arg15[%c1_118, %c0_119, %c0_120] : memref<7x101x128xbf16, #tpu.memory_space<vmem>>, vector<1x101x128xbf16>
    %138 = vector.shape_cast %137 : vector<1x101x128xbf16> to vector<101x128xbf16>
    %cst_121 = arith.constant dense<0.000000e+00> : vector<95x128xf32>
    %139 = tpu.matmul %136, %138, %cst_121 {dimension_numbers = #tpu.dot_dimension_numbers<[1], [0], [0], [1], [0, 0, 1, 1], [], []>} : vector<95x101xbf16>, vector<101x128xbf16>, vector<95x128xf32> -> vector<95x128xf32>
    %140 = arith.addf %133, %139 : vector<95x128xf32>
    %c0_122 = arith.constant 0 : index
    %c2_123 = arith.constant 2 : index
    %c0_124 = arith.constant 0 : index
    %141 = vector.load %arg4[%c0_122, %c2_123, %c0_124] : memref<1x101x101xf32, #tpu.memory_space<vmem>>, vector<1x95x101xf32>
    %142 = vector.shape_cast %141 : vector<1x95x101xf32> to vector<95x101xf32>
    %143 = arith.truncf %142 : vector<95x101xf32> to vector<95x101xbf16>
    %c2_125 = arith.constant 2 : index
    %c0_126 = arith.constant 0 : index
    %c0_127 = arith.constant 0 : index
    %144 = vector.load %arg15[%c2_125, %c0_126, %c0_127] : memref<7x101x128xbf16, #tpu.memory_space<vmem>>, vector<1x101x128xbf16>
    %145 = vector.shape_cast %144 : vector<1x101x128xbf16> to vector<101x128xbf16>
    %cst_128 = arith.constant dense<0.000000e+00> : vector<95x128xf32>
    %146 = tpu.matmul %143, %145, %cst_128 {dimension_numbers = #tpu.dot_dimension_numbers<[1], [0], [0], [1], [0, 0, 1, 1], [], []>} : vector<95x101xbf16>, vector<101x128xbf16>, vector<95x128xf32> -> vector<95x128xf32>
    %147 = arith.addf %140, %146 : vector<95x128xf32>
    %c0_129 = arith.constant 0 : index
    %c3_130 = arith.constant 3 : index
    %c0_131 = arith.constant 0 : index
    %148 = vector.load %arg4[%c0_129, %c3_130, %c0_131] : memref<1x101x101xf32, #tpu.memory_space<vmem>>, vector<1x95x101xf32>
    %149 = vector.shape_cast %148 : vector<1x95x101xf32> to vector<95x101xf32>
    %150 = arith.truncf %149 : vector<95x101xf32> to vector<95x101xbf16>
    %c3_132 = arith.constant 3 : index
    %c0_133 = arith.constant 0 : index
    %c0_134 = arith.constant 0 : index
    %151 = vector.load %arg15[%c3_132, %c0_133, %c0_134] : memref<7x101x128xbf16, #tpu.memory_space<vmem>>, vector<1x101x128xbf16>
    %152 = vector.shape_cast %151 : vector<1x101x128xbf16> to vector<101x128xbf16>
    %cst_135 = arith.constant dense<0.000000e+00> : vector<95x128xf32>
    %153 = tpu.matmul %150, %152, %cst_135 {dimension_numbers = #tpu.dot_dimension_numbers<[1], [0], [0], [1], [0, 0, 1, 1], [], []>} : vector<95x101xbf16>, vector<101x128xbf16>, vector<95x128xf32> -> vector<95x128xf32>
    %154 = arith.addf %147, %153 : vector<95x128xf32>
    %c0_136 = arith.constant 0 : index
    %c4_137 = arith.constant 4 : index
    %c0_138 = arith.constant 0 : index
    %155 = vector.load %arg4[%c0_136, %c4_137, %c0_138] : memref<1x101x101xf32, #tpu.memory_space<vmem>>, vector<1x95x101xf32>
    %156 = vector.shape_cast %155 : vector<1x95x101xf32> to vector<95x101xf32>
    %157 = arith.truncf %156 : vector<95x101xf32> to vector<95x101xbf16>
    %c4_139 = arith.constant 4 : index
    %c0_140 = arith.constant 0 : index
    %c0_141 = arith.constant 0 : index
    %158 = vector.load %arg15[%c4_139, %c0_140, %c0_141] : memref<7x101x128xbf16, #tpu.memory_space<vmem>>, vector<1x101x128xbf16>
    %159 = vector.shape_cast %158 : vector<1x101x128xbf16> to vector<101x128xbf16>
    %cst_142 = arith.constant dense<0.000000e+00> : vector<95x128xf32>
    %160 = tpu.matmul %157, %159, %cst_142 {dimension_numbers = #tpu.dot_dimension_numbers<[1], [0], [0], [1], [0, 0, 1, 1], [], []>} : vector<95x101xbf16>, vector<101x128xbf16>, vector<95x128xf32> -> vector<95x128xf32>
    %161 = arith.addf %154, %160 : vector<95x128xf32>
    %c0_143 = arith.constant 0 : index
    %c5_144 = arith.constant 5 : index
    %c0_145 = arith.constant 0 : index
    %162 = vector.load %arg4[%c0_143, %c5_144, %c0_145] : memref<1x101x101xf32, #tpu.memory_space<vmem>>, vector<1x95x101xf32>
    %163 = vector.shape_cast %162 : vector<1x95x101xf32> to vector<95x101xf32>
    %164 = arith.truncf %163 : vector<95x101xf32> to vector<95x101xbf16>
    %c5_146 = arith.constant 5 : index
    %c0_147 = arith.constant 0 : index
    %c0_148 = arith.constant 0 : index
    %165 = vector.load %arg15[%c5_146, %c0_147, %c0_148] : memref<7x101x128xbf16, #tpu.memory_space<vmem>>, vector<1x101x128xbf16>
    %166 = vector.shape_cast %165 : vector<1x101x128xbf16> to vector<101x128xbf16>
    %cst_149 = arith.constant dense<0.000000e+00> : vector<95x128xf32>
    %167 = tpu.matmul %164, %166, %cst_149 {dimension_numbers = #tpu.dot_dimension_numbers<[1], [0], [0], [1], [0, 0, 1, 1], [], []>} : vector<95x101xbf16>, vector<101x128xbf16>, vector<95x128xf32> -> vector<95x128xf32>
    %168 = arith.addf %161, %167 : vector<95x128xf32>
    %c0_150 = arith.constant 0 : index
    %c6_151 = arith.constant 6 : index
    %c0_152 = arith.constant 0 : index
    %169 = vector.load %arg4[%c0_150, %c6_151, %c0_152] : memref<1x101x101xf32, #tpu.memory_space<vmem>>, vector<1x95x101xf32>
    %170 = vector.shape_cast %169 : vector<1x95x101xf32> to vector<95x101xf32>
    %171 = arith.truncf %170 : vector<95x101xf32> to vector<95x101xbf16>
    %c6_153 = arith.constant 6 : index
    %c0_154 = arith.constant 0 : index
    %c0_155 = arith.constant 0 : index
    %172 = vector.load %arg15[%c6_153, %c0_154, %c0_155] : memref<7x101x128xbf16, #tpu.memory_space<vmem>>, vector<1x101x128xbf16>
    %173 = vector.shape_cast %172 : vector<1x101x128xbf16> to vector<101x128xbf16>
    %cst_156 = arith.constant dense<0.000000e+00> : vector<95x128xf32>
    %174 = tpu.matmul %171, %173, %cst_156 {dimension_numbers = #tpu.dot_dimension_numbers<[1], [0], [0], [1], [0, 0, 1, 1], [], []>} : vector<95x101xbf16>, vector<101x128xbf16>, vector<95x128xf32> -> vector<95x128xf32>
    %175 = arith.addf %168, %174 : vector<95x128xf32>
    %c0_157 = arith.constant 0 : index
    %c0_158 = arith.constant 0 : index
    %176 = vector.load %arg12[%c0_157, %c0_158] : memref<1x128xf32, #tpu.memory_space<vmem>>, vector<1x128xf32>
    %177 = vector.broadcast %176 : vector<1x128xf32> to vector<95x128xf32>
    %178 = arith.addf %79, %177 : vector<95x128xf32>
    %cst_159 = arith.constant 0.000000e+00 : f32
    %179 = vector.broadcast %cst_159 : f32 to vector<95x128xf32>
    %180 = arith.maximumf %178, %179 : vector<95x128xf32>
    %c0_160 = arith.constant 0 : index
    %c0_161 = arith.constant 0 : index
    %181 = vector.load %arg14[%c0_160, %c0_161] : memref<1x128xf32, #tpu.memory_space<vmem>>, vector<1x128xf32>
    %182 = vector.broadcast %181 : vector<1x128xf32> to vector<95x128xf32>
    %183 = arith.addf %127, %182 : vector<95x128xf32>
    %cst_162 = arith.constant 0.000000e+00 : f32
    %184 = vector.broadcast %cst_162 : f32 to vector<95x128xf32>
    %185 = arith.maximumf %183, %184 : vector<95x128xf32>
    %186 = arith.addf %180, %185 : vector<95x128xf32>
    %187 = arith.truncf %186 : vector<95x128xf32> to vector<95x128xbf16>
    %c0_163 = arith.constant 0 : index
    %c0_164 = arith.constant 0 : index
    %188 = vector.load %arg16[%c0_163, %c0_164] : memref<1x128xf32, #tpu.memory_space<vmem>>, vector<1x128xf32>
    %189 = vector.broadcast %188 : vector<1x128xf32> to vector<95x128xf32>
    %190 = arith.addf %175, %189 : vector<95x128xf32>
    %cst_165 = arith.constant 0.000000e+00 : f32
    %191 = vector.broadcast %cst_165 : f32 to vector<95x128xf32>
    %192 = arith.maximumf %190, %191 : vector<95x128xf32>
    %193 = arith.truncf %192 : vector<95x128xf32> to vector<95x128xbf16>
    %c0_166 = arith.constant 0 : index
    %c0_167 = arith.constant 0 : index
    %194 = vector.load %arg17[%c0_166, %c0_167] : memref<19x95xbf16, #tpu.memory_space<vmem>>, vector<19x95xbf16>
    %cst_168 = arith.constant dense<0.000000e+00> : vector<19x128xf32>
    %195 = tpu.matmul %194, %187, %cst_168 {dimension_numbers = #tpu.dot_dimension_numbers<[1], [0], [0], [1], [0, 0, 1, 1], [], []>} : vector<19x95xbf16>, vector<95x128xbf16>, vector<19x128xf32> -> vector<19x128xf32>
    %cst_169 = arith.constant dense<0.000000e+00> : vector<19x128xf32>
    %196 = tpu.matmul %194, %193, %cst_169 {dimension_numbers = #tpu.dot_dimension_numbers<[1], [0], [0], [1], [0, 0, 1, 1], [], []>} : vector<19x95xbf16>, vector<95x128xbf16>, vector<19x128xf32> -> vector<19x128xf32>
    %cst_170 = arith.constant 0.899999976 : f32
    %197 = vector.broadcast %cst_170 : f32 to vector<19x128xf32>
    %198 = arith.mulf %197, %195 : vector<19x128xf32>
    %199 = arith.negf %196 : vector<19x128xf32>
    %200 = math.exp %199 : vector<19x128xf32>
    %cst_171 = arith.constant 1.000000e+00 : f32
    %201 = vector.broadcast %cst_171 : f32 to vector<19x128xf32>
    %202 = arith.addf %201, %200 : vector<19x128xf32>
    %203 = arith.divf %201, %202 : vector<19x128xf32>
    %204 = arith.mulf %196, %203 : vector<19x128xf32>
    %cst_172 = arith.constant 1.000000e-01 : f32
    %205 = vector.broadcast %cst_172 : f32 to vector<19x128xf32>
    %206 = arith.mulf %205, %204 : vector<19x128xf32>
    %207 = arith.addf %198, %206 : vector<19x128xf32>
    %208 = vector.extract_strided_slice %207 {offsets = [0, 0], sizes = [1, 128], strides = [1, 1]} : vector<19x128xf32> to vector<1x128xf32>
    %209 = arith.truncf %208 : vector<1x128xf32> to vector<1x128xbf16>
    %c0_173 = arith.constant 0 : index
    %c0_174 = arith.constant 0 : index
    %c0_175 = arith.constant 0 : index
    %210 = vector.load %arg18[%c0_173, %c0_174, %c0_175] : memref<19x128x512xbf16, #tpu.memory_space<vmem>>, vector<1x128x512xbf16>
    %211 = vector.shape_cast %210 : vector<1x128x512xbf16> to vector<128x512xbf16>
    %cst_176 = arith.constant dense<0.000000e+00> : vector<1x512xf32>
    %212 = tpu.matmul %209, %211, %cst_176 {dimension_numbers = #tpu.dot_dimension_numbers<[1], [0], [0], [1], [0, 0, 1, 1], [], []>} : vector<1x128xbf16>, vector<128x512xbf16>, vector<1x512xf32> -> vector<1x512xf32>
    %213 = vector.extract_strided_slice %207 {offsets = [1, 0], sizes = [1, 128], strides = [1, 1]} : vector<19x128xf32> to vector<1x128xf32>
    %214 = arith.truncf %213 : vector<1x128xf32> to vector<1x128xbf16>
    %c1_177 = arith.constant 1 : index
    %c0_178 = arith.constant 0 : index
    %c0_179 = arith.constant 0 : index
    %215 = vector.load %arg18[%c1_177, %c0_178, %c0_179] : memref<19x128x512xbf16, #tpu.memory_space<vmem>>, vector<1x128x512xbf16>
    %216 = vector.shape_cast %215 : vector<1x128x512xbf16> to vector<128x512xbf16>
    %cst_180 = arith.constant dense<0.000000e+00> : vector<1x512xf32>
    %217 = tpu.matmul %214, %216, %cst_180 {dimension_numbers = #tpu.dot_dimension_numbers<[1], [0], [0], [1], [0, 0, 1, 1], [], []>} : vector<1x128xbf16>, vector<128x512xbf16>, vector<1x512xf32> -> vector<1x512xf32>
    %218 = arith.addf %212, %217 : vector<1x512xf32>
    %219 = vector.extract_strided_slice %207 {offsets = [2, 0], sizes = [1, 128], strides = [1, 1]} : vector<19x128xf32> to vector<1x128xf32>
    %220 = arith.truncf %219 : vector<1x128xf32> to vector<1x128xbf16>
    %c2_181 = arith.constant 2 : index
    %c0_182 = arith.constant 0 : index
    %c0_183 = arith.constant 0 : index
    %221 = vector.load %arg18[%c2_181, %c0_182, %c0_183] : memref<19x128x512xbf16, #tpu.memory_space<vmem>>, vector<1x128x512xbf16>
    %222 = vector.shape_cast %221 : vector<1x128x512xbf16> to vector<128x512xbf16>
    %cst_184 = arith.constant dense<0.000000e+00> : vector<1x512xf32>
    %223 = tpu.matmul %220, %222, %cst_184 {dimension_numbers = #tpu.dot_dimension_numbers<[1], [0], [0], [1], [0, 0, 1, 1], [], []>} : vector<1x128xbf16>, vector<128x512xbf16>, vector<1x512xf32> -> vector<1x512xf32>
    %224 = arith.addf %218, %223 : vector<1x512xf32>
    %225 = vector.extract_strided_slice %207 {offsets = [3, 0], sizes = [1, 128], strides = [1, 1]} : vector<19x128xf32> to vector<1x128xf32>
    %226 = arith.truncf %225 : vector<1x128xf32> to vector<1x128xbf16>
    %c3_185 = arith.constant 3 : index
    %c0_186 = arith.constant 0 : index
    %c0_187 = arith.constant 0 : index
    %227 = vector.load %arg18[%c3_185, %c0_186, %c0_187] : memref<19x128x512xbf16, #tpu.memory_space<vmem>>, vector<1x128x512xbf16>
    %228 = vector.shape_cast %227 : vector<1x128x512xbf16> to vector<128x512xbf16>
    %cst_188 = arith.constant dense<0.000000e+00> : vector<1x512xf32>
    %229 = tpu.matmul %226, %228, %cst_188 {dimension_numbers = #tpu.dot_dimension_numbers<[1], [0], [0], [1], [0, 0, 1, 1], [], []>} : vector<1x128xbf16>, vector<128x512xbf16>, vector<1x512xf32> -> vector<1x512xf32>
    %230 = arith.addf %224, %229 : vector<1x512xf32>
    %231 = vector.extract_strided_slice %207 {offsets = [4, 0], sizes = [1, 128], strides = [1, 1]} : vector<19x128xf32> to vector<1x128xf32>
    %232 = arith.truncf %231 : vector<1x128xf32> to vector<1x128xbf16>
    %c4_189 = arith.constant 4 : index
    %c0_190 = arith.constant 0 : index
    %c0_191 = arith.constant 0 : index
    %233 = vector.load %arg18[%c4_189, %c0_190, %c0_191] : memref<19x128x512xbf16, #tpu.memory_space<vmem>>, vector<1x128x512xbf16>
    %234 = vector.shape_cast %233 : vector<1x128x512xbf16> to vector<128x512xbf16>
    %cst_192 = arith.constant dense<0.000000e+00> : vector<1x512xf32>
    %235 = tpu.matmul %232, %234, %cst_192 {dimension_numbers = #tpu.dot_dimension_numbers<[1], [0], [0], [1], [0, 0, 1, 1], [], []>} : vector<1x128xbf16>, vector<128x512xbf16>, vector<1x512xf32> -> vector<1x512xf32>
    %236 = arith.addf %230, %235 : vector<1x512xf32>
    %237 = vector.extract_strided_slice %207 {offsets = [5, 0], sizes = [1, 128], strides = [1, 1]} : vector<19x128xf32> to vector<1x128xf32>
    %238 = arith.truncf %237 : vector<1x128xf32> to vector<1x128xbf16>
    %c5_193 = arith.constant 5 : index
    %c0_194 = arith.constant 0 : index
    %c0_195 = arith.constant 0 : index
    %239 = vector.load %arg18[%c5_193, %c0_194, %c0_195] : memref<19x128x512xbf16, #tpu.memory_space<vmem>>, vector<1x128x512xbf16>
    %240 = vector.shape_cast %239 : vector<1x128x512xbf16> to vector<128x512xbf16>
    %cst_196 = arith.constant dense<0.000000e+00> : vector<1x512xf32>
    %241 = tpu.matmul %238, %240, %cst_196 {dimension_numbers = #tpu.dot_dimension_numbers<[1], [0], [0], [1], [0, 0, 1, 1], [], []>} : vector<1x128xbf16>, vector<128x512xbf16>, vector<1x512xf32> -> vector<1x512xf32>
    %242 = arith.addf %236, %241 : vector<1x512xf32>
    %243 = vector.extract_strided_slice %207 {offsets = [6, 0], sizes = [1, 128], strides = [1, 1]} : vector<19x128xf32> to vector<1x128xf32>
    %244 = arith.truncf %243 : vector<1x128xf32> to vector<1x128xbf16>
    %c6_197 = arith.constant 6 : index
    %c0_198 = arith.constant 0 : index
    %c0_199 = arith.constant 0 : index
    %245 = vector.load %arg18[%c6_197, %c0_198, %c0_199] : memref<19x128x512xbf16, #tpu.memory_space<vmem>>, vector<1x128x512xbf16>
    %246 = vector.shape_cast %245 : vector<1x128x512xbf16> to vector<128x512xbf16>
    %cst_200 = arith.constant dense<0.000000e+00> : vector<1x512xf32>
    %247 = tpu.matmul %244, %246, %cst_200 {dimension_numbers = #tpu.dot_dimension_numbers<[1], [0], [0], [1], [0, 0, 1, 1], [], []>} : vector<1x128xbf16>, vector<128x512xbf16>, vector<1x512xf32> -> vector<1x512xf32>
    %248 = arith.addf %242, %247 : vector<1x512xf32>
    %249 = vector.extract_strided_slice %207 {offsets = [7, 0], sizes = [1, 128], strides = [1, 1]} : vector<19x128xf32> to vector<1x128xf32>
    %250 = arith.truncf %249 : vector<1x128xf32> to vector<1x128xbf16>
    %c7 = arith.constant 7 : index
    %c0_201 = arith.constant 0 : index
    %c0_202 = arith.constant 0 : index
    %251 = vector.load %arg18[%c7, %c0_201, %c0_202] : memref<19x128x512xbf16, #tpu.memory_space<vmem>>, vector<1x128x512xbf16>
    %252 = vector.shape_cast %251 : vector<1x128x512xbf16> to vector<128x512xbf16>
    %cst_203 = arith.constant dense<0.000000e+00> : vector<1x512xf32>
    %253 = tpu.matmul %250, %252, %cst_203 {dimension_numbers = #tpu.dot_dimension_numbers<[1], [0], [0], [1], [0, 0, 1, 1], [], []>} : vector<1x128xbf16>, vector<128x512xbf16>, vector<1x512xf32> -> vector<1x512xf32>
    %254 = arith.addf %248, %253 : vector<1x512xf32>
    %255 = vector.extract_strided_slice %207 {offsets = [8, 0], sizes = [1, 128], strides = [1, 1]} : vector<19x128xf32> to vector<1x128xf32>
    %256 = arith.truncf %255 : vector<1x128xf32> to vector<1x128xbf16>
    %c8 = arith.constant 8 : index
    %c0_204 = arith.constant 0 : index
    %c0_205 = arith.constant 0 : index
    %257 = vector.load %arg18[%c8, %c0_204, %c0_205] : memref<19x128x512xbf16, #tpu.memory_space<vmem>>, vector<1x128x512xbf16>
    %258 = vector.shape_cast %257 : vector<1x128x512xbf16> to vector<128x512xbf16>
    %cst_206 = arith.constant dense<0.000000e+00> : vector<1x512xf32>
    %259 = tpu.matmul %256, %258, %cst_206 {dimension_numbers = #tpu.dot_dimension_numbers<[1], [0], [0], [1], [0, 0, 1, 1], [], []>} : vector<1x128xbf16>, vector<128x512xbf16>, vector<1x512xf32> -> vector<1x512xf32>
    %260 = arith.addf %254, %259 : vector<1x512xf32>
    %261 = vector.extract_strided_slice %207 {offsets = [9, 0], sizes = [1, 128], strides = [1, 1]} : vector<19x128xf32> to vector<1x128xf32>
    %262 = arith.truncf %261 : vector<1x128xf32> to vector<1x128xbf16>
    %c9 = arith.constant 9 : index
    %c0_207 = arith.constant 0 : index
    %c0_208 = arith.constant 0 : index
    %263 = vector.load %arg18[%c9, %c0_207, %c0_208] : memref<19x128x512xbf16, #tpu.memory_space<vmem>>, vector<1x128x512xbf16>
    %264 = vector.shape_cast %263 : vector<1x128x512xbf16> to vector<128x512xbf16>
    %cst_209 = arith.constant dense<0.000000e+00> : vector<1x512xf32>
    %265 = tpu.matmul %262, %264, %cst_209 {dimension_numbers = #tpu.dot_dimension_numbers<[1], [0], [0], [1], [0, 0, 1, 1], [], []>} : vector<1x128xbf16>, vector<128x512xbf16>, vector<1x512xf32> -> vector<1x512xf32>
    %266 = arith.addf %260, %265 : vector<1x512xf32>
    %267 = vector.extract_strided_slice %207 {offsets = [10, 0], sizes = [1, 128], strides = [1, 1]} : vector<19x128xf32> to vector<1x128xf32>
    %268 = arith.truncf %267 : vector<1x128xf32> to vector<1x128xbf16>
    %c10 = arith.constant 10 : index
    %c0_210 = arith.constant 0 : index
    %c0_211 = arith.constant 0 : index
    %269 = vector.load %arg18[%c10, %c0_210, %c0_211] : memref<19x128x512xbf16, #tpu.memory_space<vmem>>, vector<1x128x512xbf16>
    %270 = vector.shape_cast %269 : vector<1x128x512xbf16> to vector<128x512xbf16>
    %cst_212 = arith.constant dense<0.000000e+00> : vector<1x512xf32>
    %271 = tpu.matmul %268, %270, %cst_212 {dimension_numbers = #tpu.dot_dimension_numbers<[1], [0], [0], [1], [0, 0, 1, 1], [], []>} : vector<1x128xbf16>, vector<128x512xbf16>, vector<1x512xf32> -> vector<1x512xf32>
    %272 = arith.addf %266, %271 : vector<1x512xf32>
    %273 = vector.extract_strided_slice %207 {offsets = [11, 0], sizes = [1, 128], strides = [1, 1]} : vector<19x128xf32> to vector<1x128xf32>
    %274 = arith.truncf %273 : vector<1x128xf32> to vector<1x128xbf16>
    %c11 = arith.constant 11 : index
    %c0_213 = arith.constant 0 : index
    %c0_214 = arith.constant 0 : index
    %275 = vector.load %arg18[%c11, %c0_213, %c0_214] : memref<19x128x512xbf16, #tpu.memory_space<vmem>>, vector<1x128x512xbf16>
    %276 = vector.shape_cast %275 : vector<1x128x512xbf16> to vector<128x512xbf16>
    %cst_215 = arith.constant dense<0.000000e+00> : vector<1x512xf32>
    %277 = tpu.matmul %274, %276, %cst_215 {dimension_numbers = #tpu.dot_dimension_numbers<[1], [0], [0], [1], [0, 0, 1, 1], [], []>} : vector<1x128xbf16>, vector<128x512xbf16>, vector<1x512xf32> -> vector<1x512xf32>
    %278 = arith.addf %272, %277 : vector<1x512xf32>
    %279 = vector.extract_strided_slice %207 {offsets = [12, 0], sizes = [1, 128], strides = [1, 1]} : vector<19x128xf32> to vector<1x128xf32>
    %280 = arith.truncf %279 : vector<1x128xf32> to vector<1x128xbf16>
    %c12 = arith.constant 12 : index
    %c0_216 = arith.constant 0 : index
    %c0_217 = arith.constant 0 : index
    %281 = vector.load %arg18[%c12, %c0_216, %c0_217] : memref<19x128x512xbf16, #tpu.memory_space<vmem>>, vector<1x128x512xbf16>
    %282 = vector.shape_cast %281 : vector<1x128x512xbf16> to vector<128x512xbf16>
    %cst_218 = arith.constant dense<0.000000e+00> : vector<1x512xf32>
    %283 = tpu.matmul %280, %282, %cst_218 {dimension_numbers = #tpu.dot_dimension_numbers<[1], [0], [0], [1], [0, 0, 1, 1], [], []>} : vector<1x128xbf16>, vector<128x512xbf16>, vector<1x512xf32> -> vector<1x512xf32>
    %284 = arith.addf %278, %283 : vector<1x512xf32>
    %285 = vector.extract_strided_slice %207 {offsets = [13, 0], sizes = [1, 128], strides = [1, 1]} : vector<19x128xf32> to vector<1x128xf32>
    %286 = arith.truncf %285 : vector<1x128xf32> to vector<1x128xbf16>
    %c13 = arith.constant 13 : index
    %c0_219 = arith.constant 0 : index
    %c0_220 = arith.constant 0 : index
    %287 = vector.load %arg18[%c13, %c0_219, %c0_220] : memref<19x128x512xbf16, #tpu.memory_space<vmem>>, vector<1x128x512xbf16>
    %288 = vector.shape_cast %287 : vector<1x128x512xbf16> to vector<128x512xbf16>
    %cst_221 = arith.constant dense<0.000000e+00> : vector<1x512xf32>
    %289 = tpu.matmul %286, %288, %cst_221 {dimension_numbers = #tpu.dot_dimension_numbers<[1], [0], [0], [1], [0, 0, 1, 1], [], []>} : vector<1x128xbf16>, vector<128x512xbf16>, vector<1x512xf32> -> vector<1x512xf32>
    %290 = arith.addf %284, %289 : vector<1x512xf32>
    %291 = vector.extract_strided_slice %207 {offsets = [14, 0], sizes = [1, 128], strides = [1, 1]} : vector<19x128xf32> to vector<1x128xf32>
    %292 = arith.truncf %291 : vector<1x128xf32> to vector<1x128xbf16>
    %c14 = arith.constant 14 : index
    %c0_222 = arith.constant 0 : index
    %c0_223 = arith.constant 0 : index
    %293 = vector.load %arg18[%c14, %c0_222, %c0_223] : memref<19x128x512xbf16, #tpu.memory_space<vmem>>, vector<1x128x512xbf16>
    %294 = vector.shape_cast %293 : vector<1x128x512xbf16> to vector<128x512xbf16>
    %cst_224 = arith.constant dense<0.000000e+00> : vector<1x512xf32>
    %295 = tpu.matmul %292, %294, %cst_224 {dimension_numbers = #tpu.dot_dimension_numbers<[1], [0], [0], [1], [0, 0, 1, 1], [], []>} : vector<1x128xbf16>, vector<128x512xbf16>, vector<1x512xf32> -> vector<1x512xf32>
    %296 = arith.addf %290, %295 : vector<1x512xf32>
    %297 = vector.extract_strided_slice %207 {offsets = [15, 0], sizes = [1, 128], strides = [1, 1]} : vector<19x128xf32> to vector<1x128xf32>
    %298 = arith.truncf %297 : vector<1x128xf32> to vector<1x128xbf16>
    %c15 = arith.constant 15 : index
    %c0_225 = arith.constant 0 : index
    %c0_226 = arith.constant 0 : index
    %299 = vector.load %arg18[%c15, %c0_225, %c0_226] : memref<19x128x512xbf16, #tpu.memory_space<vmem>>, vector<1x128x512xbf16>
    %300 = vector.shape_cast %299 : vector<1x128x512xbf16> to vector<128x512xbf16>
    %cst_227 = arith.constant dense<0.000000e+00> : vector<1x512xf32>
    %301 = tpu.matmul %298, %300, %cst_227 {dimension_numbers = #tpu.dot_dimension_numbers<[1], [0], [0], [1], [0, 0, 1, 1], [], []>} : vector<1x128xbf16>, vector<128x512xbf16>, vector<1x512xf32> -> vector<1x512xf32>
    %302 = arith.addf %296, %301 : vector<1x512xf32>
    %303 = vector.extract_strided_slice %207 {offsets = [16, 0], sizes = [1, 128], strides = [1, 1]} : vector<19x128xf32> to vector<1x128xf32>
    %304 = arith.truncf %303 : vector<1x128xf32> to vector<1x128xbf16>
    %c16 = arith.constant 16 : index
    %c0_228 = arith.constant 0 : index
    %c0_229 = arith.constant 0 : index
    %305 = vector.load %arg18[%c16, %c0_228, %c0_229] : memref<19x128x512xbf16, #tpu.memory_space<vmem>>, vector<1x128x512xbf16>
    %306 = vector.shape_cast %305 : vector<1x128x512xbf16> to vector<128x512xbf16>
    %cst_230 = arith.constant dense<0.000000e+00> : vector<1x512xf32>
    %307 = tpu.matmul %304, %306, %cst_230 {dimension_numbers = #tpu.dot_dimension_numbers<[1], [0], [0], [1], [0, 0, 1, 1], [], []>} : vector<1x128xbf16>, vector<128x512xbf16>, vector<1x512xf32> -> vector<1x512xf32>
    %308 = arith.addf %302, %307 : vector<1x512xf32>
    %309 = vector.extract_strided_slice %207 {offsets = [17, 0], sizes = [1, 128], strides = [1, 1]} : vector<19x128xf32> to vector<1x128xf32>
    %310 = arith.truncf %309 : vector<1x128xf32> to vector<1x128xbf16>
    %c17 = arith.constant 17 : index
    %c0_231 = arith.constant 0 : index
    %c0_232 = arith.constant 0 : index
    %311 = vector.load %arg18[%c17, %c0_231, %c0_232] : memref<19x128x512xbf16, #tpu.memory_space<vmem>>, vector<1x128x512xbf16>
    %312 = vector.shape_cast %311 : vector<1x128x512xbf16> to vector<128x512xbf16>
    %cst_233 = arith.constant dense<0.000000e+00> : vector<1x512xf32>
    %313 = tpu.matmul %310, %312, %cst_233 {dimension_numbers = #tpu.dot_dimension_numbers<[1], [0], [0], [1], [0, 0, 1, 1], [], []>} : vector<1x128xbf16>, vector<128x512xbf16>, vector<1x512xf32> -> vector<1x512xf32>
    %314 = arith.addf %308, %313 : vector<1x512xf32>
    %315 = vector.extract_strided_slice %207 {offsets = [18, 0], sizes = [1, 128], strides = [1, 1]} : vector<19x128xf32> to vector<1x128xf32>
    %316 = arith.truncf %315 : vector<1x128xf32> to vector<1x128xbf16>
    %c18 = arith.constant 18 : index
    %c0_234 = arith.constant 0 : index
    %c0_235 = arith.constant 0 : index
    %317 = vector.load %arg18[%c18, %c0_234, %c0_235] : memref<19x128x512xbf16, #tpu.memory_space<vmem>>, vector<1x128x512xbf16>
    %318 = vector.shape_cast %317 : vector<1x128x512xbf16> to vector<128x512xbf16>
    %cst_236 = arith.constant dense<0.000000e+00> : vector<1x512xf32>
    %319 = tpu.matmul %316, %318, %cst_236 {dimension_numbers = #tpu.dot_dimension_numbers<[1], [0], [0], [1], [0, 0, 1, 1], [], []>} : vector<1x128xbf16>, vector<128x512xbf16>, vector<1x512xf32> -> vector<1x512xf32>
    %320 = arith.addf %314, %319 : vector<1x512xf32>
    %c0_237 = arith.constant 0 : index
    %c0_238 = arith.constant 0 : index
    %321 = vector.load %arg19[%c0_237, %c0_238] : memref<1x512xf32, #tpu.memory_space<vmem>>, vector<1x512xf32>
    %322 = arith.addf %320, %321 : vector<1x512xf32>
    %cst_239 = arith.constant 0.000000e+00 : f32
    %323 = vector.broadcast %cst_239 : f32 to vector<1x512xf32>
    %324 = arith.maximumf %322, %323 : vector<1x512xf32>
    %325 = arith.truncf %324 : vector<1x512xf32> to vector<1x512xbf16>
    %c0_240 = arith.constant 0 : index
    %c0_241 = arith.constant 0 : index
    %326 = vector.load %arg20[%c0_240, %c0_241] : memref<512x264xbf16, #tpu.memory_space<vmem>>, vector<512x264xbf16>
    %cst_242 = arith.constant dense<0.000000e+00> : vector<1x264xf32>
    %327 = tpu.matmul %325, %326, %cst_242 {dimension_numbers = #tpu.dot_dimension_numbers<[1], [0], [0], [1], [0, 0, 1, 1], [], []>} : vector<1x512xbf16>, vector<512x264xbf16>, vector<1x264xf32> -> vector<1x264xf32>
    %c0_243 = arith.constant 0 : index
    %c0_244 = arith.constant 0 : index
    %328 = vector.load %arg21[%c0_243, %c0_244] : memref<1x264xf32, #tpu.memory_space<vmem>>, vector<1x264xf32>
    %329 = arith.addf %327, %328 : vector<1x264xf32>
    %cst_245 = arith.constant 0.000000e+00 : f32
    %330 = vector.broadcast %cst_245 : f32 to vector<1x264xf32>
    %331 = arith.maximumf %329, %330 : vector<1x264xf32>
    %332 = arith.truncf %331 : vector<1x264xf32> to vector<1x264xbf16>
    %c0_246 = arith.constant 0 : index
    %c0_247 = arith.constant 0 : index
    %333 = vector.load %arg22[%c0_246, %c0_247] : memref<264x128xbf16, #tpu.memory_space<vmem>>, vector<264x128xbf16>
    %cst_248 = arith.constant dense<0.000000e+00> : vector<1x128xf32>
    %334 = tpu.matmul %332, %333, %cst_248 {dimension_numbers = #tpu.dot_dimension_numbers<[1], [0], [0], [1], [0, 0, 1, 1], [], []>} : vector<1x264xbf16>, vector<264x128xbf16>, vector<1x128xf32> -> vector<1x128xf32>
    %c0_249 = arith.constant 0 : index
    %c0_250 = arith.constant 0 : index
    %335 = vector.load %arg23[%c0_249, %c0_250] : memref<1x128xf32, #tpu.memory_space<vmem>>, vector<1x128xf32>
    %336 = arith.addf %334, %335 : vector<1x128xf32>
    %cst_251 = arith.constant 0.000000e+00 : f32
    %337 = vector.broadcast %cst_251 : f32 to vector<1x128xf32>
    %338 = arith.maximumf %336, %337 : vector<1x128xf32>
    %339 = arith.truncf %338 : vector<1x128xf32> to vector<1x128xbf16>
    %c0_252 = arith.constant 0 : index
    %c0_253 = arith.constant 0 : index
    %340 = vector.load %arg24[%c0_252, %c0_253] : memref<128x2xbf16, #tpu.memory_space<vmem>>, vector<128x2xbf16>
    %cst_254 = arith.constant dense<0.000000e+00> : vector<1x2xf32>
    %341 = tpu.matmul %339, %340, %cst_254 {dimension_numbers = #tpu.dot_dimension_numbers<[1], [0], [0], [1], [0, 0, 1, 1], [], []>} : vector<1x128xbf16>, vector<128x2xbf16>, vector<1x2xf32> -> vector<1x2xf32>
    %c0_255 = arith.constant 0 : index
    %c0_256 = arith.constant 0 : index
    %342 = vector.load %arg25[%c0_255, %c0_256] : memref<1x2xf32, #tpu.memory_space<vmem>>, vector<1x2xf32>
    %343 = arith.addf %341, %342 : vector<1x2xf32>
    %cst_257 = arith.constant dense<0xFF800000> : vector<1xf32>
    %344 = vector.multi_reduction <maximumf>, %343, %cst_257 [1] : vector<1x2xf32> to vector<1xf32>
    %345 = vector.shape_cast %344 : vector<1xf32> to vector<1x1xf32>
    %346 = vector.broadcast %345 : vector<1x1xf32> to vector<1x2xf32>
    %347 = arith.subf %343, %346 : vector<1x2xf32>
    %348 = math.exp %347 : vector<1x2xf32>
    %cst_258 = arith.constant dense<0.000000e+00> : vector<1xf32>
    %349 = vector.multi_reduction <add>, %348, %cst_258 [1] : vector<1x2xf32> to vector<1xf32>
    %350 = vector.shape_cast %349 : vector<1xf32> to vector<1x1xf32>
    %351 = vector.broadcast %350 : vector<1x1xf32> to vector<1x2xf32>
    %352 = arith.divf %348, %351 : vector<1x2xf32>
    %c0_259 = arith.constant 0 : index
    %c0_260 = arith.constant 0 : index
    %c0_261 = arith.constant 0 : index
    %353 = vector.load %arg26[%c0_259, %c0_260, %c0_261] : memref<1x1x2xf32, #tpu.memory_space<vmem>>, vector<1x1x2xf32>
    %354 = vector.shape_cast %353 : vector<1x1x2xf32> to vector<1x2xf32>
    %355 = vector.shape_cast %352 : vector<1x2xf32> to vector<1x1x2xf32>
    tpu.vector_store %arg26[%c0_259, %c0_260, %c0_261], %355 {strides = array<i32>} : memref<1x1x2xf32, #tpu.memory_space<vmem>>, vector<1x1x2xf32>,
    return
  }
  func.func @transform_0(%arg0: i32) -> (i32, i32, i32) {
    %c0_i32 = arith.constant 0 : i32
    %c0_i32_0 = arith.constant 0 : i32
    %c0_i32_1 = arith.constant 0 : i32
    return %arg0, %c0_i32, %c0_i32_0 : i32, i32, i32
  }
  func.func @transform_1(%arg0: i32) -> (i32, i32, i32) {
    %c0_i32 = arith.constant 0 : i32
    %c0_i32_0 = arith.constant 0 : i32
    %c0_i32_1 = arith.constant 0 : i32
    return %arg0, %c0_i32, %c0_i32_0 : i32, i32, i32
  }
  func.func @transform_2(%arg0: i32) -> (i32, i32, i32) {
    %c0_i32 = arith.constant 0 : i32
    %c0_i32_0 = arith.constant 0 : i32
    %c0_i32_1 = arith.constant 0 : i32
    return %arg0, %c0_i32, %c0_i32_0 : i32, i32, i32
  }
  func.func @transform_3(%arg0: i32) -> (i32, i32, i32) {
    %c0_i32 = arith.constant 0 : i32
    %c0_i32_0 = arith.constant 0 : i32
    %c0_i32_1 = arith.constant 0 : i32
    return %arg0, %c0_i32, %c0_i32_0 : i32, i32, i32
  }
  func.func @transform_4(%arg0: i32) -> (i32, i32) {
    %c0_i32 = arith.constant 0 : i32
    %c0_i32_0 = arith.constant 0 : i32
    %c0_i32_1 = arith.constant 0 : i32
    return %c0_i32, %c0_i32_0 : i32, i32
  }
  func.func @transform_5(%arg0: i32) -> (i32, i32) {
    %c0_i32 = arith.constant 0 : i32
    %c0_i32_0 = arith.constant 0 : i32
    %c0_i32_1 = arith.constant 0 : i32
    return %c0_i32, %c0_i32_0 : i32, i32
  }
  func.func @transform_6(%arg0: i32) -> (i32, i32) {
    %c0_i32 = arith.constant 0 : i32
    %c0_i32_0 = arith.constant 0 : i32
    %c0_i32_1 = arith.constant 0 : i32
    return %c0_i32, %c0_i32_0 : i32, i32
  }
  func.func @transform_7(%arg0: i32) -> (i32, i32) {
    %c0_i32 = arith.constant 0 : i32
    %c0_i32_0 = arith.constant 0 : i32
    %c0_i32_1 = arith.constant 0 : i32
    return %c0_i32, %c0_i32_0 : i32, i32
  }
  func.func @transform_8(%arg0: i32) -> (i32, i32) {
    %c0_i32 = arith.constant 0 : i32
    %c0_i32_0 = arith.constant 0 : i32
    %c0_i32_1 = arith.constant 0 : i32
    return %c0_i32, %c0_i32_0 : i32, i32
  }
  func.func @transform_9(%arg0: i32) -> (i32, i32) {
    %c0_i32 = arith.constant 0 : i32
    %c0_i32_0 = arith.constant 0 : i32
    %c0_i32_1 = arith.constant 0 : i32
    return %c0_i32, %c0_i32_0 : i32, i32
  }
  func.func @transform_10(%arg0: i32) -> (i32, i32, i32) {
    %c0_i32 = arith.constant 0 : i32
    %c0_i32_0 = arith.constant 0 : i32
    %c0_i32_1 = arith.constant 0 : i32
    %c0_i32_2 = arith.constant 0 : i32
    return %c0_i32, %c0_i32_0, %c0_i32_1 : i32, i32, i32
  }
  func.func @transform_11(%arg0: i32) -> (i32, i32) {
    %c0_i32 = arith.constant 0 : i32
    %c0_i32_0 = arith.constant 0 : i32
    %c0_i32_1 = arith.constant 0 : i32
    return %c0_i32, %c0_i32_0 : i32, i32
  }
  func.func @transform_12(%arg0: i32) -> (i32, i32, i32) {
    %c0_i32 = arith.constant 0 : i32
    %c0_i32_0 = arith.constant 0 : i32
    %c0_i32_1 = arith.constant 0 : i32
    %c0_i32_2 = arith.constant 0 : i32
    return %c0_i32, %c0_i32_0, %c0_i32_1 : i32, i32, i32
  }
  func.func @transform_13(%arg0: i32) -> (i32, i32) {
    %c0_i32 = arith.constant 0 : i32
    %c0_i32_0 = arith.constant 0 : i32
    %c0_i32_1 = arith.constant 0 : i32
    return %c0_i32, %c0_i32_0 : i32, i32
  }
  func.func @transform_14(%arg0: i32) -> (i32, i32, i32) {
    %c0_i32 = arith.constant 0 : i32
    %c0_i32_0 = arith.constant 0 : i32
    %c0_i32_1 = arith.constant 0 : i32
    %c0_i32_2 = arith.constant 0 : i32
    return %c0_i32, %c0_i32_0, %c0_i32_1 : i32, i32, i32
  }
  func.func @transform_15(%arg0: i32) -> (i32, i32) {
    %c0_i32 = arith.constant 0 : i32
    %c0_i32_0 = arith.constant 0 : i32
    %c0_i32_1 = arith.constant 0 : i32
    return %c0_i32, %c0_i32_0 : i32, i32
  }
  func.func @transform_16(%arg0: i32) -> (i32, i32) {
    %c0_i32 = arith.constant 0 : i32
    %c0_i32_0 = arith.constant 0 : i32
    %c0_i32_1 = arith.constant 0 : i32
    return %c0_i32, %c0_i32_0 : i32, i32
  }
  func.func @transform_17(%arg0: i32) -> (i32, i32, i32) {
    %c0_i32 = arith.constant 0 : i32
    %c0_i32_0 = arith.constant 0 : i32
    %c0_i32_1 = arith.constant 0 : i32
    %c0_i32_2 = arith.constant 0 : i32
    return %c0_i32, %c0_i32_0, %c0_i32_1 : i32, i32, i32
  }
  func.func @transform_18(%arg0: i32) -> (i32, i32) {
    %c0_i32 = arith.constant 0 : i32
    %c0_i32_0 = arith.constant 0 : i32
    %c0_i32_1 = arith.constant 0 : i32
    return %c0_i32, %c0_i32_0 : i32, i32
  }
  func.func @transform_19(%arg0: i32) -> (i32, i32) {
    %c0_i32 = arith.constant 0 : i32
    %c0_i32_0 = arith.constant 0 : i32
    %c0_i32_1 = arith.constant 0 : i32
    return %c0_i32, %c0_i32_0 : i32, i32
  }
  func.func @transform_20(%arg0: i32) -> (i32, i32) {
    %c0_i32 = arith.constant 0 : i32
    %c0_i32_0 = arith.constant 0 : i32
    %c0_i32_1 = arith.constant 0 : i32
    return %c0_i32, %c0_i32_0 : i32, i32
  }
  func.func @transform_21(%arg0: i32) -> (i32, i32) {
    %c0_i32 = arith.constant 0 : i32
    %c0_i32_0 = arith.constant 0 : i32
    %c0_i32_1 = arith.constant 0 : i32
    return %c0_i32, %c0_i32_0 : i32, i32
  }
  func.func @transform_22(%arg0: i32) -> (i32, i32) {
    %c0_i32 = arith.constant 0 : i32
    %c0_i32_0 = arith.constant 0 : i32
    %c0_i32_1 = arith.constant 0 : i32
    return %c0_i32, %c0_i32_0 : i32, i32
  }
  func.func @transform_23(%arg0: i32) -> (i32, i32) {
    %c0_i32 = arith.constant 0 : i32
    %c0_i32_0 = arith.constant 0 : i32
    %c0_i32_1 = arith.constant 0 : i32
    return %c0_i32, %c0_i32_0 : i32, i32
  }
  func.func @transform_24(%arg0: i32) -> (i32, i32) {
    %c0_i32 = arith.constant 0 : i32
    %c0_i32_0 = arith.constant 0 : i32
    %c0_i32_1 = arith.constant 0 : i32
    return %c0_i32, %c0_i32_0 : i32, i32
  }
  func.func @transform_25(%arg0: i32) -> (i32, i32, i32) {
    %c0_i32 = arith.constant 0 : i32
    %c0_i32_0 = arith.constant 0 : i32
    %c0_i32_1 = arith.constant 0 : i32
    return %arg0, %c0_i32, %c0_i32_0 : i32, i32, i32
  }
}

</mosaic_0001>

<bundles_post_ra>
// kernel: mstcrb_forward.1
= control target key start
LH: loop header
LB: loop body
LE: loop exit
PB: predicated region body
PF: predicated region fallthrough
CT: control target
= control target key end

     0   :  { %s18615_s0 = inlined_call_operand.vmem [shape: f32[2,101,11], index: 0, kind: input, shape index: {}]   ;;  %s18616_s1 = inlined_call_operand.vmem [shape: f32[2,101,3], index: 1, kind: input, shape index: {}]   ;;  %s18617_s2 = inlined_call_operand.vmem [shape: f32[2,101,105], index: 2, kind: input, shape index: {}]   ;;  %s18618_s3 = inlined_call_operand.vmem [shape: f32[2,101,101], index: 3, kind: input, shape index: {}]   ;;  %s18619_s4 = inlined_call_operand.vmem [shape: f32[101,1], index: 4, kind: input, shape index: {}]   ;;  %s18620_s5 = inlined_call_operand.vmem [shape: f32[101,1], index: 5, kind: input, shape index: {}]   ;;  %s18621_s6 = inlined_call_operand.hbm [shape: bf16[3,11], index: 6, kind: input, shape index: {}]   ;;  %s18622_s7 = inlined_call_operand.hbm [shape: f32[1,11], index: 7, kind: input, shape index: {}]   ;;  %s18623_s8 = inlined_call_operand.hbm [shape: f32[1,11], index: 8, kind: input, shape index: {}]   ;;  %s18624_s9 = inlined_call_operand.<no memory space> [shape: f32[1,1], index: 9, kind: input, shape index: {}]   ;;  %s18625_s10 = inlined_call_operand.vmem [shape: bf16[7,11,128], index: 10, kind: input, shape index: {}]   ;;  %s18626_s11 = inlined_call_operand.hbm [shape: f32[1,128], index: 11, kind: input, shape index: {}]   ;;  %s18627_s12 = inlined_call_operand.hbm [shape: bf16[7,105,128], index: 12, kind: input, shape index: {}]   ;;  %s18628_s13 = inlined_call_operand.hbm [shape: f32[1,128], index: 13, kind: input, shape index: {}]   ;;  %s18629_s14 = inlined_call_operand.hbm [shape: bf16[7,101,128], index: 14, kind: input, shape index: {}]   ;;  %s18630_s15 = inlined_call_operand.hbm [shape: f32[1,128], index: 15, kind: input, shape index: {}]   ;;  %s18631_s16 = inlined_call_operand.vmem [shape: bf16[19,95], index: 16, kind: input, shape index: {}]   ;;  %s18632_s17 = inlined_call_operand.hbm [shape: bf16[19,128,512], index: 17, kind: input, shape index: {}]   ;;  %s18633_s18 = inlined_call_operand.hbm [shape: f32[1,512], index: 18, kind: input, shape index: {}]   ;;  %s18634_s19 = inlined_call_operand.vmem [shape: bf16[512,264], index: 19, kind: input, shape index: {}]   ;;  %s18635_s20 = inlined_call_operand.hbm [shape: f32[1,264], index: 20, kind: input, shape index: {}]   ;;  %s18636_s21 = inlined_call_operand.hbm [shape: bf16[264,128], index: 21, kind: input, shape index: {}]   ;;  %s18637_s22 = inlined_call_operand.hbm [shape: f32[1,128], index: 22, kind: input, shape index: {}]   ;;  %s18638_s23 = inlined_call_operand.vmem [shape: bf16[128,2], index: 23, kind: input, shape index: {}]   ;;  %s18639_s24 = inlined_call_operand.hbm [shape: f32[1,2], index: 24, kind: input, shape index: {}]   ;;  %s18640_s25 = inlined_call_operand.hbm [shape: f32[2,1,2], index: 25, kind: output, shape index: {}]  }
   0x1   :  { %18653 = sst [smem:[#allocation69_spill]] %s18615_s0 }
   0x2   :  { %18654 = sst [smem:[#allocation70_spill]] %s18616_s1 }
   0x3   :  { %18655 = sst [smem:[#allocation71_spill]] %s18617_s2 }
   0x4   :  { %18656 = sst [smem:[#allocation72_spill]] %s18618_s3 }
   0x5   :  { %18657 = sst [smem:[#allocation73_spill]] %s18619_s4 }
   0x6   :  { %18658 = sst [smem:[#allocation74_spill]] %s18620_s5 }
   0x7   :  { %18659 = sst [smem:[#allocation75_spill]] %s18621_s6 }
   0x8   :  { %18660 = sst [smem:[#allocation76_spill]] %s18622_s7 }
   0x9   :  { %18661 = sst [smem:[#allocation77_spill]] %s18623_s8 }
   0xa   :  { %18662 = sst [smem:[#allocation78_spill]] %s18624_s9 }
   0xb   :  { %18663 = sst [smem:[#allocation79_spill]] %s18626_s11 }
   0xc   :  { %18664 = sst [smem:[#allocation80_spill]] %s18628_s13 }
   0xd   :  { %18665 = sst [smem:[#allocation81_spill]] %s18630_s15 }
   0xe   :  { %18666 = sst [smem:[#allocation82_spill]] %s18633_s18 }
   0xf   :  { %18667 = sst [smem:[#allocation83_spill]] %s18640_s25 }
  0x10   :  { %s18668_s6 = sld [smem:[#allocation78_spill]] }
  0x16   :  { %v30_v0 = vstv %s18668_s6 }
  0x17   :  { %31 = vst [vmem:[#allocation3] sm:$0x1] %v30_v0 }
  0x18   :  { %32 = vsyncpa [#allocation5], 0 }
  0x19   :  { %33 = vsyncpa [#allocation8], 0 }
  0x1a   :  { %34 = vsyncpa [#allocation11], 0 }
  0x1b   :  { %35 = vsyncpa [#allocation14], 0 }
  0x1c   :  { %36 = vsyncpa [#allocation17], 0 }
  0x1d   :  { %37 = vsyncpa [#allocation20], 0 }
  0x1e   :  { %38 = vsyncpa [#allocation23], 0 }
  0x1f   :  { %39 = vsyncpa [#allocation26], 0 }
  0x20   :  { %40 = vsyncpa [#allocation6], 0 }
  0x21   :  { %42 = vsyncpa [#allocation6 + $0x1], 0  ;;  %s16143_s30 = smov 0   ;;  %s16145_s7 = smov 0  }
  0x22   :  { %s16147_s3 = smov 0   ;;  %s16149_s26 = smov 0  }
  0x23 LB: > { %18669 = sst [smem:[#allocation37_spill]] %s15976_s30  ;;  %s16164_s1 = sadd.s32 4294967295, %s15988_s26   ;;  %s15988_s26 = sphi %s16149_s26, %s18762_s26   ;;  %s15984_s3 = sphi %s16147_s3, %s18764_s3   ;;  %s15980_s7 = sphi %s16145_s7, %s18766_s7   ;;  %s15976_s30 = sphi %s16143_s30, %s18765_s30  }
  0x24   : > { %18670 = sst [smem:[#allocation38_spill]] %s15984_s3  ;;  %s10869_s8 = sadd.s32 4294967294, %s15988_s26  }
  0x25   : > { %18671 = sst [smem:[#allocation39_spill]] %s15988_s26  ;;  %s16168_s27 = sadd.s32 1, %s15988_s26  }
  0x26   : > { %18672 = sst [smem:[#allocation40_spill]] %s16168_s27  ;;  %s600_s4 = sadd.s32 1, %s15984_s3 }
  0x27   : > { %s597_s28 = ssub.s32 %s15988_s26, %s16168_s27  ;;  %p610_p0 = scmp.ne.s32.totalorder %s15984_s3, %s15980_s7 }
  0x28   : > { %p598_p1 = scmp.eq.s32.totalorder %s597_s28, 0  ;;  %p611_p2 = scmp.eq.s32.totalorder %s16164_s1, 1 }
  0x29   : > { %p616_p3 = scmp.ne.s32.totalorder %s15980_s7, %s15976_s30  ;;  %p617_p4 = scmp.eq.s32.totalorder %s10869_s8, 1 }
  0x2a   : > { %s16179_s9 = scalar_select %p598_p1, %s15984_s3, %s600_s4  }
  0x2b   : > { %p16181_p5 = por %p611_p2, %p610_p0  ;;  %p16185_p6 = por %p617_p4, %p616_p3 }
  0x2c   : > { %18673 = sst [smem:[#allocation41_spill]] %s16179_s9  ;;  %p10870_p7 = scmp.ge.s32.totalorder %s15988_s26, 1 }
  0x2d   : > { %s18674_s5 = scalar_select %p16181_p5, 1, 0 }
  0x2e   : > { %s18676_s0 = scalar_select %p16185_p6, 1, 0 }
  0x2f   : > { %18675 = sst [smem:[#allocation42_spill]] %s18674_s5  ;;  %p624_p8 = scmp.lt.s32.totalorder %s15988_s26, 3 }
  0x30   : > { %18677 = sst [smem:[#allocation43_spill]] %s18676_s0  ;;  %p15315_p9 = scmp.eq.s32.totalorder %s16164_s1, 0 }
  0x31   : > { %p16192_p10 = pnand %p10870_p7, %p624_p8  ;;  %s18679_s8 = sld [smem:[#allocation76_spill]] }
  0x32   : > { %s15990_s28 = smov [#allocation7]   ;;  %s18680_s11 = sld [smem:[#allocation79_spill]] }
  0x33   : > { %p15268_p11 = pneg %p16192_p10  ;;  %s656_s9 = sshll.u32 %s15990_s28, 4  ;;  %s657_s9 = int_to_ptr.vmem [resolvable:$true] %s656_s9 }
  0x34   : > { %s18682_s13 = sld [smem:[#allocation80_spill]]  ;;  %s15991_s26 = smov [#allocation10]  }
  0x35   : > { %p16206_p12 = pnand %p15315_p9, %p15268_p11  ;;  %s686_s28 = sshll.u32 %s15991_s26, 4  ;;  %s687_s28 = int_to_ptr.vmem [resolvable:$true] %s686_s28 }
  0x36   : > { %s18683_s15 = sld [smem:[#allocation81_spill]]  ;;  %s15992_s5 = smov [#allocation13]  }
  0x37   : > { %s654_s4 = sshll.u32 %s18679_s8, 4  ;;  %s712_s25 = sshll.u32 %s15992_s5, 4  ;;  %s655_s4 = int_to_ptr.hbm [resolvable:$true] %s654_s4  ;;  %s713_s25 = int_to_ptr.vmem [resolvable:$true] %s712_s25 }
  0x38   : > { %s684_s0 = sshll.u32 %s18680_s11, 4  ;;  %s15993_s2 = smov [#allocation16]   ;;  %s685_s0 = int_to_ptr.hbm [resolvable:$true] %s684_s0 }
  0x39   : > { %15274 = dma.hbm_to_vmem [thread:$0]  (!%p16206_p12), %s655_s4, 16, %s657_s9, [#allocation8]  }
  0x3a   : > { %s710_s8 = sshll.u32 %s18682_s13, 4  ;;  %s738_s26 = sshll.u32 %s15993_s2, 4  ;;  %s711_s8 = int_to_ptr.hbm [resolvable:$true] %s710_s8  ;;  %s739_s26 = int_to_ptr.vmem [resolvable:$true] %s738_s26 }
  0x3b   : > { %15280 = dma.hbm_to_vmem [thread:$0]  (!%p16206_p12), %s685_s0, 16, %s687_s28, [#allocation11]  }
  0x3c   : > { %s736_s11 = sshll.u32 %s18683_s15, 4  ;;  %s18684_s18 = sld [smem:[#allocation82_spill]]  ;;  %s737_s11 = int_to_ptr.hbm [resolvable:$true] %s736_s11 }
  0x3d   : > { %15286 = dma.hbm_to_vmem [thread:$0]  (!%p16206_p12), %s711_s8, 16, %s713_s25, [#allocation14]  }
  0x3e   : > { %15292 = dma.hbm_to_vmem [thread:$0]  (!%p16206_p12), %s737_s11, 16, %s739_s26, [#allocation17]  }
  0x3f   : > { %s15994_s0 = smov [#allocation19]   ;;  %s791_s3 = sshll.u32 %s18636_s21, 4  ;;  %s792_s3 = int_to_ptr.hbm [resolvable:$true] %s791_s3 }
  0x40   : > { %s767_s4 = sshll.u32 %s15994_s0, 4  ;;  %s15995_s25 = smov [#allocation22]   ;;  %s768_s4 = int_to_ptr.vmem [resolvable:$true] %s767_s4 }
  0x41   : > { %s793_s8 = sshll.u32 %s15995_s25, 4  ;;  %s18685_s2 = sld [smem:[#allocation75_spill]]  ;;  %s794_s8 = int_to_ptr.vmem [resolvable:$true] %s793_s8 }
  0x42   : > { %s765_s9 = sshll.u32 %s18684_s18, 4  ;;  %s15996_s11 = smov 64   ;;  %s766_s9 = int_to_ptr.hbm [resolvable:$true] %s765_s9 }
  0x43   : > { %15298 = dma.hbm_to_vmem [thread:$0]  (!%p16206_p12), %s766_s9, 64, %s768_s4, [#allocation20]  }
  0x44   : > { %s15997_s26 = smov 4   ;;  %s18686_s5 = sld [smem:[#allocation77_spill]] }
  0x45   : > { %15304 = dma.hbm_to_vmem [thread:$0]  (!%p16206_p12), %s792_s3, 2112, %s794_s8, [#allocation23], %s15996_s11, %s15996_s11, %s15997_s26  }
  0x46   : > { %s15998_s18 = smov [#allocation4]   ;;  %s15999_s4 = smov [#allocation9]  }
  0x47   : > { %s642_s6 = sshll.u32 %s18685_s2, 4  ;;  %s644_s9 = sshll.u32 %s15998_s18, 4  ;;  %s643_s6 = int_to_ptr.hbm [resolvable:$true] %s642_s6  ;;  %s645_s9 = int_to_ptr.vmem [resolvable:$true] %s644_s9 }
  0x48   : > { %15271 = dma.hbm_to_vmem [thread:$0]  (!%p16206_p12), %s643_s6, 32, %s645_s9, [#allocation5]  }
  0x49   : > { %s668_s25 = sshll.u32 %s15999_s4, 4  ;;  %s695_s2 = sshll.u32 %s18627_s12, 4  ;;  %s669_s25 = int_to_ptr.vmem [resolvable:$true] %s668_s25  ;;  %s696_s2 = int_to_ptr.hbm [resolvable:$true] %s695_s2 }
  0x4a   : > { %s666_s15 = sshll.u32 %s18686_s5, 4  ;;  %s721_s0 = sshll.u32 %s18629_s14, 4  ;;  %s667_s15 = int_to_ptr.hbm [resolvable:$true] %s666_s15  ;;  %s722_s0 = int_to_ptr.hbm [resolvable:$true] %s721_s0 }
  0x4b   : > { %15277 = dma.hbm_to_vmem [thread:$0]  (!%p16206_p12), %s667_s15, 16, %s669_s25, [#allocation8]  }
  0x4c   : > { %s16000_s18 = smov [#allocation12]   ;;  %s16001_s6 = smov [#allocation15]  }
  0x4d   : > { %s697_s28 = sshll.u32 %s16000_s18, 4  ;;  %s723_s5 = sshll.u32 %s16001_s6, 4  ;;  %s698_s28 = int_to_ptr.vmem [resolvable:$true] %s697_s28  ;;  %s724_s5 = int_to_ptr.vmem [resolvable:$true] %s723_s5 }
  0x4e   : > { %15283 = dma.hbm_to_vmem [thread:$0]  (!%p16206_p12), %s696_s2, 6272, %s698_s28, [#allocation11], %s15996_s11, %s15996_s11, %s15997_s26  }
  0x4f   : > { %s750_s13 = sshll.u32 %s18632_s17, 4  ;;  %s16002_s15 = smov [#allocation18]   ;;  %s751_s13 = int_to_ptr.hbm [resolvable:$true] %s750_s13 }
  0x50   : > { %15289 = dma.hbm_to_vmem [thread:$0]  (!%p16206_p12), %s722_s0, 5824, %s724_s5, [#allocation14], %s15996_s11, %s15996_s11, %s15997_s26  }
  0x51   : > { %s752_s25 = sshll.u32 %s16002_s15, 4  ;;  %s780_s8 = sshll.u32 %s18635_s20, 4  ;;  %s753_s25 = int_to_ptr.vmem [resolvable:$true] %s752_s25  ;;  %s781_s8 = int_to_ptr.hbm [resolvable:$true] %s780_s8 }
  0x52   : > { %s16003_s2 = smov 256   ;;  %s16004_s18 = smov 16  }
  0x53   : > { %15295 = dma.hbm_to_vmem [thread:$0]  (!%p16206_p12), %s751_s13, 77824, %s753_s25, [#allocation17], %s16003_s2, %s16003_s2, %s16004_s18  }
  0x54   : > { %s16005_s28 = smov [#allocation21]   ;;  %s806_s11 = sshll.u32 %s18637_s22, 4  ;;  %s807_s11 = int_to_ptr.hbm [resolvable:$true] %s806_s11 }
  0x55   : > { %s782_s6 = sshll.u32 %s16005_s28, 4  ;;  %s821_s5 = sshll.u32 %s18639_s24, 4  ;;  %s783_s6 = int_to_ptr.vmem [resolvable:$true] %s782_s6  ;;  %s822_s5 = int_to_ptr.hbm [resolvable:$true] %s821_s5 }
  0x56   : > { %15301 = dma.hbm_to_vmem [thread:$0]  (!%p16206_p12), %s781_s8, 48, %s783_s6, [#allocation20]  }
  0x57   : > { %s16006_s15 = smov [#allocation24]   ;;  %s16007_s13 = smov [#allocation25]  }
  0x58   : > { %s808_s27 = sshll.u32 %s16006_s15, 4  ;;  %s823_s25 = sshll.u32 %s16007_s13, 4  ;;  %s809_s27 = int_to_ptr.vmem [resolvable:$true] %s808_s27  ;;  %s824_s25 = int_to_ptr.vmem [resolvable:$true] %s823_s25 }
  0x59   : > { %15307 = dma.hbm_to_vmem [thread:$0]  (!%p16206_p12), %s807_s11, 16, %s809_s27, [#allocation23]  }
  0x5a   : > { %15310 = dma.hbm_to_vmem [thread:$0]  (!%p16206_p12), %s822_s5, 16, %s824_s25, [#allocation26]  }
  0x5b   : > { %868 = sbr.rel (%p16192_p10) target bundleno = 2988 (0xbac), region = 120 }
  0x60   : > { %15939 = dma.done.wait (%p15315_p9), [#allocation5], 32  }
  0x61   : > { %15941 = vsyncadd (%p15315_p9), [#allocation5], 4294967264 }
  0x62   : > { %15943 = dma.done.wait (%p15315_p9), [#allocation8], 32  }
  0x63   : > { %15945 = vsyncadd (%p15315_p9), [#allocation8], 4294967264 }
  0x64   : > { %15947 = dma.done.wait (%p15315_p9), [#allocation11], 6288  }
  0x65   : > { %15949 = vsyncadd (%p15315_p9), [#allocation11], 4294961008 }
  0x66   : > { %15951 = dma.done.wait (%p15315_p9), [#allocation14], 5840  }
  0x67   : > { %15953 = vsyncadd (%p15315_p9), [#allocation14], 4294961456 }
  0x68   : > { %15955 = dma.done.wait (%p15315_p9), [#allocation17], 77840  }
  0x69   : > { %15957 = vsyncadd (%p15315_p9), [#allocation17], 4294889456 }
  0x6a   : > { %15959 = dma.done.wait (%p15315_p9), [#allocation20], 112  }
  0x6b   : > { %15961 = vsyncadd (%p15315_p9), [#allocation20], 4294967184 }
  0x6c   : > { %15963 = dma.done.wait (%p15315_p9), [#allocation23], 2128  }
  0x6d   : > { %15965 = vsyncadd (%p15315_p9), [#allocation23], 4294965168 }
  0x6e   : > { %15967 = dma.done.wait (%p15315_p9), [#allocation26], 16  }
  0x6f   : > { %15969 = vsyncadd (%p15315_p9), [#allocation26], 4294967280  ;;  %vm1279_vm0 = vcmask 1040384   ;;  %p1016_p13 = scmp.lt.s32.totalorder %s16164_s1, 1  ;;  %vm1280_vm1 = vcmask 1041408   ;;  %v18652_v1 = vmov 65535  }
  0x70   : > { %v1281_v2 = vsel %vm1279_vm0, 4294967295, %v18652_v1  ;;  %v1252_v4 = vld [vmem:[#allocation4] sm:$0x3]  ;;  %s18687_s2 = sld [smem:[#allocation70_spill]]  ;;  %vm1257_vm2 = vcmask 23552   ;;  %v16009_v20 = vmov 0  }
  0x71   : > { %s1017_s30 = scalar_select %p1016_p13, %s16164_s1, 1  ;;  %v1282_v3 = vsel %vm1280_vm1, %v1281_v2, 0  ;;  %15396 = vset.pattern.permute.xlu1 %v16009_v20  ;;  %15398 = vset.pattern.permute.xlu0 %v16009_v20  ;;  %v16356_v31 = vld [vmem:[#allocation7] ss:$0 sm:$0xff]  ;;  %v16361_v34 = vld [vmem:[#allocation9] ss:$0 sm:$0xff] }
  0x72   : > { %v1284_v5 = vand.u32 %v1282_v3, %v1252_v4  ;;  %s18688_s9 = sld [smem:[#allocation73_spill]]  ;;  %15397 = vset.pattern.permute.xlu2 %v16009_v20  ;;  %vm1359_vm3 = vcmask 89088   ;;  %s1014_s3 = sand.u32 1, %s15980_s7  }
  0x73   : > { %s16312_s29 = smul.u32 104, %s1017_s30  ;;  %s18689_s26 = sld [smem:[#allocation74_spill]] }
  0x74   : > { %1293 = vmatpush.bf16.msra.mxu0 %v1284_v5  ;;  %15208 = vmatpush.bf16.msra.mxu3 %v1284_v5  ;;  %s18691_s6 = sld [smem:[#allocation69_spill]]  ;;  %s10630_s15 = scalar_lea.sflag [#allocation6], %s1014_s3 }
  0x75   : > { %s18702_s11 = sld [smem:[#allocation71_spill]] }
  0x76   : > { %s16318_s18 = scalar_lea.vmem %s18687_s2, %s16312_s29  ;;  %s18714_s27 = sld [smem:[#allocation72_spill]] }
  0x77   : > { %v1232_v6 = vld [vmem:[%s16318_s18] sm:$0xff]  ;;  %v1233_v7 = vld [vmem:[%s16318_s18 + $0x8] sm:$0xff]  ;;  %v1234_v9 = vld [vmem:[%s16318_s18 + $0x10] sm:$0xff]  ;;  %s18757_s28 = sld [smem:[#allocation83_spill]] }
  0x78   : > { %v1245_v8 = vpack.c.bf16 %v1233_v7, %v1232_v6  ;;  %v1235_v10 = vld [vmem:[%s16318_s18 + $0x18] sm:$0xff]  ;;  %v1236_v12 = vld [vmem:[%s16318_s18 + $0x20] sm:$0xff]  ;;  %v1237_v13 = vld [vmem:[%s16318_s18 + $0x28] sm:$0xff] }
  0x79   : > { %v1246_v11 = vpack.c.bf16 %v1235_v10, %v1234_v9  ;;  %v1247_v14 = vpack.c.bf16 %v1237_v13, %v1236_v12  ;;  %v1238_v15 = vld [vmem:[%s16318_s18 + $0x30] sm:$0xff]  ;;  %v1239_v16 = vld [vmem:[%s16318_s18 + $0x38] sm:$0xff]  ;;  %v1050_v18 = vld [vmem:[%s18688_s9] sm:$0xff]  ;;  %s18690_s0 = smov %s18689_s26 }
  0x7a   : > { %10905 = vmatmul.msk.bf16.vlgmr.msra.gmra.mxu0 %vm1257_vm2, %v1245_v8  ;;  %v1248_v17 = vpack.c.bf16 %v1239_v16, %v1238_v15  ;;  %v1141_v19 = vld [vmem:[%s18689_s26] sm:$0xff]  ;;  %v1051_v21 = vld [vmem:[%s18688_s9 + $0x8] sm:$0xff]  ;;  %1065 = vperm.xlu1 %15396, %v1050_v18   ;;  %v1052_v22 = vld [vmem:[%s18688_s9 + $0x10] sm:$0xff]  ;;  %s16423_s4 = scalar_lea.vmem %s18691_s6, %s16312_s29 }
  0x7b   : > { %1156 = vperm.xlu0 %15398, %v1141_v19   ;;  %1070 = vperm.xlu2 %15397, %v1051_v21   ;;  %v1240_v23 = vld [vmem:[%s16318_s18 + $0x40] sm:$0xff]  ;;  %v1241_v24 = vld [vmem:[%s16318_s18 + $0x48] sm:$0xff]  ;;  %v1143_v27 = vld [vmem:[%s18690_s0 + $0x10] sm:$0xff]  ;;  %s16801_s26 = scalar_lea.vmem %s18702_s11, %s16312_s29  ;;  %s1015_s11 = scalar_lea.vmem [#allocation27], %s1014_s3 }
  0x7c   : > { %v1142_v25 = vld [vmem:[%s18690_s0 + $0x8] sm:$0xff]  ;;  %v1249_v26 = vpack.c.bf16 %v1241_v24, %v1240_v23  ;;  %v1242_v28 = vld [vmem:[%s16318_s18 + $0x50] sm:$0xff]  ;;  %v1243_v29 = vld [vmem:[%s16318_s18 + $0x58] sm:$0xff] }
  0x7d   : > { %v1250_v30 = vpack.c.bf16 %v1243_v29, %v1242_v28  ;;  %v1038_v9 = vld [vmem:[%s16423_s4 + $0x8] sm:$0xff]  ;;  %v1053_v29 = vld [vmem:[%s18688_s9 + $0x18] sm:$0xff]  ;;  %s15914_s13 = scalar_lea.hbm %s18757_s28, 2 }
  0x82   : > { %1075 = vperm.xlu1 %15396, %v1052_v22  }
  0x83   : > { %1161 = vperm.xlu2 %15397, %v1142_v25  }
  0x8a   : > { %10906 = vmatmul.msk.bf16.gmra.mxu0 %vm1257_vm2, %v1246_v11 }
  0x8b   : > { %1166 = vperm.xlu2 %15397, %v1143_v27  }
  0x9a   : > { %10907 = vmatmul.msk.bf16.gmra.mxu0 %vm1257_vm2, %v1247_v14 }
  0xaa   : > { %10908 = vmatmul.msk.bf16.gmra.mxu0 %vm1257_vm2, %v1248_v17 }
  0xba   : > { %10909 = vmatmul.msk.bf16.gmra.mxu0 %vm1257_vm2, %v1249_v26 }
  0xca   : > { %10910 = vmatmul.msk.bf16.gmra.mxu0 %vm1257_vm2, %v1250_v30 }
  0xd5   : > { %v1071_v7 = vpop.permute.xlu2 %1070 }
  0xd6   : > { %v1129_v11 = vmul.f32 %v1071_v7, %v1038_v9 }
  0xdd   : > { %v1162_v15 = vpop.permute.xlu2 %1161 }
  0xde   : > { %v16434_v16 = vadd.f32 %v1162_v15, %v1129_v11 }
  0xf7   : > { %v1295_v32 = vpop.f32.mrf.mxu0 }
  0xf8   : > { %v16359_v33 = vadd.f32 %v16356_v31, %v1295_v32  ;;  %v1054_v32 = vld [vmem:[%s18688_s9 + $0x20] sm:$0xff] }
  0xfa   : > { %v1329_v35 = vmax.f32 %v16359_v33, 0.0 }
  0xfc   : > { %v1346_v36 = vmul.f32 %v16361_v34, %v1329_v35 }
  0xfe   : > { %v1360_v37 = vsel %vm1359_vm3, %v1346_v36, 0.0  ;;  %v1055_v36 = vld [vmem:[%s18688_s9 + $0x28] sm:$0xff] }
  0xff   : > { %v1297_v38 = vpop.f32.mrf.mxu0  ;;  %1361 = vadd.xlane.f32.xlu0 %v1360_v37  ;;  %v1144_v37 = vld [vmem:[%s18690_s0 + $0x18] sm:$0xff] }
 0x100   : > { %v16369_v39 = vadd.f32 %v16356_v31, %v1297_v38  ;;  %v1056_v38 = vld [vmem:[%s18688_s9 + $0x30] sm:$0xff] }
 0x102   : > { %v1330_v40 = vmax.f32 %v16369_v39, 0.0 }
 0x104   : > { %v1347_v41 = vmul.f32 %v16361_v34, %v1330_v40 }
 0x106   : > { %v1363_v42 = vsel %vm1359_vm3, %v1347_v41, 0.0  ;;  %v1145_v41 = vld [vmem:[%s18690_s0 + $0x20] sm:$0xff] }
 0x107   : > { %v1300_v43 = vpop.f32.mrf.mxu0  ;;  %1364 = vadd.xlane.f32.xlu0 %v1363_v42  ;;  %v16475_v42 = vpop.permute.xlu0 %1156 }
 0x108   : > { %v16377_v44 = vadd.f32 %v16356_v31, %v1300_v43  ;;  %v1147_v43 = vld [vmem:[%s18690_s0 + $0x30] sm:$0xff] }
 0x10a   : > { %v1331_v45 = vmax.f32 %v16377_v44, 0.0 }
 0x10c   : > { %v1348_v46 = vmul.f32 %v16361_v34, %v1331_v45 }
 0x10e   : > { %v1366_v47 = vsel %vm1359_vm3, %v1348_v46, 0.0  ;;  %v16480_v46 = vld [vmem:[#allocation3] ss:$0 sm:$0xff] }
 0x10f   : > { %v1302_v48 = vpop.f32.mrf.mxu0  ;;  %1367 = vadd.xlane.f32.xlu1 %v1366_v47  ;;  %v1146_v47 = vld [vmem:[%s18690_s0 + $0x28] sm:$0xff] }
 0x110   : > { %v16385_v49 = vadd.f32 %v16356_v31, %v1302_v48  ;;  %v16485_v48 = vpop.permute.xlu1 %1065 }
 0x112   : > { %v1332_v50 = vmax.f32 %v16385_v49, 0.0 }
 0x114   : > { %v1349_v51 = vmul.f32 %v16361_v34, %v1332_v50 }
 0x116   : > { %v1369_v52 = vsel %vm1359_vm3, %v1349_v51, 0.0 }
 0x117   : > { %v1305_v53 = vpop.f32.mrf.mxu0  ;;  %1370 = vadd.xlane.f32.xlu1 %v1369_v52 }
 0x118   : > { %v16393_v54 = vadd.f32 %v16356_v31, %v1305_v53 }
 0x11a   : > { %v1333_v55 = vmax.f32 %v16393_v54, 0.0 }
 0x11c   : > { %v1350_v56 = vmul.f32 %v16361_v34, %v1333_v55 }
 0x11e   : > { %v1372_v57 = vsel %vm1359_vm3, %v1350_v56, 0.0  ;;  %v1057_v56 = vld [vmem:[%s18688_s9 + $0x38] sm:$0xff] }
 0x11f   : > { %v1307_v58 = vpop.f32.mrf.mxu0  ;;  %1373 = vadd.xlane.f32.xlu2 %v1372_v57  ;;  %v16491_v57 = vpop.permute.xlu1 %1075 }
 0x120   : > { %v16401_v59 = vadd.f32 %v16356_v31, %v1307_v58 }
 0x122   : > { %v1334_v60 = vmax.f32 %v16401_v59, 0.0 }
 0x124   : > { %v1351_v61 = vmul.f32 %v16361_v34, %v1334_v60 }
 0x126   : > { %v1375_v62 = vsel %vm1359_vm3, %v1351_v61, 0.0 }
 0x127   : > { %v1310_v63 = vpop.f32.mrf.mxu0  ;;  %1376 = vadd.xlane.f32.xlu2 %v1375_v62 }
 0x128   : > { %v16409_v0 = vadd.f32 %v16356_v31, %v1310_v63 }
 0x12a   : > { %v1335_v2 = vmax.f32 %v16409_v0, 0.0 }
 0x12c   : > { %v1352_v3 = vmul.f32 %v16361_v34, %v1335_v2 }
 0x12e   : > { %v1378_v4 = vsel %vm1359_vm3, %v1352_v3, 0.0  ;;  %v1244_v3 = vld [vmem:[%s16318_s18 + $0x60] sm:$0x1f]  ;;  %s17007_s18 = scalar_lea.vmem %s18714_s27, %s16312_s29 }
 0x12f   : > { %v1312_v5 = vpop.f32.mrf.mxu0  ;;  %1379 = vadd.xlane.f32.xlu0 %v1378_v4 }
 0x130   : > { %v16417_v6 = vadd.f32 %v16356_v31, %v1312_v5  ;;  %v1251_v5 = vpack.c.bf16 %v1244_v3, %v1244_v3 }
 0x132   : > { %v1336_v8 = vmax.f32 %v16417_v6, 0.0  ;;  %10911 = vmatmul.msk.bf16.vlgmr.msra.gmra.mxu3 %vm1257_vm2, %v1251_v5 }
 0x134   : > { %v1353_v10 = vmul.f32 %v16361_v34, %v1336_v8 }
 0x136   : > { %v1381_v12 = vsel %vm1359_vm3, %v1353_v10, 0.0 }
 0x137   : > { %v1315_v13 = vpop.f32.mrf.mxu0  ;;  %1382 = vadd.xlane.f32.xlu1 %v1381_v12 }
 0x138   : > { %v16432_v14 = vadd.f32 %v16356_v31, %v1315_v13 }
 0x13a   : > { %v1337_v17 = vmax.f32 %v16432_v14, 0.0 }
 0x13c   : > { %v1354_v18 = vmul.f32 %v16361_v34, %v1337_v17 }
 0x13e   : > { %v1384_v19 = vsel %vm1359_vm3, %v1354_v18, 0.0 }
 0x13f   : > { %v1317_v20 = vpop.f32.mrf.mxu0  ;;  %1385 = vadd.xlane.f32.xlu2 %v1384_v19  ;;  %v16497_v19 = vpop.permute.xlu2 %1166 }
 0x140   : > { %v16442_v21 = vadd.f32 %v16356_v31, %v1317_v20 }
 0x142   : > { %v1338_v22 = vmax.f32 %v16442_v21, 0.0 }
 0x144   : > { %v1355_v23 = vmul.f32 %v16361_v34, %v1338_v22 }
 0x146   : > { %v1387_v24 = vsel %vm1359_vm3, %v1355_v23, 0.0 }
 0x147   : > { %v1320_v25 = vpop.f32.mrf.mxu0  ;;  %1388 = vadd.xlane.f32.xlu0 %v1387_v24 }
 0x148   : > { %v16450_v26 = vadd.f32 %v16356_v31, %v1320_v25 }
 0x14a   : > { %v1339_v27 = vmax.f32 %v16450_v26, 0.0 }
 0x14c   : > { %v1356_v28 = vmul.f32 %v16361_v34, %v1339_v27 }
 0x14e   : > { %v1390_v30 = vsel %vm1359_vm3, %v1356_v28, 0.0 }
 0x14f   : > { %1391 = vadd.xlane.f32.xlu0 %v1390_v30 }
 0x150   : > { %1080 = vperm.xlu1 %15396, %v1053_v29  }
 0x158   : > { %1085 = vperm.xlu1 %15396, %v1054_v32  }
 0x160   : > { %1090 = vperm.xlu1 %15396, %v1055_v36  }
 0x163   : > { %1171 = vperm.xlu0 %15398, %v1144_v37  }
 0x168   : > { %1095 = vperm.xlu1 %15396, %v1056_v38  }
 0x16b   : > { %1176 = vperm.xlu0 %15398, %v1145_v41  }
 0x170   : > { %1186 = vperm.xlu1 %15396, %v1147_v43  }
 0x172   : > { %v1362_v51 = vpop.xlane.xlu0 %1361 }
 0x173   : > { %v1404_v52 = vadd.f32 %v16480_v46, %v1362_v51  ;;  %1181 = vperm.xlu0 %15398, %v1146_v47  }
 0x175   : > { %v10912_v53 = vmul.f32 -1.442695, %v1404_v52 }
 0x177   : > { %15405 = vpow2.f32 %v10912_v53 }
 0x17a   : > { %v1365_v58 = vpop.xlane.xlu0 %1364 }
 0x17b   : > { %v1405_v61 = vadd.f32 %v16480_v46, %v1365_v58  ;;  %1100 = vperm.xlu0 %15398, %v1057_v56  }
 0x17d   : > { %v15406_v62 = vpop.eup %15405  ;;  %v10913_v63 = vmul.f32 -1.442695, %v1405_v61 }
 0x17e   : > { %v1456_v4 = vadd.f32 1.0, %v15406_v62 }
 0x17f   : > { %15407 = vpow2.f32 %v10913_v63 }
 0x180   : > { %15409 = vrcp.f32 %v1456_v4  ;;  %v1480_v23 = vand.u32 2147483648, %v1456_v4  ;;  %v1478_v28 = vand.u32 2147483647, %v1456_v4  ;;  %vm1474_vm5 = vweird.f32 %v1456_v4 }
 0x182   : > { %v1368_v7 = vpop.xlane.xlu1 %1367  ;;  %v1481_v38 = vor.u32 1.1754944e-38, %v1480_v23  ;;  %vm1479_vm7 = vcmp.eq.f32.partialorder %v1478_v28, 8.507059e+37 }
 0x183   : > { %v1406_v9 = vadd.f32 %v16480_v46, %v1368_v7 }
 0x185   : > { %v15408_v10 = vpop.eup %15407  ;;  %v10914_v11 = vmul.f32 -1.442695, %v1406_v9 }
 0x186   : > { %v15410_v12 = vpop.eup %15409  ;;  %v1457_v13 = vadd.f32 1.0, %v15408_v10 }
 0x187   : > { %15411 = vpow2.f32 %v10914_v11  ;;  %v1470_v15 = vmul.f32 %v15410_v12, %v1456_v4  ;;  %vm1475_vm4 = vweird.f32 %v15410_v12 }
 0x188   : > { %15413 = vrcp.f32 %v1457_v13  ;;  %vm1476_vm6 = vmor %vm1474_vm5, %vm1475_vm4  ;;  %v1493_v53 = vand.u32 2147483647, %v1457_v13  ;;  %v1495_v56 = vand.u32 2147483648, %v1457_v13  ;;  %vm1489_vm9 = vweird.f32 %v1457_v13 }
 0x189   : > { %v1471_v18 = vsub.f32 1.0, %v1470_v15 }
 0x18a   : > { %v1371_v20 = vpop.xlane.xlu1 %1370  ;;  %vm1494_vm11 = vcmp.eq.f32.partialorder %v1493_v53, 8.507059e+37  ;;  %v1496_v7 = vor.u32 1.1754944e-38, %v1495_v56 }
 0x18b   : > { %v1407_v24 = vadd.f32 %v16480_v46, %v1371_v20  ;;  %v1472_v25 = vmul.f32 %v15410_v12, %v1471_v18 }
 0x18d   : > { %v15412_v29 = vpop.eup %15411  ;;  %v10915_v30 = vmul.f32 -1.442695, %v1407_v24  ;;  %v1473_v32 = vadd.f32 %v15410_v12, %v1472_v25 }
 0x18e   : > { %v15414_v36 = vpop.eup %15413  ;;  %v1458_v37 = vadd.f32 1.0, %v15412_v29 }
 0x18f   : > { %15415 = vpow2.f32 %v10915_v30  ;;  %v1477_v41 = vsel %vm1476_vm6, %v15410_v12, %v1473_v32  ;;  %v1485_v43 = vmul.f32 %v15414_v36, %v1457_v13  ;;  %vm1490_vm8 = vweird.f32 %v15414_v36 }
 0x190   : > { %15417 = vrcp.f32 %v1458_v37  ;;  %v1482_v47 = vsel %vm1479_vm7, %v1481_v38, %v1477_v41  ;;  %vm1491_vm10 = vmor %vm1489_vm9, %vm1490_vm8  ;;  %v1510_v15 = vand.u32 2147483648, %v1458_v37  ;;  %vm1504_vm12 = vweird.f32 %v1458_v37 }
 0x191   : > { %1666 = vperm.xlu2 %15397, %v1482_v47   ;;  %v1486_v51 = vsub.f32 1.0, %v1485_v43  ;;  %v1742_v10 = vsub.f32 1.0, %v1482_v47  ;;  %v1508_v20 = vand.u32 2147483647, %v1458_v37 }
 0x192   : > { %v1374_v52 = vpop.xlane.xlu2 %1373  ;;  %v1511_v25 = vor.u32 1.1754944e-38, %v1510_v15 }
 0x193   : > { %v1408_v58 = vadd.f32 %v16480_v46, %v1374_v52  ;;  %v1487_v61 = vmul.f32 %v15414_v36, %v1486_v51  ;;  %vm1509_vm15 = vcmp.eq.f32.partialorder %v1508_v20, 8.507059e+37 }
 0x195   : > { %v15416_v62 = vpop.eup %15415  ;;  %v10916_v63 = vmul.f32 -1.442695, %v1408_v58  ;;  %v1488_v3 = vadd.f32 %v15414_v36, %v1487_v61 }
 0x196   : > { %v15418_v4 = vpop.eup %15417  ;;  %v1459_v5 = vadd.f32 1.0, %v15416_v62 }
 0x197   : > { %v1500_v9 = vmul.f32 %v15418_v4, %v1458_v37  ;;  %15419 = vpow2.f32 %v10916_v63  ;;  %v1492_v11 = vsel %vm1491_vm10, %v15414_v36, %v1488_v3  ;;  %vm1505_vm13 = vweird.f32 %v15418_v4 }
 0x198   : > { %15421 = vrcp.f32 %v1459_v5  ;;  %v1497_v12 = vsel %vm1494_vm11, %v1496_v7, %v1492_v11  ;;  %vm1506_vm14 = vmor %vm1504_vm12, %vm1505_vm13  ;;  %vm1519_vm0 = vweird.f32 %v1459_v5  ;;  %v1525_v37 = vand.u32 2147483648, %v1459_v5 }
 0x199   : > { %1757 = vperm.xlu2 %15397, %v1742_v10   ;;  %1671 = vperm.xlu1 %15396, %v1497_v12   ;;  %v1501_v18 = vsub.f32 1.0, %v1500_v9  ;;  %v1743_v38 = vsub.f32 1.0, %v1497_v12  ;;  %v1523_v53 = vand.u32 2147483647, %v1459_v5 }
 0x19a   : > { %v1377_v23 = vpop.xlane.xlu2 %1376  ;;  %v1526_v62 = vor.u32 1.1754944e-38, %v1525_v37 }
 0x19b   : > { %v1409_v13 = vadd.f32 %v16480_v46, %v1377_v23  ;;  %v1502_v24 = vmul.f32 %v15418_v4, %v1501_v18  ;;  %vm1524_vm5 = vcmp.eq.f32.partialorder %v1523_v53, 8.507059e+37 }
 0x19d   : > { %v15420_v28 = vpop.eup %15419  ;;  %v10917_v29 = vmul.f32 -1.442695, %v1409_v13  ;;  %v1503_v30 = vadd.f32 %v15418_v4, %v1502_v24 }
 0x19e   : > { %v15422_v32 = vpop.eup %15421  ;;  %v1460_v36 = vadd.f32 1.0, %v15420_v28 }
 0x19f   : > { %15423 = vpow2.f32 %v10917_v29  ;;  %v1507_v41 = vsel %vm1506_vm14, %v15418_v4, %v1503_v30  ;;  %v1515_v43 = vmul.f32 %v15422_v32, %v1459_v5  ;;  %vm1520_vm2 = vweird.f32 %v15422_v32 }
 0x1a0   : > { %15425 = vrcp.f32 %v1460_v36  ;;  %v1512_v47 = vsel %vm1509_vm15, %v1511_v25, %v1507_v41  ;;  %vm1521_vm4 = vmor %vm1519_vm0, %vm1520_vm2  ;;  %v1540_v15 = vand.u32 2147483648, %v1460_v36  ;;  %vm1534_vm6 = vweird.f32 %v1460_v36 }
 0x1a1   : > { %1762 = vperm.xlu1 %15396, %v1743_v38   ;;  %v1744_v51 = vsub.f32 1.0, %v1512_v47  ;;  %v1516_v52 = vsub.f32 1.0, %v1515_v43  ;;  %v1538_v18 = vand.u32 2147483647, %v1460_v36 }
 0x1a2   : > { %v1380_v56 = vpop.xlane.xlu0 %1379  ;;  %v1541_v24 = vor.u32 1.1754944e-38, %v1540_v15 }
 0x1a3   : > { %1767 = vperm.xlu0 %15398, %v1744_v51   ;;  %v1410_v58 = vadd.f32 %v16480_v46, %v1380_v56  ;;  %v1517_v61 = vmul.f32 %v15422_v32, %v1516_v52  ;;  %vm1539_vm9 = vcmp.eq.f32.partialorder %v1538_v18, 8.507059e+37 }
 0x1a5   : > { %v15424_v63 = vpop.eup %15423  ;;  %v10918_v3 = vmul.f32 -1.442695, %v1410_v58  ;;  %v1518_v4 = vadd.f32 %v15422_v32, %v1517_v61 }
 0x1a6   : > { %v15426_v7 = vpop.eup %15425  ;;  %v1461_v9 = vadd.f32 1.0, %v15424_v63 }
 0x1a7   : > { %v1530_v10 = vmul.f32 %v15426_v7, %v1460_v36  ;;  %15427 = vpow2.f32 %v10918_v3  ;;  %v1522_v11 = vsel %vm1521_vm4, %v15422_v32, %v1518_v4  ;;  %vm1535_vm7 = vweird.f32 %v15426_v7  ;;  %v1322_v36 = vpop.f32.mrf.mxu0 }
 0x1a8   : > { %15429 = vrcp.f32 %v1461_v9  ;;  %v1527_v12 = vsel %vm1524_vm5, %v1526_v62, %v1522_v11  ;;  %vm1536_vm8 = vmor %vm1534_vm6, %vm1535_vm7  ;;  %vm1549_vm10 = vweird.f32 %v1461_v9  ;;  %v16506_v58 = vadd.f32 %v16356_v31, %v1322_v36 }
 0x1a9   : > { %1676 = vperm.xlu1 %15396, %v1512_v47   ;;  %v1531_v5 = vsub.f32 1.0, %v1530_v10  ;;  %v1745_v28 = vsub.f32 1.0, %v1527_v12  ;;  %v1553_v61 = vand.u32 2147483647, %v1461_v9  ;;  %v1555_v62 = vand.u32 2147483648, %v1461_v9 }
 0x1aa   : > { %v1383_v20 = vpop.xlane.xlu1 %1382  ;;  %v1340_v15 = vmax.f32 %v16506_v58, 0.0 }
 0x1ab   : > { %1681 = vperm.xlu0 %15398, %v1527_v12   ;;  %v1411_v23 = vadd.f32 %v16480_v46, %v1383_v20  ;;  %v1532_v13 = vmul.f32 %v15426_v7, %v1531_v5  ;;  %v1150_v5 = vld [vmem:[%s18690_s0 + $0x48] sm:$0xff]  ;;  %vm1554_vm13 = vcmp.eq.f32.partialorder %v1553_v61, 8.507059e+37 }
 0x1ad   : > { %v15428_v25 = vpop.eup %15427  ;;  %v10919_v29 = vmul.f32 -1.442695, %v1411_v23  ;;  %v1533_v30 = vadd.f32 %v15426_v7, %v1532_v13 }
 0x1ae   : > { %v15430_v32 = vpop.eup %15429  ;;  %v1462_v38 = vadd.f32 1.0, %v15428_v25 }
 0x1af   : > { %v1545_v41 = vmul.f32 %v15430_v32, %v1461_v9  ;;  %15431 = vpow2.f32 %v10919_v29  ;;  %v1537_v43 = vsel %vm1536_vm8, %v15426_v7, %v1533_v30  ;;  %vm1550_vm11 = vweird.f32 %v15430_v32 }
 0x1b0   : > { %15433 = vrcp.f32 %v1462_v38  ;;  %v1542_v47 = vsel %vm1539_vm9, %v1541_v24, %v1537_v43  ;;  %vm16508_vm12 = vmor %vm1549_vm10, %vm1550_vm11  ;;  %v1556_v9 = vor.u32 1.1754944e-38, %v1555_v62  ;;  %vm1564_vm14 = vweird.f32 %v1462_v38 }
 0x1b1   : > { %1772 = vperm.xlu1 %15396, %v1745_v28   ;;  %v1746_v37 = vsub.f32 1.0, %v1542_v47  ;;  %v1546_v51 = vsub.f32 1.0, %v1545_v41  ;;  %v1568_v13 = vand.u32 2147483647, %v1462_v38  ;;  %v1570_v24 = vand.u32 2147483648, %v1462_v38 }
 0x1b2   : > { %v1386_v52 = vpop.xlane.xlu2 %1385 }
 0x1b3   : > { %1777 = vperm.xlu0 %15398, %v1746_v37   ;;  %v1412_v53 = vadd.f32 %v16480_v46, %v1386_v52  ;;  %v1547_v56 = vmul.f32 %v15430_v32, %v1546_v51  ;;  %vm1569_vm2 = vcmp.eq.f32.partialorder %v1568_v13, 8.507059e+37  ;;  %v1571_v51 = vor.u32 1.1754944e-38, %v1570_v24 }
 0x1b5   : > { %v15432_v63 = vpop.eup %15431  ;;  %v10920_v3 = vmul.f32 -1.442695, %v1412_v53  ;;  %v1548_v4 = vadd.f32 %v15430_v32, %v1547_v56 }
 0x1b6   : > { %v15434_v7 = vpop.eup %15433  ;;  %v1463_v10 = vadd.f32 1.0, %v15432_v63 }
 0x1b7   : > { %v1560_v12 = vmul.f32 %v15434_v7, %v1462_v38  ;;  %15435 = vpow2.f32 %v10920_v3  ;;  %v1552_v18 = vsel %vm16508_vm12, %v15430_v32, %v1548_v4  ;;  %vm1565_vm15 = vweird.f32 %v15434_v7  ;;  %v1148_v38 = vld [vmem:[%s18690_s0 + $0x38] sm:$0xff] }
 0x1b8   : > { %15437 = vrcp.f32 %v1463_v10  ;;  %v16519_v29 = vsel %vm1554_vm13, %v1556_v9, %v1552_v18  ;;  %vm16521_vm0 = vmor %vm1564_vm14, %vm1565_vm15  ;;  %v1357_v32 = vmul.f32 %v16361_v34, %v1340_v15  ;;  %vm1579_vm4 = vweird.f32 %v1463_v10 }
 0x1b9   : > { %1686 = vperm.xlu1 %15396, %v1542_v47   ;;  %v1561_v20 = vsub.f32 1.0, %v1560_v12  ;;  %v1747_v53 = vsub.f32 1.0, %v16519_v29  ;;  %v1585_v4 = vand.u32 2147483648, %v1463_v10 }
 0x1ba   : > { %v1389_v23 = vpop.xlane.xlu0 %1388  ;;  %v1393_v61 = vsel %vm1359_vm3, %v1357_v32, 0.0 }
 0x1bb   : > { %1201 = vperm.xlu0 %15398, %v1150_v5   ;;  %v1413_v25 = vadd.f32 %v16480_v46, %v1389_v23  ;;  %v1562_v28 = vmul.f32 %v15434_v7, %v1561_v20  ;;  %v1583_v5 = vand.u32 2147483647, %v1463_v10 }
 0x1bd   : > { %v15436_v41 = vpop.eup %15435  ;;  %v10921_v43 = vmul.f32 -1.442695, %v1413_v25  ;;  %v1563_v47 = vadd.f32 %v15434_v7, %v1562_v28  ;;  %v1586_v25 = vor.u32 1.1754944e-38, %v1585_v4  ;;  %vm1584_vm7 = vcmp.eq.f32.partialorder %v1583_v5, 8.507059e+37 }
 0x1be   : > { %v15438_v36 = vpop.eup %15437  ;;  %v1464_v37 = vadd.f32 1.0, %v15436_v41 }
 0x1bf   : > { %v1575_v52 = vmul.f32 %v15438_v36, %v1463_v10  ;;  %15439 = vpow2.f32 %v10921_v43  ;;  %v1567_v56 = vsel %vm16521_vm0, %v15434_v7, %v1563_v47  ;;  %vm1580_vm5 = vweird.f32 %v15438_v36 }
 0x1c0   : > { %15441 = vrcp.f32 %v1464_v37  ;;  %v1572_v63 = vsel %vm1569_vm2, %v1571_v51, %v1567_v56  ;;  %vm16536_vm6 = vmor %vm1579_vm4, %vm1580_vm5  ;;  %vm1594_vm8 = vweird.f32 %v1464_v37  ;;  %v1600_v43 = vand.u32 2147483648, %v1464_v37 }
 0x1c1   : > { %1191 = vperm.xlu1 %15396, %v1148_v38   ;;  %v1576_v62 = vsub.f32 1.0, %v1575_v52  ;;  %v1748_v18 = vsub.f32 1.0, %v1572_v63  ;;  %v1598_v47 = vand.u32 2147483647, %v1464_v37 }
 0x1c2   : > { %1394 = vadd.xlane.f32.xlu2 %v1393_v61  ;;  %v1392_v3 = vpop.xlane.xlu0 %1391  ;;  %v1601_v61 = vor.u32 1.1754944e-38, %v1600_v43  ;;  %v1058_v43 = vld [vmem:[%s18688_s9 + $0x40] sm:$0xff] }
 0x1c3   : > { %1782 = vperm.xlu0 %15398, %v1747_v53   ;;  %v1414_v11 = vadd.f32 %v16480_v46, %v1392_v3  ;;  %v1577_v12 = vmul.f32 %v15438_v36, %v1576_v62  ;;  %vm1599_vm11 = vcmp.eq.f32.partialorder %v1598_v47, 8.507059e+37 }
 0x1c5   : > { %v15440_v7 = vpop.eup %15439  ;;  %v10922_v20 = vmul.f32 -1.442695, %v1414_v11  ;;  %v1578_v23 = vadd.f32 %v15438_v36, %v1577_v12 }
 0x1c6   : > { %v15442_v13 = vpop.eup %15441  ;;  %v1465_v24 = vadd.f32 1.0, %v15440_v7 }
 0x1c7   : > { %v1590_v28 = vmul.f32 %v15442_v13, %v1464_v37  ;;  %15443 = vpow2.f32 %v10922_v20  ;;  %v1582_v30 = vsel %vm16536_vm6, %v15438_v36, %v1578_v23  ;;  %vm1595_vm9 = vweird.f32 %v15442_v13 }
 0x1c8   : > { %15445 = vrcp.f32 %v1465_v24  ;;  %v1587_v41 = vsel %vm1584_vm7, %v1586_v25, %v1582_v30  ;;  %vm1596_vm10 = vmor %vm1594_vm8, %vm1595_vm9  ;;  %vm1609_vm12 = vweird.f32 %v1465_v24  ;;  %v1613_v5 = vand.u32 2147483647, %v1465_v24 }
 0x1c9   : > { %1787 = vperm.xlu1 %15396, %v1748_v18   ;;  %v1591_v10 = vsub.f32 1.0, %v1590_v28  ;;  %v1749_v51 = vsub.f32 1.0, %v1587_v41  ;;  %vm1923_vm6 = vcmask 1044480   ;;  %vm1924_vm7 = vcmask 1045504  }
 0x1ca   : > { %vm1614_vm15 = vcmp.eq.f32.partialorder %v1613_v5, 8.507059e+37  ;;  %v1925_v33 = vsel %vm1923_vm6, 4294967295, %v18652_v1  ;;  %vm1396_vm8 = vcmask 86016  }
 0x1cb   : > { %1696 = vperm.xlu0 %15398, %v1572_v63   ;;  %v1592_v32 = vmul.f32 %v15442_v13, %v1591_v10  ;;  %v1615_v63 = vand.u32 2147483648, %v1465_v24 }
 0x1cd   : > { %v15444_v38 = vpop.eup %15443  ;;  %v1593_v52 = vadd.f32 %v15442_v13, %v1592_v32  ;;  %v1616_v18 = vor.u32 1.1754944e-38, %v1615_v63  ;;  %v1059_v63 = vld [vmem:[%s18688_s9 + $0x48] sm:$0xff] }
 0x1ce   : > { %v15446_v53 = vpop.eup %15445  ;;  %v1466_v56 = vadd.f32 1.0, %v15444_v38 }
 0x1cf   : > { %v1605_v62 = vmul.f32 %v15446_v53, %v1465_v24  ;;  %v1597_v36 = vsel %vm1596_vm10, %v15442_v13, %v1593_v52  ;;  %vm1610_vm13 = vweird.f32 %v15446_v53  ;;  %v16542_v13 = vpop.permute.xlu1 %1080  ;;  %v1151_v52 = vld [vmem:[%s18690_s0 + $0x50] sm:$0xff] }
 0x1d0   : > { %15447 = vrcp.f32 %v1466_v56  ;;  %v1602_v4 = vsel %vm1599_vm11, %v1601_v61, %v1597_v36  ;;  %vm1611_vm14 = vmor %vm1609_vm12, %vm1610_vm13  ;;  %vm1624_vm0 = vweird.f32 %v1466_v56  ;;  %v1630_v30 = vand.u32 2147483648, %v1466_v56  ;;  %v1037_v61 = vld [vmem:[%s16423_s4] sm:$0xff] }
 0x1d1   : > { %1792 = vperm.xlu1 %15396, %v1749_v51   ;;  %v1606_v3 = vsub.f32 1.0, %v1605_v62  ;;  %v1750_v37 = vsub.f32 1.0, %v1602_v4  ;;  %v1628_v24 = vand.u32 2147483647, %v1466_v56  ;;  %v1128_v36 = vmul.f32 %v16485_v48, %v1037_v61 }
 0x1d3   : > { %1701 = vperm.xlu0 %15398, %v1587_v41   ;;  %v1607_v11 = vmul.f32 %v15446_v53, %v1606_v3  ;;  %v1060_v41 = vld [vmem:[%s18688_s9 + $0x50] sm:$0xff]  ;;  %vm1629_vm5 = vcmp.eq.f32.partialorder %v1628_v24, 8.507059e+37 }
 0x1d4   : > { %v10951_v24 = vld [vmem:[%s18625_s10 + $0x10] sm:$0xf] }
 0x1d5   : > { %v1608_v12 = vadd.f32 %v15446_v53, %v1607_v11  ;;  %v16566_v11 = vpop.permute.xlu0 %1171 }
 0x1d6   : > { %v15448_v9 = vpop.eup %15447 }
 0x1d7   : > { %v1620_v7 = vmul.f32 %v15448_v9, %v1466_v56  ;;  %v1612_v20 = vsel %vm1611_vm14, %v15446_v53, %v1608_v12  ;;  %vm1625_vm2 = vweird.f32 %v15448_v9  ;;  %v16551_v38 = vpop.permute.xlu1 %1085  ;;  %v1149_v53 = vld [vmem:[%s18690_s0 + $0x40] sm:$0xff] }
 0x1d8   : > { %v1617_v28 = vsel %vm1614_vm15, %v1616_v18, %v1612_v20  ;;  %vm1626_vm4 = vmor %vm1624_vm0, %vm1625_vm2  ;;  %v10939_v20 = vld [vmem:[%s18625_s10] sm:$0xf]  ;;  %vm2649_vm2 = vcmask 1043456  }
 0x1d9   : > { %1797 = vperm.xlu1 %15396, %v1750_v37   ;;  %v1621_v23 = vsub.f32 1.0, %v1620_v7  ;;  %v1751_v32 = vsub.f32 1.0, %v1617_v28  ;;  %v1219_v37 = vadd.f32 %v16475_v42, %v1128_v36  ;;  %v14381_v42 = vld [vmem:[%s18625_s10] sm:$0x30]  ;;  %v1152_v36 = vld [vmem:[%s18690_s0 + $0x58] sm:$0xff] }
 0x1da   : > { %1691 = vperm.xlu2 %15397, %v16519_v29   ;;  %v1631_v29 = vor.u32 1.1754944e-38, %v1630_v30  ;;  %v10929_v30 = vld [vmem:[%s18625_s10 + $0x8] sm:$0xf] }
 0x1db   : > { %1706 = vperm.xlu0 %15398, %v1602_v4   ;;  %v1622_v25 = vmul.f32 %v15448_v9, %v1621_v23  ;;  %v1061_v4 = vld [vmem:[%s18688_s9 + $0x58] sm:$0xff]  ;;  %v16587_v23 = vsel %vm1924_vm7, %v1925_v33, 0  ;;  %vm4624_vm7 = vcmask 777216  }
 0x1dd   : > { %v1623_v10 = vadd.f32 %v15448_v9, %v1622_v25  ;;  %v16577_v18 = vpop.permute.xlu0 %1176 }
 0x1df   : > { %v1627_v47 = vsel %vm1626_vm4, %v15448_v9, %v1623_v10  ;;  %v16561_v3 = vpop.permute.xlu1 %1090  ;;  %v14382_v10 = vld [vmem:[%s18625_s10 + $0x8] sm:$0x30]  ;;  %vm2630_vm4 = vcmask 859136  }
 0x1e0   : > { %v1632_v51 = vsel %vm1629_vm5, %v1631_v29, %v1627_v47  ;;  %v14383_v29 = vld [vmem:[%s18625_s10 + $0x10] sm:$0x30]  ;;  %v10999_v47 = vld [vmem:[%s18625_s10 + $0x30] sm:$0xf]  ;;  %vm4631_vm5 = vcmask 1046528  }
 0x1e1   : > { %1115 = vperm.xlu1 %15396, %v1060_v41   ;;  %v1752_v56 = vsub.f32 1.0, %v1632_v51 }
 0x1e2   : > { %1105 = vperm.xlu2 %15397, %v1058_v43   ;;  %v1325_v43 = vpop.f32.mrf.mxu3 }
 0x1e3   : > { %1802 = vperm.xlu0 %15398, %v1751_v32   ;;  %v10930_v32 = vor.u32 %v14382_v10, %v10929_v30 }
 0x1e5   : > { %v16601_v41 = vpop.permute.xlu0 %1181 }
 0x1e7   : > { %v16574_v7 = vpop.permute.xlu1 %1095 }
 0x1e9   : > { %1206 = vperm.xlu1 %15396, %v1151_v52   ;;  %v10952_v52 = vor.u32 %v14383_v29, %v10951_v24  ;;  %v1040_v24 = vld [vmem:[%s16423_s4 + $0x18] sm:$0xff] }
 0x1ea   : > { %1196 = vperm.xlu2 %15397, %v1149_v53  }
 0x1eb   : > { %v1667_v62 = vpop.permute.xlu2 %1666  ;;  %1807 = vperm.xlu0 %15398, %v1752_v56   ;;  %v1928_v56 = vand.u32 %v10930_v32, %v16587_v23  ;;  %v2079_v61 = vand.u32 %v10952_v52, %v16587_v23 }
 0x1ec   : > { %v1729_v48 = vmul.f32 %v1667_v62, %v1329_v35  ;;  %v10940_v35 = vor.u32 %v14381_v42, %v10939_v20 }
 0x1ed   : > { %1937 = vmatpush.bf16.msra.mxu1 %v1928_v56  ;;  %2088 = vmatpush.bf16.msrb.mxu3 %v2079_v61 }
 0x1ee   : > { %v1993_v25 = vand.u32 %v10940_v35, %v16587_v23 }
 0x1f0   : > { %2002 = vmatpush.bf16.msra.mxu2 %v1993_v25 }
 0x1f1   : > { %1120 = vperm.xlu1 %15396, %v1061_v4  }
 0x1f2   : > { %1110 = vperm.xlu2 %15397, %v1059_v63   ;;  %v1327_v63 = vpop.f32.mrf.mxu3 }
 0x1f3   : > { %v1758_v12 = vpop.permute.xlu2 %1757 }
 0x1f4   : > { %v1820_v5 = vmul.f32 %v1758_v12, %v1219_v37  ;;  %v16618_v37 = vpop.permute.xlu0 %1100  ;;  %v1039_v12 = vld [vmem:[%s16423_s4 + $0x10] sm:$0xff] }
 0x1f5   : > { %v1130_v42 = vmul.f32 %v16491_v57, %v1039_v12 }
 0x1f6   : > { %v1833_v9 = vadd.f32 %v1820_v5, %v1729_v48 }
 0x1f7   : > { %v1221_v35 = vadd.f32 %v16497_v19, %v1130_v42 }
 0x1f8   : > { %1846 = vst.msk [vmem:[#allocation2] sm:$0xff] %vm1359_vm3, %v1833_v9 }
 0x1fa   : > { %1711 = vperm.xlu2 %15397, %v1617_v28   ;;  %v16590_v28 = vpop.permute.xlu1 %1186 }
 0x202   : > { %1716 = vperm.xlu2 %15397, %v1632_v51   ;;  %v14387_v51 = vld [vmem:[%s18625_s10 + $0x30] sm:$0x30] }
 0x203   : > { %v11000_v53 = vor.u32 %v14387_v51, %v10999_v47  ;;  %v1041_v51 = vld [vmem:[%s16423_s4 + $0x20] sm:$0xff] }
 0x205   : > { %v2471_v62 = vand.u32 %v11000_v53, %v16587_v23 }
 0x207   : > { %2480 = vmatpush.bf16.msrb.mxu0 %v2471_v62 }
 0x20a   : > { %1211 = vperm.xlu2 %15397, %v1152_v36   ;;  %v1132_v36 = vmul.f32 %v16551_v38, %v1041_v51 }
 0x20b   : > { %v1672_v4 = vpop.permute.xlu1 %1671 }
 0x20c   : > { %v1730_v5 = vmul.f32 %v1672_v4, %v1330_v40  ;;  %v1859_v40 = vld [vmem:[#allocation2] sm:$0xff] }
 0x213   : > { %v1763_v48 = vpop.permute.xlu1 %1762 }
 0x214   : > { %v1821_v9 = vmul.f32 %v1763_v48, %v16434_v16  ;;  %v1131_v16 = vmul.f32 %v16542_v13, %v1040_v24 }
 0x215   : > { %v1768_v20 = vpop.permute.xlu0 %1767 }
 0x216   : > { %v1834_v33 = vadd.f32 %v1821_v9, %v1730_v5  ;;  %v1822_v30 = vmul.f32 %v1768_v20, %v1221_v35  ;;  %v1222_v47 = vadd.f32 %v16566_v11, %v1131_v16 }
 0x218   : > { %1847 = vst.msk [vmem:[#allocation2 + $0x8] sm:$0xff] %vm1359_vm3, %v1834_v33 }
 0x21b   : > { %v1677_v25 = vpop.permute.xlu1 %1676 }
 0x21c   : > { %v1731_v10 = vmul.f32 %v1677_v25, %v1331_v45  ;;  %v16638_v45 = vadd.f32 %v16356_v31, %v1325_v43  ;;  %v1223_v31 = vadd.f32 %v16577_v18, %v1132_v36 }
 0x21d   : > { %v1682_v32 = vpop.permute.xlu0 %1681 }
 0x21e   : > { %v1835_v39 = vadd.f32 %v1822_v30, %v1731_v10  ;;  %v1732_v44 = vmul.f32 %v1682_v32, %v1332_v50  ;;  %v1341_v12 = vmax.f32 %v16638_v45, 0.0  ;;  %v1043_v30 = vld [vmem:[%s16423_s4 + $0x30] sm:$0xff] }
 0x21f   : > { %v1860_v29 = vld [vmem:[#allocation2 + $0x8] sm:$0xff] }
 0x220   : > { %1848 = vst.msk [vmem:[#allocation2 + $0x10] sm:$0xff] %vm1359_vm3, %v1835_v39  ;;  %v1871_v57 = vpack.c.bf16 %v1860_v29, %v1859_v40  ;;  %v1879_v61 = vld [vmem:[#allocation2 + $0x1] sm:$0xff]  ;;  %v1358_v9 = vmul.f32 %v16361_v34, %v1341_v12 }
 0x221   : > { %v2034_v13 = vld [vmem:[#allocation2 + $0x2] sm:$0xff] }
 0x222   : > { %10941 = vmatmul.msk.bf16.vlgmr.msra.gmra.mxu2 %vm1359_vm3, %v1871_v57  ;;  %v2426_v62 = vld [vmem:[#allocation2 + $0x6] sm:$0xff]  ;;  %v1397_v25 = vsel %vm1396_vm8, %v1358_v9, 0.0 }
 0x223   : > { %v1773_v19 = vpop.permute.xlu1 %1772 }
 0x224   : > { %v1823_v52 = vmul.f32 %v1773_v19, %v1222_v47 }
 0x225   : > { %v1778_v53 = vpop.permute.xlu0 %1777 }
 0x226   : > { %v1836_v56 = vadd.f32 %v1823_v52, %v1732_v44  ;;  %v1824_v43 = vmul.f32 %v1778_v53, %v1223_v31  ;;  %v1134_v53 = vmul.f32 %v16574_v7, %v1043_v30 }
 0x227   : > { %v1880_v4 = vld [vmem:[#allocation2 + $0x9] sm:$0xff] }
 0x228   : > { %v2035_v11 = vld [vmem:[#allocation2 + $0xa] sm:$0xff]  ;;  %1849 = vst.msk [vmem:[#allocation2 + $0x18] sm:$0xff] %vm1359_vm3, %v1836_v56  ;;  %v1891_v49 = vpack.c.bf16 %v1880_v4, %v1879_v61  ;;  %v1225_v56 = vadd.f32 %v16590_v28, %v1134_v53 }
 0x229   : > { %v2427_v63 = vld [vmem:[#allocation2 + $0xe] sm:$0xff]  ;;  %v2046_v50 = vpack.c.bf16 %v2035_v11, %v2034_v13  ;;  %v1044_v11 = vld [vmem:[%s16423_s4 + $0x38] sm:$0xff] }
 0x22a   : > { %v2438_v48 = vpack.c.bf16 %v2427_v63, %v2426_v62  ;;  %10931 = vmatmul.msk.bf16.vlgmr.msra.gmra.mxu1 %vm1359_vm3, %v1891_v49  ;;  %v1861_v42 = vld [vmem:[#allocation2 + $0x10] sm:$0xff]  ;;  %v1135_v28 = vmul.f32 %v16618_v37, %v1044_v11 }
 0x22b   : > { %10953 = vmatmul.msk.bf16.vlgmr.msrb.gmra.mxu3 %vm1359_vm3, %v2046_v50  ;;  %v1687_v38 = vpop.permute.xlu1 %1686 }
 0x22c   : > { %11001 = vmatmul.msk.bf16.vlgmr.msrb.gmra.mxu0 %vm1359_vm3, %v2438_v48  ;;  %v1733_v5 = vmul.f32 %v1687_v38, %v1333_v55  ;;  %v1042_v55 = vld [vmem:[%s16423_s4 + $0x28] sm:$0xff] }
 0x22d   : > { %v16652_v20 = vpop.permute.xlu0 %1201  ;;  %v1133_v52 = vmul.f32 %v16561_v3, %v1042_v55 }
 0x22e   : > { %v1837_v18 = vadd.f32 %v1824_v43, %v1733_v5 }
 0x22f   : > { %v1862_v33 = vld [vmem:[#allocation2 + $0x18] sm:$0xff]  ;;  %v1224_v61 = vadd.f32 %v16601_v41, %v1133_v52 }
 0x230   : > { %1850 = vst.msk [vmem:[#allocation2 + $0x20] sm:$0xff] %vm1359_vm3, %v1837_v18  ;;  %v1872_v35 = vpack.c.bf16 %v1862_v33, %v1861_v42  ;;  %v1881_v32 = vld [vmem:[#allocation2 + $0x11] sm:$0xff] }
 0x231   : > { %v2036_v39 = vld [vmem:[#allocation2 + $0x12] sm:$0xff] }
 0x232   : > { %10942 = vmatmul.msk.bf16.gmra.mxu2 %vm1359_vm3, %v1872_v35  ;;  %v2428_v40 = vld [vmem:[#allocation2 + $0x16] sm:$0xff] }
 0x233   : > { %1398 = vadd.xlane.f32.xlu2 %v1397_v25  ;;  %v1192_v54 = vpop.permute.xlu1 %1191 }
 0x234   : > { %v1226_v31 = vadd.f32 %v1192_v54, %v1135_v28 }
 0x235   : > { %v1395_v10 = vpop.xlane.xlu2 %1394  ;;  %v1783_v24 = vpop.permute.xlu0 %1782 }
 0x236   : > { %v1415_v34 = vadd.f32 %v16480_v46, %v1395_v10  ;;  %v1825_v36 = vmul.f32 %v1783_v24, %v1224_v61  ;;  %v1046_v61 = vld [vmem:[%s16423_s4 + $0x48] sm:$0xff] }
 0x237   : > { %v1882_v29 = vld [vmem:[#allocation2 + $0x19] sm:$0xff] }
 0x238   : > { %v2037_v16 = vld [vmem:[#allocation2 + $0x1a] sm:$0xff]  ;;  %v10923_v47 = vmul.f32 -1.442695, %v1415_v34  ;;  %v1892_v19 = vpack.c.bf16 %v1882_v29, %v1881_v32 }
 0x239   : > { %v2429_v57 = vld [vmem:[#allocation2 + $0x1e] sm:$0xff]  ;;  %v2047_v51 = vpack.c.bf16 %v2037_v16, %v2036_v39 }
 0x23a   : > { %v2439_v44 = vpack.c.bf16 %v2429_v57, %v2428_v40  ;;  %15449 = vpow2.f32 %v10923_v47  ;;  %10932 = vmatmul.msk.bf16.gmra.mxu1 %vm1359_vm3, %v1892_v19  ;;  %v1863_v5 = vld [vmem:[#allocation2 + $0x20] sm:$0xff] }
 0x23b   : > { %10954 = vmatmul.msk.bf16.gmra.mxu3 %vm1359_vm3, %v2047_v51  ;;  %v1788_v46 = vpop.permute.xlu1 %1787 }
 0x23c   : > { %11002 = vmatmul.msk.bf16.gmra.mxu0 %vm1359_vm3, %v2439_v44  ;;  %v1826_v4 = vmul.f32 %v1788_v46, %v1225_v56 }
 0x23d   : > { %v1692_v13 = vpop.permute.xlu2 %1691  ;;  %v1697_v62 = vpop.permute.xlu0 %1696 }
 0x23e   : > { %v1734_v3 = vmul.f32 %v1692_v13, %v1334_v60  ;;  %v1735_v7 = vmul.f32 %v1697_v62, %v1335_v2  ;;  %v1045_v2 = vld [vmem:[%s16423_s4 + $0x40] sm:$0xff] }
 0x240   : > { %v15450_v63 = vpop.eup %15449  ;;  %v1838_v49 = vadd.f32 %v1825_v36, %v1734_v3  ;;  %v1839_v50 = vadd.f32 %v1826_v4, %v1735_v7 }
 0x241   : > { %v1467_v48 = vadd.f32 1.0, %v15450_v63 }
 0x242   : > { %1851 = vst.msk [vmem:[#allocation2 + $0x28] sm:$0xff] %vm1359_vm3, %v1838_v49  ;;  %v1153_v49 = vld [vmem:[%s18690_s0 + $0x60] sm:$0x1f] }
 0x243   : > { %15451 = vrcp.f32 %v1467_v48  ;;  %1852 = vst.msk [vmem:[#allocation2 + $0x30] sm:$0xff] %vm1359_vm3, %v1839_v50  ;;  %v1793_v41 = vpop.permute.xlu1 %1792  ;;  %v1645_v29 = vand.u32 2147483648, %v1467_v48  ;;  %v1643_v47 = vand.u32 2147483647, %v1467_v48  ;;  %vm1639_vm10 = vweird.f32 %v1467_v48 }
 0x244   : > { %v1827_v38 = vmul.f32 %v1793_v41, %v1226_v31 }
 0x245   : > { %v1106_v59 = vpop.permute.xlu2 %1105  ;;  %v1702_v60 = vpop.permute.xlu0 %1701  ;;  %v1646_v52 = vor.u32 1.1754944e-38, %v1645_v29  ;;  %vm1644_vm12 = vcmp.eq.f32.partialorder %v1643_v47, 8.507059e+37 }
 0x246   : > { %v1736_v0 = vmul.f32 %v1702_v60, %v1336_v8  ;;  %v1136_v6 = vmul.f32 %v1106_v59, %v1045_v2 }
 0x248   : > { %v1840_v43 = vadd.f32 %v1827_v38, %v1736_v0  ;;  %v1047_v0 = vld [vmem:[%s16423_s4 + $0x50] sm:$0xff] }
 0x249   : > { %v15452_v9 = vpop.eup %15451  ;;  %v1883_v18 = vld [vmem:[#allocation2 + $0x21] sm:$0xff] }
 0x24a   : > { %v1864_v42 = vld [vmem:[#allocation2 + $0x28] sm:$0xff]  ;;  %1853 = vst.msk [vmem:[#allocation2 + $0x38] sm:$0xff] %vm1359_vm3, %v1840_v43  ;;  %v1635_v54 = vmul.f32 %v15452_v9, %v1467_v48  ;;  %vm1640_vm9 = vweird.f32 %v15452_v9  ;;  %v1865_v7 = vld [vmem:[#allocation2 + $0x30] sm:$0xff] }
 0x24b   : > { %v2038_v37 = vld [vmem:[#allocation2 + $0x22] sm:$0xff]  ;;  %v1873_v35 = vpack.c.bf16 %v1864_v42, %v1863_v5  ;;  %v2039_v25 = vld [vmem:[#allocation2 + $0x2a] sm:$0xff]  ;;  %v1798_v30 = vpop.permute.xlu1 %1797  ;;  %vm1641_vm11 = vmor %vm1639_vm10, %vm1640_vm9 }
 0x24c   : > { %v1884_v33 = vld [vmem:[#allocation2 + $0x29] sm:$0xff]  ;;  %v2048_v24 = vpack.c.bf16 %v2039_v25, %v2038_v37  ;;  %v1636_v32 = vsub.f32 1.0, %v1635_v54 }
 0x24d   : > { %v2430_v55 = vld [vmem:[#allocation2 + $0x26] sm:$0xff]  ;;  %v1893_v10 = vpack.c.bf16 %v1884_v33, %v1883_v18  ;;  %v2431_v34 = vld [vmem:[#allocation2 + $0x2e] sm:$0xff]  ;;  %10943 = vmatmul.msk.bf16.gmra.mxu2 %vm1359_vm3, %v1873_v35  ;;  %v1197_v39 = vpop.permute.xlu2 %1196  ;;  %v1707_v40 = vpop.permute.xlu0 %1706 }
 0x24e   : > { %v2440_v8 = vpack.c.bf16 %v2431_v34, %v2430_v55  ;;  %10955 = vmatmul.msk.bf16.gmra.mxu3 %vm1359_vm3, %v2048_v24  ;;  %v1227_v16 = vadd.f32 %v1197_v39, %v1136_v6  ;;  %v1637_v57 = vmul.f32 %v15452_v9, %v1636_v32  ;;  %v1737_v51 = vmul.f32 %v1707_v40, %v1337_v17  ;;  %v1062_v17 = vld [vmem:[%s18688_s9 + $0x60] sm:$0x1f] }
 0x24f   : > { %10933 = vmatmul.msk.bf16.gmra.mxu1 %vm1359_vm3, %v1893_v10 }
 0x250   : > { %11003 = vmatmul.msk.bf16.gmra.mxu0 %vm1359_vm3, %v2440_v8  ;;  %v1828_v19 = vmul.f32 %v1798_v30, %v1227_v16  ;;  %v1638_v44 = vadd.f32 %v15452_v9, %v1637_v57  ;;  %v15473_v57 = vld [vmem:[#allocation3] ss:$0 sm:$0xff] }
 0x251   : > { %v1866_v3 = vld [vmem:[#allocation2 + $0x38] sm:$0xff] }
 0x252   : > { %v1841_v53 = vadd.f32 %v1828_v19, %v1737_v51  ;;  %v1642_v46 = vsel %vm1641_vm11, %v15452_v9, %v1638_v44  ;;  %v1874_v63 = vpack.c.bf16 %v1866_v3, %v1865_v7  ;;  %v1885_v50 = vld [vmem:[#allocation2 + $0x31] sm:$0xff] }
 0x253   : > { %v1647_v56 = vsel %vm1644_vm12, %v1646_v52, %v1642_v46  ;;  %v1116_v62 = vpop.permute.xlu1 %1115  ;;  %v2040_v48 = vld [vmem:[#allocation2 + $0x32] sm:$0xff] }
 0x254   : > { %1854 = vst.msk [vmem:[#allocation2 + $0x40] sm:$0xff] %vm1359_vm3, %v1841_v53  ;;  %v1753_v13 = vsub.f32 1.0, %v1647_v56  ;;  %1721 = vperm.xlu0 %15398, %v1647_v56   ;;  %v2432_v38 = vld [vmem:[#allocation2 + $0x36] sm:$0xff]  ;;  %v1138_v18 = vmul.f32 %v1116_v62, %v1047_v0 }
 0x255   : > { %v1111_v36 = vpop.permute.xlu2 %1110  ;;  %v1803_v14 = vpop.permute.xlu0 %1802 }
 0x256   : > { %v1137_v4 = vmul.f32 %v1111_v36, %v1046_v61  ;;  %1812 = vperm.xlu1 %15396, %v1753_v13  }
 0x258   : > { %v1228_v11 = vadd.f32 %v16652_v20, %v1137_v4 }
 0x25a   : > { %v1829_v20 = vmul.f32 %v1803_v14, %v1228_v11 }
 0x25b   : > { %v1886_v28 = vld [vmem:[#allocation2 + $0x39] sm:$0xff]  ;;  %v1207_v9 = vpop.permute.xlu1 %1206 }
 0x25c   : > { %v2041_v41 = vld [vmem:[#allocation2 + $0x3a] sm:$0xff]  ;;  %1125 = vperm.xlu0 %15398, %v1062_v17   ;;  %v1894_v59 = vpack.c.bf16 %v1886_v28, %v1885_v50  ;;  %v1229_v37 = vadd.f32 %v1207_v9, %v1138_v18 }
 0x25d   : > { %v2433_v31 = vld [vmem:[#allocation2 + $0x3e] sm:$0xff]  ;;  %10944 = vmatmul.msk.bf16.gmra.mxu2 %vm1359_vm3, %v1874_v63  ;;  %v2049_v60 = vpack.c.bf16 %v2041_v41, %v2040_v48  ;;  %v1712_v2 = vpop.permute.xlu2 %1711  ;;  %v1808_v33 = vpop.permute.xlu0 %1807 }
 0x25e   : > { %v2441_v43 = vpack.c.bf16 %v2433_v31, %v2432_v38  ;;  %v1738_v5 = vmul.f32 %v1712_v2, %v1338_v22  ;;  %1216 = vperm.xlu1 %15396, %v1153_v49   ;;  %v1830_v25 = vmul.f32 %v1808_v33, %v1229_v37  ;;  %v1867_v55 = vld [vmem:[#allocation2 + $0x40] sm:$0xff]  ;;  %v10963_v31 = vld [vmem:[%s18625_s10 + $0x18] sm:$0xf] }
 0x25f   : > { %10934 = vmatmul.msk.bf16.gmra.mxu1 %vm1359_vm3, %v1894_v59  ;;  %10956 = vmatmul.msk.bf16.gmra.mxu3 %vm1359_vm3, %v2049_v60  ;;  %v14384_v59 = vld [vmem:[%s18625_s10 + $0x18] sm:$0x30]  ;;  %v10975_v60 = vld [vmem:[%s18625_s10 + $0x20] sm:$0xf] }
 0x260   : > { %11004 = vmatmul.msk.bf16.gmra.mxu0 %vm1359_vm3, %v2441_v43  ;;  %v1842_v42 = vadd.f32 %v1829_v20, %v1738_v5  ;;  %v1048_v38 = vld [vmem:[%s16423_s4 + $0x58] sm:$0xff]  ;;  %v10964_v2 = vor.u32 %v14384_v59, %v10963_v31  ;;  %v14385_v43 = vld [vmem:[%s18625_s10 + $0x20] sm:$0x30] }
 0x261   : > { %v10976_v5 = vor.u32 %v14385_v43, %v10975_v60  ;;  %v2233_v31 = vld [vmem:[#allocation2 + $0x1c] sm:$0xff]  ;;  %v2134_v59 = vld [vmem:[#allocation2 + $0x13] sm:$0xff] }
 0x262   : > { %1855 = vst.msk [vmem:[#allocation2 + $0x48] sm:$0xff] %vm1359_vm3, %v1842_v42  ;;  %v2177_v18 = vand.u32 %v10964_v2, %v16587_v23  ;;  %v2232_v60 = vld [vmem:[#allocation2 + $0x14] sm:$0xff] }
 0x263   : > { %v1121_v28 = vpop.permute.xlu1 %1120 }
 0x264   : > { %v1139_v42 = vmul.f32 %v1121_v28, %v1048_v38  ;;  %2186 = vmatpush.bf16.msrb.mxu1 %v2177_v18  ;;  %v2235_v18 = vld [vmem:[#allocation2 + $0x2c] sm:$0xff] }
 0x265   : > { %v1717_v35 = vpop.permute.xlu2 %1716 }
 0x266   : > { %v1739_v21 = vmul.f32 %v1717_v35, %v1339_v27  ;;  %v2275_v35 = vand.u32 %v10976_v5, %v16587_v23  ;;  %v2137_v5 = vld [vmem:[#allocation2 + $0x2b] sm:$0xff] }
 0x268   : > { %v1843_v22 = vadd.f32 %v1830_v25, %v1739_v21  ;;  %2284 = vmatpush.bf16.msrb.mxu2 %v2275_v35  ;;  %v2139_v35 = vld [vmem:[#allocation2 + $0x3b] sm:$0xff] }
 0x269   : > { %v1868_v54 = vld [vmem:[#allocation2 + $0x48] sm:$0xff] }
 0x26a   : > { %1856 = vst.msk [vmem:[#allocation2 + $0x50] sm:$0xff] %vm1359_vm3, %v1843_v22  ;;  %v1875_v30 = vpack.c.bf16 %v1868_v54, %v1867_v55  ;;  %v1887_v10 = vld [vmem:[#allocation2 + $0x41] sm:$0xff] }
 0x26b   : > { %v2042_v24 = vld [vmem:[#allocation2 + $0x42] sm:$0xff] }
 0x26c   : > { %v2434_v34 = vld [vmem:[#allocation2 + $0x46] sm:$0xff] }
 0x26d   : > { %10945 = vmatmul.msk.bf16.gmra.mxu2 %vm1359_vm3, %v1875_v30  ;;  %v1212_v26 = vpop.permute.xlu2 %1211 }
 0x26e   : > { %v1230_v21 = vadd.f32 %v1212_v26, %v1139_v42 }
 0x271   : > { %v1888_v6 = vld [vmem:[#allocation2 + $0x49] sm:$0xff] }
 0x272   : > { %v2043_v8 = vld [vmem:[#allocation2 + $0x4a] sm:$0xff]  ;;  %v1895_v39 = vpack.c.bf16 %v1888_v6, %v1887_v10 }
 0x273   : > { %v2435_v32 = vld [vmem:[#allocation2 + $0x4e] sm:$0xff]  ;;  %v2050_v40 = vpack.c.bf16 %v2043_v8, %v2042_v24 }
 0x274   : > { %v2442_v29 = vpack.c.bf16 %v2435_v32, %v2434_v34  ;;  %10935 = vmatmul.msk.bf16.gmra.mxu1 %vm1359_vm3, %v1895_v39 }
 0x275   : > { %10957 = vmatmul.msk.bf16.gmra.mxu3 %vm1359_vm3, %v2050_v40  ;;  %v1869_v40 = vld [vmem:[#allocation2 + $0x50] sm:$0xff] }
 0x276   : > { %11005 = vmatmul.msk.bf16.gmra.mxu0 %vm1359_vm3, %v2442_v29 }
 0x2a5   : > { %v2004_v27 = vpop.f32.mrf.mxu2 }
 0x2a6   : > { %v1399_v16 = vpop.xlane.xlu2 %1398 }
 0x2a7   : > { %v1416_v47 = vadd.f32 %v15473_v57, %v1399_v16  ;;  %v1939_v19 = vpop.f32.mrf.mxu1 }
 0x2a8   : > { %v2005_v51 = vadd.f32 %v2004_v27, %v1939_v19 }
 0x2a9   : > { %v10924_v44 = vmul.f32 -1.442695, %v1416_v47 }
 0x2ab   : > { %15453 = vpow2.f32 %v10924_v44 }
 0x2ad   : > { %v16709_v52 = vpop.f32.mrf.mxu2 }
 0x2ae   : > { %v2090_v53 = vpop.f32.mrf.mxu3 }
 0x2af   : > { %v16711_v46 = vadd.f32 %v2090_v53, %v2005_v51  ;;  %v16713_v56 = vpop.f32.mrf.mxu1 }
 0x2b1   : > { %v15454_v61 = vpop.eup %15453 }
 0x2b2   : > { %v1468_v13 = vadd.f32 1.0, %v15454_v61  ;;  %v2133_v61 = vld [vmem:[#allocation2 + $0xb] sm:$0xff] }
 0x2b4   : > { %15455 = vrcp.f32 %v1468_v13  ;;  %v1660_v49 = vand.u32 2147483648, %v1468_v13  ;;  %v1658_v48 = vand.u32 2147483647, %v1468_v13  ;;  %vm1654_vm14 = vweird.f32 %v1468_v13 }
 0x2b5   : > { %v2009_v36 = vpop.f32.mrf.mxu2 }
 0x2b6   : > { %v16715_v62 = vpop.f32.mrf.mxu3  ;;  %v1661_v0 = vor.u32 1.1754944e-38, %v1660_v49  ;;  %vm1659_vm0 = vcmp.eq.f32.partialorder %v1658_v48, 8.507059e+37 }
 0x2b7   : > { %v1944_v4 = vpop.f32.mrf.mxu1 }
 0x2b8   : > { %v2010_v3 = vadd.f32 %v2009_v36, %v1944_v4  ;;  %v2132_v4 = vld [vmem:[#allocation2 + $0x3] sm:$0xff] }
 0x2ba   : > { %v15456_v14 = vpop.eup %15455 }
 0x2bb   : > { %v1650_v17 = vmul.f32 %v15456_v14, %v1468_v13  ;;  %vm1655_vm13 = vweird.f32 %v15456_v14  ;;  %v2231_v13 = vld [vmem:[#allocation2 + $0xc] sm:$0xff] }
 0x2bc   : > { %vm1656_vm15 = vmor %vm1654_vm14, %vm1655_vm13 }
 0x2bd   : > { %v1651_v11 = vsub.f32 1.0, %v1650_v17  ;;  %v16736_v22 = vpop.f32.mrf.mxu2 }
 0x2be   : > { %v2095_v7 = vpop.f32.mrf.mxu3 }
 0x2bf   : > { %v16717_v63 = vadd.f32 %v2095_v7, %v2010_v3  ;;  %v1652_v50 = vmul.f32 %v15456_v14, %v1651_v11  ;;  %v16733_v37 = vpop.f32.mrf.mxu1  ;;  %v2230_v3 = vld [vmem:[#allocation2 + $0x4] sm:$0xff] }
 0x2c0   : > { %v2242_v17 = vpack.c.bf16 %v2231_v13, %v2230_v3  ;;  %v14399_v3 = vld [vmem:[#allocation12 + $0x58] sm:$0xff] }
 0x2c1   : > { %v1653_v41 = vadd.f32 %v15456_v14, %v1652_v50 }
 0x2c3   : > { %v1657_v20 = vsel %vm1656_vm15, %v15456_v14, %v1653_v41  ;;  %v2144_v14 = vpack.c.bf16 %v2133_v61, %v2132_v4  ;;  %v2135_v41 = vld [vmem:[#allocation2 + $0x1b] sm:$0xff]  ;;  %v2238_v61 = vld [vmem:[#allocation2 + $0x44] sm:$0xff] }
 0x2c4   : > { %v1662_v9 = vsel %vm1659_vm0, %v1661_v0, %v1657_v20  ;;  %v2145_v38 = vpack.c.bf16 %v2135_v41, %v2134_v59  ;;  %v2243_v0 = vpack.c.bf16 %v2233_v31, %v2232_v60  ;;  %v2136_v20 = vld [vmem:[#allocation2 + $0x23] sm:$0xff]  ;;  %v14396_v60 = vld [vmem:[#allocation12 + $0x40] sm:$0xff] }
 0x2c5   : > { %v1754_v33 = vsub.f32 1.0, %v1662_v9  ;;  %1726 = vperm.xlu0 %15398, %v1662_v9   ;;  %v2234_v9 = vld [vmem:[#allocation2 + $0x24] sm:$0xff]  ;;  %v2146_v42 = vpack.c.bf16 %v2137_v5, %v2136_v20  ;;  %v14386_v20 = vld [vmem:[%s18625_s10 + $0x28] sm:$0x30] }
 0x2c6   : > { %v1722_v25 = vpop.permute.xlu0 %1721  ;;  %v16738_v55 = vpop.f32.mrf.mxu3  ;;  %v1049_v31 = vld [vmem:[%s16423_s4 + $0x60] sm:$0x1f]  ;;  %s10638_s4 = scalar_lea.hbm %s18757_s28, %s16164_s1 }
 0x2c7   : > { %1817 = vperm.xlu1 %15396, %v1754_v33   ;;  %v1740_v30 = vmul.f32 %v1722_v25, %v1340_v15  ;;  %v2244_v33 = vpack.c.bf16 %v2235_v18, %v2234_v9  ;;  %v2237_v25 = vld [vmem:[#allocation2 + $0x3c] sm:$0xff]  ;;  %v14395_v9 = vld [vmem:[#allocation12 + $0x38] sm:$0xff]  ;;  %v14388_v18 = vld [vmem:[#allocation12] sm:$0xff]  ;;  %s10642_s5 = sshll.u32 %s10638_s4, 4  ;;  %s10643_s5 = int_to_ptr.hbm [resolvable:$true] %s10642_s5 }
 0x2c8   : > { %v1813_v54 = vpop.permute.xlu1 %1812  ;;  %s15908_s27 = sshra.s32 %s10643_s5, 4  ;;  %s15909_s27 = int_to_ptr.hbm [resolvable:$true] %s15908_s27 }
 0x2c9   : > { %v1831_v10 = vmul.f32 %v1813_v54, %v1230_v21  ;;  %v2138_v21 = vld [vmem:[#allocation2 + $0x33] sm:$0xff]  ;;  %s15910_s1 = scalar_lea.hbm %s15909_s27, 1  ;;  %p15915_p3 = scmp.lt.s32.totalorder %s15909_s27, %s18757_s28 }
 0x2ca   : > { %v2236_v54 = vld [vmem:[#allocation2 + $0x34] sm:$0xff]  ;;  %p15911_p0 = scmp.ne.s32.totalorder %s15909_s27, %s15910_s1  ;;  %p15916_p4 = scmp.lt.s32.totalorder %s15914_s13, %s15910_s1 }
 0x2cb   : > { %v1844_v24 = vadd.f32 %v1831_v10, %v1740_v30  ;;  %v2147_v30 = vpack.c.bf16 %v2139_v35, %v2138_v21  ;;  %v2245_v10 = vpack.c.bf16 %v2237_v25, %v2236_v54 }
 0x2cc   : > { %v1949_v34 = vpop.f32.mrf.mxu1  ;;  %p15912_p1 = pnand %p15911_p0, %p16181_p5  ;;  %p15917_p7 = por %p15916_p4, %p15915_p3 }
 0x2cd   : > { %1857 = vst.msk [vmem:[#allocation2 + $0x58] sm:$0xff] %vm1359_vm3, %v1844_v24  ;;  %v2650_v24 = vsel %vm2649_vm2, 4294967295, %v18652_v1 }
 0x2ce   : > { %v1126_v41 = vpop.permute.xlu0 %1125  ;;  %p15913_p2 = pneg %p15912_p1 }
 0x2d0   : > { %v2014_v6 = vpop.f32.mrf.mxu2  ;;  %v1217_v59 = vpop.permute.xlu1 %1216  ;;  %p15918_p8 = pnand %p15917_p7, %p15913_p2 }
 0x2d1   : > { %v2015_v8 = vadd.f32 %v2014_v6, %v1949_v34  ;;  %v2100_v32 = vpop.f32.mrf.mxu3  ;;  %v16774_v34 = vsel %vm1923_vm6, %v2650_v24, 0  ;;  %v11033_v6 = vld [vmem:[#allocation12 + $0x68] sm:$0xf]  ;;  %vm4632_vm6 = vcmask 1047552  }
 0x2d3   : > { %v16743_v39 = vadd.f32 %v2100_v32, %v2015_v8  ;;  %v14401_v8 = vld [vmem:[#allocation12 + $0x68] sm:$0x10]  ;;  %v11067_v32 = vld [vmem:[#allocation12 + $0x30] sm:$0xf] }
 0x2d4   : > { %v1889_v29 = vld [vmem:[#allocation2 + $0x51] sm:$0xff]  ;;  %v1890_v26 = vld [vmem:[#allocation2 + $0x59] sm:$0x7f]  ;;  %v16745_v47 = vpop.f32.mrf.mxu1 }
 0x2d5   : > { %v1870_v27 = vld [vmem:[#allocation2 + $0x58] sm:$0x7f]  ;;  %v1896_v16 = vpack.c.bf16 %v1890_v26, %v1889_v29  ;;  %v14394_v29 = vld [vmem:[#allocation12 + $0x30] sm:$0x10] }
 0x2d6   : > { %v1876_v57 = vpack.c.bf16 %v1870_v27, %v1869_v40  ;;  %v11034_v40 = vor.u32 %v14401_v8, %v11033_v6  ;;  %v11068_v26 = vor.u32 %v14394_v29, %v11067_v32  ;;  %v2142_v24 = vld [vmem:[#allocation2 + $0x53] sm:$0xff] }
 0x2d7   : > { %10936 = vmatmul.msk.bf16.gmra.mxu1 %vm1359_vm3, %v1896_v16  ;;  %v2240_v6 = vld [vmem:[#allocation2 + $0x54] sm:$0xff] }
 0x2d8   : > { %v16748_v58 = vpop.f32.mrf.mxu2  ;;  %10946 = vmatmul.msk.bf16.gmra.mxu2 %vm1359_vm3, %v1876_v57  ;;  %v2653_v27 = vand.u32 %v11034_v40, %v16774_v34  ;;  %v2754_v16 = vand.u32 %v11068_v26, %v16774_v34  ;;  %v14400_v57 = vld [vmem:[#allocation12 + $0x60] sm:$0xff] }
 0x2d9   : > { %v16751_v15 = vpop.f32.mrf.mxu3 }
 0x2da   : > { %2656 = vmatpush.bf16.msra.mxu1 %v2653_v27  ;;  %2757 = vmatpush.bf16.msra.mxu2 %v2754_v16  ;;  %v2436_v27 = vld [vmem:[#allocation2 + $0x56] sm:$0xff] }
 0x2dc   : > { %v1954_v19 = vpop.f32.mrf.mxu1 }
 0x2de   : > { %2657 = vmatpush.bf16.msra.mxu1 %v14400_v57 }
 0x2e0   : > { %v2019_v51 = vpop.f32.mrf.mxu2 }
 0x2e1   : > { %v2020_v44 = vadd.f32 %v2019_v51, %v1954_v19  ;;  %v2141_v19 = vld [vmem:[#allocation2 + $0x4b] sm:$0xff] }
 0x2e2   : > { %v2105_v53 = vpop.f32.mrf.mxu3  ;;  %v2239_v51 = vld [vmem:[#allocation2 + $0x4c] sm:$0xff]  ;;  %2658 = vmatpush.bf16.msra.mxu1 %v14399_v3 }
 0x2e3   : > { %v16753_v36 = vadd.f32 %v2105_v53, %v2020_v44  ;;  %v14393_v44 = vld [vmem:[#allocation12 + $0x28] sm:$0xff]  ;;  %v2140_v53 = vld [vmem:[#allocation2 + $0x43] sm:$0xff]  ;;  %v2246_v4 = vpack.c.bf16 %v2239_v51, %v2238_v61  ;;  %v2329_v61 = vld [vmem:[#allocation2 + $0xd] sm:$0xff] }
 0x2e4   : > { %v16759_v11 = vpop.f32.mrf.mxu1  ;;  %v2148_v13 = vpack.c.bf16 %v2141_v19, %v2140_v53  ;;  %2758 = vmatpush.bf16.msra.mxu2 %v14393_v44  ;;  %v2557_v19 = vld [vmem:[%s16801_s26 + $0x9] sm:$0xff]  ;;  %v2524_v44 = vld [vmem:[%s16801_s26] sm:$0xff] }
 0x2e5   : > { %18699 = vst [vmem:[#allocation45_spill] sm:$0xff] %v16759_v11  ;;  %v2525_v53 = vld [vmem:[%s16801_s26 + $0x8] sm:$0xff] }
 0x2e6   : > { %v2328_v3 = vld [vmem:[#allocation2 + $0x5] sm:$0xff] }
 0x2e7   : > { %10965 = vmatmul.msk.bf16.vlgmr.msrb.gmra.mxu1 %vm1359_vm3, %v2144_v14  ;;  %v14392_v14 = vld [vmem:[#allocation12 + $0x20] sm:$0xff] }
 0x2e8   : > { %v16755_v7 = vpop.f32.mrf.mxu2  ;;  %10977 = vmatmul.msk.bf16.vlgmr.msrb.gmra.mxu2 %vm1359_vm3, %v2242_v17  ;;  %v14398_v17 = vld [vmem:[#allocation12 + $0x50] sm:$0xff] }
 0x2e9   : > { %18698 = vst [vmem:[#allocation44_spill] sm:$0xff] %v16755_v7  ;;  %2759 = vmatpush.bf16.msra.mxu2 %v14392_v14  ;;  %2659 = vmatpush.bf16.msra.mxu1 %v14398_v17  ;;  %v2536_v14 = vpack.c.bf16 %v2525_v53, %v2524_v44  ;;  %v2340_v17 = vpack.c.bf16 %v2329_v61, %v2328_v3  ;;  %v14415_v44 = vld [vmem:[#allocation12 + $0xd8] sm:$0x10]  ;;  %v11169_v53 = vld [vmem:[#allocation12 + $0x110] sm:$0xf] }
 0x2ea   : > { %v16761_v49 = vpop.f32.mrf.mxu3  ;;  %v14422_v61 = vld [vmem:[#allocation12 + $0x110] sm:$0x10]  ;;  %v11203_v3 = vld [vmem:[#allocation12 + $0x148] sm:$0xf] }
 0x2eb   : > { %18700 = vst [vmem:[#allocation46_spill] sm:$0xff] %v16761_v49  ;;  %v3564_v49 = vld [vmem:[%s17007_s18 + $0x41] sm:$0xff] }
 0x2f0   : > { %v2024_v50 = vpop.f32.mrf.mxu2 }
 0x2f1   : > { %v1959_v48 = vpop.f32.mrf.mxu1 }
 0x2f2   : > { %v2025_v28 = vadd.f32 %v2024_v50, %v1959_v48  ;;  %v14391_v50 = vld [vmem:[#allocation12 + $0x18] sm:$0xff]  ;;  %v14397_v48 = vld [vmem:[#allocation12 + $0x48] sm:$0xff] }
 0x2f3   : > { %2760 = vmatpush.bf16.msra.mxu2 %v14391_v50  ;;  %2660 = vmatpush.bf16.msra.mxu1 %v14397_v48 }
 0x2f7   : > { %10966 = vmatmul.msk.bf16.gmra.mxu1 %vm1359_vm3, %v2145_v38  ;;  %v14389_v38 = vld [vmem:[#allocation12 + $0x8] sm:$0xff] }
 0x2f8   : > { %v2110_v2 = vpop.f32.mrf.mxu3  ;;  %10978 = vmatmul.msk.bf16.gmra.mxu2 %vm1359_vm3, %v2243_v0  ;;  %v1140_v0 = vmul.f32 %v1126_v41, %v1049_v31  ;;  %2661 = vmatpush.bf16.msra.mxu1 %v14396_v60  ;;  %v16805_v51 = vpop.f32.mrf.mxu2  ;;  %v2558_v41 = vld [vmem:[%s16801_s26 + $0x11] sm:$0xff]  ;;  %v2559_v31 = vld [vmem:[%s16801_s26 + $0x19] sm:$0xff] }
 0x2f9   : > { %v16765_v43 = vadd.f32 %v2110_v2, %v2025_v28  ;;  %v14390_v28 = vld [vmem:[#allocation12 + $0x10] sm:$0xff]  ;;  %v16795_v45 = vpop.f32.mrf.mxu1  ;;  %18703 = vst [vmem:[#allocation48_spill] sm:$0xff] %v16805_v51  ;;  %v2526_v60 = vld [vmem:[%s16801_s26 + $0x10] sm:$0xff] }
 0x2fa   : > { %2761 = vmatpush.bf16.msra.mxu2 %v14390_v28  ;;  %v10987_v2 = vld [vmem:[%s18625_s10 + $0x28] sm:$0xf]  ;;  %v1231_v35 = vadd.f32 %v1217_v59, %v1140_v0  ;;  %18701 = vst [vmem:[#allocation47_spill] sm:$0xff] %v16795_v45  ;;  %v2331_v0 = vld [vmem:[#allocation2 + $0x1d] sm:$0xff]  ;;  %v3792_v45 = vld [vmem:[%s17007_s18 + $0x12] sm:$0xff] }
 0x2fb   : > { %v10988_v5 = vor.u32 %v14386_v20, %v10987_v2  ;;  %v2569_v20 = vpack.c.bf16 %v2559_v31, %v2558_v41  ;;  %v2562_v41 = vld [vmem:[%s16801_s26 + $0x31] sm:$0xff]  ;;  %v2563_v31 = vld [vmem:[%s16801_s26 + $0x39] sm:$0xff] }
 0x2fc   : > { %2662 = vmatpush.bf16.msra.mxu1 %v14395_v9  ;;  %v2330_v9 = vld [vmem:[#allocation2 + $0x15] sm:$0xff]  ;;  %v14450_v51 = vld [vmem:[#allocation15 + $0x70] sm:$0xff] }
 0x2fe   : > { %2762 = vmatpush.bf16.msra.mxu2 %v14389_v38  ;;  %v2527_v38 = vld [vmem:[%s16801_s26 + $0x18] sm:$0xff] }
 0x302   : > { %2763 = vmatpush.bf16.msra.mxu2 %v14388_v18  ;;  %v2537_v18 = vpack.c.bf16 %v2527_v38, %v2526_v60 }
 0x307   : > { %10967 = vmatmul.msk.bf16.gmra.mxu1 %vm1359_vm3, %v2146_v42 }
 0x308   : > { %10979 = vmatmul.msk.bf16.gmra.mxu2 %vm1359_vm3, %v2244_v33  ;;  %v2373_v33 = vand.u32 %v10988_v5, %v16587_v23 }
 0x30a   : > { %2382 = vmatpush.bf16.msra.mxu3 %v2373_v33 }
 0x317   : > { %10968 = vmatmul.msk.bf16.gmra.mxu1 %vm1359_vm3, %v2147_v30 }
 0x318   : > { %10980 = vmatmul.msk.bf16.gmra.mxu2 %vm1359_vm3, %v2245_v10  ;;  %v2044_v10 = vld [vmem:[#allocation2 + $0x52] sm:$0xff] }
 0x327   : > { %10969 = vmatmul.msk.bf16.gmra.mxu1 %vm1359_vm3, %v2148_v13 }
 0x328   : > { %10981 = vmatmul.msk.bf16.gmra.mxu2 %vm1359_vm3, %v2246_v4 }
 0x337   : > { %v1727_v42 = vpop.permute.xlu0 %1726 }
 0x338   : > { %v1741_v21 = vmul.f32 %v1727_v42, %v1341_v12  ;;  %v2556_v12 = vld [vmem:[%s16801_s26 + $0x1] sm:$0xff]  ;;  %v2341_v42 = vpack.c.bf16 %v2331_v0, %v2330_v9  ;;  %v14407_v9 = vld [vmem:[#allocation12 + $0x98] sm:$0xff] }
 0x339   : > { %v1818_v25 = vpop.permute.xlu1 %1817  ;;  %v2568_v4 = vpack.c.bf16 %v2557_v19, %v2556_v12  ;;  %v14408_v12 = vld [vmem:[#allocation12 + $0xa0] sm:$0x10]  ;;  %v11135_v19 = vld [vmem:[#allocation12 + $0xd8] sm:$0xf] }
 0x33a   : > { %v1832_v54 = vmul.f32 %v1818_v25, %v1231_v35 }
 0x33c   : > { %v1845_v30 = vadd.f32 %v1832_v54, %v1741_v21  ;;  %v2560_v21 = vld [vmem:[%s16801_s26 + $0x21] sm:$0xff]  ;;  %v2561_v54 = vld [vmem:[%s16801_s26 + $0x29] sm:$0xff] }
 0x33e   : > { %1858 = vst.msk [vmem:[#allocation2 + $0x60] sm:$0x1f] %vm1396_vm8, %v1845_v30 }
 0x345   : > { %v2045_v8 = vld [vmem:[#allocation2 + $0x5a] sm:$0x7f] }
 0x346   : > { %v2143_v32 = vld [vmem:[#allocation2 + $0x5b] sm:$0x7f]  ;;  %v2051_v23 = vpack.c.bf16 %v2045_v8, %v2044_v10 }
 0x347   : > { %v2241_v40 = vld [vmem:[#allocation2 + $0x5c] sm:$0x7f]  ;;  %v2149_v29 = vpack.c.bf16 %v2143_v32, %v2142_v24  ;;  %v2332_v24 = vld [vmem:[#allocation2 + $0x25] sm:$0xff]  ;;  %v2570_v32 = vpack.c.bf16 %v2561_v54, %v2560_v21  ;;  %v2571_v54 = vpack.c.bf16 %v2563_v31, %v2562_v41 }
 0x348   : > { %v2247_v26 = vpack.c.bf16 %v2241_v40, %v2240_v6  ;;  %v2437_v16 = vld [vmem:[#allocation2 + $0x5e] sm:$0x7f]  ;;  %10958 = vmatmul.msk.bf16.gmra.mxu3 %vm1359_vm3, %v2051_v23  ;;  %v2333_v6 = vld [vmem:[#allocation2 + $0x2d] sm:$0xff] }
 0x349   : > { %v2443_v57 = vpack.c.bf16 %v2437_v16, %v2436_v27  ;;  %10970 = vmatmul.msk.bf16.gmra.mxu1 %vm1359_vm3, %v2149_v29  ;;  %v2528_v10 = vld [vmem:[%s16801_s26 + $0x20] sm:$0xff]  ;;  %v2342_v29 = vpack.c.bf16 %v2333_v6, %v2332_v24  ;;  %v14403_v31 = vld [vmem:[#allocation12 + $0x78] sm:$0xff] }
 0x34a   : > { %10982 = vmatmul.msk.bf16.gmra.mxu2 %vm1359_vm3, %v2247_v26  ;;  %v14425_v41 = vld [vmem:[#allocation12 + $0x128] sm:$0xff] }
 0x34b   : > { %11006 = vmatmul.msk.bf16.gmra.mxu0 %vm1359_vm3, %v2443_v57  ;;  %v11101_v57 = vld [vmem:[#allocation12 + $0xa0] sm:$0xf] }
 0x354   : > { %v1964_v13 = vpop.f32.mrf.mxu1 }
 0x358   : > { %10989 = vmatmul.msk.bf16.vlgmr.msra.gmra.mxu3 %vm1359_vm3, %v2340_v17 }
 0x359   : > { %11035 = vmatmul.msk.bf16.vlgmr.msra.gmra.mxu1 %vm2630_vm4, %v2568_v4  ;;  %v11170_v4 = vor.u32 %v14422_v61, %v11169_v53  ;;  %v14404_v53 = vld [vmem:[#allocation12 + $0x80] sm:$0xff]  ;;  %v14411_v61 = vld [vmem:[#allocation12 + $0xb8] sm:$0xff] }
 0x35a   : > { %11069 = vmatmul.msk.bf16.vlgmr.msra.gmra.mxu2 %vm2630_vm4, %v2536_v14  ;;  %v14429_v14 = vld [vmem:[#allocation12 + $0x148] sm:$0x10] }
 0x35b   : > { %v2029_v50 = vpop.f32.mrf.mxu2  ;;  %v3180_v38 = vand.u32 %v11170_v4, %v16774_v34  ;;  %v2564_v4 = vld [vmem:[%s16801_s26 + $0x41] sm:$0xff] }
 0x35c   : > { %v16812_v48 = vadd.f32 %v2029_v50, %v1964_v13  ;;  %v16814_v28 = vpop.f32.mrf.mxu1  ;;  %v11136_v13 = vor.u32 %v14415_v44, %v11135_v19  ;;  %v11204_v50 = vor.u32 %v14429_v14, %v11203_v3  ;;  %v14419_v19 = vld [vmem:[#allocation12 + $0xf8] sm:$0xff]  ;;  %v14426_v44 = vld [vmem:[#allocation12 + $0x130] sm:$0xff] }
 0x35d   : > { %3183 = vmatpush.bf16.msrb.mxu1 %v3180_v38  ;;  %v2565_v3 = vld [vmem:[%s16801_s26 + $0x49] sm:$0xff]  ;;  %v2532_v14 = vld [vmem:[%s16801_s26 + $0x40] sm:$0xff] }
 0x35e   : > { %v3034_v60 = vand.u32 %v11136_v13, %v16774_v34  ;;  %v14418_v13 = vld [vmem:[#allocation12 + $0xf0] sm:$0xff] }
 0x35f   : > { %v14410_v38 = vld [vmem:[#allocation12 + $0xb0] sm:$0xff] }
 0x360   : > { %3037 = vmatpush.bf16.msra.mxu0 %v3034_v60  ;;  %v2337_v60 = vld [vmem:[#allocation2 + $0x4d] sm:$0xff] }
 0x363   : > { %v16818_v59 = vpop.f32.mrf.mxu2 }
 0x364   : > { %v2188_v2 = vpop.f32.mrf.mxu1 }
 0x365   : > { %v2218_v5 = vadd.f32 %v2188_v2, %v16711_v46  ;;  %v2529_v46 = vld [vmem:[%s16801_s26 + $0x28] sm:$0xff]  ;;  %v2530_v2 = vld [vmem:[%s16801_s26 + $0x30] sm:$0xff] }
 0x366   : > { %v2538_v23 = vpack.c.bf16 %v2529_v46, %v2528_v10  ;;  %v2334_v46 = vld [vmem:[#allocation2 + $0x35] sm:$0xff] }
 0x368   : > { %10990 = vmatmul.msk.bf16.gmra.mxu3 %vm1359_vm3, %v2341_v42  ;;  %v14414_v42 = vld [vmem:[#allocation12 + $0xd0] sm:$0xff] }
 0x369   : > { %11036 = vmatmul.msk.bf16.gmra.mxu1 %vm2630_vm4, %v2569_v20  ;;  %v2531_v20 = vld [vmem:[%s16801_s26 + $0x38] sm:$0xff]  ;;  %3038 = vmatpush.bf16.msra.mxu0 %v14414_v42 }
 0x36a   : > { %11070 = vmatmul.msk.bf16.gmra.mxu2 %vm2630_vm4, %v2537_v18  ;;  %v2335_v18 = vld [vmem:[#allocation2 + $0x3d] sm:$0xff]  ;;  %v2539_v24 = vpack.c.bf16 %v2531_v20, %v2530_v2 }
 0x36b   : > { %v2286_v33 = vpop.f32.mrf.mxu2  ;;  %v2343_v6 = vpack.c.bf16 %v2335_v18, %v2334_v46  ;;  %v14417_v2 = vld [vmem:[#allocation12 + $0xe8] sm:$0xff]  ;;  %v2336_v18 = vld [vmem:[#allocation2 + $0x45] sm:$0xff]  ;;  %v14416_v46 = vld [vmem:[#allocation12 + $0xe0] sm:$0xff] }
 0x36c   : > { %v16826_v35 = vadd.f32 %v2286_v33, %v2218_v5  ;;  %v16828_v25 = vpop.f32.mrf.mxu1  ;;  %v3326_v5 = vand.u32 %v11204_v50, %v16774_v34  ;;  %v14421_v33 = vld [vmem:[#allocation12 + $0x108] sm:$0xff]  ;;  %v2533_v50 = vld [vmem:[%s16801_s26 + $0x48] sm:$0xff] }
 0x36d   : > { %3184 = vmatpush.bf16.msrb.mxu1 %v14421_v33  ;;  %v2540_v42 = vpack.c.bf16 %v2533_v50, %v2532_v14  ;;  %v2344_v33 = vpack.c.bf16 %v2337_v60, %v2336_v18  ;;  %v2943_v50 = vld [vmem:[%s16801_s26 + $0x13] sm:$0xff]  ;;  %v3233_v18 = vld [vmem:[%s16801_s26 + $0x5] sm:$0xff] }
 0x36e   : > { %3329 = vmatpush.bf16.msrb.mxu2 %v3326_v5  ;;  %v2572_v5 = vpack.c.bf16 %v2565_v3, %v2564_v4  ;;  %v2338_v4 = vld [vmem:[#allocation2 + $0x55] sm:$0xff] }
 0x373   : > { %v16832_v30 = vpop.f32.mrf.mxu2 }
 0x374   : > { %v2193_v8 = vpop.f32.mrf.mxu1 }
 0x375   : > { %v2220_v40 = vadd.f32 %v2193_v8, %v16717_v63  ;;  %v11102_v63 = vor.u32 %v14408_v12, %v11101_v57  ;;  %v14428_v8 = vld [vmem:[#allocation12 + $0x140] sm:$0xff] }
 0x376   : > { %3330 = vmatpush.bf16.msrb.mxu2 %v14428_v8  ;;  %v14412_v12 = vld [vmem:[#allocation12 + $0xc0] sm:$0xff]  ;;  %v14423_v8 = vld [vmem:[#allocation12 + $0x118] sm:$0xff] }
 0x377   : > { %v2888_v17 = vand.u32 %v11102_v63, %v16774_v34 }
 0x378   : > { %10991 = vmatmul.msk.bf16.gmra.mxu3 %vm1359_vm3, %v2342_v29 }
 0x379   : > { %11037 = vmatmul.msk.bf16.gmra.mxu1 %vm2630_vm4, %v2570_v32  ;;  %2891 = vmatpush.bf16.msrb.mxu3 %v2888_v17  ;;  %v14406_v32 = vld [vmem:[#allocation12 + $0x90] sm:$0xff] }
 0x37a   : > { %11071 = vmatmul.msk.bf16.gmra.mxu2 %vm2630_vm4, %v2538_v23  ;;  %v14420_v23 = vld [vmem:[#allocation12 + $0x100] sm:$0xff] }
 0x37b   : > { %v2291_v26 = vpop.f32.mrf.mxu2  ;;  %3185 = vmatpush.bf16.msrb.mxu1 %v14420_v23 }
 0x37c   : > { %v16840_v27 = vadd.f32 %v2291_v26, %v2220_v40  ;;  %v16842_v16 = vpop.f32.mrf.mxu1  ;;  %v14413_v40 = vld [vmem:[#allocation12 + $0xc8] sm:$0xff] }
 0x37d   : > { %2892 = vmatpush.bf16.msrb.mxu3 %v14407_v9  ;;  %v14405_v26 = vld [vmem:[#allocation12 + $0x88] sm:$0xff]  ;;  %3039 = vmatpush.bf16.msra.mxu0 %v14413_v40 }
 0x37f   : > { %3186 = vmatpush.bf16.msrb.mxu1 %v14419_v19  ;;  %v2535_v19 = vld [vmem:[%s16801_s26 + $0x58] sm:$0x7f] }
 0x381   : > { %2893 = vmatpush.bf16.msrb.mxu3 %v14406_v32  ;;  %3040 = vmatpush.bf16.msra.mxu0 %v14412_v12  ;;  %v2534_v12 = vld [vmem:[%s16801_s26 + $0x50] sm:$0xff] }
 0x382   : > { %v2541_v3 = vpack.c.bf16 %v2535_v19, %v2534_v12  ;;  %v3090_v12 = vld [vmem:[%s16801_s26 + $0x1c] sm:$0xff] }
 0x383   : > { %v16849_v0 = vpop.f32.mrf.mxu2  ;;  %3187 = vmatpush.bf16.msrb.mxu1 %v14418_v13  ;;  %v3235_v19 = vld [vmem:[%s16801_s26 + $0x15] sm:$0xff] }
 0x384   : > { %v2198_v21 = vpop.f32.mrf.mxu1 }
 0x385   : > { %v2222_v10 = vadd.f32 %v2198_v21, %v16743_v39  ;;  %v14427_v39 = vld [vmem:[#allocation12 + $0x138] sm:$0xff]  ;;  %2894 = vmatpush.bf16.msrb.mxu3 %v14405_v26  ;;  %3041 = vmatpush.bf16.msra.mxu0 %v14411_v61  ;;  %v14424_v21 = vld [vmem:[#allocation12 + $0x120] sm:$0xff] }
 0x386   : > { %3331 = vmatpush.bf16.msrb.mxu2 %v14427_v39  ;;  %v2567_v39 = vld [vmem:[%s16801_s26 + $0x59] sm:$0x7f] }
 0x387   : > { %3188 = vmatpush.bf16.msrb.mxu1 %v14417_v2  ;;  %v2795_v2 = vld [vmem:[%s16801_s26 + $0x2] sm:$0xff] }
 0x388   : > { %10992 = vmatmul.msk.bf16.gmra.mxu3 %vm1359_vm3, %v2343_v6  ;;  %v2942_v6 = vld [vmem:[%s16801_s26 + $0xb] sm:$0xff] }
 0x389   : > { %11038 = vmatmul.msk.bf16.gmra.mxu1 %vm2630_vm4, %v2571_v54  ;;  %2895 = vmatpush.bf16.msrb.mxu3 %v14404_v53  ;;  %v14402_v54 = vld [vmem:[#allocation12 + $0x70] sm:$0xff] }
 0x38a   : > { %11072 = vmatmul.msk.bf16.gmra.mxu2 %vm2630_vm4, %v2539_v24  ;;  %3042 = vmatpush.bf16.msra.mxu0 %v14410_v38  ;;  %v2941_v24 = vld [vmem:[%s16801_s26 + $0x3] sm:$0xff] }
 0x38b   : > { %v2296_v29 = vpop.f32.mrf.mxu2  ;;  %3332 = vmatpush.bf16.msrb.mxu2 %v14426_v44  ;;  %v2953_v32 = vpack.c.bf16 %v2942_v6, %v2941_v24  ;;  %3189 = vmatpush.bf16.msrb.mxu1 %v14416_v46  ;;  %v2339_v44 = vld [vmem:[#allocation2 + $0x5d] sm:$0x7f]  ;;  %v2946_v24 = vld [vmem:[%s16801_s26 + $0x2b] sm:$0xff] }
 0x38c   : > { %v16858_v57 = vadd.f32 %v2296_v29, %v2222_v10  ;;  %v16860_v63 = vpop.f32.mrf.mxu1  ;;  %v14409_v10 = vld [vmem:[#allocation12 + $0xa8] sm:$0xff]  ;;  %v2566_v29 = vld [vmem:[%s16801_s26 + $0x51] sm:$0xff]  ;;  %v2345_v14 = vpack.c.bf16 %v2339_v44, %v2338_v4  ;;  %v2945_v46 = vld [vmem:[%s16801_s26 + $0x23] sm:$0xff] }
 0x38d   : > { %2896 = vmatpush.bf16.msrb.mxu3 %v14403_v31  ;;  %v2573_v61 = vpack.c.bf16 %v2567_v39, %v2566_v29  ;;  %v2955_v6 = vpack.c.bf16 %v2946_v24, %v2945_v46  ;;  %v2798_v29 = vld [vmem:[%s16801_s26 + $0x1a] sm:$0xff]  ;;  %v3092_v46 = vld [vmem:[%s16801_s26 + $0x2c] sm:$0xff]  ;;  %v2032_v24 = vadd.f32 %v16818_v59, %v16814_v28  ;;  %v2949_v28 = vld [vmem:[%s16801_s26 + $0x43] sm:$0xff]  ;;  %v3647_v59 = vsel %vm1280_vm1, 4294967295, %v18652_v1 }
 0x38e   : > { %3043 = vmatpush.bf16.msra.mxu0 %v14409_v10  ;;  %v3089_v39 = vld [vmem:[%s16801_s26 + $0x14] sm:$0xff]  ;;  %v3236_v44 = vld [vmem:[%s16801_s26 + $0x1d] sm:$0xff]  ;;  %vm3627_vm1 = vcmask 826368  }
 0x38f   : > { %3333 = vmatpush.bf16.msrb.mxu2 %v14425_v41  ;;  %v2944_v41 = vld [vmem:[%s16801_s26 + $0x1b] sm:$0xff]  ;;  %v3100_v4 = vpack.c.bf16 %v3090_v12, %v3089_v39 }
 0x390   : > { %v2954_v60 = vpack.c.bf16 %v2944_v41, %v2943_v50  ;;  %v2947_v50 = vld [vmem:[%s16801_s26 + $0x33] sm:$0xff] }
 0x391   : > { %2897 = vmatpush.bf16.msrb.mxu3 %v14402_v54  ;;  %11137 = vmatmul.msk.bf16.vlgmr.msra.gmra.mxu0 %vm2630_vm4, %v2953_v32 }
 0x393   : > { %v16865_v17 = vpop.f32.mrf.mxu2  ;;  %3334 = vmatpush.bf16.msrb.mxu2 %v14424_v21 }
 0x394   : > { %18704 = vst [vmem:[#allocation49_spill] sm:$0xff] %v16865_v17  ;;  %v2203_v20 = vpop.f32.mrf.mxu1 }
 0x395   : > { %v2224_v9 = vadd.f32 %v2203_v20, %v16753_v36  ;;  %v2796_v20 = vld [vmem:[%s16801_s26 + $0xa] sm:$0xff] }
 0x397   : > { %3335 = vmatpush.bf16.msrb.mxu2 %v14423_v8  ;;  %v2797_v8 = vld [vmem:[%s16801_s26 + $0x12] sm:$0xff] }
 0x398   : > { %10993 = vmatmul.msk.bf16.gmra.mxu3 %vm1359_vm3, %v2344_v33  ;;  %v2807_v33 = vpack.c.bf16 %v2796_v20, %v2795_v2 }
 0x399   : > { %11039 = vmatmul.msk.bf16.gmra.mxu1 %vm2630_vm4, %v2572_v5  ;;  %v3087_v5 = vld [vmem:[%s16801_s26 + $0x4] sm:$0xff] }
 0x39a   : > { %11073 = vmatmul.msk.bf16.gmra.mxu2 %vm2630_vm4, %v2540_v42  ;;  %v3234_v42 = vld [vmem:[%s16801_s26 + $0xd] sm:$0xff] }
 0x39b   : > { %v2301_v36 = vpop.f32.mrf.mxu2  ;;  %v3245_v54 = vpack.c.bf16 %v3234_v42, %v3233_v18 }
 0x39c   : > { %v16874_v40 = vadd.f32 %v2301_v36, %v2224_v9  ;;  %v16876_v23 = vpop.f32.mrf.mxu1  ;;  %v3088_v9 = vld [vmem:[%s16801_s26 + $0xc] sm:$0xff] }
 0x39d   : > { %18705 = vst [vmem:[#allocation50_spill] sm:$0xff] %v16876_v23  ;;  %v3099_v21 = vpack.c.bf16 %v3088_v9, %v3087_v5 }
 0x3a1   : > { %11138 = vmatmul.msk.bf16.gmra.mxu0 %vm2630_vm4, %v2954_v60  ;;  %v2948_v60 = vld [vmem:[%s16801_s26 + $0x3b] sm:$0xff] }
 0x3a2   : > { %v2956_v5 = vpack.c.bf16 %v2948_v60, %v2947_v50 }
 0x3a3   : > { %v16881_v26 = vpop.f32.mrf.mxu2 }
 0x3a4   : > { %18706 = vst [vmem:[#allocation51_spill] sm:$0xff] %v16881_v26  ;;  %v2208_v53 = vpop.f32.mrf.mxu1 }
 0x3a5   : > { %v2226_v13 = vadd.f32 %v2208_v53, %v16765_v43  ;;  %v16893_v43 = vpop.f32.mrf.mxu0  ;;  %v16920_v53 = vpop.f32.mrf.mxu3 }
 0x3a6   : > { %18708 = vst [vmem:[#allocation53_spill] sm:$0xff] %v16920_v53 }
 0x3a8   : > { %10994 = vmatmul.msk.bf16.gmra.mxu3 %vm1359_vm3, %v2345_v14  ;;  %v3246_v14 = vpack.c.bf16 %v3236_v44, %v3235_v19  ;;  %vm3646_vm3 = vcmask 1042432  }
 0x3a9   : > { %11040 = vmatmul.msk.bf16.gmra.mxu1 %vm2630_vm4, %v2573_v61 }
 0x3aa   : > { %11074 = vmatmul.msk.bf16.gmra.mxu2 %vm2630_vm4, %v2541_v3 }
 0x3ab   : > { %v2306_v31 = vpop.f32.mrf.mxu2 }
 0x3ac   : > { %v16891_v38 = vadd.f32 %v2306_v31, %v2226_v13  ;;  %v16909_v36 = vpop.f32.mrf.mxu1  ;;  %v2808_v13 = vpack.c.bf16 %v2798_v29, %v2797_v8  ;;  %v3238_v8 = vld [vmem:[%s16801_s26 + $0x2d] sm:$0xff] }
 0x3ad   : > { %v16902_v10 = vpop.f32.mrf.mxu0  ;;  %18707 = vst [vmem:[#allocation52_spill] sm:$0xff] %v16909_v36 }
 0x3b1   : > { %11139 = vmatmul.msk.bf16.gmra.mxu0 %vm2630_vm4, %v2955_v6  ;;  %v3237_v6 = vld [vmem:[%s16801_s26 + $0x25] sm:$0xff] }
 0x3b3   : > { %v16922_v61 = vpop.f32.mrf.mxu2 }
 0x3b4   : > { %18709 = vst [vmem:[#allocation54_spill] sm:$0xff] %v16922_v61 }
 0x3b5   : > { %v16913_v32 = vpop.f32.mrf.mxu0 }
 0x3b8   : > { %11103 = vmatmul.msk.bf16.vlgmr.msrb.gmra.mxu3 %vm2630_vm4, %v2807_v33  ;;  %v2799_v33 = vld [vmem:[%s16801_s26 + $0x22] sm:$0xff] }
 0x3b9   : > { %11171 = vmatmul.msk.bf16.vlgmr.msrb.gmra.mxu1 %vm2630_vm4, %v3099_v21  ;;  %v2800_v21 = vld [vmem:[%s16801_s26 + $0x2a] sm:$0xff] }
 0x3ba   : > { %11205 = vmatmul.msk.bf16.vlgmr.msrb.gmra.mxu2 %vm2630_vm4, %v3245_v54  ;;  %v3091_v54 = vld [vmem:[%s16801_s26 + $0x24] sm:$0xff]  ;;  %v2809_v19 = vpack.c.bf16 %v2800_v21, %v2799_v33  ;;  %v11237_v21 = vld [vmem:[#allocation12 + $0x180] sm:$0xf] }
 0x3bb   : > { %v3101_v44 = vpack.c.bf16 %v3092_v46, %v3091_v54  ;;  %v14436_v54 = vld [vmem:[#allocation12 + $0x180] sm:$0x10] }
 0x3bd   : > { %v16928_v41 = vpop.f32.mrf.mxu0 }
 0x3c1   : > { %11140 = vmatmul.msk.bf16.gmra.mxu0 %vm2630_vm4, %v2956_v5  ;;  %v3587_v5 = vld [vmem:[#allocation15 + $0x64] sm:$0x7] }
 0x3c2   : > { %v3613_v46 = vunpack.c.l.b16 %v3587_v5  ;;  %v14435_v5 = vld [vmem:[#allocation12 + $0x178] sm:$0xff] }
 0x3c5   : > { %v16943_v29 = vpop.f32.mrf.mxu0 }
 0x3c6   : > { %v2213_v3 = vpop.f32.mrf.mxu1  ;;  %18710 = vst [vmem:[#allocation55_spill] sm:$0xff] %v16943_v29 }
 0x3c8   : > { %11104 = vmatmul.msk.bf16.gmra.mxu3 %vm2630_vm4, %v2808_v13 }
 0x3c9   : > { %11172 = vmatmul.msk.bf16.gmra.mxu1 %vm2630_vm4, %v3100_v4  ;;  %v3247_v4 = vpack.c.bf16 %v3238_v8, %v3237_v6  ;;  %v16961_v6 = vsel %vm3646_vm3, %v3647_v59, 0  ;;  %v3239_v59 = vld [vmem:[%s16801_s26 + $0x35] sm:$0xff] }
 0x3ca   : > { %11206 = vmatmul.msk.bf16.gmra.mxu2 %vm2630_vm4, %v3246_v14 }
 0x3cb   : > { %v2115_v31 = vpop.f32.mrf.mxu3 }
 0x3cc   : > { %v2130_v2 = vadd.f32 %v2115_v31, %v16812_v48  ;;  %v2950_v31 = vld [vmem:[%s16801_s26 + $0x4b] sm:$0xff] }
 0x3cd   : > { %v2311_v20 = vpop.f32.mrf.mxu2 }
 0x3ce   : > { %v2215_v9 = vpop.f32.mrf.mxu1  ;;  %v2228_v18 = vadd.f32 %v2213_v3, %v2130_v2 }
 0x3d0   : > { %v16933_v42 = vadd.f32 %v2311_v20, %v2228_v18  ;;  %v2957_v20 = vpack.c.bf16 %v2950_v31, %v2949_v28  ;;  %v3094_v28 = vld [vmem:[%s16801_s26 + $0x3c] sm:$0xff] }
 0x3d2   : > { %11141 = vmatmul.msk.bf16.gmra.mxu0 %vm2630_vm4, %v2957_v20 }
 0x3d3   : > { %v2117_v48 = vpop.f32.mrf.mxu3 }
 0x3d4   : > { %v2131_v39 = vadd.f32 %v2117_v48, %v2032_v24  ;;  %v3555_v24 = vld [vmem:[#allocation15 + $0x30] sm:$0x7]  ;;  %v3821_v48 = vld [vmem:[#allocation15 + $0x98] sm:$0x7] }
 0x3d5   : > { %v2313_v12 = vpop.f32.mrf.mxu2  ;;  %v3716_v8 = vunpack.c.l.b16 %v3555_v24 }
 0x3d6   : > { %v2664_v13 = vpop.f32.mrf.mxu1  ;;  %v2229_v3 = vadd.f32 %v2215_v9, %v2131_v39  ;;  %v16957_v9 = vpop.f32.mrf.mxu0  ;;  %v3620_v39 = vpack.c.b16 %v3613_v46, %v3613_v46  ;;  %v14448_v46 = vld [vmem:[#allocation15 + $0x5c] sm:$0xff] }
 0x3d7   : > { %18711 = vst [vmem:[#allocation56_spill] sm:$0xff] %v16957_v9  ;;  %v3531_v9 = vld [vmem:[%s17007_s18 + $0x30] sm:$0xff] }
 0x3d8   : > { %v16945_v14 = vadd.f32 %v2313_v12, %v2229_v3  ;;  %11105 = vmatmul.msk.bf16.gmra.mxu3 %vm2630_vm4, %v2809_v19  ;;  %v3847_v12 = vunpack.c.l.b16 %v3821_v48  ;;  %v2801_v19 = vld [vmem:[%s16801_s26 + $0x32] sm:$0xff] }
 0x3d9   : > { %11173 = vmatmul.msk.bf16.gmra.mxu1 %vm2630_vm4, %v3101_v44  ;;  %v3093_v3 = vld [vmem:[%s16801_s26 + $0x34] sm:$0xff] }
 0x3da   : > { %11207 = vmatmul.msk.bf16.gmra.mxu2 %vm2630_vm4, %v3247_v4  ;;  %v2802_v4 = vld [vmem:[%s16801_s26 + $0x3a] sm:$0xff]  ;;  %v3854_v31 = vpack.c.b16 %v3847_v12, %v3847_v12 }
 0x3db   : > { %v2384_v50 = vpop.f32.mrf.mxu3  ;;  %v2810_v24 = vpack.c.bf16 %v2802_v4, %v2801_v19  ;;  %v14434_v19 = vld [vmem:[#allocation12 + $0x170] sm:$0xff]  ;;  %v14447_v4 = vld [vmem:[#allocation15 + $0x54] sm:$0xff] }
 0x3dc   : > { %v16955_v60 = vadd.f32 %v2384_v50, %v16826_v35  ;;  %v11238_v35 = vor.u32 %v14436_v54, %v11237_v21  ;;  %v3650_v50 = vand.u32 %v16961_v6, %v3620_v39  ;;  %v3880_v54 = vand.u32 %v3854_v31, %v16961_v6  ;;  %v2952_v31 = vld [vmem:[%s16801_s26 + $0x5b] sm:$0x7f] }
 0x3dd   : > { %v2765_v2 = vpop.f32.mrf.mxu2 }
 0x3de   : > { %v16959_v18 = vadd.f32 %v2765_v2, %v2664_v13  ;;  %v2666_v33 = vpop.f32.mrf.mxu1  ;;  %v3472_v44 = vand.u32 %v11238_v35, %v16774_v34  ;;  %v3723_v13 = vpack.c.b16 %v3716_v8, %v3716_v8  ;;  %v3240_v2 = vld [vmem:[%s16801_s26 + $0x3d] sm:$0xff]  ;;  %3653 = vmatpush.bf16.msrb.mxu0 %v3650_v50  ;;  %v3102_v35 = vpack.c.bf16 %v3094_v28, %v3093_v3  ;;  %v16976_v8 = vpop.f32.mrf.mxu0  ;;  %v2951_v28 = vld [vmem:[%s16801_s26 + $0x53] sm:$0xff] }
 0x3df   : > { %18712 = vst [vmem:[#allocation57_spill] sm:$0xff] %v16976_v8  ;;  %v3248_v12 = vpack.c.bf16 %v3240_v2, %v3239_v59  ;;  %3883 = vmatpush.bf16.msra.mxu2 %v3880_v54  ;;  %v14453_v3 = vld [vmem:[#allocation15 + $0x88] sm:$0xff] }
 0x3e0   : > { %3475 = vmatpush.bf16.msra.mxu3 %v3472_v44  ;;  %v3749_v20 = vand.u32 %v3723_v13, %v16961_v6  ;;  %v14442_v44 = vld [vmem:[#allocation15 + $0x28] sm:$0xff]  ;;  %v14454_v13 = vld [vmem:[#allocation15 + $0x90] sm:$0xff] }
 0x3e1   : > { %v3795_v8 = vld [vmem:[%s17007_s18 + $0x2a] sm:$0xff] }
 0x3e2   : > { %3752 = vmatpush.bf16.msra.mxu1 %v3749_v20  ;;  %3654 = vmatpush.bf16.msrb.mxu0 %v14448_v46  ;;  %v2958_v20 = vpack.c.bf16 %v2952_v31, %v2951_v28  ;;  %v3241_v28 = vld [vmem:[%s16801_s26 + $0x45] sm:$0xff]  ;;  %v14451_v31 = vld [vmem:[#allocation15 + $0x78] sm:$0xff] }
 0x3e3   : > { %v16973_v21 = vpop.f32.mrf.mxu3  ;;  %3884 = vmatpush.bf16.msra.mxu2 %v14454_v13  ;;  %v14432_v13 = vld [vmem:[#allocation12 + $0x160] sm:$0xff] }
 0x3e4   : > { %3476 = vmatpush.bf16.msra.mxu3 %v14435_v5  ;;  %v14433_v5 = vld [vmem:[#allocation12 + $0x168] sm:$0xff]  ;;  %11142 = vmatmul.msk.bf16.gmra.mxu0 %vm2630_vm4, %v2958_v20 }
 0x3e5   : > { %v2767_v34 = vpop.f32.mrf.mxu2  ;;  %v14444_v20 = vld [vmem:[#allocation15 + $0x3c] sm:$0xff] }
 0x3e6   : > { %v16978_v48 = vadd.f32 %v2767_v34, %v2666_v33  ;;  %v2669_v39 = vpop.f32.mrf.mxu1  ;;  %3753 = vmatpush.bf16.msra.mxu1 %v14442_v44  ;;  %v14441_v33 = vld [vmem:[#allocation15 + $0x20] sm:$0xff]  ;;  %3655 = vmatpush.bf16.msrb.mxu0 %v14447_v4  ;;  %v14446_v34 = vld [vmem:[#allocation15 + $0x4c] sm:$0xff] }
 0x3e7   : > { %3885 = vmatpush.bf16.msra.mxu2 %v14453_v3  ;;  %v2804_v44 = vld [vmem:[%s16801_s26 + $0x4a] sm:$0xff] }
 0x3e8   : > { %11106 = vmatmul.msk.bf16.gmra.mxu3 %vm2630_vm4, %v2810_v24  ;;  %v14440_v24 = vld [vmem:[#allocation15 + $0x18] sm:$0xff] }
 0x3e9   : > { %11174 = vmatmul.msk.bf16.gmra.mxu1 %vm2630_vm4, %v3102_v35  ;;  %3477 = vmatpush.bf16.msra.mxu3 %v14434_v19  ;;  %v14452_v35 = vld [vmem:[#allocation15 + $0x80] sm:$0xff]  ;;  %v3095_v19 = vld [vmem:[%s16801_s26 + $0x44] sm:$0xff]  ;;  %v3096_v4 = vld [vmem:[%s16801_s26 + $0x4c] sm:$0xff] }
 0x3ea   : > { %11208 = vmatmul.msk.bf16.gmra.mxu2 %vm2630_vm4, %v3248_v12  ;;  %3754 = vmatpush.bf16.msra.mxu1 %v14441_v33  ;;  %v2803_v12 = vld [vmem:[%s16801_s26 + $0x42] sm:$0xff]  ;;  %v14439_v33 = vld [vmem:[#allocation15 + $0x10] sm:$0xff]  ;;  %v3103_v1 = vpack.c.bf16 %v3096_v4, %v3095_v19 }
 0x3eb   : > { %v2389_v50 = vpop.f32.mrf.mxu3  ;;  %3656 = vmatpush.bf16.msrb.mxu0 %v14446_v34  ;;  %3886 = vmatpush.bf16.msra.mxu2 %v14452_v35  ;;  %v2811_v34 = vpack.c.bf16 %v2804_v44, %v2803_v12  ;;  %v14443_v12 = vld [vmem:[#allocation15 + $0x34] sm:$0xff]  ;;  %v14437_v44 = vld [vmem:[#allocation15] sm:$0xff] }
 0x3ec   : > { %v16986_v59 = vadd.f32 %v2389_v50, %v16840_v27  ;;  %v16991_v27 = vpop.f32.mrf.mxu0  ;;  %v3242_v50 = vld [vmem:[%s16801_s26 + $0x4d] sm:$0xff] }
 0x3ed   : > { %v2770_v2 = vpop.f32.mrf.mxu2  ;;  %18713 = vst [vmem:[#allocation58_spill] sm:$0xff] %v16991_v27  ;;  %3478 = vmatpush.bf16.msra.mxu3 %v14433_v5  ;;  %v3249_v53 = vpack.c.bf16 %v3242_v50, %v3241_v28  ;;  %v3557_v4 = vld [vmem:[%s17007_s18 + $0x9] sm:$0xff]  ;;  %v2805_v50 = vld [vmem:[%s16801_s26 + $0x52] sm:$0xff]  ;;  %v3793_v27 = vld [vmem:[%s17007_s18 + $0x1a] sm:$0xff] }
 0x3ee   : > { %v16988_v54 = vadd.f32 %v2770_v2, %v2669_v39  ;;  %v2671_v46 = vpop.f32.mrf.mxu1  ;;  %v14445_v39 = vld [vmem:[#allocation15 + $0x44] sm:$0xff]  ;;  %3755 = vmatpush.bf16.msra.mxu1 %v14440_v24  ;;  %v14431_v2 = vld [vmem:[#allocation12 + $0x158] sm:$0xff] }
 0x3ef   : > { %3657 = vmatpush.bf16.msrb.mxu0 %v14445_v39  ;;  %v14438_v24 = vld [vmem:[#allocation15 + $0x8] sm:$0xff]  ;;  %3887 = vmatpush.bf16.msra.mxu2 %v14451_v31 }
 0x3f0   : > { %v3556_v39 = vld [vmem:[%s17007_s18 + $0x1] sm:$0xff] }
 0x3f1   : > { %3479 = vmatpush.bf16.msra.mxu3 %v14432_v13  ;;  %v14449_v13 = vld [vmem:[#allocation15 + $0x68] sm:$0xff] }
 0x3f2   : > { %3756 = vmatpush.bf16.msra.mxu1 %v14439_v33  ;;  %v3568_v33 = vpack.c.bf16 %v3557_v4, %v3556_v39  ;;  %v3558_v4 = vld [vmem:[%s17007_s18 + $0x11] sm:$0xff] }
 0x3f3   : > { %v16999_v3 = vpop.f32.mrf.mxu3  ;;  %3658 = vmatpush.bf16.msrb.mxu0 %v14444_v20  ;;  %3888 = vmatpush.bf16.msra.mxu2 %v14450_v51  ;;  %v3097_v20 = vld [vmem:[%s16801_s26 + $0x54] sm:$0xff] }
 0x3f4   : > { %v17009_v35 = vpop.f32.mrf.mxu0 }
 0x3f5   : > { %v2772_v5 = vpop.f32.mrf.mxu2  ;;  %18715 = vst [vmem:[#allocation59_spill] sm:$0xff] %v17009_v35  ;;  %3480 = vmatpush.bf16.msra.mxu3 %v14431_v2  ;;  %v2806_v2 = vld [vmem:[%s16801_s26 + $0x5a] sm:$0x7f] }
 0x3f6   : > { %v17001_v61 = vadd.f32 %v2772_v5, %v2671_v46  ;;  %v2674_v36 = vpop.f32.mrf.mxu1  ;;  %v14430_v46 = vld [vmem:[#allocation12 + $0x150] sm:$0xff]  ;;  %3757 = vmatpush.bf16.msra.mxu1 %v14438_v24 }
 0x3f7   : > { %3659 = vmatpush.bf16.msrb.mxu0 %v14443_v12  ;;  %3889 = vmatpush.bf16.msra.mxu2 %v14449_v13  ;;  %v3098_v5 = vld [vmem:[%s16801_s26 + $0x5c] sm:$0x7f] }
 0x3f8   : > { %11107 = vmatmul.msk.bf16.gmra.mxu3 %vm2630_vm4, %v2811_v34  ;;  %v3243_v34 = vld [vmem:[%s16801_s26 + $0x55] sm:$0xff]  ;;  %v3104_v12 = vpack.c.bf16 %v3098_v5, %v3097_v20 }
 0x3f9   : > { %11175 = vmatmul.msk.bf16.gmra.mxu1 %vm2630_vm4, %v3103_v1  ;;  %3481 = vmatpush.bf16.msra.mxu3 %v14430_v46 }
 0x3fa   : > { %11209 = vmatmul.msk.bf16.gmra.mxu2 %vm2630_vm4, %v3249_v53  ;;  %3758 = vmatpush.bf16.msra.mxu1 %v14437_v44 }
 0x3fb   : > { %v2394_v19 = vpop.f32.mrf.mxu3  ;;  %11269 = vmatmul.msk.bf16.vlgmr.msrb.gmra.mxu0 %vm3627_vm1, %v3568_v33  ;;  %v3559_v33 = vld [vmem:[%s17007_s18 + $0x19] sm:$0xff] }
 0x3fc   : > { %v17017_v1 = vadd.f32 %v2394_v19, %v16858_v57  ;;  %v17023_v31 = vpop.f32.mrf.mxu0  ;;  %v3244_v57 = vld [vmem:[%s16801_s26 + $0x5d] sm:$0x7f] }
 0x3fd   : > { %v2775_v53 = vpop.f32.mrf.mxu2  ;;  %18716 = vst [vmem:[#allocation60_spill] sm:$0xff] %v17023_v31  ;;  %v3250_v13 = vpack.c.bf16 %v3244_v57, %v3243_v34  ;;  %v3379_v34 = vld [vmem:[%s16801_s26 + $0x6] sm:$0xff]  ;;  %v3380_v57 = vld [vmem:[%s16801_s26 + $0xe] sm:$0xff] }
 0x3fe   : > { %v17019_v28 = vadd.f32 %v2775_v53, %v2674_v36  ;;  %v2676_v51 = vpop.f32.mrf.mxu1  ;;  %v2812_v36 = vpack.c.bf16 %v2806_v2, %v2805_v50  ;;  %v3569_v2 = vpack.c.bf16 %v3559_v33, %v3558_v4 }
 0x403   : > { %v17030_v24 = vpop.f32.mrf.mxu3 }
 0x404   : > { %18717 = vst [vmem:[#allocation61_spill] sm:$0xff] %v17030_v24  ;;  %v17036_v19 = vpop.f32.mrf.mxu0  ;;  %v3532_v24 = vld [vmem:[%s17007_s18 + $0x38] sm:$0xff] }
 0x405   : > { %v2777_v46 = vpop.f32.mrf.mxu2  ;;  %18718 = vst [vmem:[#allocation62_spill] sm:$0xff] %v17036_v19 }
 0x406   : > { %v17032_v39 = vadd.f32 %v2777_v46, %v2676_v51  ;;  %v2679_v44 = vpop.f32.mrf.mxu1  ;;  %v3525_v46 = vld [vmem:[%s17007_s18] sm:$0xff] }
 0x408   : > { %11108 = vmatmul.msk.bf16.gmra.mxu3 %vm2630_vm4, %v2812_v36  ;;  %v3526_v36 = vld [vmem:[%s17007_s18 + $0x8] sm:$0xff] }
 0x409   : > { %11176 = vmatmul.msk.bf16.gmra.mxu1 %vm2630_vm4, %v3104_v12  ;;  %v3790_v12 = vld [vmem:[%s17007_s18 + $0x2] sm:$0xff]  ;;  %v3537_v4 = vpack.c.bf16 %v3526_v36, %v3525_v46 }
 0x40a   : > { %11210 = vmatmul.msk.bf16.gmra.mxu2 %vm2630_vm4, %v3250_v13  ;;  %v3791_v13 = vld [vmem:[%s17007_s18 + $0xa] sm:$0xff] }
 0x40b   : > { %v2399_v53 = vpop.f32.mrf.mxu3  ;;  %11270 = vmatmul.msk.bf16.gmra.mxu0 %vm3627_vm1, %v3569_v2  ;;  %v3560_v2 = vld [vmem:[%s17007_s18 + $0x21] sm:$0xff] }
 0x40c   : > { %v17042_v51 = vadd.f32 %v2399_v53, %v16874_v40  ;;  %v17053_v19 = vpop.f32.mrf.mxu0  ;;  %v3391_v53 = vpack.c.bf16 %v3380_v57, %v3379_v34 }
 0x40d   : > { %v2780_v50 = vpop.f32.mrf.mxu2 }
 0x40e   : > { %18719 = vst [vmem:[#allocation63_spill] sm:$0xff] %v17042_v51  ;;  %v17044_v20 = vadd.f32 %v2780_v50, %v2679_v44  ;;  %v2681_v5 = vpop.f32.mrf.mxu1  ;;  %v3802_v50 = vpack.c.bf16 %v3791_v13, %v3790_v12 }
 0x413   : > { %v17055_v31 = vpop.f32.mrf.mxu3 }
 0x414   : > { %18720 = vst [vmem:[#allocation64_spill] sm:$0xff] %v17055_v31  ;;  %v17063_v34 = vpop.f32.mrf.mxu0 }
 0x415   : > { %v2782_v40 = vpop.f32.mrf.mxu2 }
 0x416   : > { %v17057_v44 = vadd.f32 %v2782_v40, %v2681_v5  ;;  %v2684_v33 = vpop.f32.mrf.mxu1  ;;  %v3561_v5 = vld [vmem:[%s17007_s18 + $0x29] sm:$0xff]  ;;  %v3381_v40 = vld [vmem:[%s16801_s26 + $0x16] sm:$0xff] }
 0x417   : > { %v3570_v36 = vpack.c.bf16 %v3561_v5, %v3560_v2 }
 0x418   : > { %11239 = vmatmul.msk.bf16.vlgmr.msra.gmra.mxu3 %vm2630_vm4, %v3391_v53  ;;  %v3382_v53 = vld [vmem:[%s16801_s26 + $0x1e] sm:$0xff] }
 0x419   : > { %11299 = vmatmul.msk.bf16.vlgmr.msra.gmra.mxu1 %vm3627_vm1, %v3537_v4  ;;  %v3527_v4 = vld [vmem:[%s17007_s18 + $0x10] sm:$0xff] }
 0x41a   : > { %11329 = vmatmul.msk.bf16.vlgmr.msra.gmra.mxu2 %vm3627_vm1, %v3802_v50  ;;  %v3528_v50 = vld [vmem:[%s17007_s18 + $0x18] sm:$0xff] }
 0x41b   : > { %v2404_v35 = vpop.f32.mrf.mxu3  ;;  %11271 = vmatmul.msk.bf16.gmra.mxu0 %vm3627_vm1, %v3570_v36  ;;  %v3538_v2 = vpack.c.bf16 %v3528_v50, %v3527_v4  ;;  %v3562_v36 = vld [vmem:[%s17007_s18 + $0x31] sm:$0xff] }
 0x41c   : > { %v17067_v57 = vadd.f32 %v2404_v35, %v16891_v38  ;;  %v17080_v26 = vpop.f32.mrf.mxu0  ;;  %v3392_v35 = vpack.c.bf16 %v3382_v53, %v3381_v40 }
 0x41d   : > { %v2785_v46 = vpop.f32.mrf.mxu2 }
 0x41e   : > { %18721 = vst [vmem:[#allocation65_spill] sm:$0xff] %v17067_v57  ;;  %v17069_v12 = vadd.f32 %v2785_v46, %v2684_v33  ;;  %v2686_v13 = vpop.f32.mrf.mxu1  ;;  %v3803_v46 = vpack.c.bf16 %v3793_v27, %v3792_v45  ;;  %v3794_v57 = vld [vmem:[%s17007_s18 + $0x22] sm:$0xff] }
 0x423   : > { %v17078_v31 = vpop.f32.mrf.mxu3 }
 0x424   : > { %18722 = vst [vmem:[#allocation66_spill] sm:$0xff] %v17078_v31  ;;  %v17088_v40 = vpop.f32.mrf.mxu0 }
 0x425   : > { %v2787_v38 = vpop.f32.mrf.mxu2 }
 0x426   : > { %v17082_v33 = vadd.f32 %v2787_v38, %v2686_v13  ;;  %v2689_v5 = vpop.f32.mrf.mxu1  ;;  %v3563_v13 = vld [vmem:[%s17007_s18 + $0x39] sm:$0xff]  ;;  %v3383_v38 = vld [vmem:[%s16801_s26 + $0x26] sm:$0xff] }
 0x427   : > { %v3571_v45 = vpack.c.bf16 %v3563_v13, %v3562_v36 }
 0x428   : > { %11240 = vmatmul.msk.bf16.gmra.mxu3 %vm2630_vm4, %v3392_v35  ;;  %v3384_v35 = vld [vmem:[%s16801_s26 + $0x2e] sm:$0xff] }
 0x429   : > { %11300 = vmatmul.msk.bf16.gmra.mxu1 %vm3627_vm1, %v3538_v2  ;;  %v3529_v2 = vld [vmem:[%s17007_s18 + $0x20] sm:$0xff]  ;;  %v3393_v36 = vpack.c.bf16 %v3384_v35, %v3383_v38  ;;  %v4107_v35 = vld [vmem:[#allocation15 + $0x100] sm:$0x7] }
 0x42a   : > { %11330 = vmatmul.msk.bf16.gmra.mxu2 %vm3627_vm1, %v3803_v46  ;;  %v3530_v46 = vld [vmem:[%s17007_s18 + $0x28] sm:$0xff] }
 0x42b   : > { %v2409_v31 = vpop.f32.mrf.mxu3  ;;  %11272 = vmatmul.msk.bf16.gmra.mxu0 %vm3627_vm1, %v3571_v45  ;;  %v3804_v45 = vpack.c.bf16 %v3795_v8, %v3794_v57  ;;  %v3964_v8 = vld [vmem:[#allocation15 + $0xcc] sm:$0x7] }
 0x42c   : > { %v17092_v53 = vadd.f32 %v2409_v31, %v16933_v42  ;;  %v17103_v23 = vpop.f32.mrf.mxu0 }
 0x42d   : > { %v2790_v4 = vpop.f32.mrf.mxu2 }
 0x42e   : > { %18723 = vst [vmem:[#allocation67_spill] sm:$0xff] %v17092_v53  ;;  %v17094_v27 = vadd.f32 %v2790_v4, %v2689_v5  ;;  %v2691_v50 = vpop.f32.mrf.mxu1  ;;  %v3539_v5 = vpack.c.bf16 %v3530_v46, %v3529_v2  ;;  %v4393_v2 = vld [vmem:[#allocation15 + $0x168] sm:$0x7]  ;;  %v4250_v46 = vld [vmem:[#allocation15 + $0x134] sm:$0x7] }
 0x433   : > { %v2411_v51 = vpop.f32.mrf.mxu3 }
 0x434   : > { %v2425_v42 = vadd.f32 %v2411_v51, %v16945_v14  ;;  %v17115_v11 = vpop.f32.mrf.mxu0  ;;  %v3565_v14 = vld [vmem:[%s17007_s18 + $0x49] sm:$0xff] }
 0x435   : > { %v2792_v31 = vpop.f32.mrf.mxu2  ;;  %v3572_v38 = vpack.c.bf16 %v3565_v14, %v3564_v49 }
 0x436   : > { %v17106_v13 = vadd.f32 %v2792_v31, %v2691_v50  ;;  %v3191_v4 = vpop.f32.mrf.mxu1  ;;  %v17109_v53 = vadd.f32 %v17053_v19, %v2425_v42  ;;  %v3990_v19 = vunpack.c.l.b16 %v3964_v8  ;;  %v4133_v31 = vunpack.c.l.b16 %v4107_v35 }
 0x438   : > { %18724 = vst [vmem:[#allocation68_spill] sm:$0xff] %v17109_v53  ;;  %11241 = vmatmul.msk.bf16.gmra.mxu3 %vm2630_vm4, %v3393_v36  ;;  %v3997_v36 = vpack.c.b16 %v3990_v19, %v3990_v19  ;;  %v3386_v53 = vld [vmem:[%s16801_s26 + $0x3e] sm:$0xff] }
 0x439   : > { %11301 = vmatmul.msk.bf16.gmra.mxu1 %vm3627_vm1, %v3539_v5  ;;  %v3385_v5 = vld [vmem:[%s16801_s26 + $0x36] sm:$0xff] }
 0x43a   : > { %11331 = vmatmul.msk.bf16.gmra.mxu2 %vm3627_vm1, %v3804_v45  ;;  %v4140_v45 = vpack.c.b16 %v4133_v31, %v4133_v31  ;;  %v4023_v17 = vand.u32 %v3997_v36, %v16961_v6 }
 0x43b   : > { %v2899_v7 = vpop.f32.mrf.mxu3  ;;  %11273 = vmatmul.msk.bf16.gmra.mxu0 %vm3627_vm1, %v3572_v38 }
 0x43c   : > { %v2929_v51 = vadd.f32 %v2899_v7, %v16959_v18  ;;  %v4419_v7 = vunpack.c.l.b16 %v4393_v2  ;;  %v4276_v18 = vunpack.c.l.b16 %v4250_v46  ;;  %v4166_v38 = vand.u32 %v4140_v45, %v16961_v6  ;;  %v17133_v2 = vpop.f32.mrf.mxu0  ;;  %4026 = vmatpush.bf16.msrb.mxu3 %v4023_v17  ;;  %v14460_v46 = vld [vmem:[#allocation15 + $0xc4] sm:$0xff]  ;;  %v14459_v17 = vld [vmem:[#allocation15 + $0xbc] sm:$0xff] }
 0x43d   : > { %v3337_v50 = vpop.f32.mrf.mxu2 }
 0x43e   : > { %v3193_v57 = vpop.f32.mrf.mxu1  ;;  %v3075_v42 = vadd.f32 %v17063_v34, %v2929_v51  ;;  %v4426_v14 = vpack.c.b16 %v4419_v7, %v4419_v7  ;;  %v4283_v8 = vpack.c.b16 %v4276_v18, %v4276_v18  ;;  %v3796_v34 = vld [vmem:[%s17007_s18 + $0x32] sm:$0xff]  ;;  %v3797_v51 = vld [vmem:[%s17007_s18 + $0x3a] sm:$0xff]  ;;  %v3394_v7 = vpack.c.bf16 %v3386_v53, %v3385_v5  ;;  %4169 = vmatpush.bf16.msra.mxu0 %v4166_v38 }
 0x43f   : > { %v3540_v18 = vpack.c.bf16 %v3532_v24, %v3531_v9  ;;  %v3805_v36 = vpack.c.bf16 %v3797_v51, %v3796_v34  ;;  %v14465_v9 = vld [vmem:[#allocation15 + $0xf0] sm:$0xff]  ;;  %v14471_v24 = vld [vmem:[#allocation15 + $0x124] sm:$0xff] }
 0x440   : > { %v3221_v49 = vadd.f32 %v3191_v4, %v3075_v42  ;;  %v4452_v35 = vand.u32 %v4426_v14, %v16961_v6  ;;  %v4309_v19 = vand.u32 %v4283_v8, %v16961_v6  ;;  %v14478_v14 = vld [vmem:[#allocation15 + $0x160] sm:$0xff]  ;;  %v14472_v6 = vld [vmem:[#allocation15 + $0x12c] sm:$0xff]  ;;  %4027 = vmatpush.bf16.msrb.mxu3 %v14460_v46 }
 0x441   : > { %v3567_v34 = vld [vmem:[%s17007_s18 + $0x59] sm:$0x7f]  ;;  %v14464_v46 = vld [vmem:[#allocation15 + $0xe8] sm:$0xff] }
 0x442   : > { %v17126_v29 = vadd.f32 %v3337_v50, %v3221_v49  ;;  %4455 = vmatpush.bf16.msrb.mxu2 %v4452_v35  ;;  %4312 = vmatpush.bf16.msrb.mxu1 %v4309_v19  ;;  %v14466_v49 = vld [vmem:[#allocation15 + $0xf8] sm:$0xff] }
 0x443   : > { %v2901_v4 = vpop.f32.mrf.mxu3  ;;  %4170 = vmatpush.bf16.msra.mxu0 %v14466_v49  ;;  %v3533_v49 = vld [vmem:[%s17007_s18 + $0x40] sm:$0xff] }
 0x444   : > { %v2930_v42 = vadd.f32 %v2901_v4, %v16978_v48  ;;  %v17142_v5 = vpop.f32.mrf.mxu0  ;;  %4028 = vmatpush.bf16.msrb.mxu3 %v14459_v17  ;;  %v14458_v4 = vld [vmem:[#allocation15 + $0xb4] sm:$0xff] }
 0x445   : > { %v3339_v31 = vpop.f32.mrf.mxu2 }
 0x446   : > { %v3196_v50 = vpop.f32.mrf.mxu1  ;;  %v3076_v45 = vadd.f32 %v17080_v26, %v2930_v42  ;;  %4456 = vmatpush.bf16.msrb.mxu2 %v14478_v14  ;;  %4313 = vmatpush.bf16.msrb.mxu1 %v14472_v6  ;;  %v14477_v26 = vld [vmem:[#allocation15 + $0x158] sm:$0xff]  ;;  %v3534_v14 = vld [vmem:[%s17007_s18 + $0x48] sm:$0xff] }
 0x447   : > { %4171 = vmatpush.bf16.msra.mxu0 %v14465_v9  ;;  %v3798_v6 = vld [vmem:[%s17007_s18 + $0x42] sm:$0xff] }
 0x448   : > { %v3222_v8 = vadd.f32 %v3193_v57, %v3076_v45  ;;  %11242 = vmatmul.msk.bf16.gmra.mxu3 %vm2630_vm4, %v3394_v7  ;;  %v3566_v57 = vld [vmem:[%s17007_s18 + $0x51] sm:$0xff]  ;;  %v14457_v45 = vld [vmem:[#allocation15 + $0xac] sm:$0xff] }
 0x449   : > { %11302 = vmatmul.msk.bf16.gmra.mxu1 %vm3627_vm1, %v3540_v18  ;;  %v3573_v35 = vpack.c.bf16 %v3567_v34, %v3566_v57  ;;  %v14470_v7 = vld [vmem:[#allocation15 + $0x11c] sm:$0xff]  ;;  %v3387_v18 = vld [vmem:[%s16801_s26 + $0x46] sm:$0xff]  ;;  %4029 = vmatpush.bf16.msrb.mxu3 %v14458_v4 }
 0x44a   : > { %11332 = vmatmul.msk.bf16.gmra.mxu2 %vm3627_vm1, %v3805_v36  ;;  %v17140_v48 = vadd.f32 %v3339_v31, %v3222_v8  ;;  %4314 = vmatpush.bf16.msrb.mxu1 %v14471_v24  ;;  %v14476_v31 = vld [vmem:[#allocation15 + $0x150] sm:$0xff]  ;;  %v14463_v8 = vld [vmem:[#allocation15 + $0xe0] sm:$0xff]  ;;  %v14475_v9 = vld [vmem:[#allocation15 + $0x148] sm:$0xff] }
 0x44b   : > { %v2904_v53 = vpop.f32.mrf.mxu3  ;;  %4457 = vmatpush.bf16.msrb.mxu2 %v14477_v26  ;;  %11274 = vmatmul.msk.bf16.gmra.mxu0 %vm3627_vm1, %v3573_v35  ;;  %v3388_v36 = vld [vmem:[%s16801_s26 + $0x4e] sm:$0xff]  ;;  %v14456_v57 = vld [vmem:[#allocation15 + $0xa4] sm:$0xff]  ;;  %v3541_v35 = vpack.c.bf16 %v3534_v14, %v3533_v49 }
 0x44c   : > { %v2931_v51 = vadd.f32 %v2904_v53, %v16988_v54  ;;  %4172 = vmatpush.bf16.msra.mxu0 %v14464_v46  ;;  %v14469_v26 = vld [vmem:[#allocation15 + $0x114] sm:$0xff]  ;;  %v17157_v53 = vpop.f32.mrf.mxu0  ;;  %v14467_v49 = vld [vmem:[#allocation15 + $0x104] sm:$0xff] }
 0x44d   : > { %v3342_v38 = vpop.f32.mrf.mxu2  ;;  %4030 = vmatpush.bf16.msrb.mxu3 %v14457_v45  ;;  %v4076_v14 = vld [vmem:[%s17007_s18 + $0x4] sm:$0xff] }
 0x44e   : > { %v3198_v19 = vpop.f32.mrf.mxu1  ;;  %v3077_v42 = vadd.f32 %v17088_v40, %v2931_v51  ;;  %v3799_v40 = vld [vmem:[%s17007_s18 + $0x4a] sm:$0xff]  ;;  %4315 = vmatpush.bf16.msrb.mxu1 %v14470_v7  ;;  %v3395_v51 = vpack.c.bf16 %v3388_v36, %v3387_v18 }
 0x44f   : > { %4458 = vmatpush.bf16.msrb.mxu2 %v14476_v31  ;;  %v3806_v46 = vpack.c.bf16 %v3799_v40, %v3798_v6  ;;  %v14474_v31 = vld [vmem:[#allocation15 + $0x140] sm:$0xff]  ;;  %v14468_v7 = vld [vmem:[#allocation15 + $0x10c] sm:$0xff] }
 0x450   : > { %v3223_v54 = vadd.f32 %v3196_v50, %v3077_v42  ;;  %4173 = vmatpush.bf16.msra.mxu0 %v14463_v8  ;;  %v14461_v18 = vld [vmem:[#allocation15 + $0xd0] sm:$0xff] }
 0x451   : > { %4031 = vmatpush.bf16.msrb.mxu3 %v14456_v57  ;;  %v4077_v6 = vld [vmem:[%s17007_s18 + $0xc] sm:$0xff] }
 0x452   : > { %v17154_v17 = vadd.f32 %v3342_v38, %v3223_v54  ;;  %v14462_v38 = vld [vmem:[#allocation15 + $0xd8] sm:$0xff]  ;;  %4316 = vmatpush.bf16.msrb.mxu1 %v14469_v26 }
 0x453   : > { %v2906_v24 = vpop.f32.mrf.mxu3  ;;  %4459 = vmatpush.bf16.msrb.mxu2 %v14475_v9  ;;  %v4088_v9 = vpack.c.bf16 %v4077_v6, %v4076_v14 }
 0x454   : > { %v2932_v50 = vadd.f32 %v2906_v24, %v17001_v61  ;;  %v14455_v61 = vld [vmem:[#allocation15 + $0x9c] sm:$0xff]  ;;  %4174 = vmatpush.bf16.msra.mxu0 %v14462_v38 }
 0x455   : > { %v3344_v34 = vpop.f32.mrf.mxu2  ;;  %4032 = vmatpush.bf16.msrb.mxu3 %v14455_v61  ;;  %v3800_v38 = vld [vmem:[%s17007_s18 + $0x52] sm:$0xff] }
 0x456   : > { %v3201_v4 = vpop.f32.mrf.mxu1  ;;  %v3078_v42 = vadd.f32 %v17103_v23, %v2932_v50  ;;  %4317 = vmatpush.bf16.msrb.mxu1 %v14468_v7  ;;  %v14473_v23 = vld [vmem:[#allocation15 + $0x138] sm:$0xff] }
 0x457   : > { %4460 = vmatpush.bf16.msrb.mxu2 %v14474_v31  ;;  %v3389_v50 = vld [vmem:[%s16801_s26 + $0x56] sm:$0xff] }
 0x458   : > { %v3224_v54 = vadd.f32 %v3198_v19, %v3078_v42  ;;  %11243 = vmatmul.msk.bf16.gmra.mxu3 %vm2630_vm4, %v3395_v51  ;;  %v17166_v19 = vpop.f32.mrf.mxu0  ;;  %4175 = vmatpush.bf16.msra.mxu0 %v14461_v18  ;;  %v3535_v51 = vld [vmem:[%s17007_s18 + $0x50] sm:$0xff] }
 0x459   : > { %11303 = vmatmul.msk.bf16.gmra.mxu1 %vm3627_vm1, %v3541_v35  ;;  %v3536_v35 = vld [vmem:[%s17007_s18 + $0x58] sm:$0x7f] }
 0x45a   : > { %11333 = vmatmul.msk.bf16.gmra.mxu2 %vm3627_vm1, %v3806_v46  ;;  %v17164_v36 = vadd.f32 %v3344_v34, %v3224_v54  ;;  %4318 = vmatpush.bf16.msrb.mxu1 %v14467_v49  ;;  %v3390_v34 = vld [vmem:[%s16801_s26 + $0x5e] sm:$0x7f]  ;;  %s10640_s26 = sshll.u32 %s1015_s11, 4  ;;  %s10641_s26 = int_to_ptr.vmem [resolvable:$true] %s10640_s26 }
 0x45b   : > { %v2909_v45 = vpop.f32.mrf.mxu3  ;;  %4461 = vmatpush.bf16.msrb.mxu2 %v14473_v23  ;;  %11389 = vmatmul.msk.bf16.vlgmr.msra.gmra.mxu0 %vm3627_vm1, %v4088_v9  ;;  %v3396_v54 = vpack.c.bf16 %v3390_v34, %v3389_v50  ;;  %v3933_v50 = vld [vmem:[%s17007_s18 + $0x3] sm:$0xff]  ;;  %v3934_v34 = vld [vmem:[%s17007_s18 + $0xb] sm:$0xff] }
 0x45c   : > { %v2933_v8 = vadd.f32 %v2909_v45, %v17019_v28  ;;  %v3801_v28 = vld [vmem:[%s17007_s18 + $0x5a] sm:$0x7f] }
 0x45d   : > { %v3347_v40 = vpop.f32.mrf.mxu2  ;;  %v3807_v18 = vpack.c.bf16 %v3801_v28, %v3800_v38  ;;  %v4362_v28 = vld [vmem:[%s17007_s18 + $0x6] sm:$0xff] }
 0x45e   : > { %v3203_v26 = vpop.f32.mrf.mxu1  ;;  %v3079_v24 = vadd.f32 %v17115_v11, %v2933_v8 }
 0x460   : > { %v3225_v57 = vadd.f32 %v3201_v4, %v3079_v24  ;;  %v17181_v31 = vpop.f32.mrf.mxu0  ;;  %v3542_v4 = vpack.c.bf16 %v3536_v35, %v3535_v51  ;;  %v4219_v51 = vld [vmem:[%s17007_s18 + $0x5] sm:$0xff]  ;;  %v4220_v35 = vld [vmem:[%s17007_s18 + $0xd] sm:$0xff] }
 0x462   : > { %v17177_v46 = vadd.f32 %v3347_v40, %v3225_v57 }
 0x463   : > { %v2911_v42 = vpop.f32.mrf.mxu3 }
 0x464   : > { %v2934_v11 = vadd.f32 %v2911_v42, %v17032_v39  ;;  %v4078_v39 = vld [vmem:[%s17007_s18 + $0x14] sm:$0xff] }
 0x465   : > { %v3349_v7 = vpop.f32.mrf.mxu2  ;;  %v4363_v42 = vld [vmem:[%s17007_s18 + $0xe] sm:$0xff] }
 0x466   : > { %v3206_v61 = vpop.f32.mrf.mxu1  ;;  %v3080_v23 = vadd.f32 %v17133_v2, %v2934_v11  ;;  %v4079_v2 = vld [vmem:[%s17007_s18 + $0x1c] sm:$0xff] }
 0x467   : > { %v4089_v9 = vpack.c.bf16 %v4079_v2, %v4078_v39 }
 0x468   : > { %v3226_v49 = vadd.f32 %v3203_v26, %v3080_v23  ;;  %11244 = vmatmul.msk.bf16.gmra.mxu3 %vm2630_vm4, %v3396_v54  ;;  %v17191_v6 = vpop.f32.mrf.mxu0 }
 0x469   : > { %11304 = vmatmul.msk.bf16.gmra.mxu1 %vm3627_vm1, %v3542_v4  ;;  %v4231_v4 = vpack.c.bf16 %v4220_v35, %v4219_v51  ;;  %v4221_v51 = vld [vmem:[%s17007_s18 + $0x15] sm:$0xff]  ;;  %v4222_v35 = vld [vmem:[%s17007_s18 + $0x1d] sm:$0xff] }
 0x46a   : > { %11334 = vmatmul.msk.bf16.gmra.mxu2 %vm3627_vm1, %v3807_v18  ;;  %v17188_v45 = vadd.f32 %v3349_v7, %v3226_v49  ;;  %v4374_v18 = vpack.c.bf16 %v4363_v42, %v4362_v28  ;;  %v4364_v42 = vld [vmem:[%s17007_s18 + $0x16] sm:$0xff] }
 0x46b   : > { %v2914_v14 = vpop.f32.mrf.mxu3  ;;  %11390 = vmatmul.msk.bf16.gmra.mxu0 %vm3627_vm1, %v4089_v9 }
 0x46c   : > { %v2935_v8 = vadd.f32 %v2914_v14, %v17044_v20 }
 0x46d   : > { %v3352_v40 = vpop.f32.mrf.mxu2 }
 0x46e   : > { %v3208_v26 = vpop.f32.mrf.mxu1  ;;  %v3081_v24 = vadd.f32 %v17142_v5, %v2935_v8  ;;  %v3945_v5 = vpack.c.bf16 %v3934_v34, %v3933_v50  ;;  %v4081_v8 = vld [vmem:[%s17007_s18 + $0x2c] sm:$0xff]  ;;  %v3936_v34 = vld [vmem:[%s17007_s18 + $0x1b] sm:$0xff] }
 0x46f   : > { %v3935_v50 = vld [vmem:[%s17007_s18 + $0x13] sm:$0xff] }
 0x470   : > { %v3227_v57 = vadd.f32 %v3206_v61, %v3081_v24  ;;  %v17205_v7 = vpop.f32.mrf.mxu0 }
 0x472   : > { %v17201_v38 = vadd.f32 %v3352_v40, %v3227_v57 }
 0x473   : > { %v2916_v11 = vpop.f32.mrf.mxu3 }
 0x474   : > { %v2936_v20 = vadd.f32 %v2916_v11, %v17057_v44  ;;  %v4080_v44 = vld [vmem:[%s17007_s18 + $0x24] sm:$0xff] }
 0x475   : > { %v3354_v54 = vpop.f32.mrf.mxu2  ;;  %v4090_v9 = vpack.c.bf16 %v4081_v8, %v4080_v44  ;;  %v4365_v11 = vld [vmem:[%s17007_s18 + $0x1e] sm:$0xff]  ;;  %v4082_v44 = vld [vmem:[%s17007_s18 + $0x34] sm:$0xff] }
 0x476   : > { %v3211_v61 = vpop.f32.mrf.mxu1  ;;  %v3082_v23 = vadd.f32 %v17157_v53, %v2936_v20 }
 0x478   : > { %v3228_v49 = vadd.f32 %v3208_v26, %v3082_v23  ;;  %11359 = vmatmul.msk.bf16.vlgmr.msrb.gmra.mxu3 %vm3627_vm1, %v3945_v5  ;;  %v3661_v2 = vpop.f32.mrf.mxu0 }
 0x479   : > { %11419 = vmatmul.msk.bf16.vlgmr.msrb.gmra.mxu1 %vm3627_vm1, %v4231_v4  ;;  %v4232_v4 = vpack.c.bf16 %v4222_v35, %v4221_v51  ;;  %v4223_v51 = vld [vmem:[%s17007_s18 + $0x25] sm:$0xff]  ;;  %v4224_v35 = vld [vmem:[%s17007_s18 + $0x2d] sm:$0xff] }
 0x47a   : > { %11449 = vmatmul.msk.bf16.vlgmr.msrb.gmra.mxu2 %vm3627_vm1, %v4374_v18  ;;  %v17212_v39 = vadd.f32 %v3354_v54, %v3228_v49  ;;  %v4375_v18 = vpack.c.bf16 %v4365_v11, %v4364_v42  ;;  %v4366_v11 = vld [vmem:[%s17007_s18 + $0x26] sm:$0xff] }
 0x47b   : > { %v2919_v14 = vpop.f32.mrf.mxu3  ;;  %11391 = vmatmul.msk.bf16.gmra.mxu0 %vm3627_vm1, %v4090_v9 }
 0x47c   : > { %v2937_v53 = vadd.f32 %v2919_v14, %v17069_v12 }
 0x47d   : > { %v3357_v40 = vpop.f32.mrf.mxu2 }
 0x47e   : > { %v3213_v26 = vpop.f32.mrf.mxu1  ;;  %v3083_v24 = vadd.f32 %v17166_v19, %v2937_v53  ;;  %v3946_v19 = vpack.c.bf16 %v3936_v34, %v3935_v50  ;;  %v3937_v50 = vld [vmem:[%s17007_s18 + $0x23] sm:$0xff]  ;;  %v3938_v34 = vld [vmem:[%s17007_s18 + $0x2b] sm:$0xff] }
 0x480   : > { %v3229_v57 = vadd.f32 %v3211_v61, %v3083_v24  ;;  %v17227_v12 = vpop.f32.mrf.mxu0 }
 0x482   : > { %v17223_v28 = vadd.f32 %v3357_v40, %v3229_v57 }
 0x483   : > { %v2921_v20 = vpop.f32.mrf.mxu3 }
 0x484   : > { %v2938_v54 = vadd.f32 %v2921_v20, %v17082_v33  ;;  %v4083_v33 = vld [vmem:[%s17007_s18 + $0x3c] sm:$0xff]  ;;  %v4367_v20 = vld [vmem:[%s17007_s18 + $0x2e] sm:$0xff] }
 0x485   : > { %v3359_v5 = vpop.f32.mrf.mxu2  ;;  %v4091_v9 = vpack.c.bf16 %v4083_v33, %v4082_v44 }
 0x486   : > { %v3216_v61 = vpop.f32.mrf.mxu1  ;;  %v3084_v23 = vadd.f32 %v17181_v31, %v2938_v54 }
 0x488   : > { %v3230_v49 = vadd.f32 %v3213_v26, %v3084_v23  ;;  %11360 = vmatmul.msk.bf16.gmra.mxu3 %vm3627_vm1, %v3946_v19  ;;  %v17238_v53 = vpop.f32.mrf.mxu0  ;;  %v4376_v23 = vpack.c.bf16 %v4367_v20, %v4366_v11  ;;  %v3939_v20 = vld [vmem:[%s17007_s18 + $0x33] sm:$0xff] }
 0x489   : > { %11420 = vmatmul.msk.bf16.gmra.mxu1 %vm3627_vm1, %v4232_v4  ;;  %v3947_v4 = vpack.c.bf16 %v3938_v34, %v3937_v50 }
 0x48a   : > { %11450 = vmatmul.msk.bf16.gmra.mxu2 %vm3627_vm1, %v4375_v18  ;;  %v17236_v14 = vadd.f32 %v3359_v5, %v3230_v49 }
 0x48b   : > { %v2924_v8 = vpop.f32.mrf.mxu3  ;;  %11392 = vmatmul.msk.bf16.gmra.mxu0 %vm3627_vm1, %v4091_v9 }
 0x48c   : > { %v2939_v31 = vadd.f32 %v2924_v8, %v17094_v27  ;;  %v2007_v27 = vadd.f32 %v16709_v52, %v16713_v56  ;;  %v17261_v52 = vld [vmem:[#allocation10] ss:$0 sm:$0xff] }
 0x48d   : > { %v3362_v40 = vpop.f32.mrf.mxu2 }
 0x48e   : > { %v3218_v26 = vpop.f32.mrf.mxu1  ;;  %v3085_v24 = vadd.f32 %v17191_v6, %v2939_v31  ;;  %v2121_v49 = vadd.f32 %v16715_v62, %v2007_v27  ;;  %v2512_v31 = vadd.f32 %v16893_v43, %v16955_v60  ;;  %v4226_v27 = vld [vmem:[%s17007_s18 + $0x3d] sm:$0xff] }
 0x490   : > { %v3231_v57 = vadd.f32 %v3216_v61, %v3085_v24  ;;  %v17251_v5 = vpop.f32.mrf.mxu0  ;;  %v4233_v61 = vpack.c.bf16 %v4224_v35, %v4223_v51  ;;  %v2219_v8 = vadd.f32 %v16828_v25, %v2121_v49  ;;  %v17271_v25 = vld [vmem:[#allocation13] ss:$0 sm:$0xff] }
 0x492   : > { %v17247_v42 = vadd.f32 %v3362_v40, %v3231_v57  ;;  %v4085_v40 = vld [vmem:[%s17007_s18 + $0x4c] sm:$0xff]  ;;  %v2317_v62 = vadd.f32 %v16832_v30, %v2219_v8 }
 0x493   : > { %v2926_v54 = vpop.f32.mrf.mxu3 }
 0x494   : > { %v2940_v19 = vadd.f32 %v2926_v54, %v17106_v13  ;;  %v4084_v13 = vld [vmem:[%s17007_s18 + $0x44] sm:$0xff]  ;;  %v2415_v9 = vadd.f32 %v16973_v21, %v2317_v62  ;;  %v3940_v21 = vld [vmem:[%s17007_s18 + $0x3b] sm:$0xff] }
 0x495   : > { %v3364_v6 = vpop.f32.mrf.mxu2  ;;  %v4092_v24 = vpack.c.bf16 %v4085_v40, %v4084_v13  ;;  %v4225_v54 = vld [vmem:[%s17007_s18 + $0x35] sm:$0xff] }
 0x496   : > { %v3760_v18 = vpop.f32.mrf.mxu1  ;;  %v3086_v44 = vadd.f32 %v17205_v7, %v2940_v19  ;;  %v2513_v35 = vadd.f32 %v16902_v10, %v2415_v9  ;;  %v4368_v19 = vld [vmem:[%s17007_s18 + $0x36] sm:$0xff] }
 0x497   : > { %v3761_v33 = vadd.f32 %v3760_v18, %v3661_v2  ;;  %v4509_v2 = vadd.f32 %v17261_v52, %v2512_v31 }
 0x498   : > { %v3232_v56 = vadd.f32 %v3218_v26, %v3086_v44  ;;  %11361 = vmatmul.msk.bf16.gmra.mxu3 %vm3627_vm1, %v3947_v4  ;;  %v17273_v60 = vpop.f32.mrf.mxu0  ;;  %v2012_v4 = vadd.f32 %v16736_v22, %v16733_v37  ;;  %v3948_v44 = vpack.c.bf16 %v3940_v21, %v3939_v20  ;;  %v2514_v22 = vadd.f32 %v16913_v32, %v16986_v59 }
 0x499   : > { %11421 = vmatmul.msk.bf16.gmra.mxu1 %vm3627_vm1, %v4233_v61  ;;  %v4521_v51 = vmax.f32 %v4509_v2, 0.0  ;;  %v4087_v2 = vld [vmem:[%s17007_s18 + $0x5c] sm:$0x7f] }
 0x49a   : > { %11451 = vmatmul.msk.bf16.gmra.mxu2 %vm3627_vm1, %v4376_v23  ;;  %v17269_v7 = vadd.f32 %v3364_v6, %v3232_v56  ;;  %v4369_v6 = vld [vmem:[%s17007_s18 + $0x3e] sm:$0xff]  ;;  %v4510_v23 = vadd.f32 %v17261_v52, %v2513_v35  ;;  %v2123_v56 = vadd.f32 %v16738_v55, %v2012_v4  ;;  %v4370_v4 = vld [vmem:[%s17007_s18 + $0x46] sm:$0xff] }
 0x49b   : > { %v3483_v43 = vpop.f32.mrf.mxu3  ;;  %11393 = vmatmul.msk.bf16.gmra.mxu0 %vm3627_vm1, %v4092_v24  ;;  %v4377_v31 = vpack.c.bf16 %v4369_v6, %v4368_v19  ;;  %v2017_v19 = vadd.f32 %v16748_v58, %v16745_v47 }
 0x49c   : > { %v3513_v26 = vadd.f32 %v3483_v43, %v17126_v29  ;;  %v2221_v40 = vadd.f32 %v16842_v16, %v2123_v56  ;;  %v4086_v43 = vld [vmem:[%s17007_s18 + $0x54] sm:$0xff] }
 0x49d   : > { %v3891_v30 = vpop.f32.mrf.mxu2  ;;  %v4093_v24 = vpack.c.bf16 %v4087_v2, %v4086_v43  ;;  %v18726_v43 = vld [vmem:[#allocation49_spill] sm:$0xff] }
 0x49e   : > { %v17278_v57 = vadd.f32 %v3891_v30, %v3761_v33  ;;  %v17280_v50 = vpop.f32.mrf.mxu1  ;;  %v4537_v34 = vadd.f32 %v17271_v25, %v3513_v26  ;;  %v4234_v33 = vpack.c.bf16 %v4226_v27, %v4225_v54  ;;  %v2319_v55 = vadd.f32 %v16849_v0, %v2221_v40  ;;  %v4227_v54 = vld [vmem:[%s17007_s18 + $0x45] sm:$0xff]  ;;  %v4228_v27 = vld [vmem:[%s17007_s18 + $0x4d] sm:$0xff] }
 0x4a0   : > { %v4549_v11 = vmax.f32 %v4537_v34, 0.0  ;;  %v17295_v18 = vpop.f32.mrf.mxu0  ;;  %v2417_v59 = vadd.f32 %v16999_v3, %v2319_v55  ;;  %v3941_v3 = vld [vmem:[%s17007_s18 + $0x43] sm:$0xff] }
 0x4a1   : > { %v18727_v55 = vld [vmem:[#allocation61_spill] sm:$0xff] }
 0x4a2   : > { %v17289_v29 = vadd.f32 %v4549_v11, %v4521_v51  ;;  %v2515_v20 = vadd.f32 %v16928_v41, %v2417_v59 }
 0x4a3   : > { %v3485_v61 = vpop.f32.mrf.mxu3 }
 0x4a4   : > { %v3514_v10 = vadd.f32 %v3485_v61, %v17140_v48  ;;  %v4522_v48 = vmax.f32 %v4510_v23, 0.0  ;;  %v4371_v61 = vld [vmem:[%s17007_s18 + $0x4e] sm:$0xff] }
 0x4a5   : > { %v17299_v49 = vpop.f32.mrf.mxu2  ;;  %v4378_v56 = vpack.c.bf16 %v4371_v61, %v4370_v4  ;;  %v18730_v4 = vld [vmem:[#allocation44_spill] sm:$0xff] }
 0x4a6   : > { %v3765_v8 = vpop.f32.mrf.mxu1  ;;  %v4538_v13 = vadd.f32 %v17271_v25, %v3514_v10  ;;  %v4512_v10 = vadd.f32 %v17261_v52, %v2515_v20  ;;  %v18728_v20 = vld [vmem:[#allocation56_spill] sm:$0xff] }
 0x4a7   : > { %v3766_v37 = vadd.f32 %v3765_v8, %v17238_v53  ;;  %v4511_v53 = vadd.f32 %v17261_v52, %v2514_v22  ;;  %v4235_v8 = vpack.c.bf16 %v4228_v27, %v4227_v54  ;;  %v3944_v54 = vld [vmem:[%s17007_s18 + $0x5b] sm:$0x7f] }
 0x4a8   : > { %v4550_v62 = vmax.f32 %v4538_v13, 0.0  ;;  %11362 = vmatmul.msk.bf16.gmra.mxu3 %vm3627_vm1, %v3948_v44  ;;  %v17316_v16 = vpop.f32.mrf.mxu0  ;;  %v4524_v40 = vmax.f32 %v4512_v10, 0.0  ;;  %v4230_v27 = vld [vmem:[%s17007_s18 + $0x5d] sm:$0x7f] }
 0x4a9   : > { %11422 = vmatmul.msk.bf16.gmra.mxu1 %vm3627_vm1, %v4234_v33  ;;  %v4523_v11 = vmax.f32 %v4511_v53, 0.0  ;;  %v4372_v10 = vld [vmem:[%s17007_s18 + $0x56] sm:$0xff] }
 0x4aa   : > { %11452 = vmatmul.msk.bf16.gmra.mxu2 %vm3627_vm1, %v4377_v31  ;;  %v17313_v9 = vadd.f32 %v4550_v62, %v4522_v48  ;;  %v18725_v48 = vld [vmem:[#allocation55_spill] sm:$0xff] }
 0x4ab   : > { %v3488_v32 = vpop.f32.mrf.mxu3  ;;  %11394 = vmatmul.msk.bf16.gmra.mxu0 %vm3627_vm1, %v4093_v24 }
 0x4ac   : > { %v3515_v26 = vadd.f32 %v3488_v32, %v17154_v17  ;;  %v4573_v0 = vpack.c.bf16 %v17313_v9, %v17289_v29  ;;  %v3942_v17 = vld [vmem:[%s17007_s18 + $0x4b] sm:$0xff] }
 0x4ad   : > { %v3896_v30 = vpop.f32.mrf.mxu2  ;;  %v3949_v33 = vpack.c.bf16 %v3942_v17, %v3941_v3  ;;  %v3943_v17 = vld [vmem:[%s17007_s18 + $0x53] sm:$0xff] }
 0x4ae   : > { %v17322_v34 = vadd.f32 %v3896_v30, %v3766_v37  ;;  %v17324_v51 = vpop.f32.mrf.mxu1  ;;  %v4539_v35 = vadd.f32 %v17271_v25, %v3515_v26  ;;  %v2125_v37 = vadd.f32 %v16751_v15, %v2017_v19  ;;  %v18729_v19 = vld [vmem:[#allocation45_spill] sm:$0xff] }
 0x4af   : > { %v2022_v61 = vadd.f32 %v18730_v4, %v18729_v19 }
 0x4b0   : > { %v4551_v21 = vmax.f32 %v4539_v35, 0.0  ;;  %v17343_v13 = vpop.f32.mrf.mxu0  ;;  %v2223_v22 = vadd.f32 %v16860_v63, %v2125_v37  ;;  %v3950_v37 = vpack.c.bf16 %v3944_v54, %v3943_v17 }
 0x4b2   : > { %v17335_v6 = vadd.f32 %v4551_v21, %v4523_v11  ;;  %v2321_v15 = vadd.f32 %v18726_v43, %v2223_v22  ;;  %v18732_v43 = vld [vmem:[#allocation50_spill] sm:$0xff] }
 0x4b3   : > { %v3490_v23 = vpop.f32.mrf.mxu3 }
 0x4b4   : > { %v3516_v44 = vadd.f32 %v3490_v23, %v17164_v36  ;;  %v2516_v36 = vadd.f32 %v18725_v48, %v17017_v1  ;;  %v2419_v1 = vadd.f32 %v18727_v55, %v2321_v15  ;;  %v18734_v55 = vld [vmem:[#allocation57_spill] sm:$0xff] }
 0x4b5   : > { %v17341_v41 = vpop.f32.mrf.mxu2 }
 0x4b6   : > { %v3770_v31 = vpop.f32.mrf.mxu1  ;;  %v4540_v47 = vadd.f32 %v17271_v25, %v3516_v44  ;;  %v4513_v63 = vadd.f32 %v17261_v52, %v2516_v36  ;;  %v2517_v21 = vadd.f32 %v18728_v20, %v2419_v1  ;;  %v4373_v44 = vld [vmem:[%s17007_s18 + $0x5e] sm:$0x7f] }
 0x4b7   : > { %v3771_v58 = vadd.f32 %v3770_v31, %v17273_v60  ;;  %v4379_v22 = vpack.c.bf16 %v4373_v44, %v4372_v10  ;;  %v18737_v10 = vld [vmem:[#allocation58_spill] sm:$0xff] }
 0x4b8   : > { %v4552_v62 = vmax.f32 %v4540_v47, 0.0  ;;  %11363 = vmatmul.msk.bf16.gmra.mxu3 %vm3627_vm1, %v3949_v33  ;;  %v3681_v35 = vpop.f32.mrf.mxu0  ;;  %v4525_v11 = vmax.f32 %v4513_v63, 0.0  ;;  %v18733_v63 = vld [vmem:[#allocation63_spill] sm:$0xff] }
 0x4b9   : > { %11423 = vmatmul.msk.bf16.gmra.mxu1 %vm3627_vm1, %v4235_v8  ;;  %v4514_v8 = vadd.f32 %v17261_v52, %v2517_v21  ;;  %v2518_v1 = vadd.f32 %v18734_v55, %v18733_v63  ;;  %v18736_v21 = vld [vmem:[#allocation64_spill] sm:$0xff] }
 0x4ba   : > { %11453 = vmatmul.msk.bf16.gmra.mxu2 %vm3627_vm1, %v4378_v56  ;;  %v17355_v2 = vadd.f32 %v4552_v62, %v4524_v40  ;;  %v18731_v40 = vld [vmem:[#allocation46_spill] sm:$0xff]  ;;  %v18741_v63 = vld [vmem:[#allocation52_spill] sm:$0xff] }
 0x4bb   : > { %v3493_v60 = vpop.f32.mrf.mxu3  ;;  %v2127_v48 = vadd.f32 %v18731_v40, %v2022_v61  ;;  %v4515_v20 = vadd.f32 %v17261_v52, %v2518_v1 }
 0x4bc   : > { %v3517_v53 = vadd.f32 %v3493_v60, %v17177_v46  ;;  %v4574_v59 = vpack.c.bf16 %v17355_v2, %v17335_v6  ;;  %v4229_v46 = vld [vmem:[%s17007_s18 + $0x55] sm:$0xff]  ;;  %v4526_v60 = vmax.f32 %v4514_v8, 0.0 }
 0x4bd   : > { %v3901_v32 = vpop.f32.mrf.mxu2  ;;  %v4236_v47 = vpack.c.bf16 %v4230_v27, %v4229_v46  ;;  %v2225_v15 = vadd.f32 %v18732_v43, %v2127_v48  ;;  %v4527_v61 = vmax.f32 %v4515_v20, 0.0  ;;  %v18744_v20 = vld [vmem:[#allocation54_spill] sm:$0xff] }
 0x4be   : > { %v17362_v26 = vadd.f32 %v3901_v32, %v3771_v58  ;;  %v17364_v30 = vpop.f32.mrf.mxu1  ;;  %v4541_v24 = vadd.f32 %v17271_v25, %v3517_v53  ;;  %v18735_v32 = vld [vmem:[#allocation51_spill] sm:$0xff] }
 0x4c0   : > { %v4553_v3 = vmax.f32 %v4541_v24, 0.0  ;;  %v2323_v24 = vadd.f32 %v18735_v32, %v2225_v15  ;;  %v18743_v32 = vld [vmem:[#allocation59_spill] sm:$0xff] }
 0x4c2   : > { %v17374_v23 = vadd.f32 %v4553_v3, %v4525_v11  ;;  %v2421_v3 = vadd.f32 %v18736_v21, %v2323_v24 }
 0x4c3   : > { %v3495_v33 = vpop.f32.mrf.mxu3 }
 0x4c4   : > { %v3518_v31 = vadd.f32 %v3495_v33, %v17188_v45  ;;  %v17391_v45 = vpop.f32.mrf.mxu0  ;;  %v2519_v44 = vadd.f32 %v18737_v10, %v2421_v3 }
 0x4c5   : > { %v17380_v56 = vpop.f32.mrf.mxu2 }
 0x4c6   : > { %v3775_v58 = vpop.f32.mrf.mxu1  ;;  %v4542_v36 = vadd.f32 %v17271_v25, %v3518_v31 }
 0x4c7   : > { %v3776_v62 = vadd.f32 %v3775_v58, %v17316_v16 }
 0x4c8   : > { %v4554_v53 = vmax.f32 %v4542_v36, 0.0  ;;  %11364 = vmatmul.msk.bf16.gmra.mxu3 %vm3627_vm1, %v3950_v37 }
 0x4c9   : > { %11424 = vmatmul.msk.bf16.gmra.mxu1 %vm3627_vm1, %v4236_v47  ;;  %v18738_v47 = vld [vmem:[#allocation47_spill] sm:$0xff] }
 0x4ca   : > { %11454 = vmatmul.msk.bf16.gmra.mxu2 %vm3627_vm1, %v4379_v22  ;;  %v17394_v11 = vadd.f32 %v4554_v53, %v4526_v60  ;;  %v4516_v22 = vadd.f32 %v17261_v52, %v2519_v44  ;;  %v18742_v53 = vld [vmem:[#allocation65_spill] sm:$0xff] }
 0x4cb   : > { %v3498_v16 = vpop.f32.mrf.mxu3  ;;  %v2520_v24 = vadd.f32 %v18743_v32, %v18742_v53  ;;  %v18747_v53 = vld [vmem:[#allocation67_spill] sm:$0xff]  ;;  %v18748_v32 = vld [vmem:[#allocation62_spill] sm:$0xff] }
 0x4cc   : > { %v3519_v17 = vadd.f32 %v3498_v16, %v17201_v38  ;;  %v4575_v46 = vpack.c.bf16 %v17394_v11, %v17374_v23  ;;  %v3686_v37 = vpop.f32.mrf.mxu0  ;;  %v18739_v38 = vld [vmem:[#allocation48_spill] sm:$0xff]  ;;  %v4528_v1 = vmax.f32 %v4516_v22, 0.0 }
 0x4cd   : > { %v3906_v54 = vpop.f32.mrf.mxu2  ;;  %v2027_v58 = vadd.f32 %v18739_v38, %v18738_v47 }
 0x4ce   : > { %v17401_v27 = vadd.f32 %v3906_v54, %v3776_v62  ;;  %v17403_v19 = vpop.f32.mrf.mxu1  ;;  %v4543_v4 = vadd.f32 %v17271_v25, %v3519_v17  ;;  %v18740_v62 = vld [vmem:[#allocation53_spill] sm:$0xff]  ;;  %v4517_v17 = vadd.f32 %v17261_v52, %v2520_v24  ;;  %v18745_v54 = vld [vmem:[#allocation66_spill] sm:$0xff]  ;;  %v2522_v24 = vadd.f32 %v18748_v32, %v18747_v53 }
 0x4cf   : > { %v2129_v43 = vadd.f32 %v18740_v62, %v2027_v58  ;;  %v18746_v58 = vld [vmem:[#allocation60_spill] sm:$0xff] }
 0x4d0   : > { %v4555_v33 = vmax.f32 %v4543_v4, 0.0  ;;  %v4529_v38 = vmax.f32 %v4517_v17, 0.0 }
 0x4d1   : > { %v2227_v55 = vadd.f32 %v18741_v63, %v2129_v43 }
 0x4d2   : > { %v17407_v8 = vadd.f32 %v4555_v33, %v4527_v61 }
 0x4d3   : > { %v3500_v31 = vpop.f32.mrf.mxu3  ;;  %v2325_v21 = vadd.f32 %v18744_v20, %v2227_v55 }
 0x4d4   : > { %v3520_v40 = vadd.f32 %v3500_v31, %v17212_v39  ;;  %v17432_v31 = vpop.f32.mrf.mxu0 }
 0x4d5   : > { %v17413_v48 = vpop.f32.mrf.mxu2  ;;  %v2423_v4 = vadd.f32 %v18745_v54, %v2325_v21 }
 0x4d6   : > { %v3780_v36 = vpop.f32.mrf.mxu1  ;;  %v4544_v15 = vadd.f32 %v17271_v25, %v3520_v40 }
 0x4d7   : > { %v3781_v60 = vadd.f32 %v3780_v36, %v3681_v35  ;;  %v2521_v22 = vadd.f32 %v18746_v58, %v2423_v4 }
 0x4d8   : > { %v4556_v16 = vmax.f32 %v4544_v15, 0.0 }
 0x4da   : > { %v17421_v3 = vadd.f32 %v4556_v16, %v4528_v1 }
 0x4db   : > { %v3503_v39 = vpop.f32.mrf.mxu3 }
 0x4dc   : > { %v3521_v61 = vadd.f32 %v3503_v39, %v17223_v28  ;;  %v4576_v35 = vpack.c.bf16 %v17421_v3, %v17407_v8  ;;  %v4518_v28 = vadd.f32 %v17261_v52, %v2521_v22  ;;  %v4177_v55 = vpop.f32.mrf.mxu0  ;;  %v4519_v3 = vadd.f32 %v17261_v52, %v2522_v24  ;;  %v18749_v22 = vld [vmem:[#allocation68_spill] sm:$0xff] }
 0x4dd   : > { %v3911_v10 = vpop.f32.mrf.mxu2 }
 0x4de   : > { %v17428_v44 = vadd.f32 %v3911_v10, %v3781_v60  ;;  %v17430_v33 = vpop.f32.mrf.mxu1  ;;  %v4545_v47 = vadd.f32 %v17271_v25, %v3521_v61  ;;  %v4530_v1 = vmax.f32 %v4518_v28, 0.0  ;;  %v4531_v61 = vmax.f32 %v4519_v3, 0.0 }
 0x4e0   : > { %v4557_v40 = vmax.f32 %v4545_v47, 0.0 }
 0x4e2   : > { %v4569_v36 = vadd.f32 %v4557_v40, %v4529_v38  ;;  %v4520_v40 = vadd.f32 %v17261_v52, %v18749_v22 }
 0x4e3   : > { %v3505_v62 = vpop.f32.mrf.mxu3 }
 0x4e4   : > { %v3522_v43 = vadd.f32 %v3505_v62, %v17236_v14  ;;  %v17450_v47 = vpop.f32.mrf.mxu0 }
 0x4e5   : > { %v17438_v15 = vpop.f32.mrf.mxu2 }
 0x4e6   : > { %v3785_v8 = vpop.f32.mrf.mxu1  ;;  %v4546_v60 = vadd.f32 %v17271_v25, %v3522_v43  ;;  %v4532_v43 = vmax.f32 %v4520_v40, 0.0 }
 0x4e7   : > { %v3786_v63 = vadd.f32 %v3785_v8, %v3686_v37 }
 0x4e8   : > { %v4558_v16 = vmax.f32 %v4546_v60, 0.0  ;;  %v18750_v60 = vmov 65535  }
 0x4ea   : > { %v4570_v20 = vadd.f32 %v4558_v16, %v4530_v1 }
 0x4eb   : > { %v3508_v21 = vpop.f32.mrf.mxu3 }
 0x4ec   : > { %v3523_v39 = vadd.f32 %v3508_v21, %v17247_v42  ;;  %v4577_v14 = vpack.c.bf16 %v4570_v20, %v4569_v36  ;;  %v4182_v24 = vpop.f32.mrf.mxu0 }
 0x4ed   : > { %v3916_v17 = vpop.f32.mrf.mxu2 }
 0x4ee   : > { %v17445_v54 = vadd.f32 %v3916_v17, %v3786_v63  ;;  %v17447_v4 = vpop.f32.mrf.mxu1  ;;  %v4547_v37 = vadd.f32 %v17271_v25, %v3523_v39  ;;  %v4633_v63 = vsel %vm4631_vm5, 4294967295, %v18750_v60  ;;  %vm10603_vm5 = vcmask 8192  }
 0x4ef   : > { %v17459_v32 = vsel %vm4632_vm6, %v4633_v63, 0 }
 0x4f0   : > { %v4559_v10 = vmax.f32 %v4547_v37, 0.0 }
 0x4f2   : > { %v4571_v38 = vadd.f32 %v4559_v10, %v4531_v61 }
 0x4f3   : > { %v3510_v58 = vpop.f32.mrf.mxu3 }
 0x4f4   : > { %v3524_v62 = vadd.f32 %v3510_v58, %v17269_v7  ;;  %v17471_v10 = vpop.f32.mrf.mxu0 }
 0x4f5   : > { %v17455_v42 = vpop.f32.mrf.mxu2 }
 0x4f6   : > { %v4320_v36 = vpop.f32.mrf.mxu1  ;;  %v4548_v28 = vadd.f32 %v17271_v25, %v3524_v62 }
 0x4f8   : > { %v4560_v8 = vmax.f32 %v4548_v28, 0.0 }
 0x4fa   : > { %v4572_v1 = vadd.f32 %v4560_v8, %v4532_v43 }
 0x4fb   : > { %v4034_v53 = vpop.f32.mrf.mxu3 }
 0x4fc   : > { %v4578_v16 = vpack.c.bf16 %v4572_v1, %v4571_v38  ;;  %v4064_v52 = vadd.f32 %v4034_v53, %v17278_v57  ;;  %v4187_v40 = vpop.f32.mrf.mxu0 }
 0x4fd   : > { %v4463_v7 = vpop.f32.mrf.mxu2 }
 0x4fe   : > { %v17462_v20 = vpop.f32.mrf.mxu1  ;;  %v4207_v21 = vadd.f32 %v4177_v55, %v4064_v52  ;;  %v4636_v3 = vand.u32 %v17459_v32, %v4578_v16 }
 0x500   : > { %v4350_v25 = vadd.f32 %v4320_v36, %v4207_v21  ;;  %4640 = vmatpush.bf16.msra.mxu3 %v4636_v3 }
 0x502   : > { %v17465_v39 = vadd.f32 %v4463_v7, %v4350_v25 }
 0x503   : > { %v17467_v17 = vpop.f32.mrf.mxu3 }
 0x504   : > { %18751 = vst [vmem:[#allocation55_spill] sm:$0xff] %v17465_v39  ;;  %4641 = vmatpush.bf16.msra.mxu3 %v4577_v14  ;;  %v17491_v23 = vpop.f32.mrf.mxu0 }
 0x505   : > { %v17469_v37 = vpop.f32.mrf.mxu2 }
 0x506   : > { %v4325_v61 = vpop.f32.mrf.mxu1 }
 0x508   : > { %4642 = vmatpush.bf16.msra.mxu3 %v4576_v35 }
 0x50b   : > { %v4039_v57 = vpop.f32.mrf.mxu3 }
 0x50c   : > { %v4066_v38 = vadd.f32 %v4039_v57, %v17322_v34  ;;  %4643 = vmatpush.bf16.msra.mxu3 %v4575_v46  ;;  %v4192_v60 = vpop.f32.mrf.mxu0 }
 0x50d   : > { %v4468_v58 = vpop.f32.mrf.mxu2 }
 0x50e   : > { %v17477_v55 = vpop.f32.mrf.mxu1  ;;  %v4209_v22 = vadd.f32 %v4182_v24, %v4066_v38  ;;  %v3783_v38 = vadd.f32 %v17430_v33, %v17391_v45  ;;  %v3788_v45 = vadd.f32 %v17447_v4, %v17432_v31  ;;  %v3773_v33 = vadd.f32 %v17364_v30, %v17295_v18 }
 0x510   : > { %v4352_v62 = vadd.f32 %v4325_v61, %v4209_v22  ;;  %4644 = vmatpush.bf16.msra.mxu3 %v4574_v59 }
 0x512   : > { %v17482_v14 = vadd.f32 %v4468_v58, %v4352_v62 }
 0x513   : > { %v17484_v35 = vpop.f32.mrf.mxu3 }
 0x514   : > { %4645 = vmatpush.bf16.msra.mxu3 %v4573_v0  ;;  %v4194_v0 = vpop.f32.mrf.mxu0 }
 0x515   : > { %v17486_v36 = vpop.f32.mrf.mxu2 }
 0x516   : > { %v4330_v34 = vpop.f32.mrf.mxu1 }
 0x51b   : > { %v4044_v11 = vpop.f32.mrf.mxu3 }
 0x51c   : > { %v4068_v46 = vadd.f32 %v4044_v11, %v17362_v26  ;;  %v4197_v26 = vpop.f32.mrf.mxu0  ;;  %v3778_v11 = vadd.f32 %v17403_v19, %v17343_v13  ;;  %v3768_v19 = vadd.f32 %v17324_v51, %v17251_v5  ;;  %v17524_v5 = vld [vmem:[#allocation16] ss:$0 sm:$0xff] }
 0x51d   : > { %v4473_v28 = vpop.f32.mrf.mxu2 }
 0x51e   : > { %v17494_v43 = vpop.f32.mrf.mxu1  ;;  %v4211_v6 = vadd.f32 %v4187_v40, %v4068_v46  ;;  %v3930_v40 = vadd.f32 %v17438_v15, %v3783_v38  ;;  %v3928_v39 = vadd.f32 %v17413_v48, %v3778_v11  ;;  %v3924_v31 = vadd.f32 %v17341_v41, %v3768_v19  ;;  %v17530_v41 = vld [vmem:[%s18631_s16] sm:$0xff]  ;;  %v11564_v19 = vld [vmem:[#allocation18 + $0x1c0] sm:$0xf] }
 0x51f   : > { %11459 = vmatmul.msk.bf16.vlgmr.msra.gmra.mxu3 %vm4624_vm7, %v17530_v41 }
 0x520   : > { %v4354_v2 = vadd.f32 %v4330_v34, %v4211_v6  ;;  %v4067_v51 = vadd.f32 %v17484_v35, %v3924_v31 }
 0x522   : > { %v17496_v59 = vadd.f32 %v4473_v28, %v4354_v2 }
 0x523   : > { %v4046_v8 = vpop.f32.mrf.mxu3 }
 0x524   : > { %v4199_v3 = vpop.f32.mrf.mxu0 }
 0x525   : > { %v17498_v63 = vpop.f32.mrf.mxu2 }
 0x526   : > { %v4335_v1 = vpop.f32.mrf.mxu1 }
 0x52b   : > { %v4049_v29 = vpop.f32.mrf.mxu3 }
 0x52c   : > { %v4202_v58 = vpop.f32.mrf.mxu0  ;;  %v4070_v15 = vadd.f32 %v4049_v29, %v17401_v27 }
 0x52d   : > { %v17500_v9 = vpop.f32.mrf.mxu2 }
 0x52e   : > { %v4337_v53 = vpop.f32.mrf.mxu1 }
 0x533   : > { %v4051_v24 = vpop.f32.mrf.mxu3 }
 0x534   : > { %v4071_v38 = vadd.f32 %v4051_v24, %v3928_v39  ;;  %v4204_v18 = vpop.f32.mrf.mxu0  ;;  %v3763_v39 = vadd.f32 %v17280_v50, %v17227_v12 }
 0x535   : > { %v17502_v16 = vpop.f32.mrf.mxu2 }
 0x536   : > { %v4340_v52 = vpop.f32.mrf.mxu1  ;;  %v4214_v30 = vadd.f32 %v4194_v0, %v4071_v38  ;;  %v14504_v38 = vld [vmem:[#allocation18 + $0xc4] sm:$0xf] }
 0x538   : > { %v4357_v12 = vadd.f32 %v4337_v53, %v4214_v30  ;;  %v11580_v53 = vld [vmem:[#allocation18 + $0x1e0] sm:$0xf]  ;;  %v14500_v30 = vld [vmem:[#allocation18 + $0xa4] sm:$0xf] }
 0x53b   : > { %v4054_v7 = vpop.f32.mrf.mxu3 }
 0x53c   : > { %v4072_v6 = vadd.f32 %v4054_v7, %v17428_v44  ;;  %v3926_v44 = vadd.f32 %v17380_v56, %v3773_v33  ;;  %v4500_v33 = vadd.f32 %v17502_v16, %v4357_v12 }
 0x53d   : > { %v4483_v21 = vpop.f32.mrf.mxu2 }
 0x53e   : > { %v4342_v25 = vpop.f32.mrf.mxu1  ;;  %v4215_v7 = vadd.f32 %v4197_v26, %v4072_v6  ;;  %v4069_v4 = vadd.f32 %v4046_v8, %v3926_v44  ;;  %v3922_v8 = vadd.f32 %v17299_v49, %v3763_v39  ;;  %v4210_v49 = vadd.f32 %v17471_v10, %v4067_v51  ;;  %v14506_v10 = vld [vmem:[#allocation18 + $0xcc] sm:$0xf0] }
 0x53f   : > { %v14534_v51 = vld [vmem:[#allocation18 + $0x1ac] sm:$0xf0] }
 0x540   : > { %v4358_v24 = vadd.f32 %v4340_v52, %v4215_v7  ;;  %v4065_v11 = vadd.f32 %v17467_v17, %v3922_v8  ;;  %v4353_v31 = vadd.f32 %v17477_v55, %v4210_v49  ;;  %v14498_v8 = vld [vmem:[#allocation18 + $0x8c] sm:$0xf0]  ;;  %v11644_v49 = vld [vmem:[#allocation18 + $0x60] sm:$0xf] }
 0x542   : > { %v4501_v35 = vadd.f32 %v4483_v21, %v4358_v24  ;;  %v11692_v21 = vld [vmem:[#allocation18 + $0xc0] sm:$0xf]  ;;  %v4208_v16 = vadd.f32 %v17450_v47, %v4065_v11 }
 0x543   : > { %v4056_v61 = vpop.f32.mrf.mxu3 }
 0x544   : > { %v4073_v46 = vadd.f32 %v4056_v61, %v3930_v40  ;;  %v11708_v40 = vld [vmem:[#allocation18 + $0xe0] sm:$0xf]  ;;  %v4351_v12 = vadd.f32 %v17462_v20, %v4208_v16  ;;  %v4587_v20 = vadd.f32 %v17524_v5, %v17496_v59 }
 0x545   : > { %v4485_v57 = vpop.f32.mrf.mxu2 }
 0x546   : > { %v4345_v34 = vpop.f32.mrf.mxu1 }
 0x54b   : > { %v4059_v22 = vpop.f32.mrf.mxu3 }
 0x54c   : > { %v4074_v62 = vadd.f32 %v4059_v22, %v17445_v54  ;;  %v3932_v54 = vadd.f32 %v17455_v42, %v3788_v45  ;;  %v4216_v22 = vadd.f32 %v4199_v3, %v4073_v46  ;;  %v11710_v46 = vld [vmem:[#allocation18 + $0xf0] sm:$0xf0] }
 0x54d   : > { %v4488_v2 = vpop.f32.mrf.mxu2 }
 0x54e   : > { %v4217_v28 = vadd.f32 %v4202_v58, %v4074_v62  ;;  %v4213_v58 = vadd.f32 %v4192_v60, %v4070_v15  ;;  %v4359_v27 = vadd.f32 %v4342_v25, %v4216_v22  ;;  %v4347_v3 = vpop.f32.mrf.mxu1  ;;  %v4212_v60 = vadd.f32 %v17491_v23, %v4069_v4  ;;  %v14510_v62 = vld [vmem:[#allocation18 + $0xec] sm:$0xf0] }
 0x54f   : > { %v4591_v22 = vadd.f32 %v17524_v5, %v4501_v35 }
 0x550   : > { %v4360_v13 = vadd.f32 %v4345_v34, %v4217_v28  ;;  %v4356_v0 = vadd.f32 %v4335_v1, %v4213_v58  ;;  %v4502_v50 = vadd.f32 %v4485_v57, %v4359_v27  ;;  %v14508_v34 = vld [vmem:[#allocation18 + $0xe4] sm:$0xf]  ;;  %v11709_v1 = vor.u32 %v14510_v62, %v11708_v40  ;;  %v14542_v57 = vld [vmem:[#allocation18 + $0x1ec] sm:$0xf0]  ;;  %v11678_v27 = vld [vmem:[#allocation18 + $0xb0] sm:$0xf0] }
 0x551   : > { %v4355_v28 = vadd.f32 %v17494_v43, %v4212_v60  ;;  %v11581_v45 = vor.u32 %v14542_v57, %v11580_v53  ;;  %v11694_v43 = vld [vmem:[#allocation18 + $0xd0] sm:$0xf0]  ;;  %v11681_v47 = vor.u32 %v14500_v30, %v11678_v27  ;;  %v14496_v60 = vld [vmem:[#allocation18 + $0x84] sm:$0xf]  ;;  %v14526_v53 = vld [vmem:[#allocation18 + $0x16c] sm:$0xf0]  ;;  %v4494_v57 = vadd.f32 %v17469_v37, %v4351_v12 }
 0x552   : > { %v4503_v29 = vadd.f32 %v4488_v2, %v4360_v13  ;;  %v4499_v6 = vadd.f32 %v17500_v9, %v4356_v0  ;;  %v11713_v2 = vor.u32 %v14508_v34, %v11710_v46  ;;  %v4592_v15 = vadd.f32 %v17524_v5, %v4502_v50  ;;  %5188 = vmatpush.bf16.msra.mxu1 %v11709_v1  ;;  %v14538_v9 = vld [vmem:[#allocation18 + $0x1cc] sm:$0xf0]  ;;  %v11662_v0 = vld [vmem:[#allocation18 + $0x90] sm:$0xf0]  ;;  %v14492_v1 = vld [vmem:[#allocation18 + $0x64] sm:$0xf] }
 0x553   : > { %v4061_v48 = vpop.f32.mrf.mxu3  ;;  %4976 = vmatpush.bf16.msrb.mxu3 %v11581_v45  ;;  %v11693_v13 = vor.u32 %v14506_v10, %v11692_v21  ;;  %v11697_v7 = vor.u32 %v14504_v38, %v11694_v43  ;;  %v4498_v4 = vadd.f32 %v17498_v63, %v4355_v28  ;;  %v11660_v63 = vld [vmem:[#allocation18 + $0x80] sm:$0xf]  ;;  %v4496_v50 = vadd.f32 %v17486_v36, %v4353_v31  ;;  %v11646_v36 = vld [vmem:[#allocation18 + $0x70] sm:$0xf0] }
 0x554   : > { %v4075_v61 = vadd.f32 %v4061_v48, %v3932_v54  ;;  %v4593_v52 = vadd.f32 %v17524_v5, %v4503_v29  ;;  %5201 = vmatpush.bf16.msra.mxu2 %v11713_v2  ;;  %v11565_v48 = vor.u32 %v14538_v9, %v11564_v19  ;;  %v4589_v58 = vadd.f32 %v17524_v5, %v4499_v6  ;;  %v11516_v46 = vld [vmem:[#allocation18 + $0x160] sm:$0xf] }
 0x555   : > { %v4490_v26 = vpop.f32.mrf.mxu2  ;;  %v4590_v29 = vadd.f32 %v17524_v5, %v4500_v33  ;;  %v11661_v62 = vor.u32 %v14498_v8, %v11660_v63  ;;  %v11665_v34 = vor.u32 %v14496_v60, %v11662_v0  ;;  %v4586_v28 = vadd.f32 %v17524_v5, %v4496_v50  ;;  %v4615_v6 = vld [vmem:[%s18631_s16 + $0x8] sm:$0x3]  ;;  %v11518_v63 = vld [vmem:[#allocation18 + $0x170] sm:$0xf0]  ;;  %v14522_v0 = vld [vmem:[#allocation18 + $0x14c] sm:$0xf0] }
 0x556   : > { %v4218_v42 = vadd.f32 %v4204_v18, %v4075_v61  ;;  %v4605_v17 = vmax.f32 %v4593_v52, 0.0  ;;  %v11676_v61 = vld [vmem:[#allocation18 + $0xa0] sm:$0xf]  ;;  %v14502_v18 = vld [vmem:[#allocation18 + $0xac] sm:$0xf0]  ;;  %5189 = vmatpush.bf16.msra.mxu1 %v11693_v13  ;;  %v4621_v33 = vunpack.c.l.b16 %v4615_v6  ;;  %v11649_v59 = vor.u32 %v14492_v1, %v11646_v36 }
 0x557   : > { %v11677_v24 = vor.u32 %v14502_v18, %v11676_v61  ;;  %4977 = vmatpush.bf16.msrb.mxu3 %v11565_v48  ;;  %v14530_v52 = vld [vmem:[#allocation18 + $0x18c] sm:$0xf0]  ;;  %v4602_v35 = vmax.f32 %v4590_v29, 0.0  ;;  %v4585_v37 = vadd.f32 %v17524_v5, %v17482_v14  ;;  %v4599_v10 = vmax.f32 %v4587_v20, 0.0  ;;  %v11630_v13 = vld [vmem:[#allocation18 + $0x50] sm:$0xf0] }
 0x558   : > { %v4361_v56 = vadd.f32 %v4347_v3, %v4218_v42  ;;  %v4604_v42 = vmax.f32 %v4592_v15, 0.0  ;;  %v11548_v3 = vld [vmem:[#allocation18 + $0x1a0] sm:$0xf]  ;;  %5202 = vmatpush.bf16.msra.mxu2 %v11697_v7  ;;  %v11517_v15 = vor.u32 %v14526_v53, %v11516_v46  ;;  %v4623_v38 = vpack.c.b16 %v4621_v33, %v4621_v33  ;;  %v18752_v48 = vld [vmem:[#allocation55_spill] sm:$0xff]  ;;  %v14536_v29 = vld [vmem:[#allocation18 + $0x1c4] sm:$0xf] }
 0x559   : > { %v11549_v55 = vor.u32 %v14534_v51, %v11548_v3  ;;  %v4584_v43 = vadd.f32 %v17524_v5, %v4494_v57  ;;  %v4598_v19 = vmax.f32 %v4586_v28, 0.0  ;;  %v4583_v61 = vadd.f32 %v17524_v5, %v18752_v48  ;;  %v11550_v3 = vld [vmem:[#allocation18 + $0x1b0] sm:$0xf0]  ;;  %v14528_v51 = vld [vmem:[#allocation18 + $0x184] sm:$0xf] }
 0x55a   : > { %v4504_v25 = vadd.f32 %v4490_v26, %v4361_v56  ;;  %v4603_v56 = vmax.f32 %v4591_v22, 0.0  ;;  %v11532_v26 = vld [vmem:[#allocation18 + $0x180] sm:$0xf]  ;;  %5190 = vmatpush.bf16.msra.mxu1 %v11677_v24  ;;  %v14488_v22 = vld [vmem:[#allocation18 + $0x44] sm:$0xf]  ;;  %11460 = vmatmul.msk.bf16.gmra.mxu3 %vm4624_vm7, %v4623_v38  ;;  %v4597_v14 = vmax.f32 %v4585_v37, 0.0 }
 0x55b   : > { %4978 = vmatpush.bf16.msrb.mxu3 %v11549_v55  ;;  %v11533_v11 = vor.u32 %v14530_v52, %v11532_v26  ;;  %v11633_v7 = vor.u32 %v14488_v22, %v11630_v13  ;;  %v4596_v16 = vmax.f32 %v4584_v43, 0.0  ;;  %v4595_v18 = vmax.f32 %v4583_v61, 0.0  ;;  %v14532_v24 = vld [vmem:[#allocation18 + $0x1a4] sm:$0xf]  ;;  %v11500_v60 = vld [vmem:[#allocation18 + $0x140] sm:$0xf] }
 0x55c   : > { %v4594_v23 = vadd.f32 %v17524_v5, %v4504_v25  ;;  %v4601_v25 = vmax.f32 %v4589_v58, 0.0  ;;  %v4611_v40 = vpack.c.bf16 %v4604_v42, %v4603_v56  ;;  %5203 = vmatpush.bf16.msra.mxu2 %v11681_v47  ;;  %v4608_v31 = vpack.c.bf16 %v4598_v19, %v4597_v14  ;;  %v11582_v58 = vld [vmem:[#allocation18 + $0x1f0] sm:$0xf0]  ;;  %v14524_v55 = vld [vmem:[#allocation18 + $0x164] sm:$0xf] }
 0x55d   : > { %v4607_v27 = vpack.c.bf16 %v4596_v16, %v4595_v18  ;;  %v11566_v42 = vld [vmem:[#allocation18 + $0x1d0] sm:$0xf0]  ;;  %v11521_v8 = vor.u32 %v14524_v55, %v11518_v63  ;;  %v14520_v26 = vld [vmem:[#allocation18 + $0x144] sm:$0xf]  ;;  %v11501_v12 = vor.u32 %v14522_v0, %v11500_v60  ;;  %v14486_v52 = vld [vmem:[#allocation18 + $0x2c] sm:$0xf0] }
 0x55e   : > { %v4606_v54 = vmax.f32 %v4594_v23, 0.0  ;;  %v14494_v23 = vld [vmem:[#allocation18 + $0x6c] sm:$0xf0]  ;;  %v4610_v45 = vpack.c.bf16 %v4602_v35, %v4601_v25  ;;  %5191 = vmatpush.bf16.msra.mxu1 %v11661_v62  ;;  %v11534_v56 = vld [vmem:[#allocation18 + $0x190] sm:$0xf0] }
 0x55f   : > { %v11645_v21 = vor.u32 %v14494_v23, %v11644_v49  ;;  %4979 = vmatpush.bf16.msrb.mxu3 %v11533_v11  ;;  %v11537_v47 = vor.u32 %v14528_v51, %v11534_v56  ;;  %v11502_v50 = vld [vmem:[#allocation18 + $0x150] sm:$0xf0]  ;;  %v14484_v25 = vld [vmem:[#allocation18 + $0x24] sm:$0xf]  ;;  %v14518_v11 = vld [vmem:[#allocation18 + $0x12c] sm:$0xf0] }
 0x560   : > { %v4612_v44 = vpack.c.bf16 %v4606_v54, %v4605_v17  ;;  %5204 = vmatpush.bf16.msra.mxu2 %v11665_v34  ;;  %v11628_v17 = vld [vmem:[#allocation18 + $0x40] sm:$0xf]  ;;  %v14490_v54 = vld [vmem:[#allocation18 + $0x4c] sm:$0xf0]  ;;  %v14516_v49 = vld [vmem:[#allocation18 + $0x124] sm:$0xf] }
 0x561   : > { %v11484_v34 = vld [vmem:[#allocation18 + $0x120] sm:$0xf]  ;;  %v11486_v1 = vld [vmem:[#allocation18 + $0x130] sm:$0xf0]  ;;  %v14482_v46 = vld [vmem:[#allocation18 + $0xc] sm:$0xf0] }
 0x562   : > { %v4657_v39 = vand.u32 %v17459_v32, %v4612_v44  ;;  %v4588_v32 = vadd.f32 %v17524_v5, %v4498_v4  ;;  %5192 = vmatpush.bf16.msra.mxu1 %v11645_v21  ;;  %v11629_v44 = vor.u32 %v14490_v54, %v11628_v17  ;;  %v14540_v4 = vld [vmem:[#allocation18 + $0x1e4] sm:$0xf]  ;;  %v11553_v5 = vor.u32 %v14532_v24, %v11550_v3  ;;  %v11596_v36 = vld [vmem:[#allocation18] sm:$0xf]  ;;  %v11598_v28 = vld [vmem:[#allocation18 + $0x10] sm:$0xf0] }
 0x563   : > { %4980 = vmatpush.bf16.msrb.mxu3 %v11517_v15  ;;  %v11585_v30 = vor.u32 %v14540_v4, %v11582_v58  ;;  %v11485_v23 = vor.u32 %v14518_v11, %v11484_v34  ;;  %v11489_v20 = vor.u32 %v14516_v49, %v11486_v1  ;;  %v14480_v53 = vld [vmem:[#allocation18 + $0x4] sm:$0xf]  ;;  %v11597_v57 = vor.u32 %v14482_v46, %v11596_v36  ;;  %v11836_v6 = vld [vmem:[#allocation18 + $0x2e0] sm:$0xf]  ;;  %v14514_v54 = vld [vmem:[#allocation18 + $0x10c] sm:$0xf0] }
 0x564   : > { %4661 = vmatpush.bf16.msrb.mxu0 %v4657_v39  ;;  %v4600_v2 = vmax.f32 %v4588_v32, 0.0  ;;  %5205 = vmatpush.bf16.msra.mxu2 %v11649_v59  ;;  %v11569_v39 = vor.u32 %v14536_v29, %v11566_v42  ;;  %v11505_v32 = vor.u32 %v14520_v26, %v11502_v50  ;;  %v14572_v33 = vld [vmem:[#allocation18 + $0x2e4] sm:$0xf]  ;;  %v11838_v59 = vld [vmem:[#allocation18 + $0x2f0] sm:$0xf0] }
 0x565   : > { %v11468_v15 = vld [vmem:[#allocation18 + $0x100] sm:$0xf]  ;;  %v11841_v17 = vor.u32 %v14572_v33, %v11838_v59  ;;  %v14512_v37 = vld [vmem:[#allocation18 + $0x104] sm:$0xf]  ;;  %v11588_v13 = vld [vmem:[#allocation18 + $0x1e8] sm:$0xf] }
 0x566   : > { %v4609_v9 = vpack.c.bf16 %v4600_v2, %v4599_v10  ;;  %5193 = vmatpush.bf16.msra.mxu1 %v11629_v44  ;;  %v14574_v2 = vld [vmem:[#allocation18 + $0x2ec] sm:$0xf0]  ;;  %v11470_v10 = vld [vmem:[#allocation18 + $0x110] sm:$0xf0]  ;;  %v14543_v43 = vld [vmem:[#allocation18 + $0x1f4] sm:$0xf0] }
 0x567   : > { %4981 = vmatpush.bf16.msrb.mxu3 %v11501_v12  ;;  %v11837_v21 = vor.u32 %v14574_v2, %v11836_v6  ;;  %v11473_v22 = vor.u32 %v14512_v37, %v11470_v10  ;;  %v14541_v19 = vld [vmem:[#allocation18 + $0x1ec] sm:$0xf]  ;;  %v11590_v44 = vld [vmem:[#allocation18 + $0x1f8] sm:$0xf0]  ;;  %v14570_v48 = vld [vmem:[#allocation18 + $0x2cc] sm:$0xf0] }
 0x568   : > { %4662 = vmatpush.bf16.msrb.mxu0 %v4611_v40  ;;  %5206 = vmatpush.bf16.msra.mxu2 %v11633_v7  ;;  %v11614_v40 = vld [vmem:[#allocation18 + $0x30] sm:$0xf0]  ;;  %v11820_v7 = vld [vmem:[#allocation18 + $0x2c0] sm:$0xf]  ;;  %v11593_v61 = vor.u32 %v14541_v19, %v11590_v44  ;;  %v14568_v16 = vld [vmem:[#allocation18 + $0x2c4] sm:$0xf] }
 0x569   : > { %v11617_v62 = vor.u32 %v14484_v25, %v11614_v40  ;;  %v11821_v14 = vor.u32 %v14570_v48, %v11820_v7  ;;  %v11572_v58 = vld [vmem:[#allocation18 + $0x1c8] sm:$0xf]  ;;  %v14539_v18 = vld [vmem:[#allocation18 + $0x1d4] sm:$0xf0]  ;;  %v11574_v29 = vld [vmem:[#allocation18 + $0x1d8] sm:$0xf0] }
 0x56a   : > { %v14566_v24 = vld [vmem:[#allocation18 + $0x2ac] sm:$0xf0]  ;;  %v14564_v3 = vld [vmem:[#allocation18 + $0x2a4] sm:$0xf]  ;;  %v11806_v51 = vld [vmem:[#allocation18 + $0x2b0] sm:$0xf0] }
 0x56b   : > { %4982 = vmatpush.bf16.msrb.mxu3 %v11485_v23  ;;  %v11809_v56 = vor.u32 %v14564_v3, %v11806_v51  ;;  %v14535_v55 = vld [vmem:[#allocation18 + $0x1b4] sm:$0xf0]  ;;  %v14533_v63 = vld [vmem:[#allocation18 + $0x1ac] sm:$0xf]  ;;  %v11558_v60 = vld [vmem:[#allocation18 + $0x1b8] sm:$0xf0] }
 0x56c   : > { %4663 = vmatpush.bf16.msrb.mxu0 %v4610_v45  ;;  %5207 = vmatpush.bf16.msra.mxu2 %v11617_v62  ;;  %v11601_v45 = vor.u32 %v14480_v53, %v11598_v28  ;;  %v11561_v0 = vor.u32 %v14533_v63, %v11558_v60  ;;  %v11788_v26 = vld [vmem:[#allocation18 + $0x280] sm:$0xf]  ;;  %v14562_v12 = vld [vmem:[#allocation18 + $0x28c] sm:$0xf0]  ;;  %v14560_v50 = vld [vmem:[#allocation18 + $0x284] sm:$0xf] }
 0x56d   : > { %v11540_v25 = vld [vmem:[#allocation18 + $0x188] sm:$0xf]  ;;  %v14529_v40 = vld [vmem:[#allocation18 + $0x18c] sm:$0xf]  ;;  %v11542_v34 = vld [vmem:[#allocation18 + $0x198] sm:$0xf0] }
 0x56e   : > { %v11545_v11 = vor.u32 %v14529_v40, %v11542_v34  ;;  %v11772_v49 = vld [vmem:[#allocation18 + $0x260] sm:$0xf]  ;;  %v14558_v23 = vld [vmem:[#allocation18 + $0x26c] sm:$0xf0]  ;;  %v14556_v1 = vld [vmem:[#allocation18 + $0x264] sm:$0xf] }
 0x56f   : > { %v11774_v36 = vld [vmem:[#allocation18 + $0x270] sm:$0xf0]  ;;  %v11524_v53 = vld [vmem:[#allocation18 + $0x168] sm:$0xf]  ;;  %v14525_v28 = vld [vmem:[#allocation18 + $0x16c] sm:$0xf] }
 0x570   : > { %4664 = vmatpush.bf16.msrb.mxu0 %v4609_v9  ;;  %5208 = vmatpush.bf16.msra.mxu2 %v11601_v45  ;;  %v11589_v9 = vor.u32 %v14543_v43, %v11588_v13  ;;  %v11777_v46 = vor.u32 %v14556_v1, %v11774_v36  ;;  %v11526_v2 = vld [vmem:[#allocation18 + $0x178] sm:$0xf0]  ;;  %v14554_v33 = vld [vmem:[#allocation18 + $0x24c] sm:$0xf0]  ;;  %v14552_v59 = vld [vmem:[#allocation18 + $0x244] sm:$0xf] }
 0x571   : > { %v11529_v45 = vor.u32 %v14525_v28, %v11526_v2  ;;  %v11508_v10 = vld [vmem:[#allocation18 + $0x148] sm:$0xf]  ;;  %v11510_v19 = vld [vmem:[#allocation18 + $0x158] sm:$0xf0]  ;;  %v11740_v44 = vld [vmem:[#allocation18 + $0x220] sm:$0xf] }
 0x572   : > { %v14550_v7 = vld [vmem:[#allocation18 + $0x22c] sm:$0xf0]  ;;  %v14548_v48 = vld [vmem:[#allocation18 + $0x224] sm:$0xf]  ;;  %v11726_v3 = vld [vmem:[#allocation18 + $0x210] sm:$0xf0] }
 0x573   : > { %v11476_v51 = vld [vmem:[#allocation18 + $0x108] sm:$0xf]  ;;  %v11478_v60 = vld [vmem:[#allocation18 + $0x118] sm:$0xf0]  ;;  %v14606_v1 = vld [vmem:[#allocation18 + $0x3ec] sm:$0xf0] }
 0x574   : > { %4665 = vmatpush.bf16.msrb.mxu0 %v4608_v31  ;;  %5449 = vmatpush.bf16.msrb.mxu2 %v11841_v17  ;;  %v11822_v31 = vld [vmem:[#allocation18 + $0x2d0] sm:$0xf0]  ;;  %v14604_v36 = vld [vmem:[#allocation18 + $0x3e4] sm:$0xf]  ;;  %v14511_v28 = vld [vmem:[#allocation18 + $0xf4] sm:$0xf0] }
 0x575   : > { %v11825_v4 = vor.u32 %v14568_v16, %v11822_v31  ;;  %v11758_v17 = vld [vmem:[#allocation18 + $0x250] sm:$0xf0]  ;;  %v11492_v31 = vld [vmem:[#allocation18 + $0x128] sm:$0xf]  ;;  %v11718_v2 = vld [vmem:[#allocation18 + $0xf8] sm:$0xf0] }
 0x576   : > { %v11761_v37 = vor.u32 %v14552_v59, %v11758_v17  ;;  %v14600_v17 = vld [vmem:[#allocation18 + $0x3c4] sm:$0xf] }
 0x578   : > { %4666 = vmatpush.bf16.msrb.mxu0 %v4607_v27  ;;  %v11573_v27 = vor.u32 %v14539_v18, %v11572_v58  ;;  %5450 = vmatpush.bf16.msrb.mxu2 %v11825_v4  ;;  %v14519_v4 = vld [vmem:[#allocation18 + $0x134] sm:$0xf0]  ;;  %v14517_v58 = vld [vmem:[#allocation18 + $0x12c] sm:$0xf]  ;;  %v11494_v18 = vld [vmem:[#allocation18 + $0x138] sm:$0xf0] }
 0x57b   : > { %11461 = vmatmul.msk.bf16.vlgmr.msrb.gmra.mxu0 %vm4624_vm7, %v17530_v41  ;;  %v11612_v41 = vld [vmem:[#allocation18 + $0x20] sm:$0xf] }
 0x57c   : > { %4989 = vmatpush.bf16.msra.mxu0 %v11585_v30  ;;  %v11613_v35 = vor.u32 %v14486_v52, %v11612_v41  ;;  %v14537_v30 = vld [vmem:[#allocation18 + $0x1cc] sm:$0xf]  ;;  %5451 = vmatpush.bf16.msrb.mxu2 %v11809_v56  ;;  %v11790_v41 = vld [vmem:[#allocation18 + $0x290] sm:$0xf0] }
 0x57d   : > { %v11577_v42 = vor.u32 %v14537_v30, %v11574_v29  ;;  %v11793_v52 = vor.u32 %v14560_v50, %v11790_v41  ;;  %v11493_v30 = vor.u32 %v14519_v4, %v11492_v31  ;;  %v11724_v29 = vld [vmem:[#allocation18 + $0x200] sm:$0xf]  ;;  %v11684_v4 = vld [vmem:[#allocation18 + $0xa8] sm:$0xf] }
 0x57e   : > { %5194 = vmatpush.bf16.msra.mxu1 %v11613_v35  ;;  %v14531_v35 = vld [vmem:[#allocation18 + $0x194] sm:$0xf0] }
 0x57f   : > { %v11541_v62 = vor.u32 %v14531_v35, %v11540_v25 }
 0x580   : > { %4990 = vmatpush.bf16.msra.mxu0 %v11569_v39  ;;  %v11804_v39 = vld [vmem:[#allocation18 + $0x2a0] sm:$0xf]  ;;  %5452 = vmatpush.bf16.msrb.mxu2 %v11793_v52 }
 0x582   : > { %5195 = vmatpush.bf16.msra.mxu1 %v11597_v57  ;;  %v14527_v57 = vld [vmem:[#allocation18 + $0x174] sm:$0xf0] }
 0x583   : > { %v11525_v6 = vor.u32 %v14527_v57, %v11524_v53  ;;  %v11716_v53 = vld [vmem:[#allocation18 + $0xe8] sm:$0xf] }
 0x584   : > { %4991 = vmatpush.bf16.msra.mxu0 %v11553_v5  ;;  %v11805_v5 = vor.u32 %v14566_v24, %v11804_v39  ;;  %5453 = vmatpush.bf16.msrb.mxu2 %v11777_v46  ;;  %v14544_v39 = vld [vmem:[#allocation18 + $0x204] sm:$0xf]  ;;  %v11966_v46 = vld [vmem:[#allocation18 + $0x3f0] sm:$0xf0] }
 0x586   : > { %5436 = vmatpush.bf16.msrb.mxu1 %v11837_v21  ;;  %v11756_v21 = vld [vmem:[#allocation18 + $0x240] sm:$0xf] }
 0x588   : > { %4992 = vmatpush.bf16.msra.mxu0 %v11537_v47  ;;  %v11556_v47 = vld [vmem:[#allocation18 + $0x1a8] sm:$0xf]  ;;  %5454 = vmatpush.bf16.msrb.mxu2 %v11761_v37  ;;  %v11950_v37 = vld [vmem:[#allocation18 + $0x3d0] sm:$0xf0] }
 0x58a   : > { %5437 = vmatpush.bf16.msrb.mxu1 %v11821_v14  ;;  %v11742_v14 = vld [vmem:[#allocation18 + $0x230] sm:$0xf0] }
 0x58b   : > { %11462 = vmatmul.msk.bf16.gmra.mxu0 %vm4624_vm7, %v4623_v38  ;;  %v11469_v38 = vor.u32 %v14514_v54, %v11468_v15  ;;  %v11757_v15 = vor.u32 %v14554_v33, %v11756_v21  ;;  %v11745_v16 = vor.u32 %v14548_v48, %v11742_v14  ;;  %v11969_v21 = vor.u32 %v14604_v36, %v11966_v46  ;;  %v11948_v33 = vld [vmem:[#allocation18 + $0x3c0] sm:$0xf]  ;;  %v14598_v48 = vld [vmem:[#allocation18 + $0x3ac] sm:$0xf0]  ;;  %v11934_v14 = vld [vmem:[#allocation18 + $0x3b0] sm:$0xf0] }
 0x58c   : > { %4993 = vmatpush.bf16.msra.mxu0 %v11521_v8  ;;  %v11557_v8 = vor.u32 %v14535_v55, %v11556_v47  ;;  %v14515_v47 = vld [vmem:[#allocation18 + $0x114] sm:$0xf0]  ;;  %v14513_v55 = vld [vmem:[#allocation18 + $0x10c] sm:$0xf] }
 0x58d   : > { %4983 = vmatpush.bf16.msrb.mxu3 %v11469_v38  ;;  %v14523_v38 = vld [vmem:[#allocation18 + $0x154] sm:$0xf0]  ;;  %5455 = vmatpush.bf16.msrb.mxu2 %v11745_v16 }
 0x58e   : > { %5438 = vmatpush.bf16.msrb.mxu1 %v11805_v5  ;;  %v11509_v43 = vor.u32 %v14523_v38, %v11508_v10  ;;  %v11729_v5 = vor.u32 %v14544_v39, %v11726_v3  ;;  %v11700_v38 = vld [vmem:[#allocation18 + $0xc8] sm:$0xf]  ;;  %v14594_v39 = vld [vmem:[#allocation18 + $0x38c] sm:$0xf0]  ;;  %v11918_v3 = vld [vmem:[#allocation18 + $0x390] sm:$0xf0] }
 0x590   : > { %4994 = vmatpush.bf16.msra.mxu0 %v11505_v32  ;;  %v11789_v32 = vor.u32 %v14562_v12, %v11788_v26 }
 0x591   : > { %5002 = vmatpush.bf16.msra.mxu3 %v11589_v9  ;;  %5456 = vmatpush.bf16.msrb.mxu2 %v11729_v5 }
 0x592   : > { %5439 = vmatpush.bf16.msrb.mxu1 %v11789_v32 }
 0x594   : > { %4995 = vmatpush.bf16.msra.mxu0 %v11489_v20  ;;  %v11773_v20 = vor.u32 %v14558_v23, %v11772_v49  ;;  %v11964_v23 = vld [vmem:[#allocation18 + $0x3e0] sm:$0xf] }
 0x595   : > { %5003 = vmatpush.bf16.msra.mxu3 %v11573_v27  ;;  %v11497_v27 = vor.u32 %v14517_v58, %v11494_v18  ;;  %v14503_v58 = vld [vmem:[#allocation18 + $0xb4] sm:$0xf0]  ;;  %v14501_v18 = vld [vmem:[#allocation18 + $0xac] sm:$0xf] }
 0x596   : > { %5440 = vmatpush.bf16.msrb.mxu1 %v11773_v20  ;;  %v11685_v5 = vor.u32 %v14503_v58, %v11684_v4 }
 0x598   : > { %4996 = vmatpush.bf16.msra.mxu0 %v11473_v22  ;;  %v14521_v22 = vld [vmem:[#allocation18 + $0x14c] sm:$0xf] }
 0x599   : > { %5004 = vmatpush.bf16.msra.mxu3 %v11557_v8  ;;  %v11513_v9 = vor.u32 %v14521_v22, %v11510_v19  ;;  %v11477_v8 = vor.u32 %v14515_v47, %v11476_v51  ;;  %v14507_v22 = vld [vmem:[#allocation18 + $0xd4] sm:$0xf0]  ;;  %v11702_v19 = vld [vmem:[#allocation18 + $0xd8] sm:$0xf0] }
 0x59a   : > { %5441 = vmatpush.bf16.msrb.mxu1 %v11757_v15  ;;  %v14602_v15 = vld [vmem:[#allocation18 + $0x3cc] sm:$0xf0]  ;;  %v11701_v16 = vor.u32 %v14507_v22, %v11700_v38  ;;  %v14499_v47 = vld [vmem:[#allocation18 + $0x94] sm:$0xf0]  ;;  %v14485_v22 = vld [vmem:[#allocation18 + $0x2c] sm:$0xf] }
 0x59b   : > { %v14487_v38 = vld [vmem:[#allocation18 + $0x34] sm:$0xf0] }
 0x59c   : > { %5015 = vmatpush.bf16.msrb.mxu0 %v11593_v61  ;;  %v11741_v61 = vor.u32 %v14550_v7, %v11740_v44  ;;  %v11953_v44 = vor.u32 %v14600_v17, %v11950_v37  ;;  %v11932_v7 = vld [vmem:[#allocation18 + $0x3a0] sm:$0xf]  ;;  %v11870_v17 = vld [vmem:[#allocation18 + $0x330] sm:$0xf0] }
 0x59d   : > { %5005 = vmatpush.bf16.msra.mxu3 %v11541_v62 }
 0x59e   : > { %5442 = vmatpush.bf16.msrb.mxu1 %v11741_v61  ;;  %v14596_v61 = vld [vmem:[#allocation18 + $0x3a4] sm:$0xf] }
 0x5a0   : > { %5016 = vmatpush.bf16.msrb.mxu0 %v11577_v42  ;;  %v14546_v42 = vld [vmem:[#allocation18 + $0x20c] sm:$0xf0] }
 0x5a1   : > { %5006 = vmatpush.bf16.msra.mxu3 %v11525_v6  ;;  %v11725_v24 = vor.u32 %v14546_v42, %v11724_v29  ;;  %v14509_v6 = vld [vmem:[#allocation18 + $0xec] sm:$0xf]  ;;  %v11937_v29 = vor.u32 %v14596_v61, %v11934_v14  ;;  %v11916_v42 = vld [vmem:[#allocation18 + $0x380] sm:$0xf]  ;;  %v11854_v61 = vld [vmem:[#allocation18 + $0x310] sm:$0xf0] }
 0x5a2   : > { %v4647_v34 = vpop.f32.mrf.mxu3  ;;  %v11721_v10 = vor.u32 %v14509_v6, %v11718_v2  ;;  %v11638_v6 = vld [vmem:[#allocation18 + $0x58] sm:$0xf0]  ;;  %v12092_v14 = vld [vmem:[#allocation18 + $0x4e0] sm:$0xf] }
 0x5a3   : > { %5443 = vmatpush.bf16.msrb.mxu1 %v11725_v24  ;;  %v4677_v49 = vmul.f32 0.9, %v4647_v34  ;;  %v14592_v24 = vld [vmem:[#allocation18 + $0x384] sm:$0xf] }
 0x5a4   : > { %5017 = vmatpush.bf16.msrb.mxu0 %v11561_v0  ;;  %v11481_v0 = vor.u32 %v14513_v55, %v11478_v60  ;;  %v14497_v55 = vld [vmem:[#allocation18 + $0x8c] sm:$0xf]  ;;  %v11921_v60 = vor.u32 %v14592_v24, %v11918_v3 }
 0x5a5   : > { %5007 = vmatpush.bf16.msra.mxu3 %v11509_v43  ;;  %v14505_v43 = vld [vmem:[#allocation18 + $0xcc] sm:$0xf] }
 0x5a6   : > { %v11705_v31 = vor.u32 %v14505_v43, %v11702_v19  ;;  %v11622_v43 = vld [vmem:[#allocation18 + $0x38] sm:$0xf0]  ;;  %v11852_v19 = vld [vmem:[#allocation18 + $0x300] sm:$0xf] }
 0x5a7   : > { %v11625_v58 = vor.u32 %v14485_v22, %v11622_v43  ;;  %v14561_v22 = vld [vmem:[#allocation18 + $0x28c] sm:$0xf]  ;;  %v11798_v43 = vld [vmem:[#allocation18 + $0x298] sm:$0xf0] }
 0x5a8   : > { %5018 = vmatpush.bf16.msrb.mxu0 %v11545_v11 }
 0x5a9   : > { %5008 = vmatpush.bf16.msra.mxu3 %v11493_v30  ;;  %v11686_v30 = vld [vmem:[#allocation18 + $0xb8] sm:$0xf0] }
 0x5aa   : > { %v11689_v51 = vor.u32 %v14501_v18, %v11686_v30  ;;  %v12094_v18 = vld [vmem:[#allocation18 + $0x4f0] sm:$0xf0]  ;;  %v11604_v30 = vld [vmem:[#allocation18 + $0x8] sm:$0xf] }
 0x5ac   : > { %5019 = vmatpush.bf16.msrb.mxu0 %v11529_v45  ;;  %v11965_v45 = vor.u32 %v14606_v1, %v11964_v23  ;;  %v14584_v1 = vld [vmem:[#allocation18 + $0x344] sm:$0xf] }
 0x5ad   : > { %5009 = vmatpush.bf16.msra.mxu3 %v11477_v8  ;;  %v11917_v8 = vor.u32 %v14594_v39, %v11916_v42  ;;  %v11606_v42 = vld [vmem:[#allocation18 + $0x18] sm:$0xf0]  ;;  %v11844_v39 = vld [vmem:[#allocation18 + $0x2e8] sm:$0xf] }
 0x5b0   : > { %5020 = vmatpush.bf16.msrb.mxu0 %v11513_v9  ;;  %v11949_v9 = vor.u32 %v14602_v15, %v11948_v33  ;;  %v14582_v33 = vld [vmem:[#allocation18 + $0x32c] sm:$0xf0]  ;;  %v14580_v15 = vld [vmem:[#allocation18 + $0x324] sm:$0xf] }
 0x5b4   : > { %5021 = vmatpush.bf16.msrb.mxu0 %v11497_v27  ;;  %v11933_v27 = vor.u32 %v14598_v48, %v11932_v7  ;;  %v14578_v7 = vld [vmem:[#allocation18 + $0x30c] sm:$0xf0]  ;;  %v14576_v48 = vld [vmem:[#allocation18 + $0x304] sm:$0xf] }
 0x5b5   : > { %v11853_v24 = vor.u32 %v14578_v7, %v11852_v19  ;;  %v11857_v3 = vor.u32 %v14576_v48, %v11854_v61  ;;  %v14622_v7 = vld [vmem:[#allocation18 + $0x46c] sm:$0xf0]  ;;  %v14620_v48 = vld [vmem:[#allocation18 + $0x464] sm:$0xf]  ;;  %v12030_v61 = vld [vmem:[#allocation18 + $0x470] sm:$0xf0] }
 0x5b8   : > { %5022 = vmatpush.bf16.msrb.mxu0 %v11481_v0  ;;  %v11900_v0 = vld [vmem:[#allocation18 + $0x360] sm:$0xf] }
 0x5f8   : > { %v17570_v54 = vpop.f32.mrf.mxu0 }
 0x5f9   : > { %v11463_v13 = vmul.f32 -1.442695, %v17570_v54 }
 0x5fb   : > { %15457 = vpow2.f32 %v11463_v13 }
 0x601   : > { %v15458_v56 = vpop.eup %15457 }
 0x602   : > { %v4689_v63 = vadd.f32 1.0, %v15458_v56  ;;  %v11668_v56 = vld [vmem:[#allocation18 + $0x88] sm:$0xf] }
 0x604   : > { %15459 = vrcp.f32 %v4689_v63  ;;  %v4703_v32 = vand.u32 2147483648, %v4689_v63  ;;  %v4701_v52 = vand.u32 2147483647, %v4689_v63  ;;  %vm4697_vm9 = vweird.f32 %v4689_v63 }
 0x606   : > { %v4704_v35 = vor.u32 1.1754944e-38, %v4703_v32  ;;  %vm4702_vm11 = vcmp.eq.f32.partialorder %v4701_v52, 8.507059e+37  ;;  %v11669_v32 = vor.u32 %v14499_v47, %v11668_v56  ;;  %v11652_v52 = vld [vmem:[#allocation18 + $0x68] sm:$0xf]  ;;  %v11846_v56 = vld [vmem:[#allocation18 + $0x2f8] sm:$0xf0] }
 0x60a   : > { %v15460_v26 = vpop.eup %15459 }
 0x60b   : > { %v4693_v12 = vmul.f32 %v15460_v26, %v4689_v63  ;;  %vm4698_vm8 = vweird.f32 %v15460_v26  ;;  %v11670_v63 = vld [vmem:[#allocation18 + $0x98] sm:$0xf0] }
 0x60c   : > { %vm4699_vm10 = vmor %vm4697_vm9, %vm4698_vm8 }
 0x60d   : > { %v4694_v50 = vsub.f32 1.0, %v4693_v12  ;;  %v14588_v12 = vld [vmem:[#allocation18 + $0x364] sm:$0xf] }
 0x60f   : > { %v4695_v41 = vmul.f32 %v15460_v26, %v4694_v50  ;;  %v11902_v50 = vld [vmem:[#allocation18 + $0x370] sm:$0xf0] }
 0x610   : > { %v11905_v34 = vor.u32 %v14588_v12, %v11902_v50  ;;  %v12078_v12 = vld [vmem:[#allocation18 + $0x4d0] sm:$0xf0] }
 0x611   : > { %v4696_v25 = vadd.f32 %v15460_v26, %v4695_v41  ;;  %v11673_v41 = vor.u32 %v14497_v55, %v11670_v63  ;;  %v12076_v63 = vld [vmem:[#allocation18 + $0x4c0] sm:$0xf] }
 0x613   : > { %v4700_v40 = vsel %vm4699_vm10, %v15460_v26, %v4696_v25  ;;  %v14590_v26 = vld [vmem:[#allocation18 + $0x36c] sm:$0xf0]  ;;  %v14495_v25 = vld [vmem:[#allocation18 + $0x74] sm:$0xf0] }
 0x614   : > { %v4705_v62 = vsel %vm4702_vm11, %v4704_v35, %v4700_v40  ;;  %v14493_v35 = vld [vmem:[#allocation18 + $0x6c] sm:$0xf]  ;;  %v11654_v40 = vld [vmem:[#allocation18 + $0x78] sm:$0xf0]  ;;  %v11653_v36 = vor.u32 %v14495_v25, %v11652_v52  ;;  %v14571_v52 = vld [vmem:[#allocation18 + $0x2d4] sm:$0xf0] }
 0x615   : > { %v4737_v11 = vmul.f32 %v4705_v62, %v17570_v54  ;;  %v11717_v54 = vor.u32 %v14511_v28, %v11716_v53  ;;  %v11901_v62 = vor.u32 %v14590_v26, %v11900_v0  ;;  %v11657_v46 = vor.u32 %v14493_v35, %v11654_v40  ;;  %v11636_v53 = vld [vmem:[#allocation18 + $0x48] sm:$0xf]  ;;  %v14489_v28 = vld [vmem:[#allocation18 + $0x4c] sm:$0xf]  ;;  %v14634_v0 = vld [vmem:[#allocation18 + $0x4cc] sm:$0xf0] }
 0x616   : > { %v14632_v26 = vld [vmem:[#allocation18 + $0x4c4] sm:$0xf]  ;;  %v14569_v25 = vld [vmem:[#allocation18 + $0x2cc] sm:$0xf]  ;;  %v11830_v35 = vld [vmem:[#allocation18 + $0x2d8] sm:$0xf0] }
 0x617   : > { %v4740_v20 = vmul.f32 0.1, %v4737_v11  ;;  %v11884_v11 = vld [vmem:[#allocation18 + $0x340] sm:$0xf] }
 0x619   : > { %v4743_v57 = vadd.f32 %v4740_v20, %v4677_v49  ;;  %v14586_v49 = vld [vmem:[#allocation18 + $0x34c] sm:$0xf0]  ;;  %v11886_v20 = vld [vmem:[#allocation18 + $0x350] sm:$0xf0] }
 0x61a   : > { %v11885_v2 = vor.u32 %v14586_v49, %v11884_v11  ;;  %v12060_v11 = vld [vmem:[#allocation18 + $0x4a0] sm:$0xf]  ;;  %v14630_v49 = vld [vmem:[#allocation18 + $0x4ac] sm:$0xf0] }
 0x61b   : > { %v17574_v59 = vpack.c.bf16 %v4743_v57, %v4743_v57  ;;  %v14491_v57 = vld [vmem:[#allocation18 + $0x54] sm:$0xf0] }
 0x61c   : > { %v11637_v37 = vor.u32 %v14491_v57, %v11636_v53  ;;  %v11812_v53 = vld [vmem:[#allocation18 + $0x2a8] sm:$0xf]  ;;  %v14567_v57 = vld [vmem:[#allocation18 + $0x2b4] sm:$0xf0] }
 0x61d   : > { %5196 = vmatmul.bf16.vlgmr.msra.gmra.mxu1 %v17574_v59  ;;  %5209 = vmatmul.bf16.vlgmr.msra.gmra.mxu2 %v17574_v59  ;;  %v17579_v13 = vshrl.u32 %v17574_v59, 16  ;;  %v17584_v23 = vrot.slane %v17574_v59, 1 }
 0x61e   : > { %5687 = vmatpush.bf16.msra.mxu1 %v11965_v45  ;;  %5700 = vmatpush.bf16.msra.mxu2 %v11969_v21  ;;  %v11889_v45 = vor.u32 %v14584_v1, %v11886_v20  ;;  %v11868_v21 = vld [vmem:[#allocation18 + $0x320] sm:$0xf]  ;;  %v14628_v1 = vld [vmem:[#allocation18 + $0x4a4] sm:$0xf]  ;;  %v12062_v20 = vld [vmem:[#allocation18 + $0x4b0] sm:$0xf0] }
 0x61f   : > { %4984 = vmatmul.bf16.vlgmr.msrb.gmra.mxu3 %v17579_v13  ;;  %4997 = vmatmul.bf16.vlgmr.msra.gmra.mxu0 %v17579_v13  ;;  %v17591_v40 = vrot.slane %v17579_v13, 1 }
 0x620   : > { %5214 = vmatpush.bf16.msrb.mxu3 %v11717_v54  ;;  %5227 = vmatpush.bf16.msra.mxu0 %v11721_v10  ;;  %v11641_v54 = vor.u32 %v14489_v28, %v11638_v6  ;;  %v11620_v10 = vld [vmem:[#allocation18 + $0x28] sm:$0xf]  ;;  %v14565_v28 = vld [vmem:[#allocation18 + $0x2ac] sm:$0xf]  ;;  %v11814_v6 = vld [vmem:[#allocation18 + $0x2b8] sm:$0xf0] }
 0x621   : > { %v11621_v4 = vor.u32 %v14487_v38, %v11620_v10  ;;  %v11796_v10 = vld [vmem:[#allocation18 + $0x288] sm:$0xf]  ;;  %v14563_v38 = vld [vmem:[#allocation18 + $0x294] sm:$0xf0] }
 0x622   : > { %5688 = vmatpush.bf16.msra.mxu1 %v11949_v9  ;;  %5701 = vmatpush.bf16.msra.mxu2 %v11953_v44  ;;  %v11869_v9 = vor.u32 %v14582_v33, %v11868_v21  ;;  %v11873_v44 = vor.u32 %v14580_v15, %v11870_v17  ;;  %v12044_v21 = vld [vmem:[#allocation18 + $0x480] sm:$0xf]  ;;  %v14626_v33 = vld [vmem:[#allocation18 + $0x48c] sm:$0xf0]  ;;  %v14624_v15 = vld [vmem:[#allocation18 + $0x484] sm:$0xf] }
 0x623   : > { %v12046_v17 = vld [vmem:[#allocation18 + $0x490] sm:$0xf0]  ;;  %v12045_v19 = vor.u32 %v14626_v33, %v12044_v21  ;;  %v14547_v21 = vld [vmem:[#allocation18 + $0x214] sm:$0xf0]  ;;  %v14545_v33 = vld [vmem:[#allocation18 + $0x20c] sm:$0xf] }
 0x624   : > { %5215 = vmatpush.bf16.msrb.mxu3 %v11701_v16  ;;  %5228 = vmatpush.bf16.msra.mxu0 %v11705_v31  ;;  %v14638_v16 = vld [vmem:[#allocation18 + $0x4ec] sm:$0xf0]  ;;  %v14636_v31 = vld [vmem:[#allocation18 + $0x4e4] sm:$0xf] }
 0x625   : > { %v12093_v47 = vor.u32 %v14638_v16, %v12092_v14  ;;  %v12097_v55 = vor.u32 %v14636_v31, %v12094_v18  ;;  %v11797_v14 = vor.u32 %v14563_v38, %v11796_v10  ;;  %v11801_v16 = vor.u32 %v14561_v22, %v11798_v43  ;;  %v11780_v31 = vld [vmem:[#allocation18 + $0x268] sm:$0xf]  ;;  %v11782_v18 = vld [vmem:[#allocation18 + $0x278] sm:$0xf0]  ;;  %v14607_v10 = vld [vmem:[#allocation18 + $0x3f4] sm:$0xf0] }
 0x626   : > { %5689 = vmatpush.bf16.msra.mxu1 %v11933_v27  ;;  %5702 = vmatpush.bf16.msra.mxu2 %v11937_v29  ;;  %v14483_v27 = vld [vmem:[#allocation18 + $0x14] sm:$0xf0]  ;;  %v14481_v29 = vld [vmem:[#allocation18 + $0xc] sm:$0xf]  ;;  %v11974_v22 = vld [vmem:[#allocation18 + $0x3f8] sm:$0xf0] }
 0x627   : > { %v14605_v38 = vld [vmem:[#allocation18 + $0x3ec] sm:$0xf] }
 0x628   : > { %5216 = vmatpush.bf16.msrb.mxu3 %v11685_v5  ;;  %5229 = vmatpush.bf16.msra.mxu0 %v11689_v51  ;;  %v14575_v5 = vld [vmem:[#allocation18 + $0x2f4] sm:$0xf0]  ;;  %v14573_v51 = vld [vmem:[#allocation18 + $0x2ec] sm:$0xf] }
 0x629   : > { %v11845_v50 = vor.u32 %v14575_v5, %v11844_v39  ;;  %v14616_v39 = vld [vmem:[#allocation18 + $0x444] sm:$0xf] }
 0x62a   : > { %5690 = vmatpush.bf16.msra.mxu1 %v11917_v8  ;;  %5703 = vmatpush.bf16.msra.mxu2 %v11921_v60  ;;  %v11605_v8 = vor.u32 %v14483_v27, %v11604_v30  ;;  %v11609_v60 = vor.u32 %v14481_v29, %v11606_v42  ;;  %v12033_v27 = vor.u32 %v14620_v48, %v12030_v61  ;;  %v12012_v29 = vld [vmem:[#allocation18 + $0x440] sm:$0xf]  ;;  %v14618_v42 = vld [vmem:[#allocation18 + $0x44c] sm:$0xf0]  ;;  %v14664_v61 = vld [vmem:[#allocation18 + $0x5c4] sm:$0xf] }
 0x62b   : > { %v14666_v48 = vld [vmem:[#allocation18 + $0x5cc] sm:$0xf0] }
 0x62c   : > { %5217 = vmatpush.bf16.msrb.mxu3 %v11669_v32  ;;  %5230 = vmatpush.bf16.msra.mxu0 %v11673_v41  ;;  %v11849_v32 = vor.u32 %v14573_v51, %v11846_v56  ;;  %v11828_v41 = vld [vmem:[#allocation18 + $0x2c8] sm:$0xf]  ;;  %v14555_v56 = vld [vmem:[#allocation18 + $0x254] sm:$0xf0] }
 0x62d   : > { %5444 = vmatmul.bf16.vlgmr.msrb.gmra.mxu1 %v17584_v23  ;;  %5457 = vmatmul.bf16.vlgmr.msrb.gmra.mxu2 %v17584_v23  ;;  %v11764_v51 = vld [vmem:[#allocation18 + $0x248] sm:$0xf] }
 0x62e   : > { %5691 = vmatpush.bf16.msra.mxu1 %v11901_v62  ;;  %5704 = vmatpush.bf16.msra.mxu2 %v11905_v34  ;;  %v12077_v62 = vor.u32 %v14634_v0, %v12076_v63  ;;  %v12081_v34 = vor.u32 %v14632_v26, %v12078_v12  ;;  %v12013_v63 = vor.u32 %v14618_v42, %v12012_v29  ;;  %v14614_v0 = vld [vmem:[#allocation18 + $0x42c] sm:$0xf0]  ;;  %v14612_v26 = vld [vmem:[#allocation18 + $0x424] sm:$0xf]  ;;  %v11998_v12 = vld [vmem:[#allocation18 + $0x430] sm:$0xf0] }
 0x62f   : > { %5010 = vmatmul.bf16.vlgmr.msra.gmra.mxu3 %v17579_v13  ;;  %5023 = vmatmul.bf16.vlgmr.msrb.gmra.mxu0 %v17579_v13  ;;  %v11958_v29 = vld [vmem:[#allocation18 + $0x3d8] sm:$0xf0]  ;;  %v17603_v42 = vrot.slane %v17574_v59, 2 }
 0x630   : > { %5218 = vmatpush.bf16.msrb.mxu3 %v11653_v36  ;;  %5231 = vmatpush.bf16.msra.mxu0 %v11657_v46  ;;  %v11829_v36 = vor.u32 %v14571_v52, %v11828_v41  ;;  %v11833_v46 = vor.u32 %v14569_v25, %v11830_v35  ;;  %v11748_v52 = vld [vmem:[#allocation18 + $0x228] sm:$0xf]  ;;  %v14551_v25 = vld [vmem:[#allocation18 + $0x234] sm:$0xf0]  ;;  %v14549_v35 = vld [vmem:[#allocation18 + $0x22c] sm:$0xf] }
 0x632   : > { %5692 = vmatpush.bf16.msra.mxu1 %v11885_v2  ;;  %5705 = vmatpush.bf16.msra.mxu2 %v11889_v45  ;;  %v12061_v2 = vor.u32 %v14630_v49, %v12060_v11  ;;  %v12065_v45 = vor.u32 %v14628_v1, %v12062_v20  ;;  %v12001_v49 = vor.u32 %v14612_v26, %v11998_v12  ;;  %v14610_v1 = vld [vmem:[#allocation18 + $0x40c] sm:$0xf0]  ;;  %v14608_v20 = vld [vmem:[#allocation18 + $0x404] sm:$0xf] }
 0x634   : > { %5219 = vmatpush.bf16.msrb.mxu3 %v11637_v37  ;;  %5232 = vmatpush.bf16.msra.mxu0 %v11641_v54  ;;  %v11813_v37 = vor.u32 %v14567_v57, %v11812_v53  ;;  %v11817_v54 = vor.u32 %v14565_v28, %v11814_v6  ;;  %v14670_v53 = vld [vmem:[#allocation18 + $0x5ec] sm:$0xf0]  ;;  %v14668_v57 = vld [vmem:[#allocation18 + $0x5e4] sm:$0xf]  ;;  %v11749_v28 = vor.u32 %v14551_v25, %v11748_v52 }
 0x635   : > { %v14656_v52 = vld [vmem:[#allocation18 + $0x584] sm:$0xf] }
 0x636   : > { %5693 = vmatpush.bf16.msra.mxu1 %v11869_v9  ;;  %5706 = vmatpush.bf16.msra.mxu2 %v11873_v44  ;;  %v12049_v9 = vor.u32 %v14624_v15, %v12046_v17  ;;  %v12028_v44 = vld [vmem:[#allocation18 + $0x460] sm:$0xf]  ;;  %v11734_v15 = vld [vmem:[#allocation18 + $0x218] sm:$0xf0]  ;;  %v11972_v17 = vld [vmem:[#allocation18 + $0x3e8] sm:$0xf] }
 0x637   : > { %v12029_v30 = vor.u32 %v14622_v7, %v12028_v44  ;;  %v11737_v44 = vor.u32 %v14545_v33, %v11734_v15  ;;  %v12204_v7 = vld [vmem:[#allocation18 + $0x5c0] sm:$0xf]  ;;  %v11908_v33 = vld [vmem:[#allocation18 + $0x368] sm:$0xf]  ;;  %v17612_v15 = vpop.f32.mrf.mxu3 }
 0x638   : > { %5220 = vmatpush.bf16.msrb.mxu3 %v11621_v4  ;;  %5233 = vmatpush.bf16.msra.mxu0 %v11625_v58  ;;  %v14559_v4 = vld [vmem:[#allocation18 + $0x274] sm:$0xf0]  ;;  %v14557_v58 = vld [vmem:[#allocation18 + $0x26c] sm:$0xf] }
 0x639   : > { %v11785_v5 = vor.u32 %v14557_v58, %v11782_v18  ;;  %v11956_v58 = vld [vmem:[#allocation18 + $0x3c8] sm:$0xf] }
 0x63a   : > { %5694 = vmatpush.bf16.msra.mxu1 %v11853_v24  ;;  %5707 = vmatpush.bf16.msra.mxu2 %v11857_v3  ;;  %v12014_v24 = vld [vmem:[#allocation18 + $0x450] sm:$0xf0]  ;;  %v11781_v3 = vor.u32 %v14559_v4, %v11780_v31  ;;  %v11977_v31 = vor.u32 %v14605_v38, %v11974_v22  ;;  %v14650_v38 = vld [vmem:[#allocation18 + $0x54c] sm:$0xf0] }
 0x63b   : > { %v12206_v4 = vld [vmem:[#allocation18 + $0x5d0] sm:$0xf0] }
 0x63c   : > { %5221 = vmatpush.bf16.msrb.mxu3 %v11605_v8  ;;  %5234 = vmatpush.bf16.msra.mxu0 %v11609_v60  ;;  %v12017_v8 = vor.u32 %v14616_v39, %v12014_v24  ;;  %v11996_v60 = vld [vmem:[#allocation18 + $0x420] sm:$0xf]  ;;  %v12205_v39 = vor.u32 %v14666_v48, %v12204_v7  ;;  %v12209_v24 = vor.u32 %v14664_v61, %v12206_v4  ;;  %v14587_v61 = vld [vmem:[#allocation18 + $0x354] sm:$0xf0] }
 0x63d   : > { %5695 = vmatmul.bf16.vlgmr.msra.gmra.mxu1 %v17591_v40  ;;  %5708 = vmatmul.bf16.vlgmr.msra.gmra.mxu2 %v17591_v40  ;;  %v11997_v11 = vor.u32 %v14614_v0, %v11996_v60  ;;  %v14597_v60 = vld [vmem:[#allocation18 + $0x3ac] sm:$0xf]  ;;  %v11942_v0 = vld [vmem:[#allocation18 + $0x3b8] sm:$0xf0] }
 0x63e   : > { %5938 = vmatpush.bf16.msrb.mxu1 %v12093_v47  ;;  %5951 = vmatpush.bf16.msrb.mxu2 %v12097_v55  ;;  %v14553_v47 = vld [vmem:[#allocation18 + $0x24c] sm:$0xf]  ;;  %v11766_v55 = vld [vmem:[#allocation18 + $0x258] sm:$0xf0] }
 0x63f   : > { %5222 = vmatmul.bf16.vlgmr.msrb.gmra.mxu3 %v17574_v59  ;;  %5235 = vmatmul.bf16.vlgmr.msra.gmra.mxu0 %v17574_v59  ;;  %v11769_v41 = vor.u32 %v14553_v47, %v11766_v55  ;;  %v14660_v47 = vld [vmem:[#allocation18 + $0x5a4] sm:$0xf]  ;;  %v12190_v55 = vld [vmem:[#allocation18 + $0x5b0] sm:$0xf0] }
 0x640   : > { %5462 = vmatpush.bf16.msra.mxu3 %v11845_v50  ;;  %5475 = vmatpush.bf16.msrb.mxu0 %v11849_v32  ;;  %v17597_v50 = vpop.f32.mrf.mxu0  ;;  %v11765_v32 = vor.u32 %v14555_v56, %v11764_v51  ;;  %v12193_v12 = vor.u32 %v14660_v47, %v12190_v55 }
 0x642   : > { %5939 = vmatpush.bf16.msrb.mxu1 %v12077_v62  ;;  %5952 = vmatpush.bf16.msrb.mxu2 %v12081_v34  ;;  %v11750_v62 = vld [vmem:[#allocation18 + $0x238] sm:$0xf0]  ;;  %v11980_v34 = vld [vmem:[#allocation18 + $0x400] sm:$0xf] }
 0x643   : > { %v11753_v6 = vor.u32 %v14549_v35, %v11750_v62 }
 0x644   : > { %5463 = vmatpush.bf16.msra.mxu3 %v11829_v36  ;;  %5476 = vmatpush.bf16.msrb.mxu0 %v11833_v46  ;;  %v11982_v36 = vld [vmem:[#allocation18 + $0x410] sm:$0xf0]  ;;  %v12220_v46 = vld [vmem:[#allocation18 + $0x5e0] sm:$0xf] }
 0x645   : > { %v12221_v43 = vor.u32 %v14670_v53, %v12220_v46 }
 0x646   : > { %5940 = vmatpush.bf16.msrb.mxu1 %v12061_v2  ;;  %5953 = vmatpush.bf16.msrb.mxu2 %v12065_v45  ;;  %v12222_v2 = vld [vmem:[#allocation18 + $0x5f0] sm:$0xf0]  ;;  %v11732_v45 = vld [vmem:[#allocation18 + $0x208] sm:$0xf] }
 0x648   : > { %5464 = vmatpush.bf16.msra.mxu3 %v11813_v37  ;;  %5477 = vmatpush.bf16.msrb.mxu0 %v11817_v54  ;;  %v11981_v37 = vor.u32 %v14610_v1, %v11980_v34  ;;  %v11985_v54 = vor.u32 %v14608_v20, %v11982_v36  ;;  %v11945_v34 = vor.u32 %v14597_v60, %v11942_v0  ;;  %v14595_v1 = vld [vmem:[#allocation18 + $0x394] sm:$0xf0]  ;;  %v14593_v20 = vld [vmem:[#allocation18 + $0x38c] sm:$0xf]  ;;  %v11926_v36 = vld [vmem:[#allocation18 + $0x398] sm:$0xf0]  ;;  %v4652_v0 = vpop.f32.mrf.mxu3 }
 0x649   : > { %v11878_v60 = vld [vmem:[#allocation18 + $0x338] sm:$0xf0] }
 0x64a   : > { %5941 = vmatpush.bf16.msrb.mxu1 %v12045_v19  ;;  %5954 = vmatpush.bf16.msrb.mxu2 %v12049_v9  ;;  %v12225_v19 = vor.u32 %v14668_v57, %v12222_v2  ;;  %v11733_v9 = vor.u32 %v14547_v21, %v11732_v45  ;;  %v12156_v57 = vld [vmem:[#allocation18 + $0x560] sm:$0xf]  ;;  %v11929_v2 = vor.u32 %v14593_v20, %v11926_v36  ;;  %v14652_v45 = vld [vmem:[#allocation18 + $0x564] sm:$0xf]  ;;  %v12158_v21 = vld [vmem:[#allocation18 + $0x570] sm:$0xf0] }
 0x64b   : > { %v14702_v36 = vld [vmem:[#allocation18 + $0x6ec] sm:$0xf0] }
 0x64c   : > { %5465 = vmatpush.bf16.msra.mxu3 %v11797_v14  ;;  %5478 = vmatpush.bf16.msrb.mxu0 %v11801_v16  ;;  %v17599_v14 = vpop.f32.mrf.mxu0  ;;  %v11973_v16 = vor.u32 %v14607_v10, %v11972_v17  ;;  %v14591_v17 = vld [vmem:[#allocation18 + $0x374] sm:$0xf0]  ;;  %v12140_v10 = vld [vmem:[#allocation18 + $0x540] sm:$0xf] }
 0x64d   : > { %v11465_v18 = vmul.f32 -1.442695, %v17599_v14  ;;  %v11909_v7 = vor.u32 %v14591_v17, %v11908_v33 }
 0x64e   : > { %5942 = vmatpush.bf16.msrb.mxu1 %v12029_v30  ;;  %5955 = vmatpush.bf16.msrb.mxu2 %v12033_v27  ;;  %v14603_v30 = vld [vmem:[#allocation18 + $0x3d4] sm:$0xf0]  ;;  %v14601_v27 = vld [vmem:[#allocation18 + $0x3cc] sm:$0xf] }
 0x64f   : > { %15461 = vpow2.f32 %v11465_v18  ;;  %v11957_v51 = vor.u32 %v14603_v30, %v11956_v58  ;;  %v11961_v56 = vor.u32 %v14601_v27, %v11958_v29  ;;  %v12141_v58 = vor.u32 %v14650_v38, %v12140_v10  ;;  %v12124_v18 = vld [vmem:[#allocation18 + $0x520] sm:$0xf]  ;;  %v14646_v30 = vld [vmem:[#allocation18 + $0x52c] sm:$0xf0]  ;;  %v12102_v10 = vld [vmem:[#allocation18 + $0x4f8] sm:$0xf0] }
 0x650   : > { %5466 = vmatpush.bf16.msra.mxu3 %v11781_v3  ;;  %5479 = vmatpush.bf16.msrb.mxu0 %v11785_v5  ;;  %v12188_v3 = vld [vmem:[#allocation18 + $0x5a0] sm:$0xf]  ;;  %v14662_v5 = vld [vmem:[#allocation18 + $0x5ac] sm:$0xf0] }
 0x651   : > { %v12189_v26 = vor.u32 %v14662_v5, %v12188_v3  ;;  %v14644_v3 = vld [vmem:[#allocation18 + $0x524] sm:$0xf]  ;;  %v12126_v5 = vld [vmem:[#allocation18 + $0x530] sm:$0xf0] }
 0x652   : > { %5943 = vmatpush.bf16.msrb.mxu1 %v12013_v63  ;;  %5956 = vmatpush.bf16.msrb.mxu2 %v12017_v8  ;;  %v11940_v63 = vld [vmem:[#allocation18 + $0x3a8] sm:$0xf]  ;;  %v14599_v8 = vld [vmem:[#allocation18 + $0x3b4] sm:$0xf0] }
 0x653   : > { %v11941_v62 = vor.u32 %v14599_v8, %v11940_v63  ;;  %v14583_v63 = vld [vmem:[#allocation18 + $0x334] sm:$0xf0]  ;;  %v14581_v8 = vld [vmem:[#allocation18 + $0x32c] sm:$0xf] }
 0x654   : > { %5467 = vmatpush.bf16.msra.mxu3 %v11765_v32  ;;  %5480 = vmatpush.bf16.msrb.mxu0 %v11769_v41  ;;  %v12172_v32 = vld [vmem:[#allocation18 + $0x580] sm:$0xf]  ;;  %v14658_v41 = vld [vmem:[#allocation18 + $0x58c] sm:$0xf0]  ;;  %v4675_v25 = vpop.f32.mrf.mxu0 }
 0x655   : > { %v15462_v35 = vpop.eup %15461  ;;  %v12129_v25 = vor.u32 %v14644_v3, %v12126_v5 }
 0x656   : > { %5944 = vmatpush.bf16.msrb.mxu1 %v11997_v11  ;;  %5957 = vmatpush.bf16.msrb.mxu2 %v12001_v49  ;;  %v12174_v11 = vld [vmem:[#allocation18 + $0x590] sm:$0xf0]  ;;  %v11924_v49 = vld [vmem:[#allocation18 + $0x388] sm:$0xf]  ;;  %v17609_v46 = vadd.f32 1.0, %v15462_v35 }
 0x657   : > { %v12177_v53 = vor.u32 %v14656_v52, %v12174_v11  ;;  %v12125_v52 = vor.u32 %v14646_v30, %v12124_v18  ;;  %v12110_v35 = vld [vmem:[#allocation18 + $0x510] sm:$0xf0]  ;;  %v12348_v11 = vld [vmem:[#allocation18 + $0x6e0] sm:$0xf]  ;;  %v12084_v30 = vld [vmem:[#allocation18 + $0x4c8] sm:$0xf] }
 0x658   : > { %5468 = vmatpush.bf16.msra.mxu3 %v11749_v28  ;;  %5481 = vmatpush.bf16.msrb.mxu0 %v11753_v6  ;;  %v14654_v28 = vld [vmem:[#allocation18 + $0x56c] sm:$0xf0]  ;;  %15463 = vrcp.f32 %v17609_v46  ;;  %v11925_v6 = vor.u32 %v14595_v1, %v11924_v49  ;;  %vm4727_vm12 = vweird.f32 %v17609_v46  ;;  %v4731_v55 = vand.u32 2147483647, %v17609_v46  ;;  %v12334_v18 = vld [vmem:[#allocation18 + $0x6d0] sm:$0xf0] }
 0x659   : > { %v12157_v22 = vor.u32 %v14654_v28, %v12156_v57  ;;  %v11881_v1 = vor.u32 %v14581_v8, %v11878_v60  ;;  %v11860_v57 = vld [vmem:[#allocation18 + $0x308] sm:$0xf]  ;;  %v14579_v28 = vld [vmem:[#allocation18 + $0x314] sm:$0xf0]  ;;  %v12318_v8 = vld [vmem:[#allocation18 + $0x6b0] sm:$0xf0] }
 0x65a   : > { %5945 = vmatpush.bf16.msrb.mxu1 %v11981_v37  ;;  %5958 = vmatpush.bf16.msrb.mxu2 %v11985_v54  ;;  %v14589_v37 = vld [vmem:[#allocation18 + $0x36c] sm:$0xf]  ;;  %v11910_v54 = vld [vmem:[#allocation18 + $0x378] sm:$0xf0]  ;;  %vm4732_vm15 = vcmp.eq.f32.partialorder %v4731_v55, 8.507059e+37 }
 0x65b   : > { %v11913_v48 = vor.u32 %v14589_v37, %v11910_v54  ;;  %v14639_v37 = vld [vmem:[#allocation18 + $0x4f4] sm:$0xf0]  ;;  %v14637_v54 = vld [vmem:[#allocation18 + $0x4ec] sm:$0xf]  ;;  %v12068_v60 = vld [vmem:[#allocation18 + $0x4a8] sm:$0xf] }
 0x65c   : > { %5469 = vmatpush.bf16.msra.mxu3 %v11733_v9  ;;  %5482 = vmatpush.bf16.msrb.mxu0 %v11737_v44  ;;  %v12142_v9 = vld [vmem:[#allocation18 + $0x550] sm:$0xf0]  ;;  %v11892_v44 = vld [vmem:[#allocation18 + $0x348] sm:$0xf] }
 0x65d   : > { %5946 = vmatmul.bf16.vlgmr.msrb.gmra.mxu1 %v17603_v42  ;;  %5959 = vmatmul.bf16.vlgmr.msrb.gmra.mxu2 %v17603_v42 }
 0x65e   : > { %6189 = vmatpush.bf16.msra.mxu1 %v12221_v43  ;;  %6202 = vmatpush.bf16.msra.mxu2 %v12225_v19  ;;  %v12161_v43 = vor.u32 %v14652_v45, %v12158_v21  ;;  %v14648_v19 = vld [vmem:[#allocation18 + $0x544] sm:$0xf]  ;;  %v15464_v4 = vpop.eup %15463  ;;  %v12100_v45 = vld [vmem:[#allocation18 + $0x4e8] sm:$0xf] }
 0x65f   : > { %5470 = vmatmul.bf16.vlgmr.msra.gmra.mxu3 %v17584_v23  ;;  %5483 = vmatmul.bf16.vlgmr.msrb.gmra.mxu0 %v17584_v23  ;;  %v12173_v23 = vor.u32 %v14658_v41, %v12172_v32  ;;  %v4723_v27 = vmul.f32 %v15464_v4, %v17609_v46  ;;  %v12145_v29 = vor.u32 %v14648_v19, %v12142_v9  ;;  %vm4728_vm13 = vweird.f32 %v15464_v4  ;;  %v14640_v32 = vld [vmem:[#allocation18 + $0x504] sm:$0xf] }
 0x660   : > { %5713 = vmatpush.bf16.msrb.mxu3 %v11973_v16  ;;  %5726 = vmatpush.bf16.msra.mxu0 %v11977_v31  ;;  %v14585_v16 = vld [vmem:[#allocation18 + $0x34c] sm:$0xf]  ;;  %v11894_v31 = vld [vmem:[#allocation18 + $0x358] sm:$0xf0]  ;;  %vm17621_vm14 = vmor %vm4727_vm12, %vm4728_vm13  ;;  %v12113_v33 = vor.u32 %v14640_v32, %v12110_v35  ;;  %v4679_v19 = vmul.f32 0.9, %v4652_v0  ;;  %v11861_v9 = vor.u32 %v14579_v28, %v11860_v57 }
 0x661   : > { %v4724_v47 = vsub.f32 1.0, %v4723_v27  ;;  %v14635_v27 = vld [vmem:[#allocation18 + $0x4d4] sm:$0xf0]  ;;  %v14686_v57 = vld [vmem:[#allocation18 + $0x66c] sm:$0xf0] }
 0x662   : > { %6190 = vmatpush.bf16.msra.mxu1 %v12205_v39  ;;  %6203 = vmatpush.bf16.msra.mxu2 %v12209_v24  ;;  %v11893_v39 = vor.u32 %v14587_v61, %v11892_v44  ;;  %v11897_v24 = vor.u32 %v14585_v16, %v11894_v31  ;;  %v14696_v61 = vld [vmem:[#allocation18 + $0x6c4] sm:$0xf]  ;;  %v4654_v16 = vpop.f32.mrf.mxu3  ;;  %v14631_v0 = vld [vmem:[#allocation18 + $0x4b4] sm:$0xf0] }
 0x663   : > { %v4725_v41 = vmul.f32 %v15464_v4, %v4724_v47  ;;  %v12337_v5 = vor.u32 %v14696_v61, %v12334_v18  ;;  %v12085_v47 = vor.u32 %v14635_v27, %v12084_v30  ;;  %v12069_v35 = vor.u32 %v14631_v0, %v12068_v60  ;;  %v12022_v61 = vld [vmem:[#allocation18 + $0x458] sm:$0xf0]  ;;  %v14676_v27 = vld [vmem:[#allocation18 + $0x624] sm:$0xf]  ;;  %v12238_v60 = vld [vmem:[#allocation18 + $0x610] sm:$0xf0] }
 0x664   : > { %5714 = vmatpush.bf16.msrb.mxu3 %v11957_v51  ;;  %5727 = vmatpush.bf16.msra.mxu0 %v11961_v56  ;;  %v4733_v51 = vand.u32 2147483648, %v17609_v46  ;;  %v11876_v56 = vld [vmem:[#allocation18 + $0x328] sm:$0xf] }
 0x665   : > { %v11877_v49 = vor.u32 %v14583_v63, %v11876_v56  ;;  %v4726_v20 = vadd.f32 %v15464_v4, %v4725_v41  ;;  %v14694_v56 = vld [vmem:[#allocation18 + $0x6ac] sm:$0xf0]  ;;  %v14692_v63 = vld [vmem:[#allocation18 + $0x6a4] sm:$0xf] }
 0x666   : > { %6191 = vmatpush.bf16.msra.mxu1 %v12189_v26  ;;  %6204 = vmatpush.bf16.msra.mxu2 %v12193_v12  ;;  %v12108_v26 = vld [vmem:[#allocation18 + $0x500] sm:$0xf]  ;;  %v14642_v12 = vld [vmem:[#allocation18 + $0x50c] sm:$0xf0]  ;;  %v12321_v41 = vor.u32 %v14692_v63, %v12318_v8  ;;  %v14672_v8 = vld [vmem:[#allocation18 + $0x604] sm:$0xf] }
 0x667   : > { %v4730_v46 = vsel %vm17621_vm14, %v15464_v4, %v4726_v20  ;;  %v12109_v21 = vor.u32 %v14642_v12, %v12108_v26  ;;  %v12101_v4 = vor.u32 %v14639_v37, %v12100_v45  ;;  %v14629_v26 = vld [vmem:[#allocation18 + $0x4ac] sm:$0xf]  ;;  %v12070_v12 = vld [vmem:[#allocation18 + $0x4b8] sm:$0xf0]  ;;  %v12036_v45 = vld [vmem:[#allocation18 + $0x468] sm:$0xf] }
 0x668   : > { %5715 = vmatpush.bf16.msrb.mxu3 %v11941_v62  ;;  %5728 = vmatpush.bf16.msra.mxu0 %v11945_v34  ;;  %v4734_v34 = vor.u32 1.1754944e-38, %v4733_v51  ;;  %v12316_v51 = vld [vmem:[#allocation18 + $0x6a0] sm:$0xf]  ;;  %v12073_v62 = vor.u32 %v14629_v26, %v12070_v12  ;;  %v14625_v20 = vld [vmem:[#allocation18 + $0x48c] sm:$0xf] }
 0x669   : > { %v12317_v32 = vor.u32 %v14694_v56, %v12316_v51  ;;  %v12006_v51 = vld [vmem:[#allocation18 + $0x438] sm:$0xf0]  ;;  %v12236_v56 = vld [vmem:[#allocation18 + $0x600] sm:$0xf]  ;;  %v14674_v63 = vld [vmem:[#allocation18 + $0x60c] sm:$0xf0] }
 0x66a   : > { %6192 = vmatpush.bf16.msra.mxu1 %v12173_v23  ;;  %6205 = vmatpush.bf16.msra.mxu2 %v12177_v53  ;;  %v14700_v23 = vld [vmem:[#allocation18 + $0x6e4] sm:$0xf]  ;;  %v12350_v53 = vld [vmem:[#allocation18 + $0x6f0] sm:$0xf0]  ;;  %v4735_v17 = vsel %vm4732_vm15, %v4734_v34, %v4730_v46  ;;  %v12476_v12 = vld [vmem:[#allocation18 + $0x7e0] sm:$0xf] }
 0x66b   : > { %v4739_v38 = vmul.f32 %v4735_v17, %v17599_v14  ;;  %v14688_v34 = vld [vmem:[#allocation18 + $0x684] sm:$0xf]  ;;  %v12038_v17 = vld [vmem:[#allocation18 + $0x478] sm:$0xf0] }
 0x66c   : > { %5716 = vmatpush.bf16.msrb.mxu3 %v11925_v6  ;;  %5729 = vmatpush.bf16.msra.mxu0 %v11929_v2  ;;  %v14577_v6 = vld [vmem:[#allocation18 + $0x30c] sm:$0xf]  ;;  %v11862_v2 = vld [vmem:[#allocation18 + $0x318] sm:$0xf0] }
 0x66d   : > { %v11865_v44 = vor.u32 %v14577_v6, %v11862_v2  ;;  %v4742_v31 = vmul.f32 0.1, %v4739_v38  ;;  %v14684_v6 = vld [vmem:[#allocation18 + $0x664] sm:$0xf]  ;;  %v12286_v2 = vld [vmem:[#allocation18 + $0x670] sm:$0xf0] }
 0x66e   : > { %6193 = vmatpush.bf16.msra.mxu1 %v12157_v22  ;;  %6206 = vmatpush.bf16.msra.mxu2 %v12161_v43  ;;  %v12349_v22 = vor.u32 %v14702_v36, %v12348_v11  ;;  %v12353_v43 = vor.u32 %v14700_v23, %v12350_v53  ;;  %v12302_v11 = vld [vmem:[#allocation18 + $0x690] sm:$0xf0]  ;;  %v12054_v36 = vld [vmem:[#allocation18 + $0x498] sm:$0xf0]  ;;  %v12284_v53 = vld [vmem:[#allocation18 + $0x660] sm:$0xf] }
 0x66f   : > { %v17628_v14 = vadd.f32 %v4742_v31, %v4679_v19  ;;  %v12057_v46 = vor.u32 %v14625_v20, %v12054_v36  ;;  %v12285_v37 = vor.u32 %v14686_v57, %v12284_v53  ;;  %v14682_v38 = vld [vmem:[#allocation18 + $0x64c] sm:$0xf0]  ;;  %v14680_v19 = vld [vmem:[#allocation18 + $0x644] sm:$0xf]  ;;  %v14671_v20 = vld [vmem:[#allocation18 + $0x5f4] sm:$0xf0] }
 0x670   : > { %5717 = vmatpush.bf16.msrb.mxu3 %v11909_v7  ;;  %5730 = vmatpush.bf16.msra.mxu0 %v11913_v48  ;;  %v12332_v7 = vld [vmem:[#allocation18 + $0x6c0] sm:$0xf]  ;;  %v14698_v48 = vld [vmem:[#allocation18 + $0x6cc] sm:$0xf0]  ;;  %v14669_v36 = vld [vmem:[#allocation18 + $0x5ec] sm:$0xf] }
 0x671   : > { %v12333_v3 = vor.u32 %v14698_v48, %v12332_v7  ;;  %v14619_v7 = vld [vmem:[#allocation18 + $0x454] sm:$0xf0]  ;;  %v14617_v48 = vld [vmem:[#allocation18 + $0x44c] sm:$0xf] }
 0x672   : > { %6194 = vmatpush.bf16.msra.mxu1 %v12141_v58  ;;  %6207 = vmatpush.bf16.msra.mxu2 %v12145_v29  ;;  %v12105_v58 = vor.u32 %v14637_v54, %v12102_v10  ;;  %v14633_v29 = vld [vmem:[#allocation18 + $0x4cc] sm:$0xf]  ;;  %v12289_v54 = vor.u32 %v14684_v6, %v12286_v2  ;;  %v12268_v10 = vld [vmem:[#allocation18 + $0x640] sm:$0xf]  ;;  %v12025_v30 = vor.u32 %v14617_v48, %v12022_v61  ;;  %v14730_v2 = vld [vmem:[#allocation18 + $0x7cc] sm:$0xf0] }
 0x673   : > { %v12269_v16 = vor.u32 %v14682_v38, %v12268_v10  ;;  %v12460_v6 = vld [vmem:[#allocation18 + $0x7c0] sm:$0xf]  ;;  %v14665_v10 = vld [vmem:[#allocation18 + $0x5cc] sm:$0xf]  ;;  %v12214_v38 = vld [vmem:[#allocation18 + $0x5d8] sm:$0xf0] }
 0x674   : > { %5718 = vmatpush.bf16.msrb.mxu3 %v11893_v39  ;;  %5731 = vmatpush.bf16.msra.mxu0 %v11897_v24  ;;  %v12086_v39 = vld [vmem:[#allocation18 + $0x4d8] sm:$0xf0]  ;;  %v17631_v24 = vrot.slane %v17579_v13, 2  ;;  %v12217_v48 = vor.u32 %v14665_v10, %v12214_v38  ;;  %v14724_v61 = vld [vmem:[#allocation18 + $0x7a4] sm:$0xf] }
 0x675   : > { %v12089_v55 = vor.u32 %v14633_v29, %v12086_v39  ;;  %v12254_v29 = vld [vmem:[#allocation18 + $0x630] sm:$0xf0]  ;;  %v12004_v39 = vld [vmem:[#allocation18 + $0x428] sm:$0xf]  ;;  %v12150_v10 = vld [vmem:[#allocation18 + $0x558] sm:$0xf0] }
 0x676   : > { %6195 = vmatpush.bf16.msra.mxu1 %v12125_v52  ;;  %6208 = vmatpush.bf16.msra.mxu2 %v12129_v25  ;;  %v12300_v52 = vld [vmem:[#allocation18 + $0x680] sm:$0xf]  ;;  %v14690_v25 = vld [vmem:[#allocation18 + $0x68c] sm:$0xf0] }
 0x677   : > { %v12301_v23 = vor.u32 %v14690_v25, %v12300_v52  ;;  %v12478_v52 = vld [vmem:[#allocation18 + $0x7f0] sm:$0xf0]  ;;  %v11988_v25 = vld [vmem:[#allocation18 + $0x408] sm:$0xf] }
 0x678   : > { %5719 = vmatpush.bf16.msrb.mxu3 %v11877_v49  ;;  %5732 = vmatpush.bf16.msra.mxu0 %v11881_v1  ;;  %v12052_v49 = vld [vmem:[#allocation18 + $0x488] sm:$0xf]  ;;  %v14627_v1 = vld [vmem:[#allocation18 + $0x494] sm:$0xf0] }
 0x679   : > { %v12053_v28 = vor.u32 %v14627_v1, %v12052_v49  ;;  %v12237_v49 = vor.u32 %v14674_v63, %v12236_v56  ;;  %v12241_v1 = vor.u32 %v14672_v8, %v12238_v60  ;;  %v14720_v56 = vld [vmem:[#allocation18 + $0x784] sm:$0xf]  ;;  %v14659_v63 = vld [vmem:[#allocation18 + $0x594] sm:$0xf0]  ;;  %v14657_v8 = vld [vmem:[#allocation18 + $0x58c] sm:$0xf] }
 0x67a   : > { %6196 = vmatpush.bf16.msra.mxu1 %v12109_v21  ;;  %6209 = vmatpush.bf16.msra.mxu2 %v12113_v33  ;;  %v14623_v21 = vld [vmem:[#allocation18 + $0x474] sm:$0xf0]  ;;  %v14621_v33 = vld [vmem:[#allocation18 + $0x46c] sm:$0xf]  ;;  %v12182_v60 = vld [vmem:[#allocation18 + $0x598] sm:$0xf0] }
 0x67c   : > { %5720 = vmatpush.bf16.msrb.mxu3 %v11861_v9  ;;  %5733 = vmatpush.bf16.msra.mxu0 %v11865_v44  ;;  %v12270_v9 = vld [vmem:[#allocation18 + $0x650] sm:$0xf0]  ;;  %v12020_v44 = vld [vmem:[#allocation18 + $0x448] sm:$0xf] }
 0x67d   : > { %6197 = vmatmul.bf16.vlgmr.msra.gmra.mxu1 %v17631_v24  ;;  %6210 = vmatmul.bf16.vlgmr.msra.gmra.mxu2 %v17631_v24  ;;  %v12273_v31 = vor.u32 %v14680_v19, %v12270_v9  ;;  %v12021_v18 = vor.u32 %v14619_v7, %v12020_v44  ;;  %v12444_v9 = vld [vmem:[#allocation18 + $0x7a0] sm:$0xf]  ;;  %v14726_v44 = vld [vmem:[#allocation18 + $0x7ac] sm:$0xf0] }
 0x67e   : > { %6440 = vmatpush.bf16.msrb.mxu1 %v12349_v22  ;;  %6453 = vmatpush.bf16.msrb.mxu2 %v12353_v43  ;;  %v12037_v22 = vor.u32 %v14623_v21, %v12036_v45  ;;  %v12041_v43 = vor.u32 %v14621_v33, %v12038_v17  ;;  %v14728_v33 = vld [vmem:[#allocation18 + $0x7c4] sm:$0xf]  ;;  %v12462_v17 = vld [vmem:[#allocation18 + $0x7d0] sm:$0xf0] }
 0x67f   : > { %5721 = vmatmul.bf16.vlgmr.msrb.gmra.mxu3 %v17591_v40  ;;  %5734 = vmatmul.bf16.vlgmr.msra.gmra.mxu0 %v17591_v40  ;;  %v12305_v40 = vor.u32 %v14688_v34, %v12302_v11  ;;  %v11990_v34 = vld [vmem:[#allocation18 + $0x418] sm:$0xf0]  ;;  %v12228_v11 = vld [vmem:[#allocation18 + $0x5e8] sm:$0xf]  ;;  %v12465_v19 = vor.u32 %v14728_v33, %v12462_v17 }
 0x680   : > { %5964 = vmatpush.bf16.msra.mxu3 %v12101_v4  ;;  %5977 = vmatpush.bf16.msrb.mxu0 %v12105_v58  ;;  %v12252_v4 = vld [vmem:[#allocation18 + $0x620] sm:$0xf]  ;;  %v14678_v58 = vld [vmem:[#allocation18 + $0x62c] sm:$0xf0]  ;;  %v12229_v45 = vor.u32 %v14671_v20, %v12228_v11  ;;  %v14655_v11 = vld [vmem:[#allocation18 + $0x574] sm:$0xf0] }
 0x681   : > { %v12148_v33 = vld [vmem:[#allocation18 + $0x548] sm:$0xf] }
 0x682   : > { %6441 = vmatpush.bf16.msrb.mxu1 %v12333_v3  ;;  %6454 = vmatpush.bf16.msrb.mxu2 %v12337_v5  ;;  %v14615_v3 = vld [vmem:[#allocation18 + $0x434] sm:$0xf0]  ;;  %v14613_v5 = vld [vmem:[#allocation18 + $0x42c] sm:$0xf] }
 0x683   : > { %v12005_v0 = vor.u32 %v14615_v3, %v12004_v39  ;;  %v12009_v26 = vor.u32 %v14613_v5, %v12006_v51 }
 0x684   : > { %5965 = vmatpush.bf16.msra.mxu3 %v12085_v47  ;;  %5978 = vmatpush.bf16.msrb.mxu0 %v12089_v55  ;;  %v12253_v47 = vor.u32 %v14678_v58, %v12252_v4  ;;  %v12257_v55 = vor.u32 %v14676_v27, %v12254_v29  ;;  %v14663_v4 = vld [vmem:[#allocation18 + $0x5b4] sm:$0xf0]  ;;  %v14661_v58 = vld [vmem:[#allocation18 + $0x5ac] sm:$0xf]  ;;  %v12428_v27 = vld [vmem:[#allocation18 + $0x780] sm:$0xf] }
 0x685   : > { %v14722_v29 = vld [vmem:[#allocation18 + $0x78c] sm:$0xf0] }
 0x686   : > { %6442 = vmatpush.bf16.msrb.mxu1 %v12317_v32  ;;  %6455 = vmatpush.bf16.msrb.mxu2 %v12321_v41  ;;  %v14734_v32 = vld [vmem:[#allocation18 + $0x7ec] sm:$0xf0]  ;;  %v14732_v41 = vld [vmem:[#allocation18 + $0x7e4] sm:$0xf] }
 0x687   : > { %v12477_v53 = vor.u32 %v14734_v32, %v12476_v12  ;;  %v12481_v57 = vor.u32 %v14732_v41, %v12478_v52  ;;  %v12412_v32 = vld [vmem:[#allocation18 + $0x760] sm:$0xf]  ;;  %v14718_v41 = vld [vmem:[#allocation18 + $0x76c] sm:$0xf0] }
 0x688   : > { %5966 = vmatpush.bf16.msra.mxu3 %v12069_v35  ;;  %5979 = vmatpush.bf16.msrb.mxu0 %v12073_v62  ;;  %v14611_v35 = vld [vmem:[#allocation18 + $0x414] sm:$0xf0]  ;;  %v14609_v62 = vld [vmem:[#allocation18 + $0x40c] sm:$0xf] }
 0x68a   : > { %6443 = vmatpush.bf16.msrb.mxu1 %v12301_v23  ;;  %6456 = vmatpush.bf16.msrb.mxu2 %v12305_v40  ;;  %v12230_v23 = vld [vmem:[#allocation18 + $0x5f8] sm:$0xf0]  ;;  %v11464_v40 = vmul.f32 -1.442695, %v17597_v50 }
 0x68b   : > { %v12233_v21 = vor.u32 %v14669_v36, %v12230_v23  ;;  %v12413_v23 = vor.u32 %v14718_v41, %v12412_v32  ;;  %v12606_v32 = vld [vmem:[#allocation18 + $0x8f0] sm:$0xf0]  ;;  %v12116_v41 = vld [vmem:[#allocation18 + $0x508] sm:$0xf] }
 0x68c   : > { %5967 = vmatpush.bf16.msra.mxu3 %v12053_v28  ;;  %5980 = vmatpush.bf16.msrb.mxu0 %v12057_v46  ;;  %v11989_v28 = vor.u32 %v14611_v35, %v11988_v25  ;;  %v11993_v46 = vor.u32 %v14609_v62, %v11990_v34  ;;  %15465 = vpow2.f32 %v11464_v40  ;;  %v12185_v25 = vor.u32 %v14657_v8, %v12182_v60  ;;  %v14716_v35 = vld [vmem:[#allocation18 + $0x764] sm:$0xf]  ;;  %v12414_v62 = vld [vmem:[#allocation18 + $0x770] sm:$0xf0]  ;;  %v12164_v34 = vld [vmem:[#allocation18 + $0x568] sm:$0xf] }
 0x68d   : > { %v12417_v40 = vor.u32 %v14716_v35, %v12414_v62  ;;  %v12604_v8 = vld [vmem:[#allocation18 + $0x8e0] sm:$0xf]  ;;  %v14766_v60 = vld [vmem:[#allocation18 + $0x8ec] sm:$0xf0]  ;;  %v14641_v35 = vld [vmem:[#allocation18 + $0x50c] sm:$0xf] }
 0x68e   : > { %6444 = vmatpush.bf16.msrb.mxu1 %v12285_v37  ;;  %6457 = vmatpush.bf16.msrb.mxu2 %v12289_v54  ;;  %v12212_v37 = vld [vmem:[#allocation18 + $0x5c8] sm:$0xf]  ;;  %v14667_v54 = vld [vmem:[#allocation18 + $0x5d4] sm:$0xf0]  ;;  %v12118_v62 = vld [vmem:[#allocation18 + $0x518] sm:$0xf0] }
 0x68f   : > { %v12213_v7 = vor.u32 %v14667_v54, %v12212_v37  ;;  %v14651_v37 = vld [vmem:[#allocation18 + $0x554] sm:$0xf0]  ;;  %v14649_v54 = vld [vmem:[#allocation18 + $0x54c] sm:$0xf] }
 0x690   : > { %5968 = vmatpush.bf16.msra.mxu3 %v12037_v22  ;;  %5981 = vmatpush.bf16.msrb.mxu0 %v12041_v43  ;;  %v17639_v22 = vrot.slane %v17574_v59, 3  ;;  %v12461_v43 = vor.u32 %v14730_v2, %v12460_v6  ;;  %v12445_v59 = vor.u32 %v14726_v44, %v12444_v9  ;;  %v12165_v6 = vor.u32 %v14655_v11, %v12164_v34  ;;  %v12380_v9 = vld [vmem:[#allocation18 + $0x720] sm:$0xf]  ;;  %v14710_v44 = vld [vmem:[#allocation18 + $0x72c] sm:$0xf0] }
 0x691   : > { %v12356_v34 = vld [vmem:[#allocation18 + $0x6e8] sm:$0xf] }
 0x692   : > { %6445 = vmatpush.bf16.msrb.mxu1 %v12269_v16  ;;  %6458 = vmatpush.bf16.msrb.mxu2 %v12273_v31  ;;  %v12446_v16 = vld [vmem:[#allocation18 + $0x7b0] sm:$0xf0]  ;;  %v12196_v31 = vld [vmem:[#allocation18 + $0x5a8] sm:$0xf]  ;;  %v15466_v39 = vpop.eup %15465 }
 0x693   : > { %v12197_v5 = vor.u32 %v14663_v4, %v12196_v31  ;;  %v12132_v31 = vld [vmem:[#allocation18 + $0x528] sm:$0xf]  ;;  %v14647_v4 = vld [vmem:[#allocation18 + $0x534] sm:$0xf0] }
 0x694   : > { %5969 = vmatpush.bf16.msra.mxu3 %v12021_v18  ;;  %5982 = vmatpush.bf16.msrb.mxu0 %v12025_v30  ;;  %v12198_v18 = vld [vmem:[#allocation18 + $0x5b8] sm:$0xf0]  ;;  %v12449_v30 = vor.u32 %v14724_v61, %v12446_v16  ;;  %v14708_v61 = vld [vmem:[#allocation18 + $0x724] sm:$0xf]  ;;  %v12382_v16 = vld [vmem:[#allocation18 + $0x730] sm:$0xf0] }
 0x695   : > { %v12201_v51 = vor.u32 %v14661_v58, %v12198_v18  ;;  %v14645_v58 = vld [vmem:[#allocation18 + $0x52c] sm:$0xf]  ;;  %v12134_v18 = vld [vmem:[#allocation18 + $0x538] sm:$0xf0] }
 0x696   : > { %6446 = vmatpush.bf16.msrb.mxu1 %v12253_v47  ;;  %6459 = vmatpush.bf16.msrb.mxu2 %v12257_v55  ;;  %v12430_v47 = vld [vmem:[#allocation18 + $0x790] sm:$0xf0]  ;;  %v12180_v55 = vld [vmem:[#allocation18 + $0x588] sm:$0xf] }
 0x697   : > { %v12433_v12 = vor.u32 %v14720_v56, %v12430_v47  ;;  %v12181_v52 = vor.u32 %v14659_v63, %v12180_v55  ;;  %v12133_v55 = vor.u32 %v14647_v4, %v12132_v31  ;;  %v12137_v63 = vor.u32 %v14645_v58, %v12134_v18  ;;  %v12572_v31 = vld [vmem:[#allocation18 + $0x8a0] sm:$0xf] }
 0x698   : > { %5970 = vmatpush.bf16.msra.mxu3 %v12005_v0  ;;  %5983 = vmatpush.bf16.msrb.mxu0 %v12009_v26  ;;  %v12429_v26 = vor.u32 %v14722_v29, %v12428_v27  ;;  %v12364_v27 = vld [vmem:[#allocation18 + $0x700] sm:$0xf]  ;;  %v12381_v29 = vor.u32 %v14710_v44, %v12380_v9 }
 0x69a   : > { %6447 = vmatpush.bf16.msrb.mxu1 %v12237_v49  ;;  %6460 = vmatpush.bf16.msrb.mxu2 %v12241_v1  ;;  %v5197_v3 = vpop.f32.mrf.mxu1  ;;  %v14653_v49 = vld [vmem:[#allocation18 + $0x56c] sm:$0xf]  ;;  %v12166_v1 = vld [vmem:[#allocation18 + $0x578] sm:$0xf0] }
 0x69b   : > { %v12169_v2 = vor.u32 %v14653_v49, %v12166_v1  ;;  %v14703_v1 = vld [vmem:[#allocation18 + $0x6f4] sm:$0xf0] }
 0x69c   : > { %5971 = vmatpush.bf16.msra.mxu3 %v11989_v28  ;;  %5984 = vmatpush.bf16.msrb.mxu0 %v11993_v46  ;;  %v4998_v0 = vpop.f32.mrf.mxu0 }
 0x69d   : > { %6448 = vmatmul.bf16.vlgmr.msrb.gmra.mxu1 %v17639_v22  ;;  %6461 = vmatmul.bf16.vlgmr.msrb.gmra.mxu2 %v17639_v22 }
 0x69e   : > { %6691 = vmatpush.bf16.msra.mxu1 %v12477_v53  ;;  %6704 = vmatpush.bf16.msra.mxu2 %v12481_v57  ;;  %v12396_v53 = vld [vmem:[#allocation18 + $0x740] sm:$0xf]  ;;  %v14714_v57 = vld [vmem:[#allocation18 + $0x74c] sm:$0xf0] }
 0x69f   : > { %5972 = vmatmul.bf16.vlgmr.msra.gmra.mxu3 %v17603_v42  ;;  %5985 = vmatmul.bf16.vlgmr.msrb.gmra.mxu0 %v17603_v42  ;;  %v17645_v42 = vadd.f32 1.0, %v15466_v39  ;;  %v12385_v39 = vor.u32 %v14708_v61, %v12382_v16 }
 0x6a0   : > { %6215 = vmatpush.bf16.msrb.mxu3 %v12229_v45  ;;  %6228 = vmatpush.bf16.msra.mxu0 %v12233_v21  ;;  %v5210_v20 = vpop.f32.mrf.mxu2  ;;  %v14712_v45 = vld [vmem:[#allocation18 + $0x744] sm:$0xf]  ;;  %v12398_v21 = vld [vmem:[#allocation18 + $0x750] sm:$0xf0] }
 0x6a1   : > { %v17647_v36 = vadd.f32 %v5210_v20, %v4998_v0  ;;  %15467 = vrcp.f32 %v17645_v42  ;;  %v14764_v0 = vld [vmem:[#allocation18 + $0x8e4] sm:$0xf]  ;;  %v14701_v20 = vld [vmem:[#allocation18 + $0x6ec] sm:$0xf]  ;;  %vm4712_vm4 = vweird.f32 %v17645_v42 }
 0x6a2   : > { %6692 = vmatpush.bf16.msra.mxu1 %v12461_v43  ;;  %6705 = vmatpush.bf16.msra.mxu2 %v12465_v19  ;;  %v4985_v28 = vpop.f32.mrf.mxu3  ;;  %v5199_v46 = vpop.f32.mrf.mxu1  ;;  %v12397_v43 = vor.u32 %v14714_v57, %v12396_v53  ;;  %v12401_v19 = vor.u32 %v14712_v45, %v12398_v21  ;;  %v12609_v53 = vor.u32 %v14764_v0, %v12606_v32  ;;  %v12558_v32 = vld [vmem:[#allocation18 + $0x890] sm:$0xf0] }
 0x6a3   : > { %v5198_v17 = vadd.f32 %v5197_v3, %v4985_v28  ;;  %v14706_v3 = vld [vmem:[#allocation18 + $0x70c] sm:$0xf0]  ;;  %v12121_v46 = vor.u32 %v14641_v35, %v12118_v62  ;;  %v12357_v21 = vor.u32 %v14703_v1, %v12356_v34  ;;  %v12310_v35 = vld [vmem:[#allocation18 + $0x698] sm:$0xf0]  ;;  %v4716_v34 = vand.u32 2147483647, %v17645_v42 }
 0x6a4   : > { %6216 = vmatpush.bf16.msrb.mxu3 %v12213_v7  ;;  %6229 = vmatpush.bf16.msra.mxu0 %v12217_v48  ;;  %v5000_v38 = vpop.f32.mrf.mxu0  ;;  %v12149_v7 = vor.u32 %v14651_v37, %v12148_v33  ;;  %v12153_v48 = vor.u32 %v14649_v54, %v12150_v10  ;;  %v12365_v11 = vor.u32 %v14706_v3, %v12364_v27  ;;  %v12590_v37 = vld [vmem:[#allocation18 + $0x8d0] sm:$0xf0]  ;;  %v12340_v54 = vld [vmem:[#allocation18 + $0x6c8] sm:$0xf]  ;;  %v14693_v3 = vld [vmem:[#allocation18 + $0x6ac] sm:$0xf] }
 0x6a5   : > { %v14699_v38 = vld [vmem:[#allocation18 + $0x6d4] sm:$0xf0]  ;;  %v12574_v27 = vld [vmem:[#allocation18 + $0x8b0] sm:$0xf0]  ;;  %vm4717_vm1 = vcmp.eq.f32.partialorder %v4716_v34, 8.507059e+37 }
 0x6a6   : > { %6693 = vmatpush.bf16.msra.mxu1 %v12445_v59  ;;  %6706 = vmatpush.bf16.msra.mxu2 %v12449_v30  ;;  %v12341_v58 = vor.u32 %v14699_v38, %v12340_v54  ;;  %v12494_v62 = vld [vmem:[#allocation18 + $0x810] sm:$0xf0] }
 0x6a7   : > { %v17650_v59 = vpop.eup %15467 }
 0x6a8   : > { %6217 = vmatpush.bf16.msrb.mxu3 %v12197_v5  ;;  %6230 = vmatpush.bf16.msra.mxu0 %v12201_v51  ;;  %v5212_v30 = vpop.f32.mrf.mxu2  ;;  %v14704_v5 = vld [vmem:[#allocation18 + $0x704] sm:$0xf]  ;;  %v12366_v51 = vld [vmem:[#allocation18 + $0x710] sm:$0xf0]  ;;  %vm4713_vm0 = vweird.f32 %v17650_v59 }
 0x6a9   : > { %v12369_v49 = vor.u32 %v14704_v5, %v12366_v51  ;;  %v14756_v30 = vld [vmem:[#allocation18 + $0x8a4] sm:$0xf]  ;;  %v4718_v5 = vand.u32 2147483648, %v17645_v42  ;;  %vm17677_vm3 = vmor %vm4712_vm4, %vm4713_vm0 }
 0x6aa   : > { %6694 = vmatpush.bf16.msra.mxu1 %v12429_v26  ;;  %6707 = vmatpush.bf16.msra.mxu2 %v12433_v12  ;;  %v4987_v56 = vpop.f32.mrf.mxu3  ;;  %v5445_v47 = vpop.f32.mrf.mxu1  ;;  %v4708_v26 = vmul.f32 %v17650_v59, %v17645_v42 }
 0x6ab   : > { %v17654_v12 = vadd.f32 %v5445_v47, %v5198_v17  ;;  %v14760_v17 = vld [vmem:[#allocation18 + $0x8c4] sm:$0xf]  ;;  %v12577_v47 = vor.u32 %v14756_v30, %v12574_v27  ;;  %v4719_v1 = vor.u32 1.1754944e-38, %v4718_v5  ;;  %v14742_v5 = vld [vmem:[#allocation18 + $0x82c] sm:$0xf0] }
 0x6ac   : > { %6218 = vmatpush.bf16.msrb.mxu3 %v12181_v52  ;;  %6231 = vmatpush.bf16.msra.mxu0 %v12185_v25  ;;  %v14643_v52 = vld [vmem:[#allocation18 + $0x514] sm:$0xf0]  ;;  %v17656_v25 = vpop.f32.mrf.mxu0  ;;  %v4709_v57 = vsub.f32 1.0, %v4708_v26  ;;  %v12593_v16 = vor.u32 %v14760_v17, %v12590_v37  ;;  %v14752_v26 = vld [vmem:[#allocation18 + $0x884] sm:$0xf] }
 0x6ad   : > { %v12117_v28 = vor.u32 %v14643_v52, %v12116_v41  ;;  %v12308_v41 = vld [vmem:[#allocation18 + $0x688] sm:$0xf]  ;;  %v14689_v52 = vld [vmem:[#allocation18 + $0x68c] sm:$0xf]  ;;  %v12294_v17 = vld [vmem:[#allocation18 + $0x678] sm:$0xf0] }
 0x6ae   : > { %6695 = vmatpush.bf16.msra.mxu1 %v12413_v23  ;;  %6708 = vmatpush.bf16.msra.mxu2 %v12417_v40  ;;  %v12358_v23 = vld [vmem:[#allocation18 + $0x6f8] sm:$0xf0]  ;;  %v12605_v40 = vor.u32 %v14766_v60, %v12604_v8  ;;  %v12313_v42 = vor.u32 %v14689_v52, %v12310_v35  ;;  %v14738_v35 = vld [vmem:[#allocation18 + $0x80c] sm:$0xf0] }
 0x6af   : > { %v12361_v33 = vor.u32 %v14701_v20, %v12358_v23 }
 0x6b0   : > { %6219 = vmatpush.bf16.msrb.mxu3 %v12165_v6  ;;  %6232 = vmatpush.bf16.msra.mxu0 %v12169_v2  ;;  %v12588_v6 = vld [vmem:[#allocation18 + $0x8c0] sm:$0xf]  ;;  %v14762_v2 = vld [vmem:[#allocation18 + $0x8cc] sm:$0xf0]  ;;  %v5458_v45 = vpop.f32.mrf.mxu2 }
 0x6b1   : > { %v17659_v10 = vadd.f32 %v5458_v45, %v17647_v36  ;;  %v12589_v61 = vor.u32 %v14762_v2, %v12588_v6  ;;  %v14758_v36 = vld [vmem:[#allocation18 + $0x8ac] sm:$0xf0]  ;;  %v14748_v6 = vld [vmem:[#allocation18 + $0x864] sm:$0xf]  ;;  %v12542_v2 = vld [vmem:[#allocation18 + $0x870] sm:$0xf0] }
 0x6b2   : > { %6696 = vmatpush.bf16.msra.mxu1 %v12397_v43  ;;  %6709 = vmatpush.bf16.msra.mxu2 %v12401_v19  ;;  %v14697_v43 = vld [vmem:[#allocation18 + $0x6cc] sm:$0xf]  ;;  %v12342_v19 = vld [vmem:[#allocation18 + $0x6d8] sm:$0xf0]  ;;  %v17661_v9 = vpop.f32.mrf.mxu3  ;;  %v5447_v44 = vpop.f32.mrf.mxu1  ;;  %v12573_v56 = vor.u32 %v14758_v36, %v12572_v31  ;;  %v12292_v45 = vld [vmem:[#allocation18 + $0x668] sm:$0xf] }
 0x6b3   : > { %v12345_v18 = vor.u32 %v14697_v43, %v12342_v19  ;;  %v12545_v43 = vor.u32 %v14748_v6, %v12542_v2  ;;  %v14746_v19 = vld [vmem:[#allocation18 + $0x84c] sm:$0xf0]  ;;  %v12276_v31 = vld [vmem:[#allocation18 + $0x648] sm:$0xf] }
 0x6b4   : > { %6220 = vmatpush.bf16.msrb.mxu3 %v12149_v7  ;;  %6233 = vmatpush.bf16.msra.mxu0 %v12153_v48  ;;  %v4710_v7 = vmul.f32 %v17650_v59, %v4709_v57  ;;  %v17665_v48 = vrot.slane %v17579_v13, 3  ;;  %v5026_v4 = vpop.f32.mrf.mxu0  ;;  %v12326_v13 = vld [vmem:[#allocation18 + $0x6b8] sm:$0xf0]  ;;  %v14750_v57 = vld [vmem:[#allocation18 + $0x86c] sm:$0xf0] }
 0x6b5   : > { %v12329_v0 = vor.u32 %v14693_v3, %v12326_v13  ;;  %v14683_v4 = vld [vmem:[#allocation18 + $0x654] sm:$0xf0]  ;;  %v12508_v13 = vld [vmem:[#allocation18 + $0x820] sm:$0xf] }
 0x6b6   : > { %6697 = vmatpush.bf16.msra.mxu1 %v12381_v29  ;;  %6710 = vmatpush.bf16.msra.mxu2 %v12385_v39  ;;  %v12324_v29 = vld [vmem:[#allocation18 + $0x6a8] sm:$0xf]  ;;  %v14695_v39 = vld [vmem:[#allocation18 + $0x6b4] sm:$0xf0]  ;;  %v4711_v51 = vadd.f32 %v17650_v59, %v4710_v7 }
 0x6b7   : > { %v12325_v60 = vor.u32 %v14695_v39, %v12324_v29 }
 0x6b8   : > { %6221 = vmatpush.bf16.msrb.mxu3 %v12133_v55  ;;  %6234 = vmatpush.bf16.msra.mxu0 %v12137_v63  ;;  %v12556_v55 = vld [vmem:[#allocation18 + $0x880] sm:$0xf]  ;;  %v14754_v63 = vld [vmem:[#allocation18 + $0x88c] sm:$0xf0]  ;;  %v5460_v8 = vpop.f32.mrf.mxu2 }
 0x6b9   : > { %v12557_v23 = vor.u32 %v14754_v63, %v12556_v55  ;;  %v14740_v55 = vld [vmem:[#allocation18 + $0x824] sm:$0xf]  ;;  %v12260_v63 = vld [vmem:[#allocation18 + $0x628] sm:$0xf]  ;;  %v14679_v8 = vld [vmem:[#allocation18 + $0x634] sm:$0xf0] }
 0x6ba   : > { %6698 = vmatpush.bf16.msra.mxu1 %v12365_v11  ;;  %6711 = vmatpush.bf16.msra.mxu2 %v12369_v49  ;;  %v5013_v11 = vpop.f32.mrf.mxu3  ;;  %v4715_v49 = vsel %vm17677_vm3, %v17650_v59, %v4711_v51  ;;  %v5696_v20 = vpop.f32.mrf.mxu1  ;;  %v14687_v59 = vld [vmem:[#allocation18 + $0x674] sm:$0xf0]  ;;  %v12261_v34 = vor.u32 %v14679_v8, %v12260_v63  ;;  %v14725_v63 = vld [vmem:[#allocation18 + $0x7ac] sm:$0xf] }
 0x6bb   : > { %v4720_v54 = vsel %vm4717_vm1, %v4719_v1, %v4715_v49  ;;  %v12293_v44 = vor.u32 %v14687_v59, %v12292_v45  ;;  %v12732_v49 = vld [vmem:[#allocation18 + $0x9e0] sm:$0xf]  ;;  %v14798_v1 = vld [vmem:[#allocation18 + $0x9ec] sm:$0xf0]  ;;  %v14733_v59 = vld [vmem:[#allocation18 + $0x7ec] sm:$0xf] }
 0x6bc   : > { %6222 = vmatpush.bf16.msrb.mxu3 %v12117_v28  ;;  %6235 = vmatpush.bf16.msra.mxu0 %v12121_v46  ;;  %v17686_v28 = vadd.f32 %v5696_v20, %v17654_v12  ;;  %v12524_v12 = vld [vmem:[#allocation18 + $0x840] sm:$0xf]  ;;  %v14796_v20 = vld [vmem:[#allocation18 + $0x9e4] sm:$0xf] }
 0x6bd   : > { %6699 = vmatmul.bf16.vlgmr.msra.gmra.mxu1 %v17665_v48  ;;  %6712 = vmatmul.bf16.vlgmr.msra.gmra.mxu2 %v17665_v48  ;;  %v12525_v39 = vor.u32 %v14746_v19, %v12524_v12  ;;  %v12716_v19 = vld [vmem:[#allocation18 + $0x9c0] sm:$0xf] }
 0x6be   : > { %6941 = vmatpush.bf16.msrb.mxu1 %v12605_v40  ;;  %6954 = vmatpush.bf16.msrb.mxu2 %v12609_v53  ;;  %v12561_v40 = vor.u32 %v14752_v26, %v12558_v32  ;;  %v12540_v53 = vld [vmem:[#allocation18 + $0x860] sm:$0xf]  ;;  %v4678_v32 = vmul.f32 0.9, %v17612_v15  ;;  %v14673_v15 = vld [vmem:[#allocation18 + $0x60c] sm:$0xf] }
 0x6bf   : > { %6223 = vmatmul.bf16.vlgmr.msrb.gmra.mxu3 %v17631_v24  ;;  %6236 = vmatmul.bf16.vlgmr.msra.gmra.mxu0 %v17631_v24  ;;  %v14691_v24 = vld [vmem:[#allocation18 + $0x694] sm:$0xf0]  ;;  %v12541_v38 = vor.u32 %v14750_v57, %v12540_v53  ;;  %v12244_v53 = vld [vmem:[#allocation18 + $0x608] sm:$0xf] }
 0x6c0   : > { %6466 = vmatpush.bf16.msra.mxu3 %v12357_v21  ;;  %6479 = vmatpush.bf16.msrb.mxu0 %v12361_v33  ;;  %v12309_v46 = vor.u32 %v14691_v24, %v12308_v41  ;;  %v5236_v21 = vpop.f32.mrf.mxu0  ;;  %v14685_v33 = vld [vmem:[#allocation18 + $0x66c] sm:$0xf]  ;;  %v5709_v36 = vpop.f32.mrf.mxu2  ;;  %v12492_v41 = vld [vmem:[#allocation18 + $0x800] sm:$0xf]  ;;  %v12509_v24 = vor.u32 %v14742_v5, %v12508_v13  ;;  %v14675_v57 = vld [vmem:[#allocation18 + $0x614] sm:$0xf0] }
 0x6c1   : > { %v17689_v37 = vadd.f32 %v5236_v21, %v17656_v25  ;;  %v12297_v7 = vor.u32 %v14685_v33, %v12294_v17  ;;  %v4738_v25 = vmul.f32 %v4720_v54, %v17597_v50  ;;  %v17693_v30 = vadd.f32 %v5709_v36, %v17659_v10  ;;  %v12510_v50 = vld [vmem:[#allocation18 + $0x830] sm:$0xf0]  ;;  %v14735_v21 = vld [vmem:[#allocation18 + $0x7f4] sm:$0xf0]  ;;  %v12486_v33 = vld [vmem:[#allocation18 + $0x7f8] sm:$0xf0] }
 0x6c2   : > { %6942 = vmatpush.bf16.msrb.mxu1 %v12589_v61  ;;  %6955 = vmatpush.bf16.msrb.mxu2 %v12593_v16  ;;  %v14744_v61 = vld [vmem:[#allocation18 + $0x844] sm:$0xf]  ;;  %v12526_v16 = vld [vmem:[#allocation18 + $0x850] sm:$0xf0]  ;;  %v5223_v27 = vpop.f32.mrf.mxu3  ;;  %v5698_v29 = vpop.f32.mrf.mxu1  ;;  %v12513_v52 = vor.u32 %v14740_v55, %v12510_v50  ;;  %v12493_v2 = vor.u32 %v14738_v35, %v12492_v41  ;;  %v12733_v17 = vor.u32 %v14798_v1, %v12732_v49  ;;  %v12468_v36 = vld [vmem:[#allocation18 + $0x7c8] sm:$0xf] }
 0x6c3   : > { %v12529_v3 = vor.u32 %v14744_v61, %v12526_v16  ;;  %v17696_v51 = vadd.f32 %v5223_v27, %v17661_v9  ;;  %v4741_v26 = vmul.f32 0.1, %v4738_v25  ;;  %v14736_v9 = vld [vmem:[#allocation18 + $0x804] sm:$0xf]  ;;  %v12489_v61 = vor.u32 %v14733_v59, %v12486_v33  ;;  %v12452_v55 = vld [vmem:[#allocation18 + $0x7a8] sm:$0xf] }
 0x6c4   : > { %6467 = vmatpush.bf16.msra.mxu3 %v12341_v58  ;;  %6480 = vmatpush.bf16.msrb.mxu0 %v12345_v18  ;;  %v14681_v58 = vld [vmem:[#allocation18 + $0x64c] sm:$0xf]  ;;  %v12278_v18 = vld [vmem:[#allocation18 + $0x658] sm:$0xf0]  ;;  %v12497_v45 = vor.u32 %v14736_v9, %v12494_v62  ;;  %v14792_v16 = vld [vmem:[#allocation18 + $0x9c4] sm:$0xf] }
 0x6c5   : > { %v14727_v50 = vld [vmem:[#allocation18 + $0x7b4] sm:$0xf0]  ;;  %v12436_v35 = vld [vmem:[#allocation18 + $0x788] sm:$0xf]  ;;  %v14721_v62 = vld [vmem:[#allocation18 + $0x78c] sm:$0xf] }
 0x6c6   : > { %6943 = vmatpush.bf16.msrb.mxu1 %v12573_v56  ;;  %6956 = vmatpush.bf16.msrb.mxu2 %v12577_v47  ;;  %v12277_v56 = vor.u32 %v14683_v4, %v12276_v31  ;;  %v12281_v47 = vor.u32 %v14681_v58, %v12278_v18  ;;  %v12718_v31 = vld [vmem:[#allocation18 + $0x9d0] sm:$0xf0]  ;;  %v14731_v4 = vld [vmem:[#allocation18 + $0x7d4] sm:$0xf0]  ;;  %v14729_v58 = vld [vmem:[#allocation18 + $0x7cc] sm:$0xf] }
 0x6c7   : > { %v12470_v18 = vld [vmem:[#allocation18 + $0x7d8] sm:$0xf0]  ;;  %v12721_v29 = vor.u32 %v14792_v16, %v12718_v31  ;;  %v12469_v13 = vor.u32 %v14731_v4, %v12468_v36  ;;  %v14723_v9 = vld [vmem:[#allocation18 + $0x794] sm:$0xf0]  ;;  %v12652_v33 = vld [vmem:[#allocation18 + $0x940] sm:$0xf] }
 0x6c8   : > { %6468 = vmatpush.bf16.msra.mxu3 %v12325_v60  ;;  %6481 = vmatpush.bf16.msrb.mxu0 %v12329_v0  ;;  %v5238_v10 = vpop.f32.mrf.mxu0  ;;  %v14677_v60 = vld [vmem:[#allocation18 + $0x62c] sm:$0xf]  ;;  %v12262_v0 = vld [vmem:[#allocation18 + $0x638] sm:$0xf0]  ;;  %v12473_v5 = vor.u32 %v14729_v58, %v12470_v18 }
 0x6c9   : > { %v12265_v11 = vor.u32 %v14677_v60, %v12262_v0  ;;  %v12454_v10 = vld [vmem:[#allocation18 + $0x7b8] sm:$0xf0]  ;;  %v12684_v0 = vld [vmem:[#allocation18 + $0x980] sm:$0xf]  ;;  %v14713_v16 = vld [vmem:[#allocation18 + $0x74c] sm:$0xf] }
 0x6ca   : > { %6944 = vmatpush.bf16.msrb.mxu1 %v12557_v23  ;;  %6957 = vmatpush.bf16.msrb.mxu2 %v12561_v40  ;;  %v5711_v23 = vpop.f32.mrf.mxu2  ;;  %v12734_v40 = vld [vmem:[#allocation18 + $0x9f0] sm:$0xf0]  ;;  %v5225_v6 = vpop.f32.mrf.mxu3  ;;  %v12457_v41 = vor.u32 %v14725_v63, %v12454_v10  ;;  %v12406_v31 = vld [vmem:[#allocation18 + $0x758] sm:$0xf0] }
 0x6cb   : > { %v12737_v54 = vor.u32 %v14796_v20, %v12734_v40  ;;  %v12668_v23 = vld [vmem:[#allocation18 + $0x960] sm:$0xf]  ;;  %v14782_v40 = vld [vmem:[#allocation18 + $0x96c] sm:$0xf0]  ;;  %v12420_v6 = vld [vmem:[#allocation18 + $0x768] sm:$0xf] }
 0x6cc   : > { %6469 = vmatpush.bf16.msra.mxu3 %v12309_v46  ;;  %6482 = vmatpush.bf16.msrb.mxu0 %v12313_v42  ;;  %v12246_v46 = vld [vmem:[#allocation18 + $0x618] sm:$0xf0]  ;;  %v12484_v42 = vld [vmem:[#allocation18 + $0x7e8] sm:$0xf] }
 0x6cd   : > { %v12249_v12 = vor.u32 %v14673_v15, %v12246_v46  ;;  %v14780_v46 = vld [vmem:[#allocation18 + $0x964] sm:$0xf] }
 0x6ce   : > { %6945 = vmatpush.bf16.msrb.mxu1 %v12541_v38  ;;  %6958 = vmatpush.bf16.msrb.mxu2 %v12545_v43  ;;  %v4744_v38 = vadd.f32 %v4741_v26, %v4678_v32  ;;  %v12245_v43 = vor.u32 %v14675_v57, %v12244_v53  ;;  %v14786_v26 = vld [vmem:[#allocation18 + $0x98c] sm:$0xf0]  ;;  %v12453_v32 = vor.u32 %v14727_v50, %v12452_v55  ;;  %v14709_v55 = vld [vmem:[#allocation18 + $0x72c] sm:$0xf]  ;;  %v12390_v50 = vld [vmem:[#allocation18 + $0x738] sm:$0xf0] }
 0x6cf   : > { %v12685_v49 = vor.u32 %v14786_v26, %v12684_v0  ;;  %v12437_v57 = vor.u32 %v14723_v9, %v12436_v35  ;;  %v12622_v0 = vld [vmem:[#allocation18 + $0x910] sm:$0xf0]  ;;  %v14828_v35 = vld [vmem:[#allocation18 + $0xae4] sm:$0xf] }
 0x6d0   : > { %6470 = vmatpush.bf16.msra.mxu3 %v12293_v44  ;;  %6483 = vmatpush.bf16.msrb.mxu0 %v12297_v7  ;;  %v14794_v44 = vld [vmem:[#allocation18 + $0x9cc] sm:$0xf0]  ;;  %v12485_v7 = vor.u32 %v14735_v21, %v12484_v42  ;;  %v17699_v25 = vpack.c.bf16 %v4744_v38, %v4744_v38  ;;  %v12670_v42 = vld [vmem:[#allocation18 + $0x970] sm:$0xf0]  ;;  %v12422_v21 = vld [vmem:[#allocation18 + $0x778] sm:$0xf0] }
 0x6d1   : > { %v12717_v27 = vor.u32 %v14794_v44, %v12716_v19  ;;  %v12673_v59 = vor.u32 %v14780_v46, %v12670_v42  ;;  %v12404_v19 = vld [vmem:[#allocation18 + $0x748] sm:$0xf]  ;;  %v12614_v46 = vld [vmem:[#allocation18 + $0x8f8] sm:$0xf0] }
 0x6d2   : > { %6946 = vmatpush.bf16.msrb.mxu1 %v12525_v39  ;;  %6959 = vmatpush.bf16.msrb.mxu2 %v12529_v3  ;;  %v12700_v39 = vld [vmem:[#allocation18 + $0x9a0] sm:$0xf]  ;;  %v14790_v3 = vld [vmem:[#allocation18 + $0x9ac] sm:$0xf0] }
 0x6d3   : > { %v12701_v8 = vor.u32 %v14790_v3, %v12700_v39  ;;  %v14774_v39 = vld [vmem:[#allocation18 + $0x92c] sm:$0xf0] }
 0x6d4   : > { %6471 = vmatpush.bf16.msra.mxu3 %v12277_v56  ;;  %6484 = vmatpush.bf16.msrb.mxu0 %v12281_v47  ;;  %v14788_v56 = vld [vmem:[#allocation18 + $0x9a4] sm:$0xf]  ;;  %v12702_v47 = vld [vmem:[#allocation18 + $0x9b0] sm:$0xf0] }
 0x6d5   : > { %v12705_v60 = vor.u32 %v14788_v56, %v12702_v47  ;;  %v12388_v56 = vld [vmem:[#allocation18 + $0x728] sm:$0xf]  ;;  %v14711_v47 = vld [vmem:[#allocation18 + $0x734] sm:$0xf0] }
 0x6d6   : > { %6947 = vmatpush.bf16.msrb.mxu1 %v12509_v24  ;;  %6960 = vmatpush.bf16.msrb.mxu2 %v12513_v52  ;;  %v14784_v24 = vld [vmem:[#allocation18 + $0x984] sm:$0xf]  ;;  %v12686_v52 = vld [vmem:[#allocation18 + $0x990] sm:$0xf0] }
 0x6d7   : > { %v12689_v1 = vor.u32 %v14784_v24, %v12686_v52  ;;  %v12860_v24 = vld [vmem:[#allocation18 + $0xae0] sm:$0xf]  ;;  %v14830_v52 = vld [vmem:[#allocation18 + $0xaec] sm:$0xf0] }
 0x6d8   : > { %6472 = vmatpush.bf16.msra.mxu3 %v12261_v34  ;;  %6485 = vmatpush.bf16.msrb.mxu0 %v12265_v11  ;;  %v12438_v34 = vld [vmem:[#allocation18 + $0x798] sm:$0xf0]  ;;  %v12861_v42 = vor.u32 %v14830_v52, %v12860_v24  ;;  %v12796_v52 = vld [vmem:[#allocation18 + $0xa60] sm:$0xf] }
 0x6d9   : > { %v12441_v15 = vor.u32 %v14721_v62, %v12438_v34  ;;  %v12862_v62 = vld [vmem:[#allocation18 + $0xaf0] sm:$0xf0]  ;;  %v12372_v34 = vld [vmem:[#allocation18 + $0x708] sm:$0xf] }
 0x6da   : > { %6948 = vmatpush.bf16.msrb.mxu1 %v12493_v2  ;;  %6961 = vmatpush.bf16.msrb.mxu2 %v12497_v45  ;;  %v5947_v11 = vpop.f32.mrf.mxu1  ;;  %v14719_v2 = vld [vmem:[#allocation18 + $0x774] sm:$0xf0]  ;;  %v14717_v45 = vld [vmem:[#allocation18 + $0x76c] sm:$0xf] }
 0x6db   : > { %v12421_v38 = vor.u32 %v14719_v2, %v12420_v6  ;;  %v12865_v6 = vor.u32 %v14828_v35, %v12862_v62  ;;  %v14814_v35 = vld [vmem:[#allocation18 + $0xa6c] sm:$0xf0] }
 0x6dc   : > { %6473 = vmatpush.bf16.msra.mxu3 %v12245_v43  ;;  %6486 = vmatpush.bf16.msrb.mxu0 %v12249_v12  ;;  %v5484_v20 = vpop.f32.mrf.mxu0  ;;  %v14776_v43 = vld [vmem:[#allocation18 + $0x944] sm:$0xf]  ;;  %v12654_v12 = vld [vmem:[#allocation18 + $0x950] sm:$0xf0] }
 0x6dd   : > { %6949 = vmatmul.bf16.vlgmr.msrb.gmra.mxu1 %v17699_v25  ;;  %6962 = vmatmul.bf16.vlgmr.msrb.gmra.mxu2 %v17699_v25  ;;  %v17709_v53 = vadd.f32 %v5484_v20, %v17689_v37  ;;  %v12425_v37 = vor.u32 %v14717_v45, %v12422_v21  ;;  %v12657_v18 = vor.u32 %v14776_v43, %v12654_v12  ;;  %v12612_v20 = vld [vmem:[#allocation18 + $0x8e8] sm:$0xf]  ;;  %v12844_v21 = vld [vmem:[#allocation18 + $0xac0] sm:$0xf]  ;;  %v14761_v43 = vld [vmem:[#allocation18 + $0x8cc] sm:$0xf] }
 0x6de   : > { %7194 = vmatpush.bf16.msra.mxu1 %v12733_v17  ;;  %7207 = vmatpush.bf16.msra.mxu2 %v12737_v54  ;;  %v14778_v17 = vld [vmem:[#allocation18 + $0x94c] sm:$0xf0]  ;;  %v12598_v12 = vld [vmem:[#allocation18 + $0x8d8] sm:$0xf0] }
 0x6df   : > { %6474 = vmatmul.bf16.vlgmr.msra.gmra.mxu3 %v17639_v22  ;;  %6487 = vmatmul.bf16.vlgmr.msrb.gmra.mxu0 %v17639_v22  ;;  %v17706_v22 = vadd.f32 %v5947_v11, %v17686_v28  ;;  %v12669_v28 = vor.u32 %v14782_v40, %v12668_v23  ;;  %v12653_v58 = vor.u32 %v14778_v17, %v12652_v33  ;;  %v14707_v11 = vld [vmem:[#allocation18 + $0x714] sm:$0xf0]  ;;  %v14824_v17 = vld [vmem:[#allocation18 + $0xac4] sm:$0xf] }
 0x6e0   : > { %6717 = vmatpush.bf16.msrb.mxu3 %v12485_v7  ;;  %6730 = vmatpush.bf16.msra.mxu0 %v12489_v61  ;;  %v5960_v54 = vpop.f32.mrf.mxu2  ;;  %v14715_v61 = vld [vmem:[#allocation18 + $0x754] sm:$0xf0]  ;;  %v12373_v2 = vor.u32 %v14707_v11, %v12372_v34  ;;  %v14812_v11 = vld [vmem:[#allocation18 + $0xa64] sm:$0xf] }
 0x6e1   : > { %v17712_v44 = vadd.f32 %v5960_v54, %v17693_v30  ;;  %v12405_v3 = vor.u32 %v14715_v61, %v12404_v19  ;;  %v12409_v30 = vor.u32 %v14713_v16, %v12406_v31  ;;  %v12846_v54 = vld [vmem:[#allocation18 + $0xad0] sm:$0xf0]  ;;  %v17718_v19 = vshrl.u32 %v17699_v25, 16  ;;  %v12828_v16 = vld [vmem:[#allocation18 + $0xaa0] sm:$0xf] }
 0x6e2   : > { %7195 = vmatpush.bf16.msra.mxu1 %v12717_v27  ;;  %7208 = vmatpush.bf16.msra.mxu2 %v12721_v29  ;;  %v5471_v7 = vpop.f32.mrf.mxu3  ;;  %v5949_v4 = vpop.f32.mrf.mxu1  ;;  %v12636_v29 = vld [vmem:[#allocation18 + $0x920] sm:$0xf]  ;;  %v12849_v61 = vor.u32 %v14824_v17, %v12846_v54  ;;  %v14822_v31 = vld [vmem:[#allocation18 + $0xaac] sm:$0xf0]  ;;  %v14745_v17 = vld [vmem:[#allocation18 + $0x84c] sm:$0xf] }
 0x6e3   : > { %v17715_v36 = vadd.f32 %v5471_v7, %v17696_v51  ;;  %v12620_v51 = vld [vmem:[#allocation18 + $0x900] sm:$0xf]  ;;  %v12637_v63 = vor.u32 %v14774_v39, %v12636_v29  ;;  %v12580_v29 = vld [vmem:[#allocation18 + $0x8a8] sm:$0xf]  ;;  %v14759_v39 = vld [vmem:[#allocation18 + $0x8b4] sm:$0xf0] }
 0x6e4   : > { %6718 = vmatpush.bf16.msrb.mxu3 %v12469_v13  ;;  %6731 = vmatpush.bf16.msra.mxu0 %v12473_v5  ;;  %v5486_v27 = vpop.f32.mrf.mxu0  ;;  %v14772_v13 = vld [vmem:[#allocation18 + $0x924] sm:$0xf]  ;;  %v12638_v5 = vld [vmem:[#allocation18 + $0x930] sm:$0xf0]  ;;  %v12534_v54 = vld [vmem:[#allocation18 + $0x858] sm:$0xf0] }
 0x6e5   : > { %v12641_v10 = vor.u32 %v14772_v13, %v12638_v5  ;;  %v12830_v27 = vld [vmem:[#allocation18 + $0xab0] sm:$0xf0]  ;;  %v12829_v13 = vor.u32 %v14822_v31, %v12828_v16  ;;  %v14806_v16 = vld [vmem:[#allocation18 + $0xa2c] sm:$0xf0] }
 0x6e6   : > { %7196 = vmatpush.bf16.msra.mxu1 %v12701_v8  ;;  %7209 = vmatpush.bf16.msra.mxu2 %v12705_v60  ;;  %v14770_v8 = vld [vmem:[#allocation18 + $0x90c] sm:$0xf0]  ;;  %v14768_v60 = vld [vmem:[#allocation18 + $0x904] sm:$0xf] }
 0x6e7   : > { %v12621_v23 = vor.u32 %v14770_v8, %v12620_v51  ;;  %v12625_v40 = vor.u32 %v14768_v60, %v12622_v0  ;;  %v14816_v51 = vld [vmem:[#allocation18 + $0xa84] sm:$0xf]  ;;  %v14755_v8 = vld [vmem:[#allocation18 + $0x894] sm:$0xf0]  ;;  %v14753_v60 = vld [vmem:[#allocation18 + $0x88c] sm:$0xf] }
 0x6e8   : > { %6719 = vmatpush.bf16.msrb.mxu3 %v12453_v32  ;;  %6732 = vmatpush.bf16.msra.mxu0 %v12457_v41  ;;  %v5962_v26 = vpop.f32.mrf.mxu2  ;;  %v12389_v32 = vor.u32 %v14711_v47, %v12388_v56  ;;  %v12393_v41 = vor.u32 %v14709_v55, %v12390_v50  ;;  %v12812_v56 = vld [vmem:[#allocation18 + $0xa80] sm:$0xf]  ;;  %v14818_v47 = vld [vmem:[#allocation18 + $0xa8c] sm:$0xf0]  ;;  %v12581_v55 = vor.u32 %v14759_v39, %v12580_v29  ;;  %v12566_v0 = vld [vmem:[#allocation18 + $0x898] sm:$0xf0] }
 0x6e9   : > { %v12569_v34 = vor.u32 %v14753_v60, %v12566_v0  ;;  %v14741_v29 = vld [vmem:[#allocation18 + $0x82c] sm:$0xf]  ;;  %v12518_v39 = vld [vmem:[#allocation18 + $0x838] sm:$0xf0]  ;;  %v12990_v60 = vld [vmem:[#allocation18 + $0xbf0] sm:$0xf0] }
 0x6ea   : > { %7197 = vmatpush.bf16.msra.mxu1 %v12685_v49  ;;  %7210 = vmatpush.bf16.msra.mxu2 %v12689_v1  ;;  %v5473_v9 = vpop.f32.mrf.mxu3  ;;  %v14705_v49 = vld [vmem:[#allocation18 + $0x70c] sm:$0xf]  ;;  %v12374_v1 = vld [vmem:[#allocation18 + $0x718] sm:$0xf0]  ;;  %v12500_v0 = vld [vmem:[#allocation18 + $0x808] sm:$0xf] }
 0x6eb   : > { %v12377_v45 = vor.u32 %v14705_v49, %v12374_v1  ;;  %v12798_v49 = vld [vmem:[#allocation18 + $0xa70] sm:$0xf0]  ;;  %v12548_v1 = vld [vmem:[#allocation18 + $0x868] sm:$0xf] }
 0x6ec   : > { %6720 = vmatpush.bf16.msrb.mxu3 %v12437_v57  ;;  %6733 = vmatpush.bf16.msra.mxu0 %v12441_v15  ;;  %v14767_v57 = vld [vmem:[#allocation18 + $0x8f4] sm:$0xf0]  ;;  %v14765_v15 = vld [vmem:[#allocation18 + $0x8ec] sm:$0xf] }
 0x6ed   : > { %v12617_v33 = vor.u32 %v14765_v15, %v12614_v46  ;;  %v12780_v15 = vld [vmem:[#allocation18 + $0xa40] sm:$0xf]  ;;  %v14810_v46 = vld [vmem:[#allocation18 + $0xa4c] sm:$0xf0] }
 0x6ee   : > { %7198 = vmatpush.bf16.msra.mxu1 %v12669_v28  ;;  %7211 = vmatpush.bf16.msra.mxu2 %v12673_v59  ;;  %v14826_v28 = vld [vmem:[#allocation18 + $0xacc] sm:$0xf0]  ;;  %v12613_v59 = vor.u32 %v14767_v57, %v12612_v20  ;;  %v14751_v20 = vld [vmem:[#allocation18 + $0x874] sm:$0xf0]  ;;  %v12801_v57 = vor.u32 %v14812_v11, %v12798_v49  ;;  %v12742_v11 = vld [vmem:[#allocation18 + $0x9f8] sm:$0xf0] }
 0x6ef   : > { %v12845_v7 = vor.u32 %v14826_v28, %v12844_v21  ;;  %v12532_v21 = vld [vmem:[#allocation18 + $0x848] sm:$0xf] }
 0x6f0   : > { %6721 = vmatpush.bf16.msrb.mxu3 %v12421_v38  ;;  %6734 = vmatpush.bf16.msra.mxu0 %v12425_v37  ;;  %v12596_v38 = vld [vmem:[#allocation18 + $0x8c8] sm:$0xf]  ;;  %v14763_v37 = vld [vmem:[#allocation18 + $0x8d4] sm:$0xf0] }
 0x6f1   : > { %v12597_v4 = vor.u32 %v14763_v37, %v12596_v38 }
 0x6f2   : > { %7199 = vmatpush.bf16.msra.mxu1 %v12653_v58  ;;  %7212 = vmatpush.bf16.msra.mxu2 %v12657_v18  ;;  %v12601_v58 = vor.u32 %v14761_v43, %v12598_v12  ;;  %v14820_v18 = vld [vmem:[#allocation18 + $0xaa4] sm:$0xf]  ;;  %v12781_v43 = vor.u32 %v14810_v46, %v12780_v15 }
 0x6f3   : > { %v12833_v5 = vor.u32 %v14820_v18, %v12830_v27  ;;  %v12516_v18 = vld [vmem:[#allocation18 + $0x828] sm:$0xf]  ;;  %v14743_v27 = vld [vmem:[#allocation18 + $0x834] sm:$0xf0]  ;;  %v14856_v46 = vld [vmem:[#allocation18 + $0xbc4] sm:$0xf] }
 0x6f4   : > { %6722 = vmatpush.bf16.msrb.mxu3 %v12405_v3  ;;  %6735 = vmatpush.bf16.msra.mxu0 %v12409_v30  ;;  %v14757_v3 = vld [vmem:[#allocation18 + $0x8ac] sm:$0xf]  ;;  %v12582_v30 = vld [vmem:[#allocation18 + $0x8b8] sm:$0xf0] }
 0x6f5   : > { %v12585_v50 = vor.u32 %v14757_v3, %v12582_v30 }
 0x6f6   : > { %7200 = vmatpush.bf16.msra.mxu1 %v12637_v63  ;;  %7213 = vmatpush.bf16.msra.mxu2 %v12641_v10  ;;  %v12814_v63 = vld [vmem:[#allocation18 + $0xa90] sm:$0xf0]  ;;  %v12564_v10 = vld [vmem:[#allocation18 + $0x888] sm:$0xf] }
 0x6f7   : > { %v12565_v62 = vor.u32 %v14755_v8, %v12564_v10  ;;  %v14860_v10 = vld [vmem:[#allocation18 + $0xbe4] sm:$0xf] }
 0x6f8   : > { %6723 = vmatpush.bf16.msrb.mxu3 %v12389_v32  ;;  %6736 = vmatpush.bf16.msra.mxu0 %v12393_v41  ;;  %v12813_v32 = vor.u32 %v14818_v47, %v12812_v56  ;;  %v12817_v41 = vor.u32 %v14816_v51, %v12814_v63  ;;  %v12750_v56 = vld [vmem:[#allocation18 + $0xa10] sm:$0xf0]  ;;  %v12988_v51 = vld [vmem:[#allocation18 + $0xbe0] sm:$0xf]  ;;  %v14862_v63 = vld [vmem:[#allocation18 + $0xbec] sm:$0xf0] }
 0x6f9   : > { %v12989_v49 = vor.u32 %v14862_v63, %v12988_v51 }
 0x6fa   : > { %7201 = vmatpush.bf16.msra.mxu1 %v12621_v23  ;;  %7214 = vmatpush.bf16.msra.mxu2 %v12625_v40  ;;  %v6198_v26 = vpop.f32.mrf.mxu1  ;;  %v14749_v23 = vld [vmem:[#allocation18 + $0x86c] sm:$0xf]  ;;  %v12550_v40 = vld [vmem:[#allocation18 + $0x878] sm:$0xf0] }
 0x6fc   : > { %6724 = vmatpush.bf16.msrb.mxu3 %v12373_v2  ;;  %6737 = vmatpush.bf16.msra.mxu0 %v12377_v45  ;;  %v5735_v24 = vpop.f32.mrf.mxu0  ;;  %v14808_v2 = vld [vmem:[#allocation18 + $0xa44] sm:$0xf]  ;;  %v12782_v45 = vld [vmem:[#allocation18 + $0xa50] sm:$0xf0] }
 0x6fd   : > { %7202 = vmatmul.bf16.vlgmr.msra.gmra.mxu1 %v17718_v19  ;;  %7215 = vmatmul.bf16.vlgmr.msra.gmra.mxu2 %v17718_v19  ;;  %v17728_v9 = vadd.f32 %v5735_v24, %v17709_v53  ;;  %v12553_v53 = vor.u32 %v14749_v23, %v12550_v40  ;;  %v12785_v12 = vor.u32 %v14808_v2, %v12782_v45  ;;  %v12740_v24 = vld [vmem:[#allocation18 + $0x9e8] sm:$0xf]  ;;  %v12972_v40 = vld [vmem:[#allocation18 + $0xbc0] sm:$0xf]  ;;  %v14793_v2 = vld [vmem:[#allocation18 + $0x9cc] sm:$0xf] }
 0x6fe   : > { %7446 = vmatpush.bf16.msrb.mxu1 %v12861_v42  ;;  %7459 = vmatpush.bf16.msrb.mxu2 %v12865_v6  ;;  %v12549_v6 = vor.u32 %v14751_v20, %v12548_v1  ;;  %v12993_v1 = vor.u32 %v14860_v10, %v12990_v60  ;;  %v12726_v45 = vld [vmem:[#allocation18 + $0x9d8] sm:$0xf0]  ;;  %v12924_v10 = vld [vmem:[#allocation18 + $0xb60] sm:$0xf] }
 0x6ff   : > { %6725 = vmatmul.bf16.vlgmr.msrb.gmra.mxu3 %v17665_v48  ;;  %6738 = vmatmul.bf16.vlgmr.msra.gmra.mxu0 %v17665_v48  ;;  %v17725_v48 = vadd.f32 %v6198_v26, %v17706_v22  ;;  %v12797_v22 = vor.u32 %v14814_v35, %v12796_v52  ;;  %v14739_v26 = vld [vmem:[#allocation18 + $0x814] sm:$0xf0] }
 0x700   : > { %6967 = vmatpush.bf16.msra.mxu3 %v12613_v59  ;;  %6980 = vmatpush.bf16.msrb.mxu0 %v12617_v33  ;;  %v6211_v42 = vpop.f32.mrf.mxu2  ;;  %v14747_v33 = vld [vmem:[#allocation18 + $0x854] sm:$0xf0]  ;;  %v12501_v20 = vor.u32 %v14739_v26, %v12500_v0 }
 0x701   : > { %v17731_v28 = vadd.f32 %v6211_v42, %v17712_v44  ;;  %v12533_v31 = vor.u32 %v14747_v33, %v12532_v21  ;;  %v12537_v44 = vor.u32 %v14745_v17, %v12534_v54  ;;  %v12974_v42 = vld [vmem:[#allocation18 + $0xbd0] sm:$0xf0]  ;;  %v17737_v21 = vrot.slane %v17699_v25, 1  ;;  %v12956_v17 = vld [vmem:[#allocation18 + $0xba0] sm:$0xf] }
 0x702   : > { %7447 = vmatpush.bf16.msrb.mxu1 %v12845_v7  ;;  %7460 = vmatpush.bf16.msrb.mxu2 %v12849_v61  ;;  %v5722_v59 = vpop.f32.mrf.mxu3  ;;  %v6200_v37 = vpop.f32.mrf.mxu1  ;;  %v12764_v61 = vld [vmem:[#allocation18 + $0xa20] sm:$0xf]  ;;  %v12977_v33 = vor.u32 %v14856_v46, %v12974_v42  ;;  %v14854_v54 = vld [vmem:[#allocation18 + $0xbac] sm:$0xf0]  ;;  %v14779_v46 = vld [vmem:[#allocation18 + $0x954] sm:$0xf0] }
 0x703   : > { %v17734_v38 = vadd.f32 %v5722_v59, %v17715_v36  ;;  %v12748_v36 = vld [vmem:[#allocation18 + $0xa00] sm:$0xf]  ;;  %v12765_v3 = vor.u32 %v14806_v16, %v12764_v61  ;;  %v12708_v61 = vld [vmem:[#allocation18 + $0x9a8] sm:$0xf]  ;;  %v14791_v16 = vld [vmem:[#allocation18 + $0x9b4] sm:$0xf0] }
 0x704   : > { %6968 = vmatpush.bf16.msra.mxu3 %v12597_v4  ;;  %6981 = vmatpush.bf16.msrb.mxu0 %v12601_v58  ;;  %v5737_v7 = vpop.f32.mrf.mxu0  ;;  %v14804_v4 = vld [vmem:[#allocation18 + $0xa24] sm:$0xf]  ;;  %v12766_v58 = vld [vmem:[#allocation18 + $0xa30] sm:$0xf0]  ;;  %v14777_v42 = vld [vmem:[#allocation18 + $0x94c] sm:$0xf] }
 0x705   : > { %v12769_v30 = vor.u32 %v14804_v4, %v12766_v58  ;;  %v12958_v7 = vld [vmem:[#allocation18 + $0xbb0] sm:$0xf0]  ;;  %v12957_v4 = vor.u32 %v14854_v54, %v12956_v17  ;;  %v12892_v17 = vld [vmem:[#allocation18 + $0xb20] sm:$0xf]  ;;  %v14838_v54 = vld [vmem:[#allocation18 + $0xb2c] sm:$0xf0] }
 0x706   : > { %7448 = vmatpush.bf16.msrb.mxu1 %v12829_v13  ;;  %7461 = vmatpush.bf16.msrb.mxu2 %v12833_v5  ;;  %v14802_v13 = vld [vmem:[#allocation18 + $0xa0c] sm:$0xf0]  ;;  %v14800_v5 = vld [vmem:[#allocation18 + $0xa04] sm:$0xf] }
 0x707   : > { %v12749_v52 = vor.u32 %v14802_v13, %v12748_v36  ;;  %v12753_v35 = vor.u32 %v14800_v5, %v12750_v56  ;;  %v14848_v36 = vld [vmem:[#allocation18 + $0xb84] sm:$0xf]  ;;  %v14787_v13 = vld [vmem:[#allocation18 + $0x994] sm:$0xf0]  ;;  %v14785_v5 = vld [vmem:[#allocation18 + $0x98c] sm:$0xf] }
 0x708   : > { %6969 = vmatpush.bf16.msra.mxu3 %v12581_v55  ;;  %6982 = vmatpush.bf16.msrb.mxu0 %v12585_v50  ;;  %v6213_v47 = vpop.f32.mrf.mxu2  ;;  %v12517_v55 = vor.u32 %v14743_v27, %v12516_v18  ;;  %v12521_v50 = vor.u32 %v14741_v29, %v12518_v39  ;;  %v12940_v18 = vld [vmem:[#allocation18 + $0xb80] sm:$0xf]  ;;  %v14850_v27 = vld [vmem:[#allocation18 + $0xb8c] sm:$0xf0]  ;;  %v12709_v29 = vor.u32 %v14791_v16, %v12708_v61  ;;  %v12694_v56 = vld [vmem:[#allocation18 + $0x998] sm:$0xf0] }
 0x709   : > { %v12697_v26 = vor.u32 %v14785_v5, %v12694_v56  ;;  %v14775_v61 = vld [vmem:[#allocation18 + $0x934] sm:$0xf0]  ;;  %v14773_v16 = vld [vmem:[#allocation18 + $0x92c] sm:$0xf]  ;;  %v13118_v56 = vld [vmem:[#allocation18 + $0xcf0] sm:$0xf0] }
 0x70a   : > { %7449 = vmatpush.bf16.msrb.mxu1 %v12813_v32  ;;  %7462 = vmatpush.bf16.msrb.mxu2 %v12817_v41  ;;  %v5724_v8 = vpop.f32.mrf.mxu3  ;;  %v14737_v32 = vld [vmem:[#allocation18 + $0x80c] sm:$0xf]  ;;  %v12502_v41 = vld [vmem:[#allocation18 + $0x818] sm:$0xf0] }
 0x70b   : > { %v12505_v23 = vor.u32 %v14737_v32, %v12502_v41  ;;  %v14846_v8 = vld [vmem:[#allocation18 + $0xb6c] sm:$0xf0]  ;;  %v14844_v32 = vld [vmem:[#allocation18 + $0xb64] sm:$0xf]  ;;  %v12926_v41 = vld [vmem:[#allocation18 + $0xb70] sm:$0xf0] }
 0x70c   : > { %6970 = vmatpush.bf16.msra.mxu3 %v12565_v62  ;;  %6983 = vmatpush.bf16.msrb.mxu0 %v12569_v34  ;;  %v14799_v62 = vld [vmem:[#allocation18 + $0x9f4] sm:$0xf0]  ;;  %v14797_v34 = vld [vmem:[#allocation18 + $0x9ec] sm:$0xf] }
 0x70d   : > { %v12745_v15 = vor.u32 %v14797_v34, %v12742_v11  ;;  %v12929_v34 = vor.u32 %v14844_v32, %v12926_v41  ;;  %v12908_v11 = vld [vmem:[#allocation18 + $0xb40] sm:$0xf]  ;;  %v14829_v32 = vld [vmem:[#allocation18 + $0xaec] sm:$0xf]  ;;  %v12870_v41 = vld [vmem:[#allocation18 + $0xaf8] sm:$0xf0] }
 0x70e   : > { %7450 = vmatpush.bf16.msrb.mxu1 %v12797_v22  ;;  %7463 = vmatpush.bf16.msrb.mxu2 %v12801_v57  ;;  %v14858_v22 = vld [vmem:[#allocation18 + $0xbcc] sm:$0xf0]  ;;  %v12741_v57 = vor.u32 %v14799_v62, %v12740_v24  ;;  %v12676_v24 = vld [vmem:[#allocation18 + $0x968] sm:$0xf]  ;;  %v12678_v62 = vld [vmem:[#allocation18 + $0x978] sm:$0xf0] }
 0x70f   : > { %v12973_v59 = vor.u32 %v14858_v22, %v12972_v40  ;;  %v12910_v40 = vld [vmem:[#allocation18 + $0xb50] sm:$0xf0]  ;;  %v12660_v22 = vld [vmem:[#allocation18 + $0x948] sm:$0xf] }
 0x710   : > { %6971 = vmatpush.bf16.msra.mxu3 %v12549_v6  ;;  %6984 = vmatpush.bf16.msrb.mxu0 %v12553_v53  ;;  %v12724_v6 = vld [vmem:[#allocation18 + $0x9c8] sm:$0xf]  ;;  %v14795_v53 = vld [vmem:[#allocation18 + $0x9d4] sm:$0xf0] }
 0x711   : > { %v12725_v37 = vor.u32 %v14795_v53, %v12724_v6  ;;  %v12662_v6 = vld [vmem:[#allocation18 + $0x958] sm:$0xf0] }
 0x712   : > { %7451 = vmatpush.bf16.msrb.mxu1 %v12781_v43  ;;  %7464 = vmatpush.bf16.msrb.mxu2 %v12785_v12  ;;  %v12729_v43 = vor.u32 %v14793_v2, %v12726_v45  ;;  %v14852_v12 = vld [vmem:[#allocation18 + $0xba4] sm:$0xf] }
 0x713   : > { %v12961_v58 = vor.u32 %v14852_v12, %v12958_v7  ;;  %v12894_v12 = vld [vmem:[#allocation18 + $0xb30] sm:$0xf0]  ;;  %v12644_v7 = vld [vmem:[#allocation18 + $0x928] sm:$0xf] }
 0x714   : > { %6972 = vmatpush.bf16.msra.mxu3 %v12533_v31  ;;  %6985 = vmatpush.bf16.msrb.mxu0 %v12537_v44  ;;  %v14789_v31 = vld [vmem:[#allocation18 + $0x9ac] sm:$0xf]  ;;  %v12710_v44 = vld [vmem:[#allocation18 + $0x9b8] sm:$0xf0] }
 0x715   : > { %v12713_v39 = vor.u32 %v14789_v31, %v12710_v44  ;;  %v12646_v31 = vld [vmem:[#allocation18 + $0x938] sm:$0xf0]  ;;  %v12893_v44 = vor.u32 %v14838_v54, %v12892_v17  ;;  %v13086_v17 = vld [vmem:[#allocation18 + $0xcb0] sm:$0xf0]  ;;  %v12836_v54 = vld [vmem:[#allocation18 + $0xaa8] sm:$0xf] }
 0x716   : > { %7452 = vmatpush.bf16.msrb.mxu1 %v12765_v3  ;;  %7465 = vmatpush.bf16.msrb.mxu2 %v12769_v30  ;;  %v12942_v3 = vld [vmem:[#allocation18 + $0xb90] sm:$0xf0]  ;;  %v12692_v30 = vld [vmem:[#allocation18 + $0x988] sm:$0xf] }
 0x717   : > { %v12945_v51 = vor.u32 %v14848_v36, %v12942_v3  ;;  %v12693_v0 = vor.u32 %v14787_v13, %v12692_v30  ;;  %v12649_v36 = vor.u32 %v14773_v16, %v12646_v31  ;;  %v13116_v3 = vld [vmem:[#allocation18 + $0xce0] sm:$0xf]  ;;  %v14894_v30 = vld [vmem:[#allocation18 + $0xcec] sm:$0xf0]  ;;  %v14892_v13 = vld [vmem:[#allocation18 + $0xce4] sm:$0xf] }
 0x718   : > { %6973 = vmatpush.bf16.msra.mxu3 %v12517_v55  ;;  %6986 = vmatpush.bf16.msrb.mxu0 %v12521_v50  ;;  %v12941_v50 = vor.u32 %v14850_v27, %v12940_v18  ;;  %v14832_v18 = vld [vmem:[#allocation18 + $0xb04] sm:$0xf]  ;;  %v12878_v27 = vld [vmem:[#allocation18 + $0xb10] sm:$0xf0]  ;;  %v14882_v16 = vld [vmem:[#allocation18 + $0xc8c] sm:$0xf0] }
 0x71a   : > { %7453 = vmatpush.bf16.msrb.mxu1 %v12749_v52  ;;  %7466 = vmatpush.bf16.msrb.mxu2 %v12753_v35  ;;  %v6449_v47 = vpop.f32.mrf.mxu1  ;;  %v14783_v52 = vld [vmem:[#allocation18 + $0x974] sm:$0xf0]  ;;  %v14781_v35 = vld [vmem:[#allocation18 + $0x96c] sm:$0xf] }
 0x71b   : > { %v17744_v55 = vadd.f32 %v6449_v47, %v17725_v48  ;;  %v12925_v48 = vor.u32 %v14846_v8, %v12924_v10  ;;  %v12628_v47 = vld [vmem:[#allocation18 + $0x908] sm:$0xf] }
 0x71c   : > { %6974 = vmatpush.bf16.msra.mxu3 %v12501_v20  ;;  %6987 = vmatpush.bf16.msrb.mxu0 %v12505_v23  ;;  %v5986_v63 = vpop.f32.mrf.mxu0  ;;  %v12677_v20 = vor.u32 %v14783_v52, %v12676_v24  ;;  %v14840_v23 = vld [vmem:[#allocation18 + $0xb44] sm:$0xf]  ;;  %v12868_v10 = vld [vmem:[#allocation18 + $0xae8] sm:$0xf]  ;;  %v13117_v24 = vor.u32 %v14894_v30, %v13116_v3  ;;  %v13121_v52 = vor.u32 %v14892_v13, %v13118_v56  ;;  %v14878_v56 = vld [vmem:[#allocation18 + $0xc6c] sm:$0xf0] }
 0x71d   : > { %7454 = vmatmul.bf16.vlgmr.msrb.gmra.mxu1 %v17737_v21  ;;  %7467 = vmatmul.bf16.vlgmr.msrb.gmra.mxu2 %v17737_v21  ;;  %v17747_v60 = vadd.f32 %v5986_v63, %v17728_v9  ;;  %v12681_v9 = vor.u32 %v14781_v35, %v12678_v62  ;;  %v12630_v63 = vld [vmem:[#allocation18 + $0x918] sm:$0xf0] }
 0x71e   : > { %7697 = vmatpush.bf16.msra.mxu1 %v12989_v49  ;;  %7710 = vmatpush.bf16.msra.mxu2 %v12993_v1  ;;  %v14842_v49 = vld [vmem:[#allocation18 + $0xb4c] sm:$0xf0] }
 0x71f   : > { %6975 = vmatmul.bf16.vlgmr.msra.gmra.mxu3 %v17699_v25  ;;  %6988 = vmatmul.bf16.vlgmr.msrb.gmra.mxu0 %v17699_v25  ;;  %v12909_v45 = vor.u32 %v14842_v49, %v12908_v11  ;;  %v12873_v49 = vor.u32 %v14829_v32, %v12870_v41  ;;  %v12806_v32 = vld [vmem:[#allocation18 + $0xa78] sm:$0xf0] }
 0x720   : > { %7220 = vmatpush.bf16.msrb.mxu3 %v12741_v57  ;;  %7233 = vmatpush.bf16.msra.mxu0 %v12745_v15  ;;  %v6462_v1 = vpop.f32.mrf.mxu2 }
 0x721   : > { %v17750_v57 = vadd.f32 %v6462_v1, %v17731_v28  ;;  %v12665_v28 = vor.u32 %v14777_v42, %v12662_v6  ;;  %v14888_v1 = vld [vmem:[#allocation18 + $0xcc4] sm:$0xf]  ;;  %v13084_v6 = vld [vmem:[#allocation18 + $0xca0] sm:$0xf] }
 0x722   : > { %7698 = vmatpush.bf16.msra.mxu1 %v12973_v59  ;;  %7711 = vmatpush.bf16.msra.mxu2 %v12977_v33  ;;  %v5973_v15 = vpop.f32.mrf.mxu3  ;;  %v6451_v2 = vpop.f32.mrf.mxu1  ;;  %v12913_v59 = vor.u32 %v14840_v23, %v12910_v40  ;;  %v14827_v23 = vld [vmem:[#allocation18 + $0xad4] sm:$0xf0]  ;;  %v14825_v40 = vld [vmem:[#allocation18 + $0xacc] sm:$0xf] }
 0x723   : > { %v17753_v53 = vadd.f32 %v5973_v15, %v17734_v38  ;;  %v12876_v38 = vld [vmem:[#allocation18 + $0xb00] sm:$0xf]  ;;  %v17756_v15 = vrot.slane %v17718_v19, 1  ;;  %v14886_v2 = vld [vmem:[#allocation18 + $0xcac] sm:$0xf0] }
 0x724   : > { %7221 = vmatpush.bf16.msrb.mxu3 %v12725_v37  ;;  %7234 = vmatpush.bf16.msra.mxu0 %v12729_v43  ;;  %v5988_v33 = vpop.f32.mrf.mxu0  ;;  %v12661_v37 = vor.u32 %v14779_v46, %v12660_v22  ;;  %v14836_v43 = vld [vmem:[#allocation18 + $0xb24] sm:$0xf]  ;;  %v12854_v22 = vld [vmem:[#allocation18 + $0xad8] sm:$0xf0] }
 0x725   : > { %v14884_v33 = vld [vmem:[#allocation18 + $0xca4] sm:$0xf] }
 0x726   : > { %7699 = vmatpush.bf16.msra.mxu1 %v12957_v4  ;;  %7712 = vmatpush.bf16.msra.mxu2 %v12961_v58  ;;  %v12897_v4 = vor.u32 %v14836_v43, %v12894_v12  ;;  %v14834_v58 = vld [vmem:[#allocation18 + $0xb0c] sm:$0xf0]  ;;  %v12838_v43 = vld [vmem:[#allocation18 + $0xab8] sm:$0xf0]  ;;  %v13085_v12 = vor.u32 %v14886_v2, %v13084_v6  ;;  %v13020_v2 = vld [vmem:[#allocation18 + $0xc20] sm:$0xf] }
 0x727   : > { %v12877_v8 = vor.u32 %v14834_v58, %v12876_v38  ;;  %v12820_v58 = vld [vmem:[#allocation18 + $0xa88] sm:$0xf] }
 0x728   : > { %7222 = vmatpush.bf16.msrb.mxu3 %v12709_v29  ;;  %7235 = vmatpush.bf16.msra.mxu0 %v12713_v39  ;;  %v6464_v29 = vpop.f32.mrf.mxu2  ;;  %v12645_v39 = vor.u32 %v14775_v61, %v12644_v7  ;;  %v13089_v7 = vor.u32 %v14884_v33, %v13086_v17  ;;  %v13068_v61 = vld [vmem:[#allocation18 + $0xc80] sm:$0xf]  ;;  %v14868_v33 = vld [vmem:[#allocation18 + $0xc24] sm:$0xf]  ;;  %v13022_v17 = vld [vmem:[#allocation18 + $0xc30] sm:$0xf0] }
 0x729   : > { %v12822_v29 = vld [vmem:[#allocation18 + $0xa98] sm:$0xf0]  ;;  %v13069_v3 = vor.u32 %v14882_v16, %v13068_v61  ;;  %v14866_v61 = vld [vmem:[#allocation18 + $0xc0c] sm:$0xf0]  ;;  %v14864_v16 = vld [vmem:[#allocation18 + $0xc04] sm:$0xf] }
 0x72a   : > { %7700 = vmatpush.bf16.msra.mxu1 %v12941_v50  ;;  %7713 = vmatpush.bf16.msra.mxu2 %v12945_v51  ;;  %v5975_v5 = vpop.f32.mrf.mxu3  ;;  %v14771_v50 = vld [vmem:[#allocation18 + $0x914] sm:$0xf0]  ;;  %v14769_v51 = vld [vmem:[#allocation18 + $0x90c] sm:$0xf] }
 0x72b   : > { %v12629_v35 = vor.u32 %v14771_v50, %v12628_v47  ;;  %v12633_v62 = vor.u32 %v14769_v51, %v12630_v63  ;;  %v13052_v5 = vld [vmem:[#allocation18 + $0xc60] sm:$0xf]  ;;  %v14876_v63 = vld [vmem:[#allocation18 + $0xc64] sm:$0xf] }
 0x72c   : > { %7223 = vmatpush.bf16.msrb.mxu3 %v12693_v0  ;;  %7236 = vmatpush.bf16.msra.mxu0 %v12697_v26  ;;  %v12881_v0 = vor.u32 %v14832_v18, %v12878_v27  ;;  %v14831_v26 = vld [vmem:[#allocation18 + $0xaf4] sm:$0xf0]  ;;  %v14817_v27 = vld [vmem:[#allocation18 + $0xa8c] sm:$0xf] }
 0x72d   : > { %v12869_v11 = vor.u32 %v14831_v26, %v12868_v10  ;;  %v14819_v18 = vld [vmem:[#allocation18 + $0xa94] sm:$0xf0]  ;;  %v12825_v51 = vor.u32 %v14817_v27, %v12822_v29  ;;  %v13054_v10 = vld [vmem:[#allocation18 + $0xc70] sm:$0xf0]  ;;  %v14813_v26 = vld [vmem:[#allocation18 + $0xa6c] sm:$0xf] }
 0x72e   : > { %7701 = vmatpush.bf16.msra.mxu1 %v12925_v48  ;;  %7714 = vmatpush.bf16.msra.mxu2 %v12929_v34  ;;  %v13100_v48 = vld [vmem:[#allocation18 + $0xcc0] sm:$0xf]  ;;  %v14890_v34 = vld [vmem:[#allocation18 + $0xccc] sm:$0xf0]  ;;  %v12821_v50 = vor.u32 %v14819_v18, %v12820_v58  ;;  %v13057_v41 = vor.u32 %v14876_v63, %v13054_v10  ;;  %v14924_v27 = vld [vmem:[#allocation18 + $0xde4] sm:$0xf] }
 0x72f   : > { %v13101_v46 = vor.u32 %v14890_v34, %v13100_v48  ;;  %v14872_v48 = vld [vmem:[#allocation18 + $0xc44] sm:$0xf]  ;;  %v13038_v34 = vld [vmem:[#allocation18 + $0xc50] sm:$0xf0]  ;;  %v13244_v58 = vld [vmem:[#allocation18 + $0xde0] sm:$0xf] }
 0x730   : > { %7224 = vmatpush.bf16.msrb.mxu3 %v12677_v20  ;;  %7237 = vmatpush.bf16.msra.mxu0 %v12681_v9  ;;  %v13102_v20 = vld [vmem:[#allocation18 + $0xcd0] sm:$0xf0]  ;;  %v12852_v9 = vld [vmem:[#allocation18 + $0xac8] sm:$0xf]  ;;  %v14926_v18 = vld [vmem:[#allocation18 + $0xdec] sm:$0xf0] }
 0x731   : > { %v13105_v42 = vor.u32 %v14888_v1, %v13102_v20  ;;  %v14811_v20 = vld [vmem:[#allocation18 + $0xa54] sm:$0xf0]  ;;  %v14861_v10 = vld [vmem:[#allocation18 + $0xbec] sm:$0xf] }
 0x732   : > { %7702 = vmatpush.bf16.msra.mxu1 %v12909_v45  ;;  %7715 = vmatpush.bf16.msra.mxu2 %v12913_v59  ;;  %v12853_v45 = vor.u32 %v14827_v23, %v12852_v9  ;;  %v12857_v59 = vor.u32 %v14825_v40, %v12854_v22  ;;  %v14809_v9 = vld [vmem:[#allocation18 + $0xa4c] sm:$0xf]  ;;  %v12790_v23 = vld [vmem:[#allocation18 + $0xa58] sm:$0xf0]  ;;  %v14863_v63 = vld [vmem:[#allocation18 + $0xbf4] sm:$0xf0] }
 0x734   : > { %7225 = vmatpush.bf16.msrb.mxu3 %v12661_v37  ;;  %7238 = vmatpush.bf16.msra.mxu0 %v12665_v28  ;;  %v14823_v37 = vld [vmem:[#allocation18 + $0xab4] sm:$0xf0]  ;;  %v14821_v28 = vld [vmem:[#allocation18 + $0xaac] sm:$0xf] }
 0x735   : > { %v12837_v31 = vor.u32 %v14823_v37, %v12836_v54  ;;  %v12841_v38 = vor.u32 %v14821_v28, %v12838_v43  ;;  %v12772_v54 = vld [vmem:[#allocation18 + $0xa28] sm:$0xf]  ;;  %v14807_v37 = vld [vmem:[#allocation18 + $0xa34] sm:$0xf0]  ;;  %v14805_v28 = vld [vmem:[#allocation18 + $0xa2c] sm:$0xf] }
 0x736   : > { %7703 = vmatpush.bf16.msra.mxu1 %v12893_v44  ;;  %7716 = vmatpush.bf16.msra.mxu2 %v12897_v4  ;;  %v14880_v44 = vld [vmem:[#allocation18 + $0xc84] sm:$0xf]  ;;  %v13070_v4 = vld [vmem:[#allocation18 + $0xc90] sm:$0xf0]  ;;  %v12774_v43 = vld [vmem:[#allocation18 + $0xa38] sm:$0xf0] }
 0x737   : > { %v13073_v30 = vor.u32 %v14880_v44, %v13070_v4  ;;  %v12773_v44 = vor.u32 %v14807_v37, %v12772_v54  ;;  %v12777_v4 = vor.u32 %v14805_v28, %v12774_v43  ;;  %v13196_v28 = vld [vmem:[#allocation18 + $0xd80] sm:$0xf]  ;;  %v14914_v43 = vld [vmem:[#allocation18 + $0xd8c] sm:$0xf0] }
 0x738   : > { %7226 = vmatpush.bf16.msrb.mxu3 %v12645_v39  ;;  %7239 = vmatpush.bf16.msra.mxu0 %v12649_v36 }
 0x73a   : > { %7704 = vmatpush.bf16.msra.mxu1 %v12877_v8  ;;  %7717 = vmatpush.bf16.msra.mxu2 %v12881_v0  ;;  %v6700_v39 = vpop.f32.mrf.mxu1  ;;  %v12804_v8 = vld [vmem:[#allocation18 + $0xa68] sm:$0xf]  ;;  %v14815_v0 = vld [vmem:[#allocation18 + $0xa74] sm:$0xf0] }
 0x73b   : > { %v17763_v36 = vadd.f32 %v6700_v39, %v17744_v55  ;;  %v13053_v55 = vor.u32 %v14878_v56, %v13052_v5  ;;  %v13246_v39 = vld [vmem:[#allocation18 + $0xdf0] sm:$0xf0]  ;;  %v12758_v5 = vld [vmem:[#allocation18 + $0xa18] sm:$0xf0]  ;;  %v12996_v56 = vld [vmem:[#allocation18 + $0xbe8] sm:$0xf] }
 0x73c   : > { %7227 = vmatpush.bf16.msrb.mxu3 %v12629_v35  ;;  %7240 = vmatpush.bf16.msra.mxu0 %v12633_v62  ;;  %v6237_v13 = vpop.f32.mrf.mxu0  ;;  %v12805_v62 = vor.u32 %v14815_v0, %v12804_v8  ;;  %v12998_v8 = vld [vmem:[#allocation18 + $0xbf8] sm:$0xf0]  ;;  %v13245_v0 = vor.u32 %v14926_v18, %v13244_v58  ;;  %v13197_v58 = vor.u32 %v14914_v43, %v13196_v28  ;;  %v14898_v28 = vld [vmem:[#allocation18 + $0xd0c] sm:$0xf0]  ;;  %v14896_v43 = vld [vmem:[#allocation18 + $0xd04] sm:$0xf] }
 0x73d   : > { %7705 = vmatmul.bf16.vlgmr.msra.gmra.mxu1 %v17756_v15  ;;  %7718 = vmatmul.bf16.vlgmr.msra.gmra.mxu2 %v17756_v15  ;;  %v17766_v47 = vadd.f32 %v6237_v13, %v17747_v60  ;;  %v12809_v60 = vor.u32 %v14813_v26, %v12806_v32  ;;  %v14801_v13 = vld [vmem:[#allocation18 + $0xa0c] sm:$0xf]  ;;  %v13249_v26 = vor.u32 %v14924_v27, %v13246_v39  ;;  %v14910_v39 = vld [vmem:[#allocation18 + $0xd6c] sm:$0xf0] }
 0x73e   : > { %7948 = vmatpush.bf16.msrb.mxu1 %v13117_v24  ;;  %7961 = vmatpush.bf16.msrb.mxu2 %v13121_v52  ;;  %v13036_v24 = vld [vmem:[#allocation18 + $0xc40] sm:$0xf]  ;;  %v14874_v52 = vld [vmem:[#allocation18 + $0xc4c] sm:$0xf0] }
 0x73f   : > { %7228 = vmatmul.bf16.vlgmr.msrb.gmra.mxu3 %v17718_v19  ;;  %7241 = vmatmul.bf16.vlgmr.msra.gmra.mxu0 %v17718_v19 }
 0x740   : > { %7472 = vmatpush.bf16.msra.mxu3 %v12869_v11  ;;  %7485 = vmatpush.bf16.msrb.mxu0 %v12873_v49  ;;  %v6713_v35 = vpop.f32.mrf.mxu2  ;;  %v12788_v11 = vld [vmem:[#allocation18 + $0xa48] sm:$0xf] }
 0x741   : > { %v17769_v49 = vadd.f32 %v6713_v35, %v17750_v57  ;;  %v12793_v57 = vor.u32 %v14809_v9, %v12790_v23  ;;  %v13001_v35 = vor.u32 %v14861_v10, %v12998_v8  ;;  %v12934_v10 = vld [vmem:[#allocation18 + $0xb78] sm:$0xf0] }
 0x742   : > { %7949 = vmatpush.bf16.msrb.mxu1 %v13101_v46  ;;  %7962 = vmatpush.bf16.msrb.mxu2 %v13105_v42  ;;  %v6224_v1 = vpop.f32.mrf.mxu3  ;;  %v6702_v22 = vpop.f32.mrf.mxu1  ;;  %v13037_v46 = vor.u32 %v14874_v52, %v13036_v24  ;;  %v13041_v42 = vor.u32 %v14872_v48, %v13038_v34  ;;  %v14922_v24 = vld [vmem:[#allocation18 + $0xdcc] sm:$0xf0]  ;;  %v12997_v52 = vor.u32 %v14863_v63, %v12996_v56  ;;  %v12980_v48 = vld [vmem:[#allocation18 + $0xbc8] sm:$0xf]  ;;  %v14859_v34 = vld [vmem:[#allocation18 + $0xbd4] sm:$0xf0] }
 0x743   : > { %v17772_v40 = vadd.f32 %v6224_v1, %v17753_v53  ;;  %v13004_v53 = vld [vmem:[#allocation18 + $0xc00] sm:$0xf]  ;;  %v12982_v1 = vld [vmem:[#allocation18 + $0xbd8] sm:$0xf0]  ;;  %v13182_v56 = vld [vmem:[#allocation18 + $0xd70] sm:$0xf0] }
 0x744   : > { %7473 = vmatpush.bf16.msra.mxu3 %v12853_v45  ;;  %7486 = vmatpush.bf16.msrb.mxu0 %v12857_v59  ;;  %v6239_v6 = vpop.f32.mrf.mxu0  ;;  %v14870_v45 = vld [vmem:[#allocation18 + $0xc2c] sm:$0xf0]  ;;  %v12789_v59 = vor.u32 %v14811_v20, %v12788_v11  ;;  %v14857_v11 = vld [vmem:[#allocation18 + $0xbcc] sm:$0xf]  ;;  %v17775_v20 = vrot.slane %v17699_v25, 2 }
 0x745   : > { %v13212_v22 = vld [vmem:[#allocation18 + $0xda0] sm:$0xf]  ;;  %v12985_v6 = vor.u32 %v14857_v11, %v12982_v1  ;;  %v14845_v63 = vld [vmem:[#allocation18 + $0xb6c] sm:$0xf] }
 0x746   : > { %7950 = vmatpush.bf16.msrb.mxu1 %v13085_v12  ;;  %7963 = vmatpush.bf16.msrb.mxu2 %v13089_v7  ;;  %v13021_v12 = vor.u32 %v14870_v45, %v13020_v2  ;;  %v13025_v7 = vor.u32 %v14868_v33, %v13022_v17  ;;  %v14916_v2 = vld [vmem:[#allocation18 + $0xda4] sm:$0xf]  ;;  %v13214_v45 = vld [vmem:[#allocation18 + $0xdb0] sm:$0xf0]  ;;  %v14853_v33 = vld [vmem:[#allocation18 + $0xbac] sm:$0xf] }
 0x747   : > { %v12966_v17 = vld [vmem:[#allocation18 + $0xbb8] sm:$0xf0]  ;;  %v13217_v37 = vor.u32 %v14916_v2, %v13214_v45  ;;  %v14900_v2 = vld [vmem:[#allocation18 + $0xd24] sm:$0xf]  ;;  %v13150_v45 = vld [vmem:[#allocation18 + $0xd30] sm:$0xf0] }
 0x748   : > { %7474 = vmatpush.bf16.msra.mxu3 %v12837_v31  ;;  %7487 = vmatpush.bf16.msrb.mxu0 %v12841_v38  ;;  %v13006_v31 = vld [vmem:[#allocation18 + $0xc10] sm:$0xf0]  ;;  %v6715_v38 = vpop.f32.mrf.mxu2 }
 0x749   : > { %v14849_v38 = vld [vmem:[#allocation18 + $0xb8c] sm:$0xf] }
 0x74a   : > { %7951 = vmatpush.bf16.msrb.mxu1 %v13069_v3  ;;  %7964 = vmatpush.bf16.msrb.mxu2 %v13073_v30  ;;  %v6226_v29 = vpop.f32.mrf.mxu3  ;;  %v12756_v3 = vld [vmem:[#allocation18 + $0xa08] sm:$0xf]  ;;  %v14803_v30 = vld [vmem:[#allocation18 + $0xa14] sm:$0xf0] }
 0x74b   : > { %v12757_v32 = vor.u32 %v14803_v30, %v12756_v3  ;;  %v13180_v29 = vld [vmem:[#allocation18 + $0xd60] sm:$0xf] }
 0x74c   : > { %7475 = vmatpush.bf16.msra.mxu3 %v12821_v50  ;;  %7488 = vmatpush.bf16.msrb.mxu0 %v12825_v51  ;;  %v13005_v50 = vor.u32 %v14866_v61, %v13004_v53  ;;  %v13009_v51 = vor.u32 %v14864_v16, %v13006_v31  ;;  %v13198_v61 = vld [vmem:[#allocation18 + $0xd90] sm:$0xf0]  ;;  %v12948_v16 = vld [vmem:[#allocation18 + $0xb88] sm:$0xf]  ;;  %v14851_v31 = vld [vmem:[#allocation18 + $0xb94] sm:$0xf0] }
 0x74d   : > { %v12949_v30 = vor.u32 %v14851_v31, %v12948_v16  ;;  %v13372_v16 = vld [vmem:[#allocation18 + $0xee0] sm:$0xf]  ;;  %v14958_v31 = vld [vmem:[#allocation18 + $0xeec] sm:$0xf0] }
 0x74e   : > { %7952 = vmatpush.bf16.msrb.mxu1 %v13053_v55  ;;  %7965 = vmatpush.bf16.msrb.mxu2 %v13057_v41  ;;  %v12761_v55 = vor.u32 %v14801_v13, %v12758_v5  ;;  %v13228_v41 = vld [vmem:[#allocation18 + $0xdc0] sm:$0xf]  ;;  %v14908_v5 = vld [vmem:[#allocation18 + $0xd64] sm:$0xf] }
 0x74f   : > { %v13229_v9 = vor.u32 %v14922_v24, %v13228_v41  ;;  %v13185_v8 = vor.u32 %v14908_v5, %v13182_v56  ;;  %v14904_v41 = vld [vmem:[#allocation18 + $0xd44] sm:$0xf]  ;;  %v13166_v24 = vld [vmem:[#allocation18 + $0xd50] sm:$0xf0]  ;;  %v14895_v5 = vld [vmem:[#allocation18 + $0xcf4] sm:$0xf0] }
 0x750   : > { %7476 = vmatpush.bf16.msra.mxu3 %v12805_v62  ;;  %7489 = vmatpush.bf16.msrb.mxu0 %v12809_v60  ;;  %v14920_v62 = vld [vmem:[#allocation18 + $0xdc4] sm:$0xf]  ;;  %v13230_v60 = vld [vmem:[#allocation18 + $0xdd0] sm:$0xf0]  ;;  %v14893_v56 = vld [vmem:[#allocation18 + $0xcec] sm:$0xf] }
 0x751   : > { %v13233_v23 = vor.u32 %v14920_v62, %v13230_v60  ;;  %v14843_v60 = vld [vmem:[#allocation18 + $0xb54] sm:$0xf0] }
 0x752   : > { %7953 = vmatpush.bf16.msrb.mxu1 %v13037_v46  ;;  %7966 = vmatpush.bf16.msrb.mxu2 %v13041_v42  ;;  %v14918_v46 = vld [vmem:[#allocation18 + $0xdac] sm:$0xf0]  ;;  %v12981_v42 = vor.u32 %v14859_v34, %v12980_v48  ;;  %v14841_v48 = vld [vmem:[#allocation18 + $0xb4c] sm:$0xf]  ;;  %v12918_v34 = vld [vmem:[#allocation18 + $0xb58] sm:$0xf0] }
 0x753   : > { %v13213_v54 = vor.u32 %v14918_v46, %v13212_v22  ;;  %v13148_v46 = vld [vmem:[#allocation18 + $0xd20] sm:$0xf] }
 0x754   : > { %7477 = vmatpush.bf16.msra.mxu3 %v12789_v59  ;;  %7490 = vmatpush.bf16.msrb.mxu0 %v12793_v57  ;;  %v12964_v59 = vld [vmem:[#allocation18 + $0xba8] sm:$0xf]  ;;  %v14855_v57 = vld [vmem:[#allocation18 + $0xbb4] sm:$0xf0] }
 0x755   : > { %v12965_v53 = vor.u32 %v14855_v57, %v12964_v59  ;;  %v12900_v59 = vld [vmem:[#allocation18 + $0xb28] sm:$0xf]  ;;  %v14839_v57 = vld [vmem:[#allocation18 + $0xb34] sm:$0xf0] }
 0x756   : > { %7954 = vmatpush.bf16.msrb.mxu1 %v13021_v12  ;;  %7967 = vmatpush.bf16.msrb.mxu2 %v13025_v7  ;;  %v12969_v12 = vor.u32 %v14853_v33, %v12966_v17  ;;  %v14912_v7 = vld [vmem:[#allocation18 + $0xd84] sm:$0xf]  ;;  %v14837_v33 = vld [vmem:[#allocation18 + $0xb2c] sm:$0xf]  ;;  %v12902_v17 = vld [vmem:[#allocation18 + $0xb38] sm:$0xf0] }
 0x757   : > { %v13201_v18 = vor.u32 %v14912_v7, %v13198_v61  ;;  %v12901_v7 = vor.u32 %v14839_v57, %v12900_v59  ;;  %v12905_v61 = vor.u32 %v14837_v33, %v12902_v17  ;;  %v13324_v33 = vld [vmem:[#allocation18 + $0xe80] sm:$0xf]  ;;  %v14946_v17 = vld [vmem:[#allocation18 + $0xe8c] sm:$0xf0] }
 0x758   : > { %7478 = vmatpush.bf16.msra.mxu3 %v12773_v44  ;;  %7491 = vmatpush.bf16.msrb.mxu0 %v12777_v4  ;;  %v12950_v44 = vld [vmem:[#allocation18 + $0xb98] sm:$0xf0] }
 0x759   : > { %v12953_v13 = vor.u32 %v14849_v38, %v12950_v44  ;;  %v14956_v38 = vld [vmem:[#allocation18 + $0xee4] sm:$0xf] }
 0x75a   : > { %7955 = vmatpush.bf16.msrb.mxu1 %v13005_v50  ;;  %7968 = vmatpush.bf16.msrb.mxu2 %v13009_v51  ;;  %v6950_v4 = vpop.f32.mrf.mxu1  ;;  %v12932_v50 = vld [vmem:[#allocation18 + $0xb68] sm:$0xf]  ;;  %v14847_v51 = vld [vmem:[#allocation18 + $0xb74] sm:$0xf0] }
 0x75c   : > { %7479 = vmatpush.bf16.msra.mxu3 %v12757_v32  ;;  %7492 = vmatpush.bf16.msrb.mxu0 %v12761_v55  ;;  %v6488_v27 = vpop.f32.mrf.mxu0  ;;  %v12933_v55 = vor.u32 %v14847_v51, %v12932_v50  ;;  %v13126_v50 = vld [vmem:[#allocation18 + $0xcf8] sm:$0xf0]  ;;  %v13373_v51 = vor.u32 %v14958_v31, %v13372_v16  ;;  %v13325_v16 = vor.u32 %v14946_v17, %v13324_v33  ;;  %v14930_v33 = vld [vmem:[#allocation18 + $0xe0c] sm:$0xf0]  ;;  %v14928_v17 = vld [vmem:[#allocation18 + $0xe04] sm:$0xf] }
 0x75d   : > { %7956 = vmatmul.bf16.vlgmr.msrb.gmra.mxu1 %v17775_v20  ;;  %7969 = vmatmul.bf16.vlgmr.msrb.gmra.mxu2 %v17775_v20  ;;  %v17785_v3 = vadd.f32 %v6488_v27, %v17766_v47  ;;  %v12937_v47 = vor.u32 %v14845_v63, %v12934_v10  ;;  %v14833_v27 = vld [vmem:[#allocation18 + $0xb0c] sm:$0xf] }
 0x75e   : > { %8199 = vmatpush.bf16.msra.mxu1 %v13245_v0  ;;  %8212 = vmatpush.bf16.msra.mxu2 %v13249_v26  ;;  %v13164_v0 = vld [vmem:[#allocation18 + $0xd40] sm:$0xf]  ;;  %v14906_v26 = vld [vmem:[#allocation18 + $0xd4c] sm:$0xf0] }
 0x75f   : > { %7480 = vmatmul.bf16.vlgmr.msra.gmra.mxu3 %v17737_v21  ;;  %7493 = vmatmul.bf16.vlgmr.msrb.gmra.mxu0 %v17737_v21  ;;  %v17782_v21 = vadd.f32 %v6950_v4, %v17763_v36  ;;  %v13181_v36 = vor.u32 %v14910_v39, %v13180_v29  ;;  %v13374_v4 = vld [vmem:[#allocation18 + $0xef0] sm:$0xf0]  ;;  %v12886_v29 = vld [vmem:[#allocation18 + $0xb18] sm:$0xf0]  ;;  %v13124_v39 = vld [vmem:[#allocation18 + $0xce8] sm:$0xf] }
 0x760   : > { %7723 = vmatpush.bf16.msrb.mxu3 %v12997_v52  ;;  %7736 = vmatpush.bf16.msra.mxu0 %v13001_v35  ;;  %v6963_v32 = vpop.f32.mrf.mxu2  ;;  %v12916_v52 = vld [vmem:[#allocation18 + $0xb48] sm:$0xf]  ;;  %v13377_v63 = vor.u32 %v14956_v38, %v13374_v4  ;;  %v14942_v4 = vld [vmem:[#allocation18 + $0xe6c] sm:$0xf0] }
 0x761   : > { %v17788_v35 = vadd.f32 %v6963_v32, %v17769_v49  ;;  %v12921_v49 = vor.u32 %v14841_v48, %v12918_v34  ;;  %v13129_v32 = vor.u32 %v14893_v56, %v13126_v50  ;;  %v13062_v56 = vld [vmem:[#allocation18 + $0xc78] sm:$0xf0] }
 0x762   : > { %8200 = vmatpush.bf16.msra.mxu1 %v13229_v9  ;;  %8213 = vmatpush.bf16.msra.mxu2 %v13233_v23  ;;  %v6475_v62 = vpop.f32.mrf.mxu3  ;;  %v6952_v1 = vpop.f32.mrf.mxu1  ;;  %v13165_v9 = vor.u32 %v14906_v26, %v13164_v0  ;;  %v13169_v23 = vor.u32 %v14904_v41, %v13166_v24  ;;  %v14954_v0 = vld [vmem:[#allocation18 + $0xecc] sm:$0xf0]  ;;  %v13125_v26 = vor.u32 %v14895_v5, %v13124_v39  ;;  %v13108_v41 = vld [vmem:[#allocation18 + $0xcc8] sm:$0xf]  ;;  %v14891_v24 = vld [vmem:[#allocation18 + $0xcd4] sm:$0xf0] }
 0x763   : > { %v17791_v11 = vadd.f32 %v6475_v62, %v17772_v40  ;;  %v13132_v40 = vld [vmem:[#allocation18 + $0xd00] sm:$0xf]  ;;  %v13110_v62 = vld [vmem:[#allocation18 + $0xcd8] sm:$0xf0]  ;;  %v13310_v39 = vld [vmem:[#allocation18 + $0xe70] sm:$0xf0] }
 0x764   : > { %7724 = vmatpush.bf16.msrb.mxu3 %v12981_v42  ;;  %7737 = vmatpush.bf16.msra.mxu0 %v12985_v6  ;;  %v6490_v22 = vpop.f32.mrf.mxu0  ;;  %v14902_v42 = vld [vmem:[#allocation18 + $0xd2c] sm:$0xf0]  ;;  %v12917_v6 = vor.u32 %v14843_v60, %v12916_v52  ;;  %v14889_v52 = vld [vmem:[#allocation18 + $0xccc] sm:$0xf]  ;;  %v17794_v60 = vrot.slane %v17718_v19, 2 }
 0x765   : > { %v13340_v1 = vld [vmem:[#allocation18 + $0xea0] sm:$0xf]  ;;  %v13113_v22 = vor.u32 %v14889_v52, %v13110_v62  ;;  %v14877_v5 = vld [vmem:[#allocation18 + $0xc6c] sm:$0xf] }
 0x766   : > { %8201 = vmatpush.bf16.msra.mxu1 %v13213_v54  ;;  %8214 = vmatpush.bf16.msra.mxu2 %v13217_v37  ;;  %v13149_v54 = vor.u32 %v14902_v42, %v13148_v46  ;;  %v13153_v37 = vor.u32 %v14900_v2, %v13150_v45  ;;  %v14948_v46 = vld [vmem:[#allocation18 + $0xea4] sm:$0xf]  ;;  %v13342_v42 = vld [vmem:[#allocation18 + $0xeb0] sm:$0xf0]  ;;  %v14885_v2 = vld [vmem:[#allocation18 + $0xcac] sm:$0xf] }
 0x767   : > { %v13094_v45 = vld [vmem:[#allocation18 + $0xcb8] sm:$0xf0]  ;;  %v13345_v57 = vor.u32 %v14948_v46, %v13342_v42  ;;  %v14932_v46 = vld [vmem:[#allocation18 + $0xe24] sm:$0xf]  ;;  %v13278_v42 = vld [vmem:[#allocation18 + $0xe30] sm:$0xf0] }
 0x768   : > { %7725 = vmatpush.bf16.msrb.mxu3 %v12965_v53  ;;  %7738 = vmatpush.bf16.msra.mxu0 %v12969_v12  ;;  %v13134_v53 = vld [vmem:[#allocation18 + $0xd10] sm:$0xf0]  ;;  %v6965_v12 = vpop.f32.mrf.mxu2 }
 0x769   : > { %v14881_v12 = vld [vmem:[#allocation18 + $0xc8c] sm:$0xf] }
 0x76a   : > { %8202 = vmatpush.bf16.msra.mxu1 %v13197_v58  ;;  %8215 = vmatpush.bf16.msra.mxu2 %v13201_v18  ;;  %v6477_v44 = vpop.f32.mrf.mxu3  ;;  %v12884_v58 = vld [vmem:[#allocation18 + $0xb08] sm:$0xf]  ;;  %v14835_v18 = vld [vmem:[#allocation18 + $0xb14] sm:$0xf0] }
 0x76b   : > { %v12885_v10 = vor.u32 %v14835_v18, %v12884_v58  ;;  %v13308_v44 = vld [vmem:[#allocation18 + $0xe60] sm:$0xf] }
 0x76c   : > { %7726 = vmatpush.bf16.msrb.mxu3 %v12949_v30  ;;  %7739 = vmatpush.bf16.msra.mxu0 %v12953_v13  ;;  %v13133_v30 = vor.u32 %v14898_v28, %v13132_v40  ;;  %v13137_v13 = vor.u32 %v14896_v43, %v13134_v53  ;;  %v13326_v28 = vld [vmem:[#allocation18 + $0xe90] sm:$0xf0]  ;;  %v13076_v43 = vld [vmem:[#allocation18 + $0xc88] sm:$0xf]  ;;  %v14883_v53 = vld [vmem:[#allocation18 + $0xc94] sm:$0xf0] }
 0x76d   : > { %v13077_v18 = vor.u32 %v14883_v53, %v13076_v43  ;;  %v13500_v43 = vld [vmem:[#allocation18 + $0xfe0] sm:$0xf]  ;;  %v14990_v53 = vld [vmem:[#allocation18 + $0xfec] sm:$0xf0] }
 0x76e   : > { %8203 = vmatpush.bf16.msra.mxu1 %v13181_v36  ;;  %8216 = vmatpush.bf16.msra.mxu2 %v13185_v8  ;;  %v12889_v36 = vor.u32 %v14833_v27, %v12886_v29  ;;  %v13356_v8 = vld [vmem:[#allocation18 + $0xec0] sm:$0xf]  ;;  %v14940_v29 = vld [vmem:[#allocation18 + $0xe64] sm:$0xf] }
 0x76f   : > { %v13357_v48 = vor.u32 %v14954_v0, %v13356_v8  ;;  %v13313_v50 = vor.u32 %v14940_v29, %v13310_v39  ;;  %v14936_v8 = vld [vmem:[#allocation18 + $0xe44] sm:$0xf]  ;;  %v13294_v0 = vld [vmem:[#allocation18 + $0xe50] sm:$0xf0]  ;;  %v14927_v29 = vld [vmem:[#allocation18 + $0xdf4] sm:$0xf0] }
 0x770   : > { %7727 = vmatpush.bf16.msrb.mxu3 %v12933_v55  ;;  %7740 = vmatpush.bf16.msra.mxu0 %v12937_v47  ;;  %v14952_v55 = vld [vmem:[#allocation18 + $0xec4] sm:$0xf]  ;;  %v13358_v47 = vld [vmem:[#allocation18 + $0xed0] sm:$0xf0]  ;;  %v14925_v39 = vld [vmem:[#allocation18 + $0xdec] sm:$0xf] }
 0x771   : > { %v13361_v34 = vor.u32 %v14952_v55, %v13358_v47  ;;  %v14875_v47 = vld [vmem:[#allocation18 + $0xc54] sm:$0xf0] }
 0x772   : > { %8204 = vmatpush.bf16.msra.mxu1 %v13165_v9  ;;  %8217 = vmatpush.bf16.msra.mxu2 %v13169_v23  ;;  %v14950_v9 = vld [vmem:[#allocation18 + $0xeac] sm:$0xf0]  ;;  %v13109_v23 = vor.u32 %v14891_v24, %v13108_v41  ;;  %v14873_v41 = vld [vmem:[#allocation18 + $0xc4c] sm:$0xf]  ;;  %v13046_v24 = vld [vmem:[#allocation18 + $0xc58] sm:$0xf0] }
 0x773   : > { %v13341_v59 = vor.u32 %v14950_v9, %v13340_v1  ;;  %v13276_v9 = vld [vmem:[#allocation18 + $0xe20] sm:$0xf] }
 0x774   : > { %7728 = vmatpush.bf16.msrb.mxu3 %v12917_v6  ;;  %7741 = vmatpush.bf16.msra.mxu0 %v12921_v49  ;;  %v13092_v6 = vld [vmem:[#allocation18 + $0xca8] sm:$0xf]  ;;  %v14887_v49 = vld [vmem:[#allocation18 + $0xcb4] sm:$0xf0] }
 0x775   : > { %v13093_v40 = vor.u32 %v14887_v49, %v13092_v6  ;;  %v13028_v6 = vld [vmem:[#allocation18 + $0xc28] sm:$0xf]  ;;  %v14871_v49 = vld [vmem:[#allocation18 + $0xc34] sm:$0xf0] }
 0x776   : > { %8205 = vmatpush.bf16.msra.mxu1 %v13149_v54  ;;  %8218 = vmatpush.bf16.msra.mxu2 %v13153_v37  ;;  %v13097_v54 = vor.u32 %v14885_v2, %v13094_v45  ;;  %v14944_v37 = vld [vmem:[#allocation18 + $0xe84] sm:$0xf]  ;;  %v14869_v2 = vld [vmem:[#allocation18 + $0xc2c] sm:$0xf]  ;;  %v13030_v45 = vld [vmem:[#allocation18 + $0xc38] sm:$0xf0] }
 0x777   : > { %v13329_v31 = vor.u32 %v14944_v37, %v13326_v28  ;;  %v13029_v37 = vor.u32 %v14871_v49, %v13028_v6  ;;  %v13033_v28 = vor.u32 %v14869_v2, %v13030_v45  ;;  %v13452_v49 = vld [vmem:[#allocation18 + $0xf80] sm:$0xf]  ;;  %v14978_v2 = vld [vmem:[#allocation18 + $0xf8c] sm:$0xf0] }
 0x778   : > { %7729 = vmatpush.bf16.msrb.mxu3 %v12901_v7  ;;  %7742 = vmatpush.bf16.msra.mxu0 %v12905_v61  ;;  %v13078_v7 = vld [vmem:[#allocation18 + $0xc98] sm:$0xf0] }
 0x779   : > { %v13081_v27 = vor.u32 %v14881_v12, %v13078_v7  ;;  %v14988_v12 = vld [vmem:[#allocation18 + $0xfe4] sm:$0xf] }
 0x77a   : > { %8206 = vmatpush.bf16.msra.mxu1 %v13133_v30  ;;  %8219 = vmatpush.bf16.msra.mxu2 %v13137_v13  ;;  %v7203_v61 = vpop.f32.mrf.mxu1  ;;  %v13060_v30 = vld [vmem:[#allocation18 + $0xc68] sm:$0xf]  ;;  %v14879_v13 = vld [vmem:[#allocation18 + $0xc74] sm:$0xf0] }
 0x77c   : > { %7730 = vmatpush.bf16.msrb.mxu3 %v12885_v10  ;;  %7743 = vmatpush.bf16.msra.mxu0 %v12889_v36  ;;  %v6739_v38 = vpop.f32.mrf.mxu0  ;;  %v13061_v36 = vor.u32 %v14879_v13, %v13060_v30  ;;  %v13254_v30 = vld [vmem:[#allocation18 + $0xdf8] sm:$0xf0]  ;;  %v13501_v13 = vor.u32 %v14990_v53, %v13500_v43 }
 0x77d   : > { %8207 = vmatmul.bf16.vlgmr.msra.gmra.mxu1 %v17794_v60  ;;  %8220 = vmatmul.bf16.vlgmr.msra.gmra.mxu2 %v17794_v60  ;;  %v17804_v58 = vadd.f32 %v6739_v38, %v17785_v3  ;;  %v13065_v3 = vor.u32 %v14877_v5, %v13062_v56  ;;  %v14865_v38 = vld [vmem:[#allocation18 + $0xc0c] sm:$0xf] }
 0x77e   : > { %8450 = vmatpush.bf16.msrb.mxu1 %v13373_v51  ;;  %8463 = vmatpush.bf16.msrb.mxu2 %v13377_v63  ;;  %v13292_v51 = vld [vmem:[#allocation18 + $0xe40] sm:$0xf]  ;;  %v14938_v63 = vld [vmem:[#allocation18 + $0xe4c] sm:$0xf0] }
 0x77f   : > { %7731 = vmatmul.bf16.vlgmr.msrb.gmra.mxu3 %v17756_v15  ;;  %7744 = vmatmul.bf16.vlgmr.msra.gmra.mxu0 %v17756_v15  ;;  %v17801_v15 = vadd.f32 %v7203_v61, %v17782_v21  ;;  %v13309_v21 = vor.u32 %v14942_v4, %v13308_v44  ;;  %v13502_v61 = vld [vmem:[#allocation18 + $0xff0] sm:$0xf0]  ;;  %v13014_v44 = vld [vmem:[#allocation18 + $0xc18] sm:$0xf0]  ;;  %v13252_v4 = vld [vmem:[#allocation18 + $0xde8] sm:$0xf] }
 0x780   : > { %7974 = vmatpush.bf16.msra.mxu3 %v13125_v26  ;;  %7987 = vmatpush.bf16.msrb.mxu0 %v13129_v32  ;;  %v7216_v10 = vpop.f32.mrf.mxu2  ;;  %v13044_v26 = vld [vmem:[#allocation18 + $0xc48] sm:$0xf]  ;;  %v13505_v5 = vor.u32 %v14988_v12, %v13502_v61  ;;  %v13436_v12 = vld [vmem:[#allocation18 + $0xf60] sm:$0xf] }
 0x781   : > { %v17807_v32 = vadd.f32 %v7216_v10, %v17788_v35  ;;  %v13049_v35 = vor.u32 %v14873_v41, %v13046_v24  ;;  %v13257_v10 = vor.u32 %v14925_v39, %v13254_v30  ;;  %v13420_v30 = vld [vmem:[#allocation18 + $0xf40] sm:$0xf] }
 0x782   : > { %8451 = vmatpush.bf16.msrb.mxu1 %v13357_v48  ;;  %8464 = vmatpush.bf16.msrb.mxu2 %v13361_v34  ;;  %v6726_v55 = vpop.f32.mrf.mxu3  ;;  %v7205_v62 = vpop.f32.mrf.mxu1  ;;  %v13293_v48 = vor.u32 %v14938_v63, %v13292_v51  ;;  %v13297_v34 = vor.u32 %v14936_v8, %v13294_v0  ;;  %v14986_v51 = vld [vmem:[#allocation18 + $0xfcc] sm:$0xf0]  ;;  %v13253_v63 = vor.u32 %v14927_v29, %v13252_v4  ;;  %v13236_v8 = vld [vmem:[#allocation18 + $0xdc8] sm:$0xf]  ;;  %v14923_v0 = vld [vmem:[#allocation18 + $0xdd4] sm:$0xf0] }
 0x783   : > { %v17810_v52 = vadd.f32 %v6726_v55, %v17791_v11  ;;  %v13260_v11 = vld [vmem:[#allocation18 + $0xe00] sm:$0xf]  ;;  %v13238_v55 = vld [vmem:[#allocation18 + $0xdd8] sm:$0xf0]  ;;  %v13188_v4 = vld [vmem:[#allocation18 + $0xd68] sm:$0xf] }
 0x784   : > { %7975 = vmatpush.bf16.msra.mxu3 %v13109_v23  ;;  %7988 = vmatpush.bf16.msrb.mxu0 %v13113_v22  ;;  %v6741_v1 = vpop.f32.mrf.mxu0  ;;  %v14934_v23 = vld [vmem:[#allocation18 + $0xe2c] sm:$0xf0]  ;;  %v13045_v22 = vor.u32 %v14875_v47, %v13044_v26  ;;  %v14921_v26 = vld [vmem:[#allocation18 + $0xdcc] sm:$0xf]  ;;  %v17813_v47 = vrot.slane %v17699_v25, 3 }
 0x785   : > { %v13468_v62 = vld [vmem:[#allocation18 + $0xfa0] sm:$0xf]  ;;  %v13241_v1 = vor.u32 %v14921_v26, %v13238_v55  ;;  %v13190_v29 = vld [vmem:[#allocation18 + $0xd78] sm:$0xf0] }
 0x786   : > { %8452 = vmatpush.bf16.msrb.mxu1 %v13341_v59  ;;  %8465 = vmatpush.bf16.msrb.mxu2 %v13345_v57  ;;  %v13277_v59 = vor.u32 %v14934_v23, %v13276_v9  ;;  %v13281_v57 = vor.u32 %v14932_v46, %v13278_v42  ;;  %v14980_v9 = vld [vmem:[#allocation18 + $0xfa4] sm:$0xf]  ;;  %v13470_v23 = vld [vmem:[#allocation18 + $0xfb0] sm:$0xf0]  ;;  %v14917_v46 = vld [vmem:[#allocation18 + $0xdac] sm:$0xf] }
 0x787   : > { %v13222_v42 = vld [vmem:[#allocation18 + $0xdb8] sm:$0xf0]  ;;  %v13473_v6 = vor.u32 %v14980_v9, %v13470_v23  ;;  %v13406_v9 = vld [vmem:[#allocation18 + $0xf30] sm:$0xf0]  ;;  %v13156_v23 = vld [vmem:[#allocation18 + $0xd28] sm:$0xf] }
 0x788   : > { %7976 = vmatpush.bf16.msra.mxu3 %v13093_v40  ;;  %7989 = vmatpush.bf16.msrb.mxu0 %v13097_v54  ;;  %v13262_v40 = vld [vmem:[#allocation18 + $0xe10] sm:$0xf0]  ;;  %v7218_v54 = vpop.f32.mrf.mxu2 }
 0x789   : > { %v13206_v54 = vld [vmem:[#allocation18 + $0xd98] sm:$0xf0] }
 0x78a   : > { %8453 = vmatpush.bf16.msrb.mxu1 %v13325_v16  ;;  %8466 = vmatpush.bf16.msrb.mxu2 %v13329_v31  ;;  %v6728_v7 = vpop.f32.mrf.mxu3  ;;  %v13012_v16 = vld [vmem:[#allocation18 + $0xc08] sm:$0xf]  ;;  %v14867_v31 = vld [vmem:[#allocation18 + $0xc14] sm:$0xf0] }
 0x78b   : > { %v13013_v56 = vor.u32 %v14867_v31, %v13012_v16  ;;  %v14974_v7 = vld [vmem:[#allocation18 + $0xf6c] sm:$0xf0] }
 0x78c   : > { %7977 = vmatpush.bf16.msra.mxu3 %v13077_v18  ;;  %7990 = vmatpush.bf16.msrb.mxu0 %v13081_v27  ;;  %v13261_v18 = vor.u32 %v14930_v33, %v13260_v11  ;;  %v13265_v27 = vor.u32 %v14928_v17, %v13262_v40  ;;  %v13225_v11 = vor.u32 %v14917_v46, %v13222_v42  ;;  %v13204_v33 = vld [vmem:[#allocation18 + $0xd88] sm:$0xf]  ;;  %v14915_v17 = vld [vmem:[#allocation18 + $0xd94] sm:$0xf0]  ;;  %v14913_v40 = vld [vmem:[#allocation18 + $0xd8c] sm:$0xf] }
 0x78d   : > { %v13205_v16 = vor.u32 %v14915_v17, %v13204_v33  ;;  %v13209_v31 = vor.u32 %v14913_v40, %v13206_v54  ;;  %v13158_v46 = vld [vmem:[#allocation18 + $0xd38] sm:$0xf0]  ;;  %v15022_v33 = vld [vmem:[#allocation18 + $0x10ec] sm:$0xf0]  ;;  %v15020_v17 = vld [vmem:[#allocation18 + $0x10e4] sm:$0xf] }
 0x78e   : > { %8454 = vmatpush.bf16.msrb.mxu1 %v13309_v21  ;;  %8467 = vmatpush.bf16.msrb.mxu2 %v13313_v50  ;;  %v13017_v21 = vor.u32 %v14865_v38, %v13014_v44  ;;  %v13484_v50 = vld [vmem:[#allocation18 + $0xfc0] sm:$0xf]  ;;  %v14972_v38 = vld [vmem:[#allocation18 + $0xf64] sm:$0xf]  ;;  %v13438_v44 = vld [vmem:[#allocation18 + $0xf70] sm:$0xf0] }
 0x78f   : > { %v13485_v41 = vor.u32 %v14986_v51, %v13484_v50  ;;  %v13441_v39 = vor.u32 %v14972_v38, %v13438_v44  ;;  %v13422_v50 = vld [vmem:[#allocation18 + $0xf50] sm:$0xf0]  ;;  %v13172_v51 = vld [vmem:[#allocation18 + $0xd48] sm:$0xf]  ;;  %v14957_v38 = vld [vmem:[#allocation18 + $0xeec] sm:$0xf] }
 0x790   : > { %7978 = vmatpush.bf16.msra.mxu3 %v13061_v36  ;;  %7991 = vmatpush.bf16.msrb.mxu0 %v13065_v3  ;;  %v14984_v36 = vld [vmem:[#allocation18 + $0xfc4] sm:$0xf]  ;;  %v13486_v3 = vld [vmem:[#allocation18 + $0xfd0] sm:$0xf0]  ;;  %v13382_v44 = vld [vmem:[#allocation18 + $0xef8] sm:$0xf0] }
 0x791   : > { %v13489_v24 = vor.u32 %v14984_v36, %v13486_v3  ;;  %v14907_v36 = vld [vmem:[#allocation18 + $0xd54] sm:$0xf0]  ;;  %v14905_v3 = vld [vmem:[#allocation18 + $0xd4c] sm:$0xf]  ;;  %v13630_v54 = vld [vmem:[#allocation18 + $0x10f0] sm:$0xf0] }
 0x792   : > { %8455 = vmatpush.bf16.msrb.mxu1 %v13293_v48  ;;  %8468 = vmatpush.bf16.msrb.mxu2 %v13297_v34  ;;  %v14982_v48 = vld [vmem:[#allocation18 + $0xfac] sm:$0xf0]  ;;  %v13237_v34 = vor.u32 %v14923_v0, %v13236_v8  ;;  %v13174_v8 = vld [vmem:[#allocation18 + $0xd58] sm:$0xf0] }
 0x793   : > { %v13469_v25 = vor.u32 %v14982_v48, %v13468_v62  ;;  %v13404_v62 = vld [vmem:[#allocation18 + $0xf20] sm:$0xf]  ;;  %v14966_v48 = vld [vmem:[#allocation18 + $0xf2c] sm:$0xf0] }
 0x794   : > { %7979 = vmatpush.bf16.msra.mxu3 %v13045_v22  ;;  %7992 = vmatpush.bf16.msrb.mxu0 %v13049_v35  ;;  %v13220_v22 = vld [vmem:[#allocation18 + $0xda8] sm:$0xf]  ;;  %v14919_v35 = vld [vmem:[#allocation18 + $0xdb4] sm:$0xf0]  ;;  %v13405_v42 = vor.u32 %v14966_v48, %v13404_v62  ;;  %v13598_v62 = vld [vmem:[#allocation18 + $0x10b0] sm:$0xf0] }
 0x795   : > { %v13221_v45 = vor.u32 %v14919_v35, %v13220_v22  ;;  %v14903_v22 = vld [vmem:[#allocation18 + $0xd34] sm:$0xf0]  ;;  %v14901_v35 = vld [vmem:[#allocation18 + $0xd2c] sm:$0xf]  ;;  %v13348_v48 = vld [vmem:[#allocation18 + $0xea8] sm:$0xf] }
 0x796   : > { %8456 = vmatpush.bf16.msrb.mxu1 %v13277_v59  ;;  %8469 = vmatpush.bf16.msrb.mxu2 %v13281_v57  ;;  %v14976_v59 = vld [vmem:[#allocation18 + $0xf84] sm:$0xf]  ;;  %v13454_v57 = vld [vmem:[#allocation18 + $0xf90] sm:$0xf0] }
 0x797   : > { %v13457_v43 = vor.u32 %v14976_v59, %v13454_v57  ;;  %v13161_v59 = vor.u32 %v14901_v35, %v13158_v46  ;;  %v13628_v57 = vld [vmem:[#allocation18 + $0x10e0] sm:$0xf] }
 0x798   : > { %7980 = vmatpush.bf16.msra.mxu3 %v13029_v37  ;;  %7993 = vmatpush.bf16.msrb.mxu0 %v13033_v28  ;;  %v13453_v28 = vor.u32 %v14978_v2, %v13452_v49  ;;  %v14960_v49 = vld [vmem:[#allocation18 + $0xf04] sm:$0xf]  ;;  %v13390_v2 = vld [vmem:[#allocation18 + $0xf10] sm:$0xf0] }
 0x79a   : > { %8457 = vmatpush.bf16.msrb.mxu1 %v13261_v18  ;;  %8470 = vmatpush.bf16.msrb.mxu2 %v13265_v27  ;;  %v7455_v37 = vpop.f32.mrf.mxu1  ;;  %v14911_v18 = vld [vmem:[#allocation18 + $0xd74] sm:$0xf0]  ;;  %v14909_v27 = vld [vmem:[#allocation18 + $0xd6c] sm:$0xf] }
 0x79c   : > { %7981 = vmatpush.bf16.msra.mxu3 %v13013_v56  ;;  %7994 = vmatpush.bf16.msrb.mxu0 %v13017_v21  ;;  %v6989_v53 = vpop.f32.mrf.mxu0  ;;  %v13189_v56 = vor.u32 %v14911_v18, %v13188_v4  ;;  %v14968_v21 = vld [vmem:[#allocation18 + $0xf44] sm:$0xf]  ;;  %v13629_v4 = vor.u32 %v15022_v33, %v13628_v57  ;;  %v13633_v18 = vor.u32 %v15020_v17, %v13630_v54  ;;  %v13564_v33 = vld [vmem:[#allocation18 + $0x1060] sm:$0xf]  ;;  %v15006_v17 = vld [vmem:[#allocation18 + $0x106c] sm:$0xf0] }
 0x79d   : > { %8458 = vmatmul.bf16.vlgmr.msrb.gmra.mxu1 %v17813_v47  ;;  %8471 = vmatmul.bf16.vlgmr.msrb.gmra.mxu2 %v17813_v47  ;;  %v17823_v61 = vadd.f32 %v6989_v53, %v17804_v58  ;;  %v13193_v58 = vor.u32 %v14909_v27, %v13190_v29  ;;  %v13142_v53 = vld [vmem:[#allocation18 + $0xd18] sm:$0xf0] }
 0x79e   : > { %8701 = vmatpush.bf16.msra.mxu1 %v13501_v13  ;;  %8714 = vmatpush.bf16.msra.mxu2 %v13505_v5  ;;  %v14970_v13 = vld [vmem:[#allocation18 + $0xf4c] sm:$0xf0] }
 0x79f   : > { %7982 = vmatmul.bf16.vlgmr.msra.gmra.mxu3 %v17775_v20  ;;  %7995 = vmatmul.bf16.vlgmr.msrb.gmra.mxu0 %v17775_v20  ;;  %v17820_v20 = vadd.f32 %v7455_v37, %v17801_v15  ;;  %v13437_v15 = vor.u32 %v14974_v7, %v13436_v12  ;;  %v13421_v55 = vor.u32 %v14970_v13, %v13420_v30  ;;  %v13140_v37 = vld [vmem:[#allocation18 + $0xd08] sm:$0xf] }
 0x7a0   : > { %8225 = vmatpush.bf16.msrb.mxu3 %v13253_v63  ;;  %8238 = vmatpush.bf16.msra.mxu0 %v13257_v10  ;;  %v7468_v5 = vpop.f32.mrf.mxu2  ;;  %v13380_v12 = vld [vmem:[#allocation18 + $0xee8] sm:$0xf]  ;;  %v13385_v13 = vor.u32 %v14957_v38, %v13382_v44  ;;  %v13548_v38 = vld [vmem:[#allocation18 + $0x1040] sm:$0xf]  ;;  %v15002_v44 = vld [vmem:[#allocation18 + $0x104c] sm:$0xf0] }
 0x7a1   : > { %v17826_v63 = vadd.f32 %v7468_v5, %v17807_v32  ;;  %v13177_v32 = vor.u32 %v14905_v3, %v13174_v8  ;;  %v15016_v5 = vld [vmem:[#allocation18 + $0x10c4] sm:$0xf]  ;;  %v13596_v8 = vld [vmem:[#allocation18 + $0x10a0] sm:$0xf] }
 0x7a2   : > { %8702 = vmatpush.bf16.msra.mxu1 %v13485_v41  ;;  %8715 = vmatpush.bf16.msra.mxu2 %v13489_v24  ;;  %v6976_v10 = vpop.f32.mrf.mxu3  ;;  %v7457_v26 = vpop.f32.mrf.mxu1  ;;  %v13425_v41 = vor.u32 %v14968_v21, %v13422_v50  ;;  %v14955_v21 = vld [vmem:[#allocation18 + $0xed4] sm:$0xf0]  ;;  %v14953_v50 = vld [vmem:[#allocation18 + $0xecc] sm:$0xf] }
 0x7a3   : > { %v17829_v0 = vadd.f32 %v6976_v10, %v17810_v52  ;;  %v13388_v52 = vld [vmem:[#allocation18 + $0xf00] sm:$0xf]  ;;  %v17832_v10 = vrot.slane %v17718_v19, 3  ;;  %v15014_v26 = vld [vmem:[#allocation18 + $0x10ac] sm:$0xf0] }
 0x7a4   : > { %8226 = vmatpush.bf16.msrb.mxu3 %v13237_v34  ;;  %8239 = vmatpush.bf16.msra.mxu0 %v13241_v1  ;;  %v6991_v24 = vpop.f32.mrf.mxu0  ;;  %v13173_v34 = vor.u32 %v14907_v36, %v13172_v51  ;;  %v14964_v1 = vld [vmem:[#allocation18 + $0xf24] sm:$0xf]  ;;  %v13366_v51 = vld [vmem:[#allocation18 + $0xed8] sm:$0xf0]  ;;  %v13597_v19 = vor.u32 %v15014_v26, %v13596_v8  ;;  %v14998_v8 = vld [vmem:[#allocation18 + $0x102c] sm:$0xf0] }
 0x7a5   : > { %v15012_v24 = vld [vmem:[#allocation18 + $0x10a4] sm:$0xf] }
 0x7a6   : > { %8703 = vmatpush.bf16.msra.mxu1 %v13469_v25  ;;  %8716 = vmatpush.bf16.msra.mxu2 %v13473_v6  ;;  %v13409_v25 = vor.u32 %v14964_v1, %v13406_v9  ;;  %v14962_v6 = vld [vmem:[#allocation18 + $0xf0c] sm:$0xf0]  ;;  %v13350_v1 = vld [vmem:[#allocation18 + $0xeb8] sm:$0xf0]  ;;  %v13601_v9 = vor.u32 %v15012_v24, %v13598_v62  ;;  %v13284_v24 = vld [vmem:[#allocation18 + $0xe28] sm:$0xf] }
 0x7a7   : > { %v13389_v7 = vor.u32 %v14962_v6, %v13388_v52  ;;  %v15008_v52 = vld [vmem:[#allocation18 + $0x1084] sm:$0xf]  ;;  %v14947_v6 = vld [vmem:[#allocation18 + $0xe94] sm:$0xf0] }
 0x7a8   : > { %8227 = vmatpush.bf16.msrb.mxu3 %v13221_v45  ;;  %8240 = vmatpush.bf16.msra.mxu0 %v13225_v11  ;;  %v7470_v45 = vpop.f32.mrf.mxu2  ;;  %v13157_v11 = vor.u32 %v14903_v22, %v13156_v23  ;;  %v13580_v23 = vld [vmem:[#allocation18 + $0x1080] sm:$0xf]  ;;  %v15010_v22 = vld [vmem:[#allocation18 + $0x108c] sm:$0xf0]  ;;  %v14935_v62 = vld [vmem:[#allocation18 + $0xe34] sm:$0xf0] }
 0x7aa   : > { %8704 = vmatpush.bf16.msra.mxu1 %v13453_v28  ;;  %8717 = vmatpush.bf16.msra.mxu2 %v13457_v43  ;;  %v6978_v40 = vpop.f32.mrf.mxu3  ;;  %v14899_v28 = vld [vmem:[#allocation18 + $0xd14] sm:$0xf0]  ;;  %v14897_v43 = vld [vmem:[#allocation18 + $0xd0c] sm:$0xf] }
 0x7ab   : > { %v13141_v27 = vor.u32 %v14899_v28, %v13140_v37  ;;  %v13145_v29 = vor.u32 %v14897_v43, %v13142_v53  ;;  %v15004_v28 = vld [vmem:[#allocation18 + $0x1064] sm:$0xf]  ;;  %v13566_v43 = vld [vmem:[#allocation18 + $0x1070] sm:$0xf0]  ;;  %v13316_v53 = vld [vmem:[#allocation18 + $0xe68] sm:$0xf] }
 0x7ac   : > { %8228 = vmatpush.bf16.msrb.mxu3 %v13205_v16  ;;  %8241 = vmatpush.bf16.msra.mxu0 %v13209_v31  ;;  %v13393_v16 = vor.u32 %v14960_v49, %v13390_v2  ;;  %v14959_v31 = vld [vmem:[#allocation18 + $0xef4] sm:$0xf0]  ;;  %v14945_v49 = vld [vmem:[#allocation18 + $0xe8c] sm:$0xf]  ;;  %v13334_v2 = vld [vmem:[#allocation18 + $0xe98] sm:$0xf0] }
 0x7ad   : > { %v13381_v30 = vor.u32 %v14959_v31, %v13380_v12  ;;  %v13337_v37 = vor.u32 %v14945_v49, %v13334_v2  ;;  %v14943_v12 = vld [vmem:[#allocation18 + $0xe74] sm:$0xf0]  ;;  %v13569_v31 = vor.u32 %v15004_v28, %v13566_v43  ;;  %v13758_v49 = vld [vmem:[#allocation18 + $0x11f0] sm:$0xf0]  ;;  %v13268_v2 = vld [vmem:[#allocation18 + $0xe08] sm:$0xf] }
 0x7ae   : > { %8705 = vmatpush.bf16.msra.mxu1 %v13437_v15  ;;  %8718 = vmatpush.bf16.msra.mxu2 %v13441_v39  ;;  %v13612_v15 = vld [vmem:[#allocation18 + $0x10c0] sm:$0xf]  ;;  %v15018_v39 = vld [vmem:[#allocation18 + $0x10cc] sm:$0xf0]  ;;  %v13510_v28 = vld [vmem:[#allocation18 + $0xff8] sm:$0xf0] }
 0x7af   : > { %v13613_v36 = vor.u32 %v15018_v39, %v13612_v15  ;;  %v13300_v15 = vld [vmem:[#allocation18 + $0xe48] sm:$0xf] }
 0x7b0   : > { %8229 = vmatpush.bf16.msrb.mxu3 %v13189_v56  ;;  %8242 = vmatpush.bf16.msra.mxu0 %v13193_v58  ;;  %v13614_v56 = vld [vmem:[#allocation18 + $0x10d0] sm:$0xf0]  ;;  %v13364_v58 = vld [vmem:[#allocation18 + $0xec8] sm:$0xf] }
 0x7b1   : > { %v13617_v3 = vor.u32 %v15016_v5, %v13614_v56  ;;  %v14937_v5 = vld [vmem:[#allocation18 + $0xe4c] sm:$0xf]  ;;  %v13302_v56 = vld [vmem:[#allocation18 + $0xe58] sm:$0xf0] }
 0x7b2   : > { %8706 = vmatpush.bf16.msra.mxu1 %v13421_v55  ;;  %8719 = vmatpush.bf16.msra.mxu2 %v13425_v41  ;;  %v13365_v55 = vor.u32 %v14955_v21, %v13364_v58  ;;  %v13369_v41 = vor.u32 %v14953_v50, %v13366_v51  ;;  %v13549_v50 = vor.u32 %v15002_v44, %v13548_v38  ;;  %v15048_v44 = vld [vmem:[#allocation18 + $0x11c4] sm:$0xf] }
 0x7b4   : > { %8230 = vmatpush.bf16.msrb.mxu3 %v13173_v34  ;;  %8243 = vmatpush.bf16.msra.mxu0 %v13177_v32  ;;  %v14951_v34 = vld [vmem:[#allocation18 + $0xeb4] sm:$0xf0]  ;;  %v14949_v32 = vld [vmem:[#allocation18 + $0xeac] sm:$0xf] }
 0x7b5   : > { %v13349_v35 = vor.u32 %v14951_v34, %v13348_v48  ;;  %v13353_v46 = vor.u32 %v14949_v32, %v13350_v1  ;;  %v14933_v48 = vld [vmem:[#allocation18 + $0xe2c] sm:$0xf]  ;;  %v13286_v34 = vld [vmem:[#allocation18 + $0xe38] sm:$0xf0] }
 0x7b6   : > { %8707 = vmatpush.bf16.msra.mxu1 %v13405_v42  ;;  %8720 = vmatpush.bf16.msra.mxu2 %v13409_v25  ;;  %v13582_v42 = vld [vmem:[#allocation18 + $0x1090] sm:$0xf0]  ;;  %v13332_v25 = vld [vmem:[#allocation18 + $0xe88] sm:$0xf] }
 0x7b7   : > { %v13333_v54 = vor.u32 %v14947_v6, %v13332_v25  ;;  %v15052_v25 = vld [vmem:[#allocation18 + $0x11e4] sm:$0xf] }
 0x7b8   : > { %8231 = vmatpush.bf16.msrb.mxu3 %v13157_v11  ;;  %8244 = vmatpush.bf16.msra.mxu0 %v13161_v59  ;;  %v13581_v11 = vor.u32 %v15010_v22, %v13580_v23  ;;  %v13585_v59 = vor.u32 %v15008_v52, %v13582_v42  ;;  %v13518_v23 = vld [vmem:[#allocation18 + $0x1010] sm:$0xf0]  ;;  %v13756_v52 = vld [vmem:[#allocation18 + $0x11e0] sm:$0xf]  ;;  %v15054_v42 = vld [vmem:[#allocation18 + $0x11ec] sm:$0xf0] }
 0x7b9   : > { %v13757_v43 = vor.u32 %v15054_v42, %v13756_v52  ;;  %v13692_v52 = vld [vmem:[#allocation18 + $0x1160] sm:$0xf]  ;;  %v15038_v42 = vld [vmem:[#allocation18 + $0x116c] sm:$0xf0] }
 0x7ba   : > { %8708 = vmatpush.bf16.msra.mxu1 %v13389_v7  ;;  %8721 = vmatpush.bf16.msra.mxu2 %v13393_v16  ;;  %v7706_v45 = vpop.f32.mrf.mxu1  ;;  %v14941_v7 = vld [vmem:[#allocation18 + $0xe6c] sm:$0xf]  ;;  %v13318_v16 = vld [vmem:[#allocation18 + $0xe78] sm:$0xf0] }
 0x7bc   : > { %8232 = vmatpush.bf16.msrb.mxu3 %v13141_v27  ;;  %8245 = vmatpush.bf16.msra.mxu0 %v13145_v29  ;;  %v7242_v57 = vpop.f32.mrf.mxu0  ;;  %v15000_v27 = vld [vmem:[#allocation18 + $0x1044] sm:$0xf]  ;;  %v13550_v29 = vld [vmem:[#allocation18 + $0x1050] sm:$0xf0] }
 0x7bd   : > { %8709 = vmatmul.bf16.vlgmr.msra.gmra.mxu1 %v17832_v10  ;;  %8722 = vmatmul.bf16.vlgmr.msra.gmra.mxu2 %v17832_v10  ;;  %v17842_v40 = vadd.f32 %v7242_v57, %v17823_v61  ;;  %v13321_v61 = vor.u32 %v14941_v7, %v13318_v16  ;;  %v13553_v51 = vor.u32 %v15000_v27, %v13550_v29  ;;  %v13508_v57 = vld [vmem:[#allocation18 + $0xfe8] sm:$0xf]  ;;  %v13740_v16 = vld [vmem:[#allocation18 + $0x11c0] sm:$0xf]  ;;  %v14985_v27 = vld [vmem:[#allocation18 + $0xfcc] sm:$0xf] }
 0x7be   : > { %8951 = vmatpush.bf16.msrb.mxu1 %v13629_v4  ;;  %8964 = vmatpush.bf16.msrb.mxu2 %v13633_v18  ;;  %v13317_v18 = vor.u32 %v14943_v12, %v13316_v53  ;;  %v13761_v53 = vor.u32 %v15052_v25, %v13758_v49  ;;  %v13494_v29 = vld [vmem:[#allocation18 + $0xfd8] sm:$0xf0] }
 0x7bf   : > { %8233 = vmatmul.bf16.vlgmr.msrb.gmra.mxu3 %v17794_v60  ;;  %8246 = vmatmul.bf16.vlgmr.msra.gmra.mxu0 %v17794_v60  ;;  %v17839_v60 = vadd.f32 %v7706_v45, %v17820_v20  ;;  %v13565_v20 = vor.u32 %v15006_v17, %v13564_v33  ;;  %v14931_v45 = vld [vmem:[#allocation18 + $0xe14] sm:$0xf0] }
 0x7c0   : > { %8476 = vmatpush.bf16.msra.mxu3 %v13381_v30  ;;  %8489 = vmatpush.bf16.msrb.mxu0 %v13385_v13  ;;  %v7719_v4 = vpop.f32.mrf.mxu2  ;;  %v14939_v13 = vld [vmem:[#allocation18 + $0xe54] sm:$0xf0]  ;;  %v13269_v12 = vor.u32 %v14931_v45, %v13268_v2  ;;  %v15036_v2 = vld [vmem:[#allocation18 + $0x1164] sm:$0xf]  ;;  %v13694_v45 = vld [vmem:[#allocation18 + $0x1170] sm:$0xf0] }
 0x7c1   : > { %v17845_v39 = vadd.f32 %v7719_v4, %v17826_v63  ;;  %v13301_v26 = vor.u32 %v14939_v13, %v13300_v15  ;;  %v13305_v63 = vor.u32 %v14937_v5, %v13302_v56  ;;  %v13742_v4 = vld [vmem:[#allocation18 + $0x11d0] sm:$0xf0]  ;;  %v17852_v15 = vpack.c.bf16 %v17628_v14, %v17628_v14  ;;  %v13724_v5 = vld [vmem:[#allocation18 + $0x11a0] sm:$0xf]  ;;  %v15046_v56 = vld [vmem:[#allocation18 + $0x11ac] sm:$0xf0] }
 0x7c2   : > { %8952 = vmatpush.bf16.msrb.mxu1 %v13613_v36  ;;  %8965 = vmatpush.bf16.msrb.mxu2 %v13617_v3  ;;  %v7229_v30 = vpop.f32.mrf.mxu3  ;;  %v7708_v21 = vpop.f32.mrf.mxu1  ;;  %v13532_v3 = vld [vmem:[#allocation18 + $0x1020] sm:$0xf]  ;;  %v13745_v13 = vor.u32 %v15048_v44, %v13742_v4  ;;  %v14981_v14 = vld [vmem:[#allocation18 + $0xfac] sm:$0xf]  ;;  %v13430_v44 = vld [vmem:[#allocation18 + $0xf58] sm:$0xf0] }
 0x7c3   : > { %v17848_v58 = vadd.f32 %v7229_v30, %v17829_v0  ;;  %v13516_v0 = vld [vmem:[#allocation18 + $0x1000] sm:$0xf]  ;;  %v13533_v32 = vor.u32 %v14998_v8, %v13532_v3  ;;  %v13476_v3 = vld [vmem:[#allocation18 + $0xfa8] sm:$0xf]  ;;  %v14983_v8 = vld [vmem:[#allocation18 + $0xfb4] sm:$0xf0] }
 0x7c4   : > { %8477 = vmatpush.bf16.msra.mxu3 %v13365_v55  ;;  %8490 = vmatpush.bf16.msrb.mxu0 %v13369_v41  ;;  %v7244_v36 = vpop.f32.mrf.mxu0  ;;  %v14996_v55 = vld [vmem:[#allocation18 + $0x1024] sm:$0xf]  ;;  %v13534_v41 = vld [vmem:[#allocation18 + $0x1030] sm:$0xf0] }
 0x7c5   : > { %v13537_v1 = vor.u32 %v14996_v55, %v13534_v41  ;;  %v13726_v36 = vld [vmem:[#allocation18 + $0x11b0] sm:$0xf0]  ;;  %v13708_v41 = vld [vmem:[#allocation18 + $0x1180] sm:$0xf] }
 0x7c6   : > { %8953 = vmatpush.bf16.msrb.mxu1 %v13597_v19  ;;  %8966 = vmatpush.bf16.msrb.mxu2 %v13601_v9  ;;  %v14994_v19 = vld [vmem:[#allocation18 + $0x100c] sm:$0xf0]  ;;  %v14992_v9 = vld [vmem:[#allocation18 + $0x1004] sm:$0xf] }
 0x7c7   : > { %v13517_v33 = vor.u32 %v14994_v19, %v13516_v0  ;;  %v13521_v17 = vor.u32 %v14992_v9, %v13518_v23  ;;  %v13710_v0 = vld [vmem:[#allocation18 + $0x1190] sm:$0xf0]  ;;  %v14977_v19 = vld [vmem:[#allocation18 + $0xf8c] sm:$0xf]  ;;  %v13462_v9 = vld [vmem:[#allocation18 + $0xf98] sm:$0xf0] }
 0x7c8   : > { %8478 = vmatpush.bf16.msra.mxu3 %v13349_v35  ;;  %8491 = vmatpush.bf16.msrb.mxu0 %v13353_v46  ;;  %v7721_v22 = vpop.f32.mrf.mxu2  ;;  %v13285_v35 = vor.u32 %v14935_v62, %v13284_v24  ;;  %v13289_v46 = vor.u32 %v14933_v48, %v13286_v34  ;;  %v15042_v24 = vld [vmem:[#allocation18 + $0x118c] sm:$0xf0]  ;;  %v13477_v62 = vor.u32 %v14983_v8, %v13476_v3  ;;  %v15040_v34 = vld [vmem:[#allocation18 + $0x1184] sm:$0xf]  ;;  %v13414_v3 = vld [vmem:[#allocation18 + $0xf38] sm:$0xf0] }
 0x7c9   : > { %v13709_v22 = vor.u32 %v15042_v24, %v13708_v41  ;;  %v13465_v49 = vor.u32 %v14977_v19, %v13462_v9  ;;  %v13396_v19 = vld [vmem:[#allocation18 + $0xf08] sm:$0xf]  ;;  %v14963_v9 = vld [vmem:[#allocation18 + $0xf14] sm:$0xf0] }
 0x7ca   : > { %8954 = vmatpush.bf16.msrb.mxu1 %v13581_v11  ;;  %8967 = vmatpush.bf16.msrb.mxu2 %v13585_v59  ;;  %v7231_v6 = vpop.f32.mrf.mxu3  ;;  %v14929_v11 = vld [vmem:[#allocation18 + $0xe0c] sm:$0xf]  ;;  %v13270_v59 = vld [vmem:[#allocation18 + $0xe18] sm:$0xf0] }
 0x7cb   : > { %v13273_v7 = vor.u32 %v14929_v11, %v13270_v59  ;;  %v13444_v11 = vld [vmem:[#allocation18 + $0xf68] sm:$0xf]  ;;  %v14975_v59 = vld [vmem:[#allocation18 + $0xf74] sm:$0xf0] }
 0x7cc   : > { %8479 = vmatpush.bf16.msra.mxu3 %v13333_v54  ;;  %8492 = vmatpush.bf16.msrb.mxu0 %v13337_v37  ;;  %v14991_v54 = vld [vmem:[#allocation18 + $0xff4] sm:$0xf0]  ;;  %v14989_v37 = vld [vmem:[#allocation18 + $0xfec] sm:$0xf] }
 0x7cd   : > { %v13513_v38 = vor.u32 %v14989_v37, %v13510_v28  ;;  %v15034_v37 = vld [vmem:[#allocation18 + $0x114c] sm:$0xf0] }
 0x7ce   : > { %8955 = vmatpush.bf16.msrb.mxu1 %v13565_v20  ;;  %8968 = vmatpush.bf16.msrb.mxu2 %v13569_v31  ;;  %v15050_v20 = vld [vmem:[#allocation18 + $0x11cc] sm:$0xf0]  ;;  %v13509_v31 = vor.u32 %v14991_v54, %v13508_v57  ;;  %v14973_v57 = vld [vmem:[#allocation18 + $0xf6c] sm:$0xf]  ;;  %v13676_v54 = vld [vmem:[#allocation18 + $0x1140] sm:$0xf] }
 0x7cf   : > { %v13741_v30 = vor.u32 %v15050_v20, %v13740_v16 }
 0x7d0   : > { %8480 = vmatpush.bf16.msra.mxu3 %v13317_v18  ;;  %8493 = vmatpush.bf16.msrb.mxu0 %v13321_v61  ;;  %v13492_v18 = vld [vmem:[#allocation18 + $0xfc8] sm:$0xf]  ;;  %v14987_v61 = vld [vmem:[#allocation18 + $0xfd4] sm:$0xf0] }
 0x7d1   : > { %v13493_v21 = vor.u32 %v14987_v61, %v13492_v18  ;;  %v13677_v61 = vor.u32 %v15034_v37, %v13676_v54  ;;  %v15080_v54 = vld [vmem:[#allocation18 + $0x12c4] sm:$0xf]  ;;  %v13870_v37 = vld [vmem:[#allocation18 + $0x12d0] sm:$0xf0] }
 0x7d2   : > { %8956 = vmatpush.bf16.msrb.mxu1 %v13549_v50  ;;  %8969 = vmatpush.bf16.msrb.mxu2 %v13553_v51  ;;  %v13497_v50 = vor.u32 %v14985_v27, %v13494_v29  ;;  %v15044_v51 = vld [vmem:[#allocation18 + $0x11a4] sm:$0xf] }
 0x7d3   : > { %v13729_v55 = vor.u32 %v15044_v51, %v13726_v36  ;;  %v14967_v51 = vld [vmem:[#allocation18 + $0xf34] sm:$0xf0]  ;;  %v14965_v36 = vld [vmem:[#allocation18 + $0xf2c] sm:$0xf] }
 0x7d4   : > { %8481 = vmatpush.bf16.msra.mxu3 %v13301_v26  ;;  %8494 = vmatpush.bf16.msrb.mxu0 %v13305_v63  ;;  %v13478_v26 = vld [vmem:[#allocation18 + $0xfb8] sm:$0xf0]  ;;  %v13725_v63 = vor.u32 %v15046_v56, %v13724_v5  ;;  %v15028_v56 = vld [vmem:[#allocation18 + $0x1124] sm:$0xf] }
 0x7d5   : > { %v13481_v48 = vor.u32 %v14981_v14, %v13478_v26  ;;  %v15026_v26 = vld [vmem:[#allocation18 + $0x110c] sm:$0xf0] }
 0x7d6   : > { %8957 = vmatpush.bf16.msrb.mxu1 %v13533_v32  ;;  %8970 = vmatpush.bf16.msrb.mxu2 %v13537_v1  ;;  %v13460_v32 = vld [vmem:[#allocation18 + $0xf88] sm:$0xf]  ;;  %v14979_v1 = vld [vmem:[#allocation18 + $0xf94] sm:$0xf0] }
 0x7d7   : > { %v13461_v6 = vor.u32 %v14979_v1, %v13460_v32  ;;  %v13886_v1 = vld [vmem:[#allocation18 + $0x12f0] sm:$0xf0] }
 0x7d8   : > { %8482 = vmatpush.bf16.msra.mxu3 %v13285_v35  ;;  %8495 = vmatpush.bf16.msrb.mxu0 %v13289_v46  ;;  %v13713_v35 = vor.u32 %v15040_v34, %v13710_v0  ;;  %v15086_v34 = vld [vmem:[#allocation18 + $0x12ec] sm:$0xf0]  ;;  %v15084_v0 = vld [vmem:[#allocation18 + $0x12e4] sm:$0xf] }
 0x7da   : > { %8958 = vmatpush.bf16.msrb.mxu1 %v13517_v33  ;;  %8971 = vmatpush.bf16.msrb.mxu2 %v13521_v17  ;;  %v7957_v23 = vpop.f32.mrf.mxu1  ;;  %v13446_v33 = vld [vmem:[#allocation18 + $0xf78] sm:$0xf0]  ;;  %v13697_v17 = vor.u32 %v15036_v2, %v13694_v45  ;;  %v13889_v45 = vor.u32 %v15084_v0, %v13886_v1 }
 0x7dc   : > { %8483 = vmatpush.bf16.msra.mxu3 %v13269_v12  ;;  %8496 = vmatpush.bf16.msrb.mxu0 %v13273_v7  ;;  %v7494_v46 = vpop.f32.mrf.mxu0  ;;  %v13678_v12 = vld [vmem:[#allocation18 + $0x1150] sm:$0xf0]  ;;  %v13428_v7 = vld [vmem:[#allocation18 + $0xf48] sm:$0xf] }
 0x7dd   : > { %8959 = vmatmul.bf16.vlgmr.msrb.gmra.mxu1 %v17852_v15  ;;  %8972 = vmatmul.bf16.vlgmr.msrb.gmra.mxu2 %v17852_v15  ;;  %v17862_v25 = vadd.f32 %v7494_v46, %v17842_v40  ;;  %v13449_v40 = vor.u32 %v14973_v57, %v13446_v33  ;;  %v13868_v57 = vld [vmem:[#allocation18 + $0x12c0] sm:$0xf]  ;;  %v15082_v33 = vld [vmem:[#allocation18 + $0x12cc] sm:$0xf0] }
 0x7de   : > { %9204 = vmatpush.bf16.msra.mxu1 %v13757_v43  ;;  %9217 = vmatpush.bf16.msra.mxu2 %v13761_v53  ;;  %v13445_v43 = vor.u32 %v14975_v59, %v13444_v11  ;;  %v15032_v53 = vld [vmem:[#allocation18 + $0x1144] sm:$0xf]  ;;  %v13397_v11 = vor.u32 %v14963_v9, %v13396_v19  ;;  %v13822_v9 = vld [vmem:[#allocation18 + $0x1270] sm:$0xf0] }
 0x7df   : > { %8484 = vmatmul.bf16.vlgmr.msra.gmra.mxu3 %v17813_v47  ;;  %8497 = vmatmul.bf16.vlgmr.msrb.gmra.mxu0 %v17813_v47  ;;  %v17859_v47 = vadd.f32 %v7957_v23, %v17839_v60  ;;  %v13693_v60 = vor.u32 %v15038_v42, %v13692_v52  ;;  %v13681_v27 = vor.u32 %v15032_v53, %v13678_v12  ;;  %v14961_v23 = vld [vmem:[#allocation18 + $0xf0c] sm:$0xf]  ;;  %v15023_v42 = vld [vmem:[#allocation18 + $0x10f4] sm:$0xf0]  ;;  %v13622_v53 = vld [vmem:[#allocation18 + $0x10d8] sm:$0xf0] }
 0x7e0   : > { %8727 = vmatpush.bf16.msrb.mxu3 %v13509_v31  ;;  %8740 = vmatpush.bf16.msra.mxu0 %v13513_v38  ;;  %v7970_v28 = vpop.f32.mrf.mxu2  ;;  %v14971_v31 = vld [vmem:[#allocation18 + $0xf54] sm:$0xf0]  ;;  %v14969_v38 = vld [vmem:[#allocation18 + $0xf4c] sm:$0xf]  ;;  %v17871_v12 = vshrl.u32 %v17852_v15, 16 }
 0x7e1   : > { %v17865_v16 = vadd.f32 %v7970_v28, %v17845_v39  ;;  %v13429_v5 = vor.u32 %v14971_v31, %v13428_v7  ;;  %v13433_v39 = vor.u32 %v14969_v38, %v13430_v44  ;;  %v13620_v28 = vld [vmem:[#allocation18 + $0x10c8] sm:$0xf]  ;;  %v13869_v7 = vor.u32 %v15082_v33, %v13868_v57  ;;  %v13852_v31 = vld [vmem:[#allocation18 + $0x12a0] sm:$0xf]  ;;  %v15078_v38 = vld [vmem:[#allocation18 + $0x12ac] sm:$0xf0] }
 0x7e2   : > { %9205 = vmatpush.bf16.msra.mxu1 %v13741_v30  ;;  %9218 = vmatpush.bf16.msra.mxu2 %v13745_v13  ;;  %v7481_v20 = vpop.f32.mrf.mxu3  ;;  %v7959_v18 = vpop.f32.mrf.mxu1  ;;  %v13660_v30 = vld [vmem:[#allocation18 + $0x1120] sm:$0xf]  ;;  %v15030_v13 = vld [vmem:[#allocation18 + $0x112c] sm:$0xf0]  ;;  %v15068_v19 = vld [vmem:[#allocation18 + $0x1264] sm:$0xf] }
 0x7e3   : > { %v17868_v4 = vadd.f32 %v7481_v20, %v17848_v58  ;;  %v13644_v58 = vld [vmem:[#allocation18 + $0x1100] sm:$0xf]  ;;  %v13661_v8 = vor.u32 %v15030_v13, %v13660_v30  ;;  %v13873_v20 = vor.u32 %v15080_v54, %v13870_v37  ;;  %v15015_v30 = vld [vmem:[#allocation18 + $0x10b4] sm:$0xf0]  ;;  %v15013_v13 = vld [vmem:[#allocation18 + $0x10ac] sm:$0xf] }
 0x7e4   : > { %8728 = vmatpush.bf16.msrb.mxu3 %v13493_v21  ;;  %8741 = vmatpush.bf16.msra.mxu0 %v13497_v50  ;;  %v7496_v29 = vpop.f32.mrf.mxu0  ;;  %v13662_v21 = vld [vmem:[#allocation18 + $0x1130] sm:$0xf0]  ;;  %v13412_v50 = vld [vmem:[#allocation18 + $0xf28] sm:$0xf]  ;;  %v13645_v46 = vor.u32 %v15026_v26, %v13644_v58  ;;  %v15009_v26 = vld [vmem:[#allocation18 + $0x108c] sm:$0xf] }
 0x7e5   : > { %v13665_v14 = vor.u32 %v15028_v56, %v13662_v21  ;;  %v13413_v24 = vor.u32 %v14967_v51, %v13412_v50  ;;  %v13604_v29 = vld [vmem:[#allocation18 + $0x10a8] sm:$0xf]  ;;  %v13836_v21 = vld [vmem:[#allocation18 + $0x1280] sm:$0xf]  ;;  %v15074_v50 = vld [vmem:[#allocation18 + $0x128c] sm:$0xf0] }
 0x7e6   : > { %9206 = vmatpush.bf16.msra.mxu1 %v13725_v63  ;;  %9219 = vmatpush.bf16.msra.mxu2 %v13729_v55  ;;  %v15024_v63 = vld [vmem:[#allocation18 + $0x1104] sm:$0xf]  ;;  %v13646_v55 = vld [vmem:[#allocation18 + $0x1110] sm:$0xf0]  ;;  %v13605_v51 = vor.u32 %v15015_v30, %v13604_v29  ;;  %v13558_v54 = vld [vmem:[#allocation18 + $0x1058] sm:$0xf0] }
 0x7e7   : > { %v13649_v52 = vor.u32 %v15024_v63, %v13646_v55  ;;  %v13838_v58 = vld [vmem:[#allocation18 + $0x1290] sm:$0xf0]  ;;  %v13590_v63 = vld [vmem:[#allocation18 + $0x1098] sm:$0xf0] }
 0x7e8   : > { %8729 = vmatpush.bf16.msrb.mxu3 %v13477_v62  ;;  %8742 = vmatpush.bf16.msra.mxu0 %v13481_v48  ;;  %v7972_v41 = vpop.f32.mrf.mxu2  ;;  %v13417_v62 = vor.u32 %v14965_v36, %v13414_v3  ;;  %v13884_v48 = vld [vmem:[#allocation18 + $0x12e0] sm:$0xf]  ;;  %v15072_v3 = vld [vmem:[#allocation18 + $0x1284] sm:$0xf]  ;;  %v13593_v1 = vor.u32 %v15009_v26, %v13590_v63  ;;  %v13542_v29 = vld [vmem:[#allocation18 + $0x1038] sm:$0xf0] }
 0x7e9   : > { %v13885_v2 = vor.u32 %v15086_v34, %v13884_v48  ;;  %v13837_v41 = vor.u32 %v15074_v50, %v13836_v21  ;;  %v13820_v48 = vld [vmem:[#allocation18 + $0x1260] sm:$0xf]  ;;  %v15070_v34 = vld [vmem:[#allocation18 + $0x126c] sm:$0xf0]  ;;  %v13764_v26 = vld [vmem:[#allocation18 + $0x11e8] sm:$0xf] }
 0x7ea   : > { %9207 = vmatpush.bf16.msra.mxu1 %v13709_v22  ;;  %9220 = vmatpush.bf16.msra.mxu2 %v13713_v35  ;;  %v7483_v32 = vpop.f32.mrf.mxu3  ;;  %v13398_v22 = vld [vmem:[#allocation18 + $0xf18] sm:$0xf0]  ;;  %v13636_v35 = vld [vmem:[#allocation18 + $0x10e8] sm:$0xf]  ;;  %v15055_v63 = vld [vmem:[#allocation18 + $0x11f4] sm:$0xf0] }
 0x7eb   : > { %v13401_v59 = vor.u32 %v14961_v23, %v13398_v22  ;;  %v13572_v23 = vld [vmem:[#allocation18 + $0x1068] sm:$0xf]  ;;  %v15007_v22 = vld [vmem:[#allocation18 + $0x1074] sm:$0xf0] }
 0x7ec   : > { %8730 = vmatpush.bf16.msrb.mxu3 %v13461_v6  ;;  %8743 = vmatpush.bf16.msra.mxu0 %v13465_v49  ;;  %v15021_v6 = vld [vmem:[#allocation18 + $0x10ec] sm:$0xf]  ;;  %v13638_v49 = vld [vmem:[#allocation18 + $0x10f8] sm:$0xf0] }
 0x7ee   : > { %9208 = vmatpush.bf16.msra.mxu1 %v13693_v60  ;;  %9221 = vmatpush.bf16.msra.mxu2 %v13697_v17  ;;  %v13637_v60 = vor.u32 %v15023_v42, %v13636_v35  ;;  %v13641_v17 = vor.u32 %v15021_v6, %v13638_v49  ;;  %v15005_v35 = vld [vmem:[#allocation18 + $0x106c] sm:$0xf]  ;;  %v13804_v42 = vld [vmem:[#allocation18 + $0x1240] sm:$0xf]  ;;  %v15066_v6 = vld [vmem:[#allocation18 + $0x124c] sm:$0xf0] }
 0x7f0   : > { %8731 = vmatpush.bf16.msrb.mxu3 %v13445_v43  ;;  %8744 = vmatpush.bf16.msra.mxu0 %v13449_v40  ;;  %v15019_v43 = vld [vmem:[#allocation18 + $0x10d4] sm:$0xf0]  ;;  %v15017_v40 = vld [vmem:[#allocation18 + $0x10cc] sm:$0xf] }
 0x7f1   : > { %v13621_v44 = vor.u32 %v15019_v43, %v13620_v28  ;;  %v13625_v18 = vor.u32 %v15017_v40, %v13622_v53  ;;  %v13805_v43 = vor.u32 %v15066_v6, %v13804_v42  ;;  %v15047_v42 = vld [vmem:[#allocation18 + $0x11b4] sm:$0xf0]  ;;  %v15045_v6 = vld [vmem:[#allocation18 + $0x11ac] sm:$0xf] }
 0x7f2   : > { %9209 = vmatpush.bf16.msra.mxu1 %v13677_v61  ;;  %9222 = vmatpush.bf16.msra.mxu2 %v13681_v27  ;;  %v15076_v61 = vld [vmem:[#allocation18 + $0x12a4] sm:$0xf]  ;;  %v13854_v27 = vld [vmem:[#allocation18 + $0x12b0] sm:$0xf0] }
 0x7f3   : > { %v13857_v56 = vor.u32 %v15076_v61, %v13854_v27  ;;  %v14999_v61 = vld [vmem:[#allocation18 + $0x1034] sm:$0xf0]  ;;  %v14997_v27 = vld [vmem:[#allocation18 + $0x102c] sm:$0xf] }
 0x7f4   : > { %8732 = vmatpush.bf16.msrb.mxu3 %v13429_v5  ;;  %8745 = vmatpush.bf16.msra.mxu0 %v13433_v39  ;;  %v13606_v5 = vld [vmem:[#allocation18 + $0x10b8] sm:$0xf0]  ;;  %v13853_v39 = vor.u32 %v15078_v38, %v13852_v31  ;;  %v15060_v38 = vld [vmem:[#allocation18 + $0x1224] sm:$0xf]  ;;  %v13545_v50 = vor.u32 %v14997_v27, %v13542_v29 }
 0x7f5   : > { %v13609_v36 = vor.u32 %v15013_v13, %v13606_v5  ;;  %v13772_v13 = vld [vmem:[#allocation18 + $0x1200] sm:$0xf]  ;;  %v15058_v5 = vld [vmem:[#allocation18 + $0x120c] sm:$0xf0] }
 0x7f6   : > { %9210 = vmatpush.bf16.msra.mxu1 %v13661_v8  ;;  %9223 = vmatpush.bf16.msra.mxu2 %v13665_v14  ;;  %v13588_v8 = vld [vmem:[#allocation18 + $0x1088] sm:$0xf]  ;;  %v15011_v14 = vld [vmem:[#allocation18 + $0x1094] sm:$0xf0] }
 0x7f7   : > { %v13589_v32 = vor.u32 %v15011_v14, %v13588_v8  ;;  %v14993_v8 = vld [vmem:[#allocation18 + $0x100c] sm:$0xf]  ;;  %v13526_v14 = vld [vmem:[#allocation18 + $0x1018] sm:$0xf0] }
 0x7f8   : > { %8733 = vmatpush.bf16.msrb.mxu3 %v13413_v24  ;;  %8746 = vmatpush.bf16.msra.mxu0 %v13417_v62  ;;  %v13841_v24 = vor.u32 %v15072_v3, %v13838_v58  ;;  %v14995_v3 = vld [vmem:[#allocation18 + $0x1014] sm:$0xf0] }
 0x7fa   : > { %9211 = vmatpush.bf16.msra.mxu1 %v13645_v46  ;;  %9224 = vmatpush.bf16.msra.mxu2 %v13649_v52  ;;  %v8208_v55 = vpop.f32.mrf.mxu1  ;;  %v13574_v46 = vld [vmem:[#allocation18 + $0x1078] sm:$0xf0]  ;;  %v13825_v52 = vor.u32 %v15068_v19, %v13822_v9  ;;  %v13748_v19 = vld [vmem:[#allocation18 + $0x11c8] sm:$0xf]  ;;  %v15051_v9 = vld [vmem:[#allocation18 + $0x11d4] sm:$0xf0] }
 0x7fc   : > { %8734 = vmatpush.bf16.msrb.mxu3 %v13397_v11  ;;  %8747 = vmatpush.bf16.msra.mxu0 %v13401_v59  ;;  %v7745_v62 = vpop.f32.mrf.mxu0  ;;  %v13806_v11 = vld [vmem:[#allocation18 + $0x1250] sm:$0xf0]  ;;  %v13556_v59 = vld [vmem:[#allocation18 + $0x1048] sm:$0xf] }
 0x7fd   : > { %9212 = vmatmul.bf16.vlgmr.msra.gmra.mxu1 %v17871_v12  ;;  %9225 = vmatmul.bf16.vlgmr.msra.gmra.mxu2 %v17871_v12  ;;  %v17881_v0 = vadd.f32 %v7745_v62, %v17862_v25  ;;  %v13577_v25 = vor.u32 %v15005_v35, %v13574_v46  ;;  %v17890_v35 = vrot.slane %v17852_v15, 1  ;;  %v13749_v46 = vor.u32 %v15051_v9, %v13748_v19  ;;  %v15081_v19 = vld [vmem:[#allocation18 + $0x12cc] sm:$0xf]  ;;  %v13878_v9 = vld [vmem:[#allocation18 + $0x12d8] sm:$0xf0] }
 0x7fe   : > { %9456 = vmatpush.bf16.msrb.mxu1 %v13885_v2  ;;  %9469 = vmatpush.bf16.msrb.mxu2 %v13889_v45  ;;  %v13573_v2 = vor.u32 %v15007_v22, %v13572_v23  ;;  %v15064_v45 = vld [vmem:[#allocation18 + $0x1244] sm:$0xf]  ;;  %v15049_v23 = vld [vmem:[#allocation18 + $0x11cc] sm:$0xf]  ;;  %v13750_v22 = vld [vmem:[#allocation18 + $0x11d8] sm:$0xf0] }
 0x7ff   : > { %8735 = vmatmul.bf16.vlgmr.msrb.gmra.mxu3 %v17832_v10  ;;  %8748 = vmatmul.bf16.vlgmr.msra.gmra.mxu0 %v17832_v10  ;;  %v17878_v10 = vadd.f32 %v8208_v55, %v17859_v47  ;;  %v13821_v47 = vor.u32 %v15070_v34, %v13820_v48  ;;  %v13809_v40 = vor.u32 %v15064_v45, %v13806_v11  ;;  %v15053_v55 = vld [vmem:[#allocation18 + $0x11ec] sm:$0xf]  ;;  %v13716_v45 = vld [vmem:[#allocation18 + $0x1188] sm:$0xf]  ;;  %v15043_v11 = vld [vmem:[#allocation18 + $0x1194] sm:$0xf0] }
 0x800   : > { %8977 = vmatpush.bf16.msra.mxu3 %v13637_v60  ;;  %8990 = vmatpush.bf16.msrb.mxu0 %v13641_v17  ;;  %v8221_v49 = vpop.f32.mrf.mxu2  ;;  %v15003_v60 = vld [vmem:[#allocation18 + $0x1054] sm:$0xf0]  ;;  %v15001_v17 = vld [vmem:[#allocation18 + $0x104c] sm:$0xf]  ;;  %v13529_v34 = vor.u32 %v14993_v8, %v13526_v14  ;;  %v13892_v14 = vld [vmem:[#allocation18 + $0x12e8] sm:$0xf] }
 0x801   : > { %v17884_v57 = vadd.f32 %v8221_v49, %v17865_v16  ;;  %v13557_v31 = vor.u32 %v15003_v60, %v13556_v59  ;;  %v13561_v16 = vor.u32 %v15001_v17, %v13558_v54  ;;  %v13734_v49 = vld [vmem:[#allocation18 + $0x11b8] sm:$0xf0]  ;;  %v15041_v59 = vld [vmem:[#allocation18 + $0x118c] sm:$0xf] }
 0x802   : > { %9457 = vmatpush.bf16.msrb.mxu1 %v13869_v7  ;;  %9470 = vmatpush.bf16.msrb.mxu2 %v13873_v20  ;;  %v7732_v33 = vpop.f32.mrf.mxu3  ;;  %v8210_v28 = vpop.f32.mrf.mxu1  ;;  %v13788_v7 = vld [vmem:[#allocation18 + $0x1220] sm:$0xf]  ;;  %v15062_v20 = vld [vmem:[#allocation18 + $0x122c] sm:$0xf0]  ;;  %v15025_v8 = vld [vmem:[#allocation18 + $0x110c] sm:$0xf] }
 0x803   : > { %v17887_v37 = vadd.f32 %v7732_v33, %v17868_v4  ;;  %v13789_v4 = vor.u32 %v15062_v20, %v13788_v7  ;;  %v13718_v33 = vld [vmem:[#allocation18 + $0x1198] sm:$0xf0]  ;;  %v13717_v28 = vor.u32 %v15043_v11, %v13716_v45  ;;  %v15037_v7 = vld [vmem:[#allocation18 + $0x116c] sm:$0xf] }
 0x804   : > { %8978 = vmatpush.bf16.msra.mxu3 %v13621_v44  ;;  %8991 = vmatpush.bf16.msrb.mxu0 %v13625_v18  ;;  %v7747_v53 = vpop.f32.mrf.mxu0  ;;  %v13790_v44 = vld [vmem:[#allocation18 + $0x1230] sm:$0xf0]  ;;  %v13540_v18 = vld [vmem:[#allocation18 + $0x1028] sm:$0xf]  ;;  %v13702_v20 = vld [vmem:[#allocation18 + $0x1178] sm:$0xf0] }
 0x805   : > { %v13793_v30 = vor.u32 %v15060_v38, %v13790_v44  ;;  %v13541_v21 = vor.u32 %v14999_v61, %v13540_v18  ;;  %v15039_v53 = vld [vmem:[#allocation18 + $0x1174] sm:$0xf0]  ;;  %v13684_v38 = vld [vmem:[#allocation18 + $0x1148] sm:$0xf]  ;;  %v15033_v61 = vld [vmem:[#allocation18 + $0x114c] sm:$0xf] }
 0x806   : > { %9458 = vmatpush.bf16.msrb.mxu1 %v13853_v39  ;;  %9471 = vmatpush.bf16.msrb.mxu2 %v13857_v56  ;;  %v15056_v39 = vld [vmem:[#allocation18 + $0x1204] sm:$0xf]  ;;  %v15035_v18 = vld [vmem:[#allocation18 + $0x1154] sm:$0xf0]  ;;  %v15073_v45 = vld [vmem:[#allocation18 + $0x128c] sm:$0xf] }
 0x807   : > { %v13846_v11 = vld [vmem:[#allocation18 + $0x1298] sm:$0xf0] }
 0x808   : > { %8979 = vmatpush.bf16.msra.mxu3 %v13605_v51  ;;  %8992 = vmatpush.bf16.msrb.mxu0 %v13609_v36  ;;  %v8223_v56 = vpop.f32.mrf.mxu2  ;;  %v13774_v51 = vld [vmem:[#allocation18 + $0x1210] sm:$0xf0]  ;;  %v13524_v36 = vld [vmem:[#allocation18 + $0x1008] sm:$0xf] }
 0x809   : > { %v13777_v62 = vor.u32 %v15056_v39, %v13774_v51  ;;  %v13525_v48 = vor.u32 %v14995_v3, %v13524_v36  ;;  %v13668_v39 = vld [vmem:[#allocation18 + $0x1128] sm:$0xf]  ;;  %v15031_v56 = vld [vmem:[#allocation18 + $0x1134] sm:$0xf0] }
 0x80a   : > { %9459 = vmatpush.bf16.msrb.mxu1 %v13837_v41  ;;  %9472 = vmatpush.bf16.msrb.mxu2 %v13841_v24  ;;  %v7734_v58 = vpop.f32.mrf.mxu3  ;;  %v13766_v41 = vld [vmem:[#allocation18 + $0x11f8] sm:$0xf0]  ;;  %v13773_v24 = vor.u32 %v15058_v5, %v13772_v13  ;;  %v13685_v13 = vor.u32 %v15035_v18, %v13684_v38  ;;  %v13669_v51 = vor.u32 %v15031_v56, %v13668_v39  ;;  %v15027_v3 = vld [vmem:[#allocation18 + $0x1114] sm:$0xf0]  ;;  %v13796_v56 = vld [vmem:[#allocation18 + $0x1228] sm:$0xf] }
 0x80b   : > { %v15067_v38 = vld [vmem:[#allocation18 + $0x1254] sm:$0xf0]  ;;  %v13814_v18 = vld [vmem:[#allocation18 + $0x1258] sm:$0xf0] }
 0x80c   : > { %8980 = vmatpush.bf16.msra.mxu3 %v13589_v32  ;;  %8993 = vmatpush.bf16.msrb.mxu0 %v13593_v1  ;;  %v13765_v32 = vor.u32 %v15055_v63, %v13764_v26  ;;  %v13769_v1 = vor.u32 %v15053_v55, %v13766_v41  ;;  %v15087_v63 = vld [vmem:[#allocation18 + $0x12f4] sm:$0xf0]  ;;  %v15085_v55 = vld [vmem:[#allocation18 + $0x12ec] sm:$0xf]  ;;  %v13894_v41 = vld [vmem:[#allocation18 + $0x12f8] sm:$0xf0] }
 0x80e   : > { %9460 = vmatpush.bf16.msrb.mxu1 %v13821_v47  ;;  %9473 = vmatpush.bf16.msrb.mxu2 %v13825_v52  ;;  %v13753_v47 = vor.u32 %v15049_v23, %v13750_v22  ;;  %v13732_v52 = vld [vmem:[#allocation18 + $0x11a8] sm:$0xf]  ;;  %v13881_v22 = vor.u32 %v15081_v19, %v13878_v9  ;;  %v13948_v19 = vld [vmem:[%s18634_s19 + $0x60] sm:$0xf]  ;;  %v15101_v9 = vld [vmem:[%s18634_s19 + $0x68] sm:$0xf0] }
 0x810   : > { %8981 = vmatpush.bf16.msra.mxu3 %v13573_v2  ;;  %8994 = vmatpush.bf16.msrb.mxu0 %v13577_v25  ;;  %v13733_v2 = vor.u32 %v15047_v42, %v13732_v52  ;;  %v13737_v25 = vor.u32 %v15045_v6, %v13734_v49  ;;  %v15077_v52 = vld [vmem:[#allocation18 + $0x12ac] sm:$0xf]  ;;  %v13862_v42 = vld [vmem:[#allocation18 + $0x12b8] sm:$0xf0] }
 0x811   : > { %v13865_v49 = vor.u32 %v15077_v52, %v13862_v42  ;;  %v13949_v52 = vor.u32 %v15101_v9, %v13948_v19  ;;  %v14056_v42 = vld [vmem:[%s18634_s19 + $0x138] sm:$0xf] }
 0x812   : > { %9461 = vmatpush.bf16.msrb.mxu1 %v13805_v43  ;;  %9474 = vmatpush.bf16.msrb.mxu2 %v13809_v40  ;;  %v13721_v43 = vor.u32 %v15041_v59, %v13718_v33  ;;  %v13700_v40 = vld [vmem:[#allocation18 + $0x1168] sm:$0xf] }
 0x814   : > { %8982 = vmatpush.bf16.msra.mxu3 %v13557_v31  ;;  %8995 = vmatpush.bf16.msrb.mxu0 %v13561_v16  ;;  %v13701_v31 = vor.u32 %v15039_v53, %v13700_v40  ;;  %v13705_v16 = vor.u32 %v15037_v7, %v13702_v20  ;;  %v15071_v40 = vld [vmem:[#allocation18 + $0x1274] sm:$0xf0]  ;;  %v13830_v53 = vld [vmem:[#allocation18 + $0x1278] sm:$0xf0] }
 0x816   : > { %9462 = vmatpush.bf16.msrb.mxu1 %v13789_v4  ;;  %9475 = vmatpush.bf16.msrb.mxu2 %v13793_v30 }
 0x818   : > { %8983 = vmatpush.bf16.msra.mxu3 %v13541_v21  ;;  %8996 = vmatpush.bf16.msrb.mxu0 %v13545_v50  ;;  %v15029_v21 = vld [vmem:[#allocation18 + $0x112c] sm:$0xf]  ;;  %v13670_v50 = vld [vmem:[#allocation18 + $0x1138] sm:$0xf0] }
 0x819   : > { %v13673_v36 = vor.u32 %v15029_v21, %v13670_v50  ;;  %v15063_v50 = vld [vmem:[#allocation18 + $0x1234] sm:$0xf0] }
 0x81a   : > { %9463 = vmatpush.bf16.msrb.mxu1 %v13773_v24  ;;  %9476 = vmatpush.bf16.msrb.mxu2 %v13777_v62  ;;  %v8459_v60 = vpop.f32.mrf.mxu1 }
 0x81b   : > { %v17897_v17 = vadd.f32 %v8459_v60, %v17878_v10  ;;  %v13686_v10 = vld [vmem:[#allocation18 + $0x1158] sm:$0xf0]  ;;  %v13849_v60 = vor.u32 %v15073_v45, %v13846_v11  ;;  %v14044_v11 = vld [vmem:[%s18634_s19 + $0x120] sm:$0xf] }
 0x81c   : > { %8984 = vmatpush.bf16.msra.mxu3 %v13525_v48  ;;  %8997 = vmatpush.bf16.msrb.mxu0 %v13529_v34  ;;  %v7996_v54 = vpop.f32.mrf.mxu0  ;;  %v13689_v5 = vor.u32 %v15033_v61, %v13686_v10  ;;  %v13893_v48 = vor.u32 %v15087_v63, %v13892_v14  ;;  %v13897_v34 = vor.u32 %v15085_v55, %v13894_v41  ;;  %v15110_v10 = vld [vmem:[%s18634_s19 + $0xb0] sm:$0xf0]  ;;  %v14080_v63 = vld [vmem:[%s18634_s19 + $0x168] sm:$0xf] }
 0x81d   : > { %9464 = vmatmul.bf16.vlgmr.msrb.gmra.mxu1 %v17890_v35  ;;  %9477 = vmatmul.bf16.vlgmr.msrb.gmra.mxu2 %v17890_v35  ;;  %v15134_v55 = vld [vmem:[%s18634_s19 + $0x170] sm:$0xf0] }
 0x81e   : > { %v14081_v41 = vor.u32 %v15134_v55, %v14080_v63  ;;  %v15103_v55 = vld [vmem:[%s18634_s19 + $0x7c] sm:$0xf] }
 0x81f   : > { %8985 = vmatmul.bf16.vlgmr.msra.gmra.mxu3 %v17852_v15  ;;  %8998 = vmatmul.bf16.vlgmr.msrb.gmra.mxu0 %v17852_v15  ;;  %v17900_v15 = vadd.f32 %v7996_v54, %v17881_v0  ;;  %v13828_v54 = vld [vmem:[#allocation18 + $0x1268] sm:$0xf] }
 0x820   : > { %9230 = vmatpush.bf16.msrb.mxu3 %v13765_v32  ;;  %9243 = vmatpush.bf16.msra.mxu0 %v13769_v1  ;;  %v8472_v44 = vpop.f32.mrf.mxu2  ;;  %v13876_v32 = vld [vmem:[#allocation18 + $0x12c8] sm:$0xf]  ;;  %v15083_v1 = vld [vmem:[#allocation18 + $0x12d4] sm:$0xf0]  ;;  %v13829_v20 = vor.u32 %v15071_v40, %v13828_v54  ;;  %v15095_v54 = vld [vmem:[%s18634_s19 + $0x38] sm:$0xf0] }
 0x821   : > { %v17903_v27 = vadd.f32 %v8472_v44, %v17884_v57  ;;  %v13652_v57 = vld [vmem:[#allocation18 + $0x1108] sm:$0xf]  ;;  %v13877_v23 = vor.u32 %v15083_v1, %v13876_v32  ;;  %v15065_v44 = vld [vmem:[#allocation18 + $0x124c] sm:$0xf]  ;;  %v15131_v1 = vld [vmem:[%s18634_s19 + $0x158] sm:$0xf0]  ;;  %10195 = vmatpush.bf16.msra.mxu2 %v14081_v41 }
 0x822   : > { %v7983_v29 = vpop.f32.mrf.mxu3  ;;  %v8461_v0 = vpop.f32.mrf.mxu1  ;;  %v13653_v24 = vor.u32 %v15027_v3, %v13652_v57  ;;  %v13817_v39 = vor.u32 %v15065_v44, %v13814_v18  ;;  %v15107_v57 = vld [vmem:[%s18634_s19 + $0x98] sm:$0xf0]  ;;  %v13780_v3 = vld [vmem:[#allocation18 + $0x1208] sm:$0xf]  ;;  %v14032_v40 = vld [vmem:[%s18634_s19 + $0x108] sm:$0xf] }
 0x823   : > { %v17906_v4 = vadd.f32 %v7983_v29, %v17887_v37  ;;  %v13654_v37 = vld [vmem:[#allocation18 + $0x1118] sm:$0xf0]  ;;  %v14020_v18 = vld [vmem:[%s18634_s19 + $0xf0] sm:$0xf] }
 0x824   : > { %9231 = vmatpush.bf16.msrb.mxu3 %v13749_v46  ;;  %9244 = vmatpush.bf16.msra.mxu0 %v13753_v47  ;;  %v7998_v30 = vpop.f32.mrf.mxu0  ;;  %v13657_v62 = vor.u32 %v15025_v8, %v13654_v37  ;;  %v13860_v46 = vld [vmem:[#allocation18 + $0x12a8] sm:$0xf]  ;;  %v15079_v47 = vld [vmem:[#allocation18 + $0x12b4] sm:$0xf0]  ;;  %v13797_v37 = vor.u32 %v15063_v50, %v13796_v56  ;;  %v14008_v56 = vld [vmem:[%s18634_s19 + $0xd8] sm:$0xf] }
 0x825   : > { %v13861_v6 = vor.u32 %v15079_v47, %v13860_v46  ;;  %v13962_v41 = vld [vmem:[%s18634_s19 + $0x84] sm:$0xf0] }
 0x828   : > { %9232 = vmatpush.bf16.msrb.mxu3 %v13733_v2  ;;  %9245 = vmatpush.bf16.msra.mxu0 %v13737_v25  ;;  %v8474_v58 = vpop.f32.mrf.mxu2  ;;  %v13844_v2 = vld [vmem:[#allocation18 + $0x1288] sm:$0xf]  ;;  %v15075_v25 = vld [vmem:[#allocation18 + $0x1294] sm:$0xf0] }
 0x829   : > { %v13845_v33 = vor.u32 %v15075_v25, %v13844_v2  ;;  %v15057_v58 = vld [vmem:[#allocation18 + $0x120c] sm:$0xf] }
 0x82a   : > { %v7985_v26 = vpop.f32.mrf.mxu3  ;;  %v15098_v2 = vld [vmem:[%s18634_s19 + $0x50] sm:$0xf0] }
 0x82b   : > { %v13782_v26 = vld [vmem:[#allocation18 + $0x1218] sm:$0xf0] }
 0x82c   : > { %9233 = vmatpush.bf16.msrb.mxu3 %v13717_v28  ;;  %9246 = vmatpush.bf16.msra.mxu0 %v13721_v43  ;;  %v13785_v47 = vor.u32 %v15057_v58, %v13782_v26  ;;  %v14082_v26 = vld [vmem:[%s18634_s19 + $0x174] sm:$0xf0] }
 0x830   : > { %9234 = vmatpush.bf16.msrb.mxu3 %v13701_v31  ;;  %9247 = vmatpush.bf16.msra.mxu0 %v13705_v16  ;;  %v13812_v16 = vld [vmem:[#allocation18 + $0x1248] sm:$0xf] }
 0x834   : > { %9235 = vmatpush.bf16.msrb.mxu3 %v13685_v13  ;;  %9248 = vmatpush.bf16.msra.mxu0 %v13689_v5  ;;  %v13813_v5 = vor.u32 %v15067_v38, %v13812_v16 }
 0x838   : > { %9236 = vmatpush.bf16.msrb.mxu3 %v13669_v51  ;;  %9249 = vmatpush.bf16.msra.mxu0 %v13673_v36  ;;  %v15061_v51 = vld [vmem:[#allocation18 + $0x122c] sm:$0xf]  ;;  %v13798_v36 = vld [vmem:[#allocation18 + $0x1238] sm:$0xf0] }
 0x839   : > { %v13801_v14 = vor.u32 %v15061_v51, %v13798_v36 }
 0x83a   : > { %v8710_v59 = vpop.f32.mrf.mxu1 }
 0x83b   : > { %v17911_v28 = vadd.f32 %v8710_v59, %v17897_v17  ;;  %v13984_v17 = vld [vmem:[%s18634_s19 + $0xa8] sm:$0xf]  ;;  %v15125_v59 = vld [vmem:[%s18634_s19 + $0x128] sm:$0xf0] }
 0x83c   : > { %9237 = vmatpush.bf16.msrb.mxu3 %v13653_v24  ;;  %9250 = vmatpush.bf16.msra.mxu0 %v13657_v62  ;;  %v8247_v43 = vpop.f32.mrf.mxu0  ;;  %v13985_v0 = vor.u32 %v15110_v10, %v13984_v17  ;;  %v13960_v24 = vld [vmem:[%s18634_s19 + $0x78] sm:$0xf]  ;;  %v15104_v62 = vld [vmem:[%s18634_s19 + $0x80] sm:$0xf0]  ;;  %v13900_v10 = vld [vmem:[%s18634_s19] sm:$0xf] }
 0x83d   : > { %v17914_v7 = vadd.f32 %v8247_v43, %v17900_v15  ;;  %v13961_v32 = vor.u32 %v15104_v62, %v13960_v24  ;;  %v15130_v24 = vld [vmem:[%s18634_s19 + $0x154] sm:$0xf] }
 0x83e   : > { %10182 = vmatpush.bf16.msra.mxu1 %v13985_v0  ;;  %v15109_v0 = vld [vmem:[%s18634_s19 + $0xac] sm:$0xf] }
 0x83f   : > { %9238 = vmatmul.bf16.vlgmr.msrb.gmra.mxu3 %v17871_v12  ;;  %9251 = vmatmul.bf16.vlgmr.msra.gmra.mxu0 %v17871_v12  ;;  %v15069_v12 = vld [vmem:[#allocation18 + $0x126c] sm:$0xf] }
 0x840   : > { %9482 = vmatpush.bf16.msra.mxu3 %v13893_v48  ;;  %9495 = vmatpush.bf16.msrb.mxu0 %v13897_v34  ;;  %v13833_v31 = vor.u32 %v15069_v12, %v13830_v53  ;;  %v8723_v61 = vpop.f32.mrf.mxu2  ;;  %v14068_v48 = vld [vmem:[%s18634_s19 + $0x150] sm:$0xf] }
 0x841   : > { %v17923_v15 = vadd.f32 %v8723_v61, %v17903_v27  ;;  %v13972_v27 = vld [vmem:[%s18634_s19 + $0x90] sm:$0xf]  ;;  %v15119_v61 = vld [vmem:[%s18634_s19 + $0xf8] sm:$0xf0] }
 0x842   : > { %v8234_v29 = vpop.f32.mrf.mxu3  ;;  %v8712_v13 = vpop.f32.mrf.mxu1  ;;  %v13973_v8 = vor.u32 %v15107_v57, %v13972_v27  ;;  %v14021_v17 = vor.u32 %v15119_v61, %v14020_v18  ;;  %v15088_v61 = vld [vmem:[%s18634_s19 + $0x4] sm:$0xf] }
 0x843   : > { %v17926_v30 = vadd.f32 %v8234_v29, %v17906_v4  ;;  %v15059_v4 = vld [vmem:[#allocation18 + $0x1214] sm:$0xf0]  ;;  %v13986_v13 = vld [vmem:[%s18634_s19 + $0xb4] sm:$0xf0] }
 0x844   : > { %9483 = vmatpush.bf16.msra.mxu3 %v13877_v23  ;;  %9496 = vmatpush.bf16.msrb.mxu0 %v13881_v22  ;;  %v8249_v21 = vpop.f32.mrf.mxu0  ;;  %v14069_v22 = vor.u32 %v15131_v1, %v14068_v48  ;;  %v13781_v46 = vor.u32 %v15059_v4, %v13780_v3  ;;  %v15106_v3 = vld [vmem:[%s18634_s19 + $0x94] sm:$0xf]  ;;  %v13974_v4 = vld [vmem:[%s18634_s19 + $0x9c] sm:$0xf0]  ;;  %v13965_v48 = vor.u32 %v15103_v55, %v13962_v41  ;;  %v13950_v1 = vld [vmem:[%s18634_s19 + $0x6c] sm:$0xf0] }
 0x845   : > { %10183 = vmatpush.bf16.msra.mxu1 %v13973_v8  ;;  %v15116_v21 = vld [vmem:[%s18634_s19 + $0xe0] sm:$0xf0]  ;;  %v13977_v58 = vor.u32 %v15106_v3, %v13974_v4  ;;  %v13996_v8 = vld [vmem:[%s18634_s19 + $0xc0] sm:$0xf]  ;;  %v13998_v3 = vld [vmem:[%s18634_s19 + $0xcc] sm:$0xf0] }
 0x846   : > { %10196 = vmatpush.bf16.msra.mxu2 %v14069_v22  ;;  %v14009_v51 = vor.u32 %v15116_v21, %v14008_v56  ;;  %v15127_v22 = vld [vmem:[%s18634_s19 + $0x13c] sm:$0xf]  ;;  %v15176_v55 = vld [vmem:[%s18634_s19 + $0x2c0] sm:$0xf0] }
 0x848   : > { %9484 = vmatpush.bf16.msra.mxu3 %v13861_v6  ;;  %9497 = vmatpush.bf16.msrb.mxu0 %v13865_v49  ;;  %v8725_v34 = vpop.f32.mrf.mxu2  ;;  %v15128_v6 = vld [vmem:[%s18634_s19 + $0x140] sm:$0xf0]  ;;  %v13936_v49 = vld [vmem:[%s18634_s19 + $0x48] sm:$0xf] }
 0x849   : > { %10184 = vmatpush.bf16.msra.mxu1 %v13961_v32  ;;  %v14057_v25 = vor.u32 %v15128_v6, %v14056_v42  ;;  %v13937_v45 = vor.u32 %v15098_v2, %v13936_v49  ;;  %v14070_v34 = vld [vmem:[%s18634_s19 + $0x15c] sm:$0xf0]  ;;  %v15100_v32 = vld [vmem:[%s18634_s19 + $0x64] sm:$0xf]  ;;  %v14046_v2 = vld [vmem:[%s18634_s19 + $0x12c] sm:$0xf0] }
 0x84a   : > { %v8236_v23 = vpop.f32.mrf.mxu3  ;;  %v14073_v9 = vor.u32 %v15130_v24, %v14070_v34  ;;  %v15124_v49 = vld [vmem:[%s18634_s19 + $0x124] sm:$0xf] }
 0x84b   : > { %10197 = vmatpush.bf16.msra.mxu2 %v14057_v25  ;;  %v13953_v23 = vor.u32 %v15100_v32, %v13950_v1  ;;  %v14049_v25 = vor.u32 %v15124_v49, %v14046_v2  ;;  %v14236_v32 = vld [vmem:[%s18634_s19 + $0x2a0] sm:$0xf]  ;;  %v15173_v1 = vld [vmem:[%s18634_s19 + $0x2a8] sm:$0xf0] }
 0x84c   : > { %9485 = vmatpush.bf16.msra.mxu3 %v13845_v33  ;;  %9498 = vmatpush.bf16.msrb.mxu0 %v13849_v60  ;;  %v14045_v33 = vor.u32 %v15125_v59, %v14044_v11  ;;  %v13924_v60 = vld [vmem:[%s18634_s19 + $0x30] sm:$0xf]  ;;  %v13926_v11 = vld [vmem:[%s18634_s19 + $0x3c] sm:$0xf0]  ;;  %v18190_v49 = vld [vmem:[#allocation19] sm:$0xf] }
 0x84d   : > { %10185 = vmatpush.bf16.msra.mxu1 %v13949_v52  ;;  %v13925_v43 = vor.u32 %v15095_v54, %v13924_v60  ;;  %v13938_v52 = vld [vmem:[%s18634_s19 + $0x54] sm:$0xf0] }
 0x84e   : > { %v14034_v60 = vld [vmem:[%s18634_s19 + $0x114] sm:$0xf0] }
 0x84f   : > { %10198 = vmatpush.bf16.msra.mxu2 %v14045_v33  ;;  %v15121_v33 = vld [vmem:[%s18634_s19 + $0x10c] sm:$0xf] }
 0x850   : > { %9486 = vmatpush.bf16.msra.mxu3 %v13829_v20  ;;  %9499 = vmatpush.bf16.msrb.mxu0 %v13833_v31  ;;  %v13912_v20 = vld [vmem:[%s18634_s19 + $0x18] sm:$0xf]  ;;  %v15092_v31 = vld [vmem:[%s18634_s19 + $0x20] sm:$0xf0]  ;;  %v14037_v54 = vor.u32 %v15121_v33, %v14034_v60  ;;  %v9514_v60 = vperm.slane %v18190_v49, 0 }
 0x851   : > { %10186 = vmatpush.bf16.msra.mxu1 %v13937_v45  ;;  %v13913_v38 = vor.u32 %v15092_v31, %v13912_v20  ;;  %v15094_v45 = vld [vmem:[%s18634_s19 + $0x34] sm:$0xf] }
 0x852   : > { %v13929_v59 = vor.u32 %v15094_v45, %v13926_v11  ;;  %v15118_v31 = vld [vmem:[%s18634_s19 + $0xf4] sm:$0xf]  ;;  %v14212_v45 = vld [vmem:[%s18634_s19 + $0x270] sm:$0xf]  ;;  %v15167_v11 = vld [vmem:[%s18634_s19 + $0x278] sm:$0xf0] }
 0x854   : > { %9487 = vmatpush.bf16.msra.mxu3 %v13813_v5  ;;  %9500 = vmatpush.bf16.msrb.mxu0 %v13817_v39  ;;  %v13989_v39 = vor.u32 %v15109_v0, %v13986_v13  ;;  %v14272_v13 = vld [vmem:[%s18634_s19 + $0x2e8] sm:$0xf] }
 0x855   : > { %10187 = vmatpush.bf16.msra.mxu1 %v13925_v43  ;;  %v15091_v43 = vld [vmem:[%s18634_s19 + $0x1c] sm:$0xf] }
 0x858   : > { %9488 = vmatpush.bf16.msra.mxu3 %v13797_v37  ;;  %9501 = vmatpush.bf16.msrb.mxu0 %v13801_v14  ;;  %v15133_v14 = vld [vmem:[%s18634_s19 + $0x16c] sm:$0xf] }
 0x859   : > { %10188 = vmatpush.bf16.msra.mxu1 %v13913_v38  ;;  %v14085_v63 = vor.u32 %v15133_v14, %v14082_v26 }
 0x85a   : > { %v17990_v53 = vpop.f32.mrf.mxu1 }
 0x85c   : > { %9489 = vmatpush.bf16.msra.mxu3 %v13781_v46  ;;  %9502 = vmatpush.bf16.msrb.mxu0 %v13785_v47  ;;  %v8498_v16 = vpop.f32.mrf.mxu0  ;;  %v14058_v46 = vld [vmem:[%s18634_s19 + $0x144] sm:$0xf0]  ;;  %v15097_v47 = vld [vmem:[%s18634_s19 + $0x4c] sm:$0xf] }
 0x85d   : > { %v17999_v44 = vadd.f32 %v8498_v16, %v17914_v7  ;;  %v15089_v7 = vld [vmem:[%s18634_s19 + $0x8] sm:$0xf0]  ;;  %v14061_v42 = vor.u32 %v15127_v22, %v14058_v46  ;;  %v13941_v6 = vor.u32 %v15097_v47, %v13938_v52  ;;  %v14022_v16 = vld [vmem:[%s18634_s19 + $0xfc] sm:$0xf0]  ;;  %v14224_v46 = vld [vmem:[%s18634_s19 + $0x288] sm:$0xf] }
 0x85e   : > { %v13901_v29 = vor.u32 %v15089_v7, %v13900_v10  ;;  %v14025_v18 = vor.u32 %v15118_v31, %v14022_v16  ;;  %v15115_v7 = vld [vmem:[%s18634_s19 + $0xdc] sm:$0xf]  ;;  %v15170_v47 = vld [vmem:[%s18634_s19 + $0x290] sm:$0xf0]  ;;  %v13992_v31 = vld [vmem:[%s18634_s19 + $0xb0] sm:$0xf] }
 0x85f   : > { %9490 = vmatmul.bf16.vlgmr.msra.gmra.mxu3 %v17890_v35  ;;  %9503 = vmatmul.bf16.vlgmr.msrb.gmra.mxu0 %v17890_v35  ;;  %v15122_v35 = vld [vmem:[%s18634_s19 + $0x110] sm:$0xf0]  ;;  %v14225_v52 = vor.u32 %v15170_v47, %v14224_v46 }
 0x860   : > { %v14033_v12 = vor.u32 %v15122_v35, %v14032_v40  ;;  %v18019_v5 = vpop.f32.mrf.mxu2  ;;  %10189 = vmatpush.bf16.msra.mxu1 %v13901_v29  ;;  %v13914_v40 = vld [vmem:[%s18634_s19 + $0x24] sm:$0xf0] }
 0x862   : > { %10199 = vmatpush.bf16.msra.mxu2 %v14033_v12  ;;  %v8485_v50 = vpop.f32.mrf.mxu3  ;;  %v8962_v27 = vpop.f32.mrf.mxu1  ;;  %v13917_v12 = vor.u32 %v15091_v43, %v13914_v40 }
 0x863   : > { %v18028_v36 = vadd.f32 %v8485_v50, %v17926_v30  ;;  %v15113_v30 = vld [vmem:[%s18634_s19 + $0xc8] sm:$0xf0] }
 0x864   : > { %10234 = vmatpush.bf16.msrb.mxu1 %v13989_v39  ;;  %v8500_v57 = vpop.f32.mrf.mxu0  ;;  %v13997_v37 = vor.u32 %v15113_v30, %v13996_v8  ;;  %v15182_v39 = vld [vmem:[%s18634_s19 + $0x2f0] sm:$0xf0]  ;;  %v14176_v30 = vld [vmem:[%s18634_s19 + $0x228] sm:$0xf] }
 0x865   : > { %v14273_v21 = vor.u32 %v15182_v39, %v14272_v13  ;;  %v15112_v57 = vld [vmem:[%s18634_s19 + $0xc4] sm:$0xf]  ;;  %v15161_v39 = vld [vmem:[%s18634_s19 + $0x248] sm:$0xf0] }
 0x866   : > { %10200 = vmatpush.bf16.msra.mxu2 %v14021_v17  ;;  %v13902_v17 = vld [vmem:[%s18634_s19 + $0xc] sm:$0xf0]  ;;  %v14001_v4 = vor.u32 %v15112_v57, %v13998_v3  ;;  %v15181_v57 = vld [vmem:[%s18634_s19 + $0x2ec] sm:$0xf] }
 0x867   : > { %v13905_v10 = vor.u32 %v15088_v61, %v13902_v17  ;;  %10221 = vmatpush.bf16.msra.mxu0 %v14273_v21  ;;  %v15111_v17 = vld [vmem:[%s18634_s19 + $0xb8] sm:$0xf0] }
 0x868   : > { %10235 = vmatpush.bf16.msrb.mxu1 %v13977_v58  ;;  %v8975_v62 = vpop.f32.mrf.mxu2  ;;  %v14260_v58 = vld [vmem:[%s18634_s19 + $0x2d0] sm:$0xf]  ;;  %v13993_v21 = vor.u32 %v15111_v17, %v13992_v31  ;;  %v15129_v17 = vld [vmem:[%s18634_s19 + $0x148] sm:$0xf0] }
 0x869   : > { %v14164_v62 = vld [vmem:[%s18634_s19 + $0x210] sm:$0xf] }
 0x86a   : > { %10201 = vmatpush.bf16.msra.mxu2 %v14009_v51  ;;  %v8487_v19 = vpop.f32.mrf.mxu3 }
 0x86b   : > { %v14237_v19 = vor.u32 %v15173_v1, %v14236_v32  ;;  %v15178_v32 = vld [vmem:[%s18634_s19 + $0x2d4] sm:$0xf]  ;;  %v14262_v1 = vld [vmem:[%s18634_s19 + $0x2dc] sm:$0xf0] }
 0x86c   : > { %10236 = vmatpush.bf16.msrb.mxu1 %v13965_v48  ;;  %v15155_v48 = vld [vmem:[%s18634_s19 + $0x218] sm:$0xf0] }
 0x86d   : > { %v14165_v34 = vor.u32 %v15155_v48, %v14164_v62  ;;  %v13968_v62 = vld [vmem:[%s18634_s19 + $0x80] sm:$0xf] }
 0x86e   : > { %10202 = vmatpush.bf16.msra.mxu2 %v13997_v37  ;;  %v15158_v37 = vld [vmem:[%s18634_s19 + $0x230] sm:$0xf0] }
 0x86f   : > { %v14177_v14 = vor.u32 %v15158_v37, %v14176_v30  ;;  %v15140_v30 = vld [vmem:[%s18634_s19 + $0x1a0] sm:$0xf0] }
 0x870   : > { %10237 = vmatpush.bf16.msrb.mxu1 %v13953_v23  ;;  %v15152_v23 = vld [vmem:[%s18634_s19 + $0x200] sm:$0xf0] }
 0x871   : > { %10208 = vmatpush.bf16.msrb.mxu3 %v14177_v14 }
 0x872   : > { %10247 = vmatpush.bf16.msrb.mxu2 %v14085_v63  ;;  %v14248_v63 = vld [vmem:[%s18634_s19 + $0x2b8] sm:$0xf] }
 0x873   : > { %v14249_v24 = vor.u32 %v15176_v55, %v14248_v63 }
 0x874   : > { %10238 = vmatpush.bf16.msrb.mxu1 %v13941_v6  ;;  %v15149_v6 = vld [vmem:[%s18634_s19 + $0x1e8] sm:$0xf0] }
 0x875   : > { %10209 = vmatpush.bf16.msrb.mxu3 %v14165_v34  ;;  %v15105_v34 = vld [vmem:[%s18634_s19 + $0x88] sm:$0xf0] }
 0x876   : > { %10248 = vmatpush.bf16.msrb.mxu2 %v14073_v9  ;;  %v14152_v9 = vld [vmem:[%s18634_s19 + $0x1f8] sm:$0xf] }
 0x877   : > { %v14153_v22 = vor.u32 %v15152_v23, %v14152_v9  ;;  %v14265_v9 = vor.u32 %v15178_v32, %v14262_v1  ;;  %v14092_v23 = vld [vmem:[%s18634_s19 + $0x180] sm:$0xf]  ;;  %v15145_v1 = vld [vmem:[%s18634_s19 + $0x1cc] sm:$0xf] }
 0x878   : > { %10239 = vmatpush.bf16.msrb.mxu1 %v13929_v59  ;;  %v14213_v59 = vor.u32 %v15167_v11, %v14212_v45  ;;  %v13956_v45 = vld [vmem:[%s18634_s19 + $0x68] sm:$0xf] }
 0x879   : > { %10210 = vmatpush.bf16.msrb.mxu3 %v14153_v22  ;;  %v15137_v22 = vld [vmem:[%s18634_s19 + $0x188] sm:$0xf0] }
 0x87a   : > { %10249 = vmatpush.bf16.msrb.mxu2 %v14061_v42  ;;  %v18102_v35 = vpop.f32.mrf.mxu1  ;;  %v14140_v42 = vld [vmem:[%s18634_s19 + $0x1e0] sm:$0xf]  ;;  %v14093_v47 = vor.u32 %v15137_v22, %v14092_v23  ;;  %v15120_v23 = vld [vmem:[%s18634_s19 + $0x100] sm:$0xf0] }
 0x87b   : > { %v14141_v2 = vor.u32 %v15149_v6, %v14140_v42  ;;  %v14178_v42 = vld [vmem:[%s18634_s19 + $0x234] sm:$0xf0] }
 0x87c   : > { %v8749_v20 = vpop.f32.mrf.mxu0  ;;  %10240 = vmatpush.bf16.msrb.mxu1 %v13917_v12 }
 0x87d   : > { %v18111_v38 = vadd.f32 %v8749_v20, %v17999_v44  ;;  %v14010_v44 = vld [vmem:[%s18634_s19 + $0xe4] sm:$0xf0]  ;;  %10211 = vmatpush.bf16.msrb.mxu3 %v14141_v2  ;;  %v15164_v20 = vld [vmem:[%s18634_s19 + $0x260] sm:$0xf0]  ;;  %v14076_v2 = vld [vmem:[%s18634_s19 + $0x158] sm:$0xf] }
 0x87e   : > { %10250 = vmatpush.bf16.msrb.mxu2 %v14049_v25  ;;  %v14013_v0 = vor.u32 %v15115_v7, %v14010_v44  ;;  %v9003_v25 = vadd.f32 %v17990_v53, %v17911_v28  ;;  %v15146_v28 = vld [vmem:[%s18634_s19 + $0x1d0] sm:$0xf0]  ;;  %v15143_v7 = vld [vmem:[%s18634_s19 + $0x1b8] sm:$0xf0] }
 0x880   : > { %v18125_v29 = vpop.f32.mrf.mxu2  ;;  %10241 = vmatpush.bf16.msrb.mxu1 %v13905_v10  ;;  %v9256_v33 = vadd.f32 %v18102_v35, %v9003_v25  ;;  %v14200_v35 = vld [vmem:[%s18634_s19 + $0x258] sm:$0xf]  ;;  %v14116_v10 = vld [vmem:[%s18634_s19 + $0x1b0] sm:$0xf]  ;;  %v15132_v25 = vld [vmem:[%s18634_s19 + $0x160] sm:$0xf0] }
 0x881   : > { %v14201_v16 = vor.u32 %v15164_v20, %v14200_v35  ;;  %v14117_v44 = vor.u32 %v15143_v7, %v14116_v10  ;;  %v14166_v35 = vld [vmem:[%s18634_s19 + $0x21c] sm:$0xf0]  ;;  %v15172_v20 = vld [vmem:[%s18634_s19 + $0x2a4] sm:$0xf]  ;;  %v14077_v31 = vor.u32 %v15132_v25, %v14076_v2  ;;  %v15151_v10 = vld [vmem:[%s18634_s19 + $0x1fc] sm:$0xf] }
 0x882   : > { %10251 = vmatpush.bf16.msrb.mxu2 %v14037_v54  ;;  %v8736_v56 = vpop.f32.mrf.mxu3  ;;  %v9215_v51 = vpop.f32.mrf.mxu1  ;;  %v14128_v54 = vld [vmem:[%s18634_s19 + $0x1c8] sm:$0xf]  ;;  %v15090_v25 = vld [vmem:[%s18634_s19 + $0x10] sm:$0xf0] }
 0x883   : > { %v18134_v50 = vadd.f32 %v8736_v56, %v18028_v36  ;;  %v15179_v36 = vld [vmem:[%s18634_s19 + $0x2d8] sm:$0xf0]  ;;  %v14129_v43 = vor.u32 %v15146_v28, %v14128_v54  ;;  %v13980_v51 = vld [vmem:[%s18634_s19 + $0x98] sm:$0xf]  ;;  %v14250_v28 = vld [vmem:[%s18634_s19 + $0x2c4] sm:$0xf0] }
 0x884   : > { %v8751_v27 = vpop.f32.mrf.mxu0  ;;  %v14261_v8 = vor.u32 %v15179_v36, %v14260_v58  ;;  %v14274_v36 = vld [vmem:[%s18634_s19 + $0x2f4] sm:$0xf0]  ;;  %v15175_v54 = vld [vmem:[%s18634_s19 + $0x2bc] sm:$0xf]  ;;  %v14154_v7 = vld [vmem:[%s18634_s19 + $0x204] sm:$0xf0] }
 0x885   : > { %10212 = vmatpush.bf16.msrb.mxu3 %v14129_v43  ;;  %v14277_v14 = vor.u32 %v15181_v57, %v14274_v36  ;;  %v14253_v43 = vor.u32 %v15175_v54, %v14250_v28  ;;  %v14142_v57 = vld [vmem:[%s18634_s19 + $0x1ec] sm:$0xf0]  ;;  %v13908_v2 = vld [vmem:[%s18634_s19 + $0x8] sm:$0xf]  ;;  %v15117_v54 = vld [vmem:[%s18634_s19 + $0xe8] sm:$0xf0] }
 0x886   : > { %10252 = vmatpush.bf16.msrb.mxu2 %v14025_v18  ;;  %10222 = vmatpush.bf16.msra.mxu0 %v14261_v8  ;;  %v9004_v18 = vadd.f32 %v18019_v5, %v17923_v15  ;;  %v9515_v15 = vperm.slane %v18190_v49, 1  ;;  %v14188_v5 = vld [vmem:[%s18634_s19 + $0x240] sm:$0xf]  ;;  %v14104_v8 = vld [vmem:[%s18634_s19 + $0x198] sm:$0xf] }
 0x887   : > { %v14189_v27 = vor.u32 %v15161_v39, %v14188_v5  ;;  %v15169_v5 = vld [vmem:[%s18634_s19 + $0x28c] sm:$0xf]  ;;  %v14226_v39 = vld [vmem:[%s18634_s19 + $0x294] sm:$0xf0] }
 0x888   : > { %v9228_v26 = vpop.f32.mrf.mxu2  ;;  %v14229_v36 = vor.u32 %v15169_v5, %v14226_v39 }
 0x889   : > { %10213 = vmatpush.bf16.msrb.mxu3 %v14117_v44  ;;  %v14105_v26 = vor.u32 %v15140_v30, %v14104_v8  ;;  %v13932_v8 = vld [vmem:[%s18634_s19 + $0x38] sm:$0xf]  ;;  %v15096_v30 = vld [vmem:[%s18634_s19 + $0x40] sm:$0xf0] }
 0x88a   : > { %10253 = vmatpush.bf16.msrb.mxu2 %v14013_v0  ;;  %v8738_v41 = vpop.f32.mrf.mxu3  ;;  %10223 = vmatpush.bf16.msra.mxu0 %v14249_v24  ;;  %v9257_v0 = vadd.f32 %v18125_v29, %v9004_v18  ;;  %v15108_v29 = vld [vmem:[%s18634_s19 + $0xa0] sm:$0xf0]  ;;  %v15135_v24 = vld [vmem:[%s18634_s19 + $0x178] sm:$0xf0] }
 0x88b   : > { %v14088_v41 = vld [vmem:[%s18634_s19 + $0x170] sm:$0xf]  ;;  %v13981_v48 = vor.u32 %v15108_v29, %v13980_v51  ;;  %v14157_v51 = vor.u32 %v15151_v10, %v14154_v7  ;;  %v15126_v29 = vld [vmem:[%s18634_s19 + $0x130] sm:$0xf0] }
 0x88c   : > { %v14089_v46 = vor.u32 %v15135_v24, %v14088_v41  ;;  %v15166_v41 = vld [vmem:[%s18634_s19 + $0x274] sm:$0xf]  ;;  %v14214_v24 = vld [vmem:[%s18634_s19 + $0x27c] sm:$0xf0] }
 0x88d   : > { %10214 = vmatpush.bf16.msrb.mxu3 %v14105_v26  ;;  %v14040_v26 = vld [vmem:[%s18634_s19 + $0x110] sm:$0xf] }
 0x88e   : > { %10254 = vmatpush.bf16.msrb.mxu2 %v14001_v4  ;;  %10224 = vmatpush.bf16.msra.mxu0 %v14237_v19 }
 0x891   : > { %10215 = vmatpush.bf16.msrb.mxu3 %v14093_v47 }
 0x892   : > { %10225 = vmatpush.bf16.msra.mxu0 %v14225_v52  ;;  %v15157_v52 = vld [vmem:[%s18634_s19 + $0x22c] sm:$0xf] }
 0x893   : > { %v14181_v11 = vor.u32 %v15157_v52, %v14178_v42  ;;  %v15163_v52 = vld [vmem:[%s18634_s19 + $0x25c] sm:$0xf]  ;;  %v14202_v42 = vld [vmem:[%s18634_s19 + $0x264] sm:$0xf0] }
 0x895   : > { %10260 = vmatpush.bf16.msra.mxu3 %v14181_v11 }
 0x896   : > { %10226 = vmatpush.bf16.msra.mxu0 %v14213_v59 }
 0x89a   : > { %v9465_v53 = vpop.f32.mrf.mxu1  ;;  %10227 = vmatpush.bf16.msra.mxu0 %v14201_v16  ;;  %v14064_v16 = vld [vmem:[%s18634_s19 + $0x140] sm:$0xf] }
 0x89b   : > { %v9508_v40 = vadd.f32 %v9465_v53, %v9256_v33  ;;  %v13969_v33 = vor.u32 %v15105_v34, %v13968_v62  ;;  %v13920_v62 = vld [vmem:[%s18634_s19 + $0x20] sm:$0xf]  ;;  %v14217_v34 = vor.u32 %v15166_v41, %v14214_v24 }
 0x89c   : > { %v18208_v12 = vpop.f32.mrf.mxu0  ;;  %v14256_v24 = vld [vmem:[%s18634_s19 + $0x2c0] sm:$0xf] }
 0x89d   : > { %v9522_v61 = vadd.f32 %v9514_v60, %v9508_v40  ;;  %v15102_v60 = vld [vmem:[%s18634_s19 + $0x70] sm:$0xf0]  ;;  %v9006_v39 = vadd.f32 %v18208_v12, %v18111_v38  ;;  %v9516_v38 = vperm.slane %v18190_v49, 2 }
 0x89e   : > { %10228 = vmatpush.bf16.msra.mxu0 %v14189_v27  ;;  %v15154_v40 = vld [vmem:[%s18634_s19 + $0x214] sm:$0xf]  ;;  %v13957_v44 = vor.u32 %v15102_v60, %v13956_v45  ;;  %v15148_v27 = vld [vmem:[%s18634_s19 + $0x1e4] sm:$0xf]  ;;  %v14205_v45 = vor.u32 %v15163_v52, %v14202_v42  ;;  %v14016_v60 = vld [vmem:[%s18634_s19 + $0xe0] sm:$0xf] }
 0x89f   : > { %v9526_v13 = vmax.f32 %v9522_v61, 0.0  ;;  %v14169_v18 = vor.u32 %v15154_v40, %v14166_v35  ;;  %v14238_v61 = vld [vmem:[%s18634_s19 + $0x2ac] sm:$0xf0]  ;;  %v15153_v52 = vld [vmem:[%s18634_s19 + $0x208] sm:$0xf0] }
 0x8a0   : > { %v9478_v56 = vpop.f32.mrf.mxu2  ;;  %v14190_v40 = vld [vmem:[%s18634_s19 + $0x24c] sm:$0xf0] }
 0x8a1   : > { %v18247_v3 = vpack.c.bf16 %v9526_v13, %v9526_v13  ;;  %v9509_v4 = vadd.f32 %v9478_v56, %v9257_v0  ;;  %v13944_v0 = vld [vmem:[%s18634_s19 + $0x50] sm:$0xf]  ;;  %v14241_v13 = vor.u32 %v15172_v20, %v14238_v61  ;;  %v14065_v56 = vor.u32 %v15129_v17, %v14064_v16  ;;  %10261 = vmatpush.bf16.msra.mxu3 %v14169_v18  ;;  %v15139_v16 = vld [vmem:[%s18634_s19 + $0x19c] sm:$0xf]  ;;  %v14106_v18 = vld [vmem:[%s18634_s19 + $0x1a4] sm:$0xf0] }
 0x8a2   : > { %v18249_v58 = vpop.f32.mrf.mxu3  ;;  %v9467_v37 = vpop.f32.mrf.mxu1  ;;  %10273 = vmatpush.bf16.msrb.mxu0 %v14277_v14  ;;  %v14145_v14 = vor.u32 %v15148_v27, %v14142_v57  ;;  %v14004_v61 = vld [vmem:[%s18634_s19 + $0xc8] sm:$0xf]  ;;  %v15114_v17 = vld [vmem:[%s18634_s19 + $0xd0] sm:$0xf0]  ;;  %v14109_v10 = vor.u32 %v15139_v16, %v14106_v18  ;;  %v14124_v16 = vld [vmem:[%s18634_s19 + $0x1b8] sm:$0xf] }
 0x8a3   : > { %v9523_v63 = vadd.f32 %v9515_v15, %v9509_v4  ;;  %10190 = vmatmul.bf16.vlgmr.msra.gmra.mxu1 %v18247_v3  ;;  %v15099_v15 = vld [vmem:[%s18634_s19 + $0x58] sm:$0xf0]  ;;  %v9005_v27 = vadd.f32 %v18249_v58, %v18134_v50  ;;  %v14268_v50 = vld [vmem:[%s18634_s19 + $0x2d8] sm:$0xf]  ;;  %v15180_v58 = vld [vmem:[%s18634_s19 + $0x2e0] sm:$0xf0] }
 0x8a4   : > { %v9001_v55 = vpop.f32.mrf.mxu0  ;;  %10286 = vmatpush.bf16.msra.mxu1 %v13993_v21  ;;  %v14052_v21 = vld [vmem:[%s18634_s19 + $0x128] sm:$0xf]  ;;  %v13945_v4 = vor.u32 %v15099_v15, %v13944_v0  ;;  %v15136_v0 = vld [vmem:[%s18634_s19 + $0x184] sm:$0xf] }
 0x8a5   : > { %v9527_v19 = vmax.f32 %v9523_v63, 0.0  ;;  %v14053_v37 = vor.u32 %v15126_v29, %v14052_v21  ;;  %10262 = vmatpush.bf16.msra.mxu3 %v14157_v51  ;;  %v15123_v63 = vld [vmem:[%s18634_s19 + $0x118] sm:$0xf0]  ;;  %v13933_v55 = vor.u32 %v15096_v30, %v13932_v8  ;;  %v9517_v21 = vperm.slane %v18190_v49, 3  ;;  %v14184_v49 = vld [vmem:[%s18634_s19 + $0x230] sm:$0xf] }
 0x8a6   : > { %10274 = vmatpush.bf16.msrb.mxu0 %v14265_v9  ;;  %v14041_v32 = vor.u32 %v15123_v63, %v14040_v26  ;;  %v14028_v9 = vld [vmem:[%s18634_s19 + $0xf8] sm:$0xf]  ;;  %v15159_v63 = vld [vmem:[%s18634_s19 + $0x238] sm:$0xf0]  ;;  %v15144_v18 = vld [vmem:[%s18634_s19 + $0x1c0] sm:$0xf0] }
 0x8a7   : > { %v18291_v6 = vpack.c.bf16 %v9527_v19, %v9527_v19  ;;  %v14130_v19 = vld [vmem:[%s18634_s19 + $0x1d4] sm:$0xf0]  ;;  %v14029_v11 = vor.u32 %v15120_v23, %v14028_v9  ;;  %v14244_v23 = vld [vmem:[%s18634_s19 + $0x2a8] sm:$0xf] }
 0x8a8   : > { %v9480_v59 = vpop.f32.mrf.mxu2  ;;  %10287 = vmatpush.bf16.msra.mxu1 %v13981_v48  ;;  %v15093_v48 = vld [vmem:[%s18634_s19 + $0x28] sm:$0xf0]  ;;  %v14133_v22 = vor.u32 %v15145_v1, %v14130_v19  ;;  %v15156_v1 = vld [vmem:[%s18634_s19 + $0x220] sm:$0xf0] }
 0x8a9   : > { %10203 = vmatmul.bf16.vlgmr.msra.gmra.mxu2 %v18291_v6  ;;  %10263 = vmatpush.bf16.msra.mxu3 %v14145_v14  ;;  %v13921_v47 = vor.u32 %v15093_v48, %v13920_v62  ;;  %v15142_v59 = vld [vmem:[%s18634_s19 + $0x1b4] sm:$0xf]  ;;  %v15177_v62 = vld [vmem:[%s18634_s19 + $0x2c8] sm:$0xf0]  ;;  %v14185_v48 = vor.u32 %v15159_v63, %v14184_v49  ;;  %v15185_v49 = vld [vmem:[#allocation22 + $0x8] sm:$0xff] }
 0x8aa   : > { %v8988_v53 = vpop.f32.mrf.mxu3  ;;  %10299 = vmatpush.bf16.msra.mxu2 %v14089_v46  ;;  %10275 = vmatpush.bf16.msrb.mxu0 %v14253_v43  ;;  %v15160_v43 = vld [vmem:[%s18634_s19 + $0x244] sm:$0xf]  ;;  %v14257_v9 = vor.u32 %v15177_v62, %v14256_v24  ;;  %v15197_v63 = vld [vmem:[#allocation22 + $0x68] sm:$0xff]  ;;  %v15196_v24 = vld [vmem:[#allocation22 + $0x60] sm:$0xff] }
 0x8ab   : > { %v13909_v53 = vor.u32 %v15090_v25, %v13908_v2  ;;  %v14193_v35 = vor.u32 %v15160_v43, %v14190_v40  ;;  %v14232_v2 = vld [vmem:[%s18634_s19 + $0x290] sm:$0xf]  ;;  %v15171_v25 = vld [vmem:[%s18634_s19 + $0x298] sm:$0xf0] }
 0x8ac   : > { %10288 = vmatpush.bf16.msra.mxu1 %v13969_v33  ;;  %v14118_v33 = vld [vmem:[%s18634_s19 + $0x1bc] sm:$0xf0]  ;;  %v15147_v43 = vld [vmem:[%s18634_s19 + $0x1d8] sm:$0xf0]  ;;  %v15195_v62 = vld [vmem:[#allocation22 + $0x58] sm:$0xff] }
 0x8ad   : > { %10264 = vmatpush.bf16.msra.mxu3 %v14133_v22  ;;  %v14121_v28 = vor.u32 %v15142_v59, %v14118_v33  ;;  %v15174_v22 = vld [vmem:[%s18634_s19 + $0x2b0] sm:$0xf0]  ;;  %v14233_v33 = vor.u32 %v15171_v25, %v14232_v2 }
 0x8ae   : > { %10300 = vmatpush.bf16.msra.mxu2 %v14077_v31  ;;  %10276 = vmatpush.bf16.msrb.mxu0 %v14241_v13  ;;  %v14017_v31 = vor.u32 %v15117_v54, %v14016_v60  ;;  %v14094_v13 = vld [vmem:[%s18634_s19 + $0x18c] sm:$0xf0]  ;;  %v14245_v42 = vor.u32 %v15174_v22, %v14244_v23  ;;  %v15150_v59 = vld [vmem:[%s18634_s19 + $0x1f0] sm:$0xf0]  ;;  %v14220_v60 = vld [vmem:[%s18634_s19 + $0x278] sm:$0xf] }
 0x8af   : > { %v14097_v15 = vor.u32 %v15136_v0, %v14094_v13  ;;  %v15168_v54 = vld [vmem:[%s18634_s19 + $0x280] sm:$0xf0]  ;;  %v15141_v0 = vld [vmem:[%s18634_s19 + $0x1a8] sm:$0xf0]  ;;  %v10376_v22 = vld [vmem:[#allocation22 + $0x80] sm:$0xf] }
 0x8b0   : > { %10289 = vmatpush.bf16.msra.mxu1 %v13957_v44  ;;  %v14005_v44 = vor.u32 %v15114_v17, %v14004_v61  ;;  %v14221_v40 = vor.u32 %v15168_v54, %v14220_v60  ;;  %v14196_v17 = vld [vmem:[%s18634_s19 + $0x248] sm:$0xf] }
 0x8b1   : > { %10265 = vmatpush.bf16.msra.mxu3 %v14121_v28 }
 0x8b2   : > { %10301 = vmatpush.bf16.msra.mxu2 %v14065_v56  ;;  %10277 = vmatpush.bf16.msrb.mxu0 %v14229_v36 }
 0x8b3   : > { %10242 = vmatmul.bf16.vlgmr.msrb.gmra.mxu1 %v18247_v3 }
 0x8b4   : > { %10290 = vmatpush.bf16.msra.mxu1 %v13945_v4 }
 0x8b5   : > { %10266 = vmatpush.bf16.msra.mxu3 %v14109_v10  ;;  %v15162_v10 = vld [vmem:[%s18634_s19 + $0x250] sm:$0xf0] }
 0x8b6   : > { %10302 = vmatpush.bf16.msra.mxu2 %v14053_v37  ;;  %10278 = vmatpush.bf16.msrb.mxu0 %v14217_v34  ;;  %v14197_v13 = vor.u32 %v15162_v10, %v14196_v17 }
 0x8b8   : > { %10291 = vmatpush.bf16.msra.mxu1 %v13933_v55  ;;  %v14269_v55 = vor.u32 %v15180_v58, %v14268_v50  ;;  %v15186_v50 = vld [vmem:[#allocation22 + $0x10] sm:$0xff] }
 0x8b9   : > { %10255 = vmatmul.bf16.vlgmr.msrb.gmra.mxu2 %v18291_v6  ;;  %10267 = vmatpush.bf16.msra.mxu3 %v14097_v15  ;;  %v15198_v58 = vld [vmem:[#allocation22 + $0x70] sm:$0xff] }
 0x8ba   : > { %10303 = vmatpush.bf16.msra.mxu2 %v14041_v32  ;;  %10279 = vmatpush.bf16.msrb.mxu0 %v14205_v45  ;;  %v14172_v32 = vld [vmem:[%s18634_s19 + $0x218] sm:$0xf] }
 0x8bc   : > { %v9252_v46 = vpop.f32.mrf.mxu0  ;;  %10292 = vmatpush.bf16.msra.mxu1 %v13921_v47  ;;  %v14160_v47 = vld [vmem:[%s18634_s19 + $0x200] sm:$0xf] }
 0x8bd   : > { %v9259_v56 = vadd.f32 %v9252_v46, %v9006_v39  ;;  %v14173_v46 = vor.u32 %v15156_v1, %v14172_v32  ;;  %v14161_v45 = vor.u32 %v15153_v52, %v14160_v47  ;;  %v15138_v39 = vld [vmem:[%s18634_s19 + $0x190] sm:$0xf0]  ;;  %v15193_v32 = vld [vmem:[#allocation22 + $0x48] sm:$0xff] }
 0x8be   : > { %10304 = vmatpush.bf16.msra.mxu2 %v14029_v11  ;;  %10280 = vmatpush.bf16.msrb.mxu0 %v14193_v35  ;;  %v14148_v11 = vld [vmem:[%s18634_s19 + $0x1e8] sm:$0xf]  ;;  %v14208_v35 = vld [vmem:[%s18634_s19 + $0x260] sm:$0xf] }
 0x8bf   : > { %v14149_v28 = vor.u32 %v15150_v59, %v14148_v11 }
 0x8c0   : > { %10293 = vmatpush.bf16.msra.mxu1 %v13909_v53  ;;  %v14136_v53 = vld [vmem:[%s18634_s19 + $0x1d0] sm:$0xf] }
 0x8c2   : > { %v9239_v20 = vpop.f32.mrf.mxu3  ;;  %10305 = vmatpush.bf16.msra.mxu2 %v14017_v31  ;;  %v14137_v31 = vor.u32 %v15147_v43, %v14136_v53 }
 0x8c3   : > { %10294 = vmatmul.bf16.vlgmr.msra.gmra.mxu1 %v18247_v3  ;;  %v14280_v3 = vld [vmem:[%s18634_s19 + $0x2f0] sm:$0xf]  ;;  %v9258_v4 = vadd.f32 %v9239_v20, %v9005_v27  ;;  %v15165_v20 = vld [vmem:[%s18634_s19 + $0x268] sm:$0xf0] }
 0x8c4   : > { %v9254_v7 = vpop.f32.mrf.mxu0  ;;  %v14209_v61 = vor.u32 %v15165_v20, %v14208_v35  ;;  %v15191_v27 = vld [vmem:[#allocation22 + $0x38] sm:$0xff] }
 0x8c5   : > { %v14125_v7 = vor.u32 %v15144_v18, %v14124_v16  ;;  %10484 = vmatpush.bf16.msrb.mxu1 %v15191_v27  ;;  %v15206_v27 = vld [vmem:[%s18638_s23 + $0x30] sm:$0xff] }
 0x8c6   : > { %10306 = vmatpush.bf16.msra.mxu2 %v14005_v44  ;;  %v14112_v44 = vld [vmem:[%s18634_s19 + $0x1a0] sm:$0xf] }
 0x8c7   : > { %v14113_v15 = vor.u32 %v15141_v0, %v14112_v44 }
 0x8c9   : > { %10307 = vmatmul.bf16.vlgmr.msra.gmra.mxu2 %v18291_v6  ;;  %v15183_v6 = vld [vmem:[%s18634_s19 + $0x2f8] sm:$0xf0] }
 0x8ca   : > { %v9241_v5 = vpop.f32.mrf.mxu3  ;;  %v14281_v8 = vor.u32 %v15183_v6, %v14280_v3  ;;  %v15190_v6 = vld [vmem:[#allocation22 + $0x30] sm:$0xff] }
 0x8cb   : > { %v14100_v5 = vld [vmem:[%s18634_s19 + $0x188] sm:$0xf]  ;;  %10485 = vmatpush.bf16.msrb.mxu1 %v15190_v6  ;;  %v15203_v6 = vld [vmem:[%s18638_s23 + $0x18] sm:$0xff] }
 0x8dc   : > { %v9504_v51 = vpop.f32.mrf.mxu0 }
 0x8dd   : > { %v9511_v29 = vadd.f32 %v9504_v51, %v9259_v56  ;;  %v14101_v56 = vor.u32 %v15138_v39, %v14100_v5 }
 0x8df   : > { %v9525_v57 = vadd.f32 %v9517_v21, %v9511_v29 }
 0x8e1   : > { %v9529_v36 = vmax.f32 %v9525_v57, 0.0 }
 0x8e2   : > { %v9491_v12 = vpop.f32.mrf.mxu3 }
 0x8e3   : > { %v18460_v30 = vpack.c.bf16 %v9529_v36, %v9529_v36  ;;  %v9510_v37 = vadd.f32 %v9491_v12, %v9258_v4  ;;  %v15189_v4 = vld [vmem:[#allocation22 + $0x28] sm:$0xff]  ;;  %v15199_v12 = vld [vmem:[#allocation22 + $0x78] sm:$0xff] }
 0x8e4   : > { %v9506_v14 = vpop.f32.mrf.mxu0  ;;  %10486 = vmatpush.bf16.msrb.mxu1 %v15189_v4  ;;  %10497 = vmatpush.bf16.msrb.mxu2 %v15199_v12  ;;  %v15202_v4 = vld [vmem:[%s18638_s23 + $0x10] sm:$0xff] }
 0x8e5   : > { %v9524_v26 = vadd.f32 %v9516_v38, %v9510_v37  ;;  %10229 = vmatmul.bf16.vlgmr.msra.gmra.mxu0 %v18460_v30  ;;  %v15188_v38 = vld [vmem:[#allocation22 + $0x20] sm:$0xff] }
 0x8e6   : > { %10325 = vmatpush.bf16.msra.mxu0 %v14281_v8 }
 0x8e7   : > { %v9528_v41 = vmax.f32 %v9524_v26, 0.0 }
 0x8e8   : > { %10487 = vmatpush.bf16.msrb.mxu1 %v15188_v38  ;;  %10498 = vmatpush.bf16.msrb.mxu2 %v15198_v58  ;;  %v15201_v38 = vld [vmem:[%s18638_s23 + $0x8] sm:$0xff] }
 0x8e9   : > { %v9532_v34 = vpack.c.bf16 %v9528_v41, %v9528_v41  ;;  %v15184_v41 = vld [vmem:[#allocation22] sm:$0xff] }
 0x8ea   : > { %v9493_v19 = vpop.f32.mrf.mxu3  ;;  %10326 = vmatpush.bf16.msra.mxu0 %v14269_v55 }
 0x8eb   : > { %10216 = vmatmul.bf16.vlgmr.msrb.gmra.mxu3 %v9532_v34  ;;  %v15192_v19 = vld [vmem:[#allocation22 + $0x40] sm:$0xff] }
 0x8ec   : > { %10312 = vmatpush.bf16.msrb.mxu3 %v14185_v48  ;;  %10499 = vmatpush.bf16.msrb.mxu2 %v15197_v63  ;;  %v15194_v48 = vld [vmem:[#allocation22 + $0x50] sm:$0xff] }
 0x8ee   : > { %10327 = vmatpush.bf16.msra.mxu0 %v14257_v9  ;;  %v9662_v9 = vld [vmem:[#allocation21] sm:$0x7] }
 0x8ef   : > { %v10176_v23 = vperm.slane %v9662_v9, 0  ;;  %v10177_v53 = vperm.slane %v9662_v9, 1 }
 0x8f0   : > { %10313 = vmatpush.bf16.msrb.mxu3 %v14173_v46  ;;  %10500 = vmatpush.bf16.msrb.mxu2 %v15196_v24  ;;  %v10443_v46 = vunpack.c.l.b16 %v10376_v22  ;;  %v10541_v24 = vld [vmem:[#allocation25] sm:$0x1] }
 0x8f2   : > { %10328 = vmatpush.bf16.msra.mxu0 %v14245_v42  ;;  %v10460_v52 = vpack.c.b16 %v10443_v46, %v10443_v46 }
 0x8f4   : > { %10314 = vmatpush.bf16.msrb.mxu3 %v14161_v45  ;;  %10501 = vmatpush.bf16.msrb.mxu2 %v15195_v62  ;;  %v10482_v2 = vsel %vm2649_vm2, %v10460_v52, 0  ;;  %vm10477_vm2 = vcmask 64512  }
 0x8f5   : > { %10281 = vmatmul.bf16.vlgmr.msrb.gmra.mxu0 %v18460_v30 }
 0x8f6   : > { %10329 = vmatpush.bf16.msra.mxu0 %v14233_v33 }
 0x8f8   : > { %10315 = vmatpush.bf16.msrb.mxu3 %v14149_v28  ;;  %10502 = vmatpush.bf16.msrb.mxu2 %v15194_v48 }
 0x8fa   : > { %10330 = vmatpush.bf16.msra.mxu0 %v14221_v40 }
 0x8fb   : > { %10268 = vmatmul.bf16.vlgmr.msra.gmra.mxu3 %v9532_v34 }
 0x8fc   : > { %10316 = vmatpush.bf16.msrb.mxu3 %v14137_v31  ;;  %10503 = vmatpush.bf16.msrb.mxu2 %v15193_v32 }
 0x8fe   : > { %10331 = vmatpush.bf16.msra.mxu0 %v14209_v61 }
 0x900   : > { %10317 = vmatpush.bf16.msrb.mxu3 %v14125_v7  ;;  %10504 = vmatpush.bf16.msrb.mxu2 %v15192_v19  ;;  %v10178_v7 = vperm.slane %v9662_v9, 2 }
 0x902   : > { %10332 = vmatpush.bf16.msra.mxu0 %v14197_v13 }
 0x904   : > { %10318 = vmatpush.bf16.msrb.mxu3 %v14113_v15 }
 0x905   : > { %10333 = vmatmul.bf16.vlgmr.msra.gmra.mxu0 %v18460_v30  ;;  %v15187_v30 = vld [vmem:[#allocation22 + $0x18] sm:$0xff] }
 0x906   : > { %10488 = vmatpush.bf16.msrb.mxu1 %v15187_v30 }
 0x908   : > { %10319 = vmatpush.bf16.msrb.mxu3 %v14101_v56 }
 0x90a   : > { %10489 = vmatpush.bf16.msrb.mxu1 %v15186_v50  ;;  %v10377_v50 = vld [vmem:[#allocation24] sm:$0x1] }
 0x90b   : > { %10320 = vmatmul.bf16.vlgmr.msrb.gmra.mxu3 %v9532_v34 }
 0x90c   : > { %10517 = vmatpush.bf16.msra.mxu3 %v10482_v2 }
 0x90e   : > { %10490 = vmatpush.bf16.msrb.mxu1 %v15185_v49 }
 0x912   : > { %10491 = vmatpush.bf16.msrb.mxu1 %v15184_v41 }
 0x920   : > { %v10191_v21 = vpop.f32.mrf.mxu1 }
 0x921   : > { %v10192_v42 = vadd.f32 %v10191_v21, %v10176_v23 }
 0x928   : > { %v10193_v51 = vpop.f32.mrf.mxu1 }
 0x92c   : > { %v10204_v29 = vpop.f32.mrf.mxu2 }
 0x92d   : > { %v10205_v25 = vadd.f32 %v10204_v29, %v10192_v42  ;;  %v15207_v29 = vld [vmem:[%s18638_s23 + $0x38] sm:$0xff] }
 0x92e   : > { %10590 = vmatpush.bf16.msrb.mxu0 %v15207_v29 }
 0x930   : > { %v10243_v57 = vpop.f32.mrf.mxu1 }
 0x931   : > { %v10244_v40 = vadd.f32 %v10243_v57, %v10177_v53  ;;  %v15205_v57 = vld [vmem:[%s18638_s23 + $0x28] sm:$0xff] }
 0x932   : > { %10591 = vmatpush.bf16.msrb.mxu0 %v15206_v27 }
 0x934   : > { %v10206_v3 = vpop.f32.mrf.mxu2 }
 0x935   : > { %v15204_v3 = vld [vmem:[%s18638_s23 + $0x20] sm:$0xff] }
 0x936   : > { %10592 = vmatpush.bf16.msrb.mxu0 %v15205_v57 }
 0x938   : > { %v10245_v36 = vpop.f32.mrf.mxu1 }
 0x93a   : > { %10593 = vmatpush.bf16.msrb.mxu0 %v15204_v3 }
 0x93c   : > { %v10256_v8 = vpop.f32.mrf.mxu2 }
 0x93d   : > { %v10257_v35 = vadd.f32 %v10256_v8, %v10244_v40  ;;  %v15200_v8 = vld [vmem:[%s18638_s23] sm:$0xff] }
 0x93e   : > { %10594 = vmatpush.bf16.msrb.mxu0 %v15203_v6 }
 0x940   : > { %v10295_v37 = vpop.f32.mrf.mxu1 }
 0x941   : > { %v10296_v0 = vadd.f32 %v10295_v37, %v10178_v7 }
 0x942   : > { %10595 = vmatpush.bf16.msrb.mxu0 %v15202_v4 }
 0x944   : > { %v10258_v14 = vpop.f32.mrf.mxu2 }
 0x946   : > { %10596 = vmatpush.bf16.msrb.mxu0 %v15201_v38 }
 0x948   : > { %v10297_v26 = vpop.f32.mrf.mxu1 }
 0x94a   : > { %10597 = vmatpush.bf16.msrb.mxu0 %v15200_v8 }
 0x94c   : > { %v10308_v55 = vpop.f32.mrf.mxu2 }
 0x94d   : > { %v10309_v13 = vadd.f32 %v10308_v55, %v10296_v0 }
 0x954   : > { %v10310_v34 = vpop.f32.mrf.mxu2 }
 0x962   : > { %v10230_v1 = vpop.f32.mrf.mxu0 }
 0x96a   : > { %v10232_v47 = vpop.f32.mrf.mxu0 }
 0x96e   : > { %v10217_v45 = vpop.f32.mrf.mxu3 }
 0x96f   : > { %v10218_v11 = vadd.f32 %v10217_v45, %v10205_v25 }
 0x971   : > { %v10231_v59 = vadd.f32 %v10230_v1, %v10218_v11 }
 0x972   : > { %v10282_v33 = vpop.f32.mrf.mxu0 }
 0x973   : > { %v10338_v60 = vmax.f32 %v10231_v59, 0.0 }
 0x975   : > { %v10341_v54 = vpack.c.bf16 %v10338_v60, %v10338_v60 }
 0x976   : > { %v10219_v28 = vpop.f32.mrf.mxu3 }
 0x977   : > { %10492 = vmatmul.bf16.vlgmr.msrb.gmra.mxu1 %v10341_v54 }
 0x97a   : > { %v10284_v43 = vpop.f32.mrf.mxu0 }
 0x97e   : > { %v10269_v20 = vpop.f32.mrf.mxu3 }
 0x97f   : > { %v10270_v31 = vadd.f32 %v10269_v20, %v10257_v35 }
 0x981   : > { %v10283_v16 = vadd.f32 %v10282_v33, %v10270_v31 }
 0x982   : > { %v10334_v18 = vpop.f32.mrf.mxu0 }
 0x983   : > { %v10339_v61 = vmax.f32 %v10283_v16, 0.0 }
 0x985   : > { %v10342_v17 = vpack.c.bf16 %v10339_v61, %v10339_v61 }
 0x986   : > { %v10271_v10 = vpop.f32.mrf.mxu3 }
 0x987   : > { %10505 = vmatmul.bf16.vlgmr.msrb.gmra.mxu2 %v10342_v17 }
 0x98a   : > { %v10336_v44 = vpop.f32.mrf.mxu0 }
 0x98e   : > { %v10321_v15 = vpop.f32.mrf.mxu3 }
 0x98f   : > { %v10322_v5 = vadd.f32 %v10321_v15, %v10309_v13 }
 0x991   : > { %v10335_v39 = vadd.f32 %v10334_v18, %v10322_v5 }
 0x993   : > { %v10340_v56 = vmax.f32 %v10335_v39, 0.0 }
 0x995   : > { %v10343_v21 = vpack.c.bf16 %v10340_v56, %v10340_v56 }
 0x996   : > { %v10323_v51 = vpop.f32.mrf.mxu3 }
 0x997   : > { %14346 = vmatmul.msk.bf16.vlgmr.msra.gmra.mxu3 %vm10477_vm2, %v10343_v21 }
 0x9f4   : > { %v10493_v36 = vpop.f32.mrf.mxu1 }
 0x9f5   : > { %v10494_v58 = vadd.f32 %v10493_v36, %v10377_v50 }
 0x9fc   : > { %v10495_v12 = vpop.f32.mrf.mxu1 }
 0xa0a   : > { %v10506_v30 = vpop.f32.mrf.mxu2 }
 0xa0b   : > { %v10507_v14 = vadd.f32 %v10506_v30, %v10494_v58 }
 0xa12   : > { %v10508_v37 = vpop.f32.mrf.mxu2 }
 0xa1a   : > { %v10519_v26 = vpop.f32.mrf.mxu3 }
 0xa1b   : > { %v10520_v49 = vadd.f32 %v10519_v26, %v10507_v14 }
 0xa1d   : > { %v10523_v63 = vmax.f32 %v10520_v49, 0.0 }
 0xa1f   : > { %v10524_v55 = vpack.c.bf16 %v10523_v63, %v10523_v63 }
 0xa21   : > { %10598 = vmatmul.bf16.vlgmr.msrb.gmra.mxu0 %v10524_v55 }
 0xa22   : > { %v10521_v41 = vpop.f32.mrf.mxu3 }
 0xa9e   : > { %v10599_v62 = vpop.f32.mrf.mxu0 }
 0xa9f   : > { %v10600_v48 = vadd.f32 %v10599_v62, %v10541_v24 }
 0xaa1   : > { %v10604_v34 = vsel %vm10603_vm5, %v10600_v48, -inf }
 0xaa2   : > { %10605 = vmax.xlane.f32.xlu0 %v10604_v34 }
 0xaa6   : > { %v10601_v32 = vpop.f32.mrf.mxu0 }
 0xb15   : > { %v10606_v1 = vpop.xlane.xlu0 %10605 }
 0xb16   : > { %v10607_v19 = vsub.f32 %v10600_v48, %v10606_v1 }
 0xb18   : > { %v10608_v9 = vmul.f32 1.442695, %v10607_v19 }
 0xb1a   : > { %15469 = vpow2.f32 %v10608_v9 }
 0xb20   : > { %v15470_v23 = vpop.eup %15469 }
 0xb21   : > { %v10610_v22 = vsel %vm10603_vm5, %v15470_v23, 0.0 }
 0xb22   : > { %10611 = vadd.xlane.f32.xlu1 %v10610_v22 }
 0xb95   : > { %v10612_v46 = vpop.xlane.xlu1 %10611 }
 0xb96   : > { %15471 = vrcp.f32 %v10612_v46  ;;  %v10624_v2 = vand.u32 2147483648, %v10612_v46  ;;  %v10622_v45 = vand.u32 2147483647, %v10612_v46  ;;  %vm10618_vm7 = vweird.f32 %v10612_v46 }
 0xb98   : > { %v10625_v59 = vor.u32 1.1754944e-38, %v10624_v2  ;;  %vm10623_vm9 = vcmp.eq.f32.partialorder %v10622_v45, 8.507059e+37 }
 0xb9c   : > { %v15472_v47 = vpop.eup %15471 }
 0xb9d   : > { %v10614_v52 = vmul.f32 %v15472_v47, %v10612_v46  ;;  %vm10619_vm6 = vweird.f32 %v15472_v47 }
 0xb9e   : > { %vm10620_vm8 = vmor %vm10618_vm7, %vm10619_vm6 }
 0xb9f   : > { %v10615_v42 = vsub.f32 1.0, %v10614_v52 }
 0xba1   : > { %v10616_v25 = vmul.f32 %v15472_v47, %v10615_v42 }
 0xba3   : > { %v10617_v11 = vadd.f32 %v15472_v47, %v10616_v25 }
 0xba5   : > { %v10621_v33 = vsel %vm10620_vm8, %v15472_v47, %v10617_v11 }
 0xba6   : > { %v10626_v60 = vsel %vm10623_vm9, %v10625_v59, %v10621_v33 }
 0xba7   : > { %v10627_v54 = vmul.f32 %v15470_v23, %v10626_v60 }
 0xba9   : > { %10628 = vst.msk [vmem:[%s1015_s11] sm:$0x1] %vm10603_vm5, %v10627_v54 }
 0xbaa   : > { %15921 = shalt.err (!%p15918_p8)
}
 0xbab   : > { %15266 = dma.vmem_to_hbm [thread:$0]  (%p16181_p5), %s10641_s26, 16, %s10643_s5, %s10630_s15  }
 0xbac PF: > { %s18759_s3 = sld [smem:[#allocation39_spill]] }
 0xbad   : > { %s18760_s8 = sld [smem:[#allocation37_spill]] }
 0xbb2   : > { %p15343_p9 = scmp.ge.s32.totalorder %s18759_s3, 2 }
 0xbb3   : > { %s10654_s4 = sand.u32 1, %s18760_s8  }
 0xbb4   : > { %p15312_p10 = pnand %p15343_p9, %p16185_p6  ;;  %s10655_s11 = scalar_lea.sflag [#allocation6], %s10654_s4 }
 0xbb6   : > { %p15313_p11 = pneg %p15312_p10 }
 0xbb8   : > { %15971 = dma.done.wait (%p15313_p11), %s10655_s11, 16  }
 0xbb9   : > { %15973 = vsyncadd (%p15313_p11), %s10655_s11, 4294967280  ;;  %s18762_s26 = sld [smem:[#allocation40_spill]]  ;;  %s18765_s30 = smov %s15980_s7 }
 0xbba   : > { %s18763_s27 = sld [smem:[#allocation38_spill]] }
 0xbbb   : > { %s18764_s3 = sld [smem:[#allocation41_spill]] }
 0xbbf   : > { %p45_p12 = scmp.ge.s32.totalorder %s18762_s26, 4  }
 0xbc0   : > { %s18766_s7 = smov %s18763_s27 }
 0xbc1   :  { %47 = sbr.rel (!%p45_p12) target bundleno = 35 (0x23), region = 257 }
 0xbc6   :  { %10660 = vsyncpa [#allocation5], 1 }
 0xbc7   :  { %10662 = vsyncpa [#allocation5 + $0x1], 1 }
 0xbc8   :  { %10663 = vsyncpa [#allocation8], 1 }
 0xbc9   :  { %10664 = vsyncpa [#allocation11], 1 }
 0xbca   :  { %10665 = vsyncpa [#allocation14], 1 }
 0xbcb   :  { %10666 = vsyncpa [#allocation17], 1 }
 0xbcc   :  { %10667 = vsyncpa [#allocation20], 1 }
 0xbcd   :  { %10668 = vsyncpa [#allocation23], 1 }
 0xbce   :  { %10669 = vsyncpa [#allocation26], 1 }
 0xbcf   :  { %10670 = vsyncpa [#allocation6], 1 }
 0xbd0   :  { %10672 = vsyncpa [#allocation6 + $0x1], 1 }

</bundles_post_ra>
